<compile_context>
chip_gen: v5e
topology: v5e:2x2
jax: 0.10.0
libtpu: 0.0.40
codegen_flags: <defaults>
</compile_context>

<pallas_src>
import jax
import jax.numpy as jnp
from jax.experimental import pallas as pl
from jax.experimental.pallas import tpu as pltpu


OUT_PAD = 128  # lane-dense width for the final (padded) output block


# ----------------------------- Pallas kernel --------------------------------

def decoder_kernel(x_ref, wih1_ref, whh1_ref, b1_ref, wih2_ref, whh2_ref,
                   b2_ref, wout_ref, bout_ref, out_ref, ys_ref):
    h1_dim = whh1_ref.shape[0]          # = input_dim
    h2_dim = whh2_ref.shape[0]          # = 2 * input_dim
    seq_len = out_ref.shape[0]
    cdt = wih1_ref.dtype                # matmul operand dtype (bfloat16)

    # Load loop-invariant operands once (they stay VMEM-resident; avoids
    # re-emitting the loads in every unrolled iteration).
    whh1 = whh1_ref[...]
    wih2 = wih2_ref[...]
    whh2 = whh2_ref[...]
    b2 = b2_ref[...]

    # Hoisted layer-1 input projection: the decoder repeats the same input row
    # at every timestep, so this whole term (incl. bias) is loop-invariant.
    xproj1 = (jnp.dot(x_ref[...].astype(cdt), wih1_ref[...],
                      preferred_element_type=jnp.float32) + b1_ref[...])  # (1, 4*h1)

    def lstm_gates(gates, hdim, c):
        # hdim is a multiple of 128, so every slice is lane-aligned (whole vregs).
        i = jax.nn.sigmoid(gates[:, 0 * hdim:1 * hdim])
        f = jax.nn.sigmoid(gates[:, 1 * hdim:2 * hdim])
        g = jnp.tanh(gates[:, 2 * hdim:3 * hdim])
        o = jax.nn.sigmoid(gates[:, 3 * hdim:4 * hdim])
        c_new = f * c + i * g
        h_new = o * jnp.tanh(c_new)
        return h_new, c_new

    h1 = jnp.zeros((1, h1_dim), jnp.float32)
    c1 = jnp.zeros((1, h1_dim), jnp.float32)
    h2 = jnp.zeros((1, h2_dim), jnp.float32)
    c2 = jnp.zeros((1, h2_dim), jnp.float32)

    # Fully unrolled time loop (seq_len is a small static constant); equivalent
    # to lax.fori_loop(..., unroll=True) and gives the scheduler cross-step
    # visibility so EUP (sigmoid/tanh) work overlaps the next MXU push.
    for t in range(seq_len):
        # Both recurrent matmuls depend only on step-(t-1) state -> issued
        # back-to-back at the top of the step; neither sits behind this step's
        # gate nonlinearities.
        g1 = xproj1 + jnp.dot(h1.astype(cdt), whh1,
                              preferred_element_type=jnp.float32)
        g2_rec = jnp.dot(h2.astype(cdt), whh2,
                         preferred_element_type=jnp.float32) + b2

        h1, c1 = lstm_gates(g1, h1_dim, c1)

        # Only the smaller input-projection matmul waits on layer-1's EUP work.
        g2 = g2_rec + jnp.dot(h1.astype(cdt), wih2,
                              preferred_element_type=jnp.float32)
        h2, c2 = lstm_gates(g2, h2_dim, c2)

        ys_ref[pl.ds(t, 1), :] = h2                            # collect rnn2 output

    # Output Linear over ALL timesteps as one (seq_len, h2) @ (h2, 128) matmul;
    # the 128-wide (padded) output makes the final store lane-dense.
    out_ref[...] = (jnp.dot(ys_ref[...].astype(cdt), wout_ref[...],
                            preferred_element_type=jnp.float32) + bout_ref[...])


# -------------------------------- wrapper ------------------------------------

def decoder_forward(x, params, seq_len, input_dim, n_features):
    assert n_features == 1, "torch module's repeat/reshape implies n_features == 1"
    wih1, whh1, b1, wih2, whh2, b2, wout, bout = params
    h1d, h2d = input_dim, 2 * input_dim

    x_row = x.reshape(1, input_dim).astype(jnp.float32)

    # bf16 matmul operands (MXU-native on all targets); biases / state stay f32.
    cdt = jnp.bfloat16
    wih1_c = wih1.astype(cdt)
    whh1_c = whh1.astype(cdt)
    wih2_c = wih2.astype(cdt)
    whh2_c = whh2.astype(cdt)

    # Pad the output head to a lane-dense 128-wide block; slice in the wrapper.
    wout_p = jnp.zeros((h2d, OUT_PAD), jnp.float32).at[:, :n_features].set(wout).astype(cdt)
    bout_p = jnp.zeros((1, OUT_PAD), jnp.float32).at[:, :n_features].set(bout)

    flops = int(2 * input_dim * 4 * h1d
                + seq_len * (2 * h1d * 4 * h1d
                             + 2 * h2d * 4 * h2d
                             + 2 * h1d * 4 * h2d)
                + 2 * seq_len * h2d * OUT_PAD)
    transcendentals = int(seq_len * 5 * (h1d + h2d))
    bytes_accessed = int(sum(a.size * a.dtype.itemsize
                             for a in (x_row, wih1_c, whh1_c, b1, wih2_c, whh2_c,
                                       b2, wout_p, bout_p))
                         + seq_len * OUT_PAD * 4)

    out = pl.pallas_call(
        decoder_kernel,
        out_shape=jax.ShapeDtypeStruct((seq_len, OUT_PAD), jnp.float32),
        in_specs=[pl.BlockSpec(memory_space=pltpu.MemorySpace.VMEM)] * 9,
        out_specs=pl.BlockSpec(memory_space=pltpu.MemorySpace.VMEM),
        scratch_shapes=[pltpu.VMEM((seq_len, h2d), jnp.float32)],
        cost_estimate=pl.CostEstimate(flops=flops,
                                      transcendentals=transcendentals,
                                      bytes_accessed=bytes_accessed),
    )(x_row, wih1_c, whh1_c, b1, wih2_c, whh2_c, b2, wout_p, bout_p)

    return out[:, :n_features]                                  # (seq_len, n_features)


# ------------------------ deterministic parameter init -----------------------

def init_params(key, input_dim, n_features):
    h1d = input_dim
    h2d = 2 * input_dim
    ks = jax.random.split(key, 10)

    def unif(k, shape, fan):
        b = 1.0 / (float(fan) ** 0.5)
        return jax.random.uniform(k, shape, jnp.float32, -b, b)

    # stored transposed w.r.t. PyTorch: (in_dim, 4*hidden); gate order [i,f,g,o]
    wih1 = unif(ks[0], (input_dim, 4 * h1d), h1d)
    whh1 = unif(ks[1], (h1d, 4 * h1d), h1d)
    b1 = unif(ks[2], (1, 4 * h1d), h1d) + unif(ks[3], (1, 4 * h1d), h1d)   # b_ih + b_hh
    wih2 = unif(ks[4], (h1d, 4 * h2d), h2d)
    whh2 = unif(ks[5], (h2d, 4 * h2d), h2d)
    b2 = unif(ks[6], (1, 4 * h2d), h2d) + unif(ks[7], (1, 4 * h2d), h2d)
    wout = unif(ks[8], (h2d, n_features), h2d)                              # Linear
    bout = unif(ks[9], (1, n_features), h2d)
    return (wih1, whh1, b1, wih2, whh2, b2, wout, bout)


# ------------------------------ pure-JAX reference ---------------------------

def decoder_reference(x, params, seq_len, input_dim, n_features):
    wih1, whh1, b1, wih2, whh2, b2, wout, bout = params
    h1d, h2d = input_dim, 2 * input_dim

    # torch: x.repeat(seq_len, n_features).reshape(n_features, seq_len, input_dim)
    xs = jnp.tile(x.reshape(1, input_dim), (seq_len, n_features)
                  ).reshape(n_features, seq_len, input_dim)[0]

    def cell(x_t, h, c, wih, whh, b, hdim):
        g = x_t @ wih + h @ whh + b
        i = jax.nn.sigmoid(g[:, 0 * hdim:1 * hdim])
        f = jax.nn.sigmoid(g[:, 1 * hdim:2 * hdim])
        gg = jnp.tanh(g[:, 2 * hdim:3 * hdim])
        o = jax.nn.sigmoid(g[:, 3 * hdim:4 * hdim])
        c = f * c + i * gg
        h = o * jnp.tanh(c)
        return h, c

    h1 = jnp.zeros((1, h1d)); c1 = jnp.zeros((1, h1d))
    h2 = jnp.zeros((1, h2d)); c2 = jnp.zeros((1, h2d))
    ys = []
    for t in range(seq_len):
        h1, c1 = cell(xs[t:t + 1], h1, c1, wih1, whh1, b1, h1d)
        h2, c2 = cell(h1, h2, c2, wih2, whh2, b2, h2d)
        ys.append(h2)
    y = jnp.concatenate(ys, axis=0)          # (seq_len, h2d)
    return y @ wout + bout                   # (seq_len, n_features)


# ---------------------------------- main --------------------------------------

if __name__ == "__main__":
    SEQ_LEN = 8
    INPUT_DIM = 128      # lane-aligned small stand-in for the module's DIM=256
    N_FEATURES = 1       # module's reshape requires n_features == 1

    key = jax.random.PRNGKey(0)
    kx, kp = jax.random.split(key)
    x = jax.random.normal(kx, (1, INPUT_DIM), jnp.float32)
    params = init_params(kp, INPUT_DIM, N_FEATURES)

    out = decoder_forward(x, params, SEQ_LEN, INPUT_DIM, N_FEATURES)
    out = jax.block_until_ready(out)

    ref = decoder_reference(x, params, SEQ_LEN, INPUT_DIM, N_FEATURES)
    assert out.shape == (SEQ_LEN, N_FEATURES)
    # bf16 MXU weights vs f32 reference -> loosened tolerance
    assert jnp.allclose(out, ref, atol=5e-2, rtol=5e-2), \
        float(jnp.max(jnp.abs(out - ref)))

    print("KERNEL_OK")
</pallas_src>

<mosaic_0001>
module attributes {stable_mosaic.version = 11 : i64} {
  func.func @decoder_kernel(%arg0: memref<1x128xf32, #tpu.memory_space<vmem>>, %arg1: memref<128x512xbf16, #tpu.memory_space<vmem>>, %arg2: memref<128x512xbf16, #tpu.memory_space<vmem>>, %arg3: memref<1x512xf32, #tpu.memory_space<vmem>>, %arg4: memref<128x1024xbf16, #tpu.memory_space<vmem>>, %arg5: memref<256x1024xbf16, #tpu.memory_space<vmem>>, %arg6: memref<1x1024xf32, #tpu.memory_space<vmem>>, %arg7: memref<256x128xbf16, #tpu.memory_space<vmem>>, %arg8: memref<1x128xf32, #tpu.memory_space<vmem>>, %arg9: memref<8x128xf32, #tpu.memory_space<vmem>>, %arg10: memref<8x256xf32, #tpu.memory_space<vmem>>) attributes {dimension_semantics = [], scalar_prefetch = 0 : i64, scratch_operands = 1 : i64, tpu.core_type = #tpu.core_type<tc>} {
    %c0 = arith.constant 0 : index
    %c0_0 = arith.constant 0 : index
    %0 = vector.load %arg2[%c0, %c0_0] : memref<128x512xbf16, #tpu.memory_space<vmem>>, vector<128x512xbf16>
    %c0_1 = arith.constant 0 : index
    %c0_2 = arith.constant 0 : index
    %1 = vector.load %arg4[%c0_1, %c0_2] : memref<128x1024xbf16, #tpu.memory_space<vmem>>, vector<128x1024xbf16>
    %c0_3 = arith.constant 0 : index
    %c0_4 = arith.constant 0 : index
    %2 = vector.load %arg5[%c0_3, %c0_4] : memref<256x1024xbf16, #tpu.memory_space<vmem>>, vector<256x1024xbf16>
    %c0_5 = arith.constant 0 : index
    %c0_6 = arith.constant 0 : index
    %3 = vector.load %arg6[%c0_5, %c0_6] : memref<1x1024xf32, #tpu.memory_space<vmem>>, vector<1x1024xf32>
    %c0_7 = arith.constant 0 : index
    %c0_8 = arith.constant 0 : index
    %4 = vector.load %arg0[%c0_7, %c0_8] : memref<1x128xf32, #tpu.memory_space<vmem>>, vector<1x128xf32>
    %5 = arith.truncf %4 : vector<1x128xf32> to vector<1x128xbf16>
    %c0_9 = arith.constant 0 : index
    %c0_10 = arith.constant 0 : index
    %6 = vector.load %arg1[%c0_9, %c0_10] : memref<128x512xbf16, #tpu.memory_space<vmem>>, vector<128x512xbf16>
    %cst = arith.constant dense<0.000000e+00> : vector<1x512xf32>
    %7 = tpu.matmul %5, %6, %cst {dimension_numbers = #tpu.dot_dimension_numbers<[1], [0], [0], [1], [0, 0, 1, 1], [], []>} : vector<1x128xbf16>, vector<128x512xbf16>, vector<1x512xf32> -> vector<1x512xf32>
    %c0_11 = arith.constant 0 : index
    %c0_12 = arith.constant 0 : index
    %8 = vector.load %arg3[%c0_11, %c0_12] : memref<1x512xf32, #tpu.memory_space<vmem>>, vector<1x512xf32>
    %9 = arith.addf %7, %8 : vector<1x512xf32>
    %cst_13 = arith.constant 0.000000e+00 : f32
    %10 = vector.broadcast %cst_13 : f32 to vector<1x128xf32>
    %cst_14 = arith.constant 0.000000e+00 : f32
    %11 = vector.broadcast %cst_14 : f32 to vector<1x128xf32>
    %cst_15 = arith.constant 0.000000e+00 : f32
    %12 = vector.broadcast %cst_15 : f32 to vector<1x256xf32>
    %cst_16 = arith.constant 0.000000e+00 : f32
    %13 = vector.broadcast %cst_16 : f32 to vector<1x256xf32>
    %14 = arith.truncf %10 : vector<1x128xf32> to vector<1x128xbf16>
    %cst_17 = arith.constant dense<0.000000e+00> : vector<1x512xf32>
    %15 = tpu.matmul %14, %0, %cst_17 {dimension_numbers = #tpu.dot_dimension_numbers<[1], [0], [0], [1], [0, 0, 1, 1], [], []>} : vector<1x128xbf16>, vector<128x512xbf16>, vector<1x512xf32> -> vector<1x512xf32>
    %16 = arith.addf %9, %15 : vector<1x512xf32>
    %17 = arith.truncf %12 : vector<1x256xf32> to vector<1x256xbf16>
    %cst_18 = arith.constant dense<0.000000e+00> : vector<1x1024xf32>
    %18 = tpu.matmul %17, %2, %cst_18 {dimension_numbers = #tpu.dot_dimension_numbers<[1], [0], [0], [1], [0, 0, 1, 1], [], []>} : vector<1x256xbf16>, vector<256x1024xbf16>, vector<1x1024xf32> -> vector<1x1024xf32>
    %19 = arith.addf %18, %3 : vector<1x1024xf32>
    %20 = vector.extract_strided_slice %16 {offsets = [0, 0], sizes = [1, 128], strides = [1, 1]} : vector<1x512xf32> to vector<1x128xf32>
    %21 = arith.negf %20 : vector<1x128xf32>
    %22 = math.exp %21 : vector<1x128xf32>
    %cst_19 = arith.constant 1.000000e+00 : f32
    %23 = vector.broadcast %cst_19 : f32 to vector<1x128xf32>
    %24 = arith.addf %23, %22 : vector<1x128xf32>
    %25 = arith.divf %23, %24 : vector<1x128xf32>
    %26 = vector.extract_strided_slice %16 {offsets = [0, 128], sizes = [1, 128], strides = [1, 1]} : vector<1x512xf32> to vector<1x128xf32>
    %27 = arith.negf %26 : vector<1x128xf32>
    %28 = math.exp %27 : vector<1x128xf32>
    %cst_20 = arith.constant 1.000000e+00 : f32
    %29 = vector.broadcast %cst_20 : f32 to vector<1x128xf32>
    %30 = arith.addf %29, %28 : vector<1x128xf32>
    %31 = arith.divf %29, %30 : vector<1x128xf32>
    %32 = vector.extract_strided_slice %16 {offsets = [0, 256], sizes = [1, 128], strides = [1, 1]} : vector<1x512xf32> to vector<1x128xf32>
    %33 = math.tanh %32 : vector<1x128xf32>
    %34 = vector.extract_strided_slice %16 {offsets = [0, 384], sizes = [1, 128], strides = [1, 1]} : vector<1x512xf32> to vector<1x128xf32>
    %35 = arith.negf %34 : vector<1x128xf32>
    %36 = math.exp %35 : vector<1x128xf32>
    %cst_21 = arith.constant 1.000000e+00 : f32
    %37 = vector.broadcast %cst_21 : f32 to vector<1x128xf32>
    %38 = arith.addf %37, %36 : vector<1x128xf32>
    %39 = arith.divf %37, %38 : vector<1x128xf32>
    %40 = arith.mulf %31, %11 : vector<1x128xf32>
    %41 = arith.mulf %25, %33 : vector<1x128xf32>
    %42 = arith.addf %40, %41 : vector<1x128xf32>
    %43 = math.tanh %42 : vector<1x128xf32>
    %44 = arith.mulf %39, %43 : vector<1x128xf32>
    %45 = arith.truncf %44 : vector<1x128xf32> to vector<1x128xbf16>
    %cst_22 = arith.constant dense<0.000000e+00> : vector<1x1024xf32>
    %46 = tpu.matmul %45, %1, %cst_22 {dimension_numbers = #tpu.dot_dimension_numbers<[1], [0], [0], [1], [0, 0, 1, 1], [], []>} : vector<1x128xbf16>, vector<128x1024xbf16>, vector<1x1024xf32> -> vector<1x1024xf32>
    %47 = arith.addf %19, %46 : vector<1x1024xf32>
    %48 = vector.extract_strided_slice %47 {offsets = [0, 0], sizes = [1, 256], strides = [1, 1]} : vector<1x1024xf32> to vector<1x256xf32>
    %49 = arith.negf %48 : vector<1x256xf32>
    %50 = math.exp %49 : vector<1x256xf32>
    %cst_23 = arith.constant 1.000000e+00 : f32
    %51 = vector.broadcast %cst_23 : f32 to vector<1x256xf32>
    %52 = arith.addf %51, %50 : vector<1x256xf32>
    %53 = arith.divf %51, %52 : vector<1x256xf32>
    %54 = vector.extract_strided_slice %47 {offsets = [0, 256], sizes = [1, 256], strides = [1, 1]} : vector<1x1024xf32> to vector<1x256xf32>
    %55 = arith.negf %54 : vector<1x256xf32>
    %56 = math.exp %55 : vector<1x256xf32>
    %cst_24 = arith.constant 1.000000e+00 : f32
    %57 = vector.broadcast %cst_24 : f32 to vector<1x256xf32>
    %58 = arith.addf %57, %56 : vector<1x256xf32>
    %59 = arith.divf %57, %58 : vector<1x256xf32>
    %60 = vector.extract_strided_slice %47 {offsets = [0, 512], sizes = [1, 256], strides = [1, 1]} : vector<1x1024xf32> to vector<1x256xf32>
    %61 = math.tanh %60 : vector<1x256xf32>
    %62 = vector.extract_strided_slice %47 {offsets = [0, 768], sizes = [1, 256], strides = [1, 1]} : vector<1x1024xf32> to vector<1x256xf32>
    %63 = arith.negf %62 : vector<1x256xf32>
    %64 = math.exp %63 : vector<1x256xf32>
    %cst_25 = arith.constant 1.000000e+00 : f32
    %65 = vector.broadcast %cst_25 : f32 to vector<1x256xf32>
    %66 = arith.addf %65, %64 : vector<1x256xf32>
    %67 = arith.divf %65, %66 : vector<1x256xf32>
    %68 = arith.mulf %59, %13 : vector<1x256xf32>
    %69 = arith.mulf %53, %61 : vector<1x256xf32>
    %70 = arith.addf %68, %69 : vector<1x256xf32>
    %71 = math.tanh %70 : vector<1x256xf32>
    %72 = arith.mulf %67, %71 : vector<1x256xf32>
    %c0_26 = arith.constant 0 : index
    %c0_27 = arith.constant 0 : index
    %73 = vector.load %arg10[%c0_26, %c0_27] : memref<8x256xf32, #tpu.memory_space<vmem>>, vector<1x256xf32>
    tpu.vector_store %arg10[%c0_26, %c0_27], %72 {strides = array<i32>} : memref<8x256xf32, #tpu.memory_space<vmem>>, vector<1x256xf32>,
    %74 = arith.truncf %44 : vector<1x128xf32> to vector<1x128xbf16>
    %cst_28 = arith.constant dense<0.000000e+00> : vector<1x512xf32>
    %75 = tpu.matmul %74, %0, %cst_28 {dimension_numbers = #tpu.dot_dimension_numbers<[1], [0], [0], [1], [0, 0, 1, 1], [], []>} : vector<1x128xbf16>, vector<128x512xbf16>, vector<1x512xf32> -> vector<1x512xf32>
    %76 = arith.addf %9, %75 : vector<1x512xf32>
    %77 = arith.truncf %72 : vector<1x256xf32> to vector<1x256xbf16>
    %cst_29 = arith.constant dense<0.000000e+00> : vector<1x1024xf32>
    %78 = tpu.matmul %77, %2, %cst_29 {dimension_numbers = #tpu.dot_dimension_numbers<[1], [0], [0], [1], [0, 0, 1, 1], [], []>} : vector<1x256xbf16>, vector<256x1024xbf16>, vector<1x1024xf32> -> vector<1x1024xf32>
    %79 = arith.addf %78, %3 : vector<1x1024xf32>
    %80 = vector.extract_strided_slice %76 {offsets = [0, 0], sizes = [1, 128], strides = [1, 1]} : vector<1x512xf32> to vector<1x128xf32>
    %81 = arith.negf %80 : vector<1x128xf32>
    %82 = math.exp %81 : vector<1x128xf32>
    %cst_30 = arith.constant 1.000000e+00 : f32
    %83 = vector.broadcast %cst_30 : f32 to vector<1x128xf32>
    %84 = arith.addf %83, %82 : vector<1x128xf32>
    %85 = arith.divf %83, %84 : vector<1x128xf32>
    %86 = vector.extract_strided_slice %76 {offsets = [0, 128], sizes = [1, 128], strides = [1, 1]} : vector<1x512xf32> to vector<1x128xf32>
    %87 = arith.negf %86 : vector<1x128xf32>
    %88 = math.exp %87 : vector<1x128xf32>
    %cst_31 = arith.constant 1.000000e+00 : f32
    %89 = vector.broadcast %cst_31 : f32 to vector<1x128xf32>
    %90 = arith.addf %89, %88 : vector<1x128xf32>
    %91 = arith.divf %89, %90 : vector<1x128xf32>
    %92 = vector.extract_strided_slice %76 {offsets = [0, 256], sizes = [1, 128], strides = [1, 1]} : vector<1x512xf32> to vector<1x128xf32>
    %93 = math.tanh %92 : vector<1x128xf32>
    %94 = vector.extract_strided_slice %76 {offsets = [0, 384], sizes = [1, 128], strides = [1, 1]} : vector<1x512xf32> to vector<1x128xf32>
    %95 = arith.negf %94 : vector<1x128xf32>
    %96 = math.exp %95 : vector<1x128xf32>
    %cst_32 = arith.constant 1.000000e+00 : f32
    %97 = vector.broadcast %cst_32 : f32 to vector<1x128xf32>
    %98 = arith.addf %97, %96 : vector<1x128xf32>
    %99 = arith.divf %97, %98 : vector<1x128xf32>
    %100 = arith.mulf %91, %42 : vector<1x128xf32>
    %101 = arith.mulf %85, %93 : vector<1x128xf32>
    %102 = arith.addf %100, %101 : vector<1x128xf32>
    %103 = math.tanh %102 : vector<1x128xf32>
    %104 = arith.mulf %99, %103 : vector<1x128xf32>
    %105 = arith.truncf %104 : vector<1x128xf32> to vector<1x128xbf16>
    %cst_33 = arith.constant dense<0.000000e+00> : vector<1x1024xf32>
    %106 = tpu.matmul %105, %1, %cst_33 {dimension_numbers = #tpu.dot_dimension_numbers<[1], [0], [0], [1], [0, 0, 1, 1], [], []>} : vector<1x128xbf16>, vector<128x1024xbf16>, vector<1x1024xf32> -> vector<1x1024xf32>
    %107 = arith.addf %79, %106 : vector<1x1024xf32>
    %108 = vector.extract_strided_slice %107 {offsets = [0, 0], sizes = [1, 256], strides = [1, 1]} : vector<1x1024xf32> to vector<1x256xf32>
    %109 = arith.negf %108 : vector<1x256xf32>
    %110 = math.exp %109 : vector<1x256xf32>
    %cst_34 = arith.constant 1.000000e+00 : f32
    %111 = vector.broadcast %cst_34 : f32 to vector<1x256xf32>
    %112 = arith.addf %111, %110 : vector<1x256xf32>
    %113 = arith.divf %111, %112 : vector<1x256xf32>
    %114 = vector.extract_strided_slice %107 {offsets = [0, 256], sizes = [1, 256], strides = [1, 1]} : vector<1x1024xf32> to vector<1x256xf32>
    %115 = arith.negf %114 : vector<1x256xf32>
    %116 = math.exp %115 : vector<1x256xf32>
    %cst_35 = arith.constant 1.000000e+00 : f32
    %117 = vector.broadcast %cst_35 : f32 to vector<1x256xf32>
    %118 = arith.addf %117, %116 : vector<1x256xf32>
    %119 = arith.divf %117, %118 : vector<1x256xf32>
    %120 = vector.extract_strided_slice %107 {offsets = [0, 512], sizes = [1, 256], strides = [1, 1]} : vector<1x1024xf32> to vector<1x256xf32>
    %121 = math.tanh %120 : vector<1x256xf32>
    %122 = vector.extract_strided_slice %107 {offsets = [0, 768], sizes = [1, 256], strides = [1, 1]} : vector<1x1024xf32> to vector<1x256xf32>
    %123 = arith.negf %122 : vector<1x256xf32>
    %124 = math.exp %123 : vector<1x256xf32>
    %cst_36 = arith.constant 1.000000e+00 : f32
    %125 = vector.broadcast %cst_36 : f32 to vector<1x256xf32>
    %126 = arith.addf %125, %124 : vector<1x256xf32>
    %127 = arith.divf %125, %126 : vector<1x256xf32>
    %128 = arith.mulf %119, %70 : vector<1x256xf32>
    %129 = arith.mulf %113, %121 : vector<1x256xf32>
    %130 = arith.addf %128, %129 : vector<1x256xf32>
    %131 = math.tanh %130 : vector<1x256xf32>
    %132 = arith.mulf %127, %131 : vector<1x256xf32>
    %c1 = arith.constant 1 : index
    %c0_37 = arith.constant 0 : index
    %133 = vector.load %arg10[%c1, %c0_37] : memref<8x256xf32, #tpu.memory_space<vmem>>, vector<1x256xf32>
    tpu.vector_store %arg10[%c1, %c0_37], %132 {strides = array<i32>} : memref<8x256xf32, #tpu.memory_space<vmem>>, vector<1x256xf32>,
    %134 = arith.truncf %104 : vector<1x128xf32> to vector<1x128xbf16>
    %cst_38 = arith.constant dense<0.000000e+00> : vector<1x512xf32>
    %135 = tpu.matmul %134, %0, %cst_38 {dimension_numbers = #tpu.dot_dimension_numbers<[1], [0], [0], [1], [0, 0, 1, 1], [], []>} : vector<1x128xbf16>, vector<128x512xbf16>, vector<1x512xf32> -> vector<1x512xf32>
    %136 = arith.addf %9, %135 : vector<1x512xf32>
    %137 = arith.truncf %132 : vector<1x256xf32> to vector<1x256xbf16>
    %cst_39 = arith.constant dense<0.000000e+00> : vector<1x1024xf32>
    %138 = tpu.matmul %137, %2, %cst_39 {dimension_numbers = #tpu.dot_dimension_numbers<[1], [0], [0], [1], [0, 0, 1, 1], [], []>} : vector<1x256xbf16>, vector<256x1024xbf16>, vector<1x1024xf32> -> vector<1x1024xf32>
    %139 = arith.addf %138, %3 : vector<1x1024xf32>
    %140 = vector.extract_strided_slice %136 {offsets = [0, 0], sizes = [1, 128], strides = [1, 1]} : vector<1x512xf32> to vector<1x128xf32>
    %141 = arith.negf %140 : vector<1x128xf32>
    %142 = math.exp %141 : vector<1x128xf32>
    %cst_40 = arith.constant 1.000000e+00 : f32
    %143 = vector.broadcast %cst_40 : f32 to vector<1x128xf32>
    %144 = arith.addf %143, %142 : vector<1x128xf32>
    %145 = arith.divf %143, %144 : vector<1x128xf32>
    %146 = vector.extract_strided_slice %136 {offsets = [0, 128], sizes = [1, 128], strides = [1, 1]} : vector<1x512xf32> to vector<1x128xf32>
    %147 = arith.negf %146 : vector<1x128xf32>
    %148 = math.exp %147 : vector<1x128xf32>
    %cst_41 = arith.constant 1.000000e+00 : f32
    %149 = vector.broadcast %cst_41 : f32 to vector<1x128xf32>
    %150 = arith.addf %149, %148 : vector<1x128xf32>
    %151 = arith.divf %149, %150 : vector<1x128xf32>
    %152 = vector.extract_strided_slice %136 {offsets = [0, 256], sizes = [1, 128], strides = [1, 1]} : vector<1x512xf32> to vector<1x128xf32>
    %153 = math.tanh %152 : vector<1x128xf32>
    %154 = vector.extract_strided_slice %136 {offsets = [0, 384], sizes = [1, 128], strides = [1, 1]} : vector<1x512xf32> to vector<1x128xf32>
    %155 = arith.negf %154 : vector<1x128xf32>
    %156 = math.exp %155 : vector<1x128xf32>
    %cst_42 = arith.constant 1.000000e+00 : f32
    %157 = vector.broadcast %cst_42 : f32 to vector<1x128xf32>
    %158 = arith.addf %157, %156 : vector<1x128xf32>
    %159 = arith.divf %157, %158 : vector<1x128xf32>
    %160 = arith.mulf %151, %102 : vector<1x128xf32>
    %161 = arith.mulf %145, %153 : vector<1x128xf32>
    %162 = arith.addf %160, %161 : vector<1x128xf32>
    %163 = math.tanh %162 : vector<1x128xf32>
    %164 = arith.mulf %159, %163 : vector<1x128xf32>
    %165 = arith.truncf %164 : vector<1x128xf32> to vector<1x128xbf16>
    %cst_43 = arith.constant dense<0.000000e+00> : vector<1x1024xf32>
    %166 = tpu.matmul %165, %1, %cst_43 {dimension_numbers = #tpu.dot_dimension_numbers<[1], [0], [0], [1], [0, 0, 1, 1], [], []>} : vector<1x128xbf16>, vector<128x1024xbf16>, vector<1x1024xf32> -> vector<1x1024xf32>
    %167 = arith.addf %139, %166 : vector<1x1024xf32>
    %168 = vector.extract_strided_slice %167 {offsets = [0, 0], sizes = [1, 256], strides = [1, 1]} : vector<1x1024xf32> to vector<1x256xf32>
    %169 = arith.negf %168 : vector<1x256xf32>
    %170 = math.exp %169 : vector<1x256xf32>
    %cst_44 = arith.constant 1.000000e+00 : f32
    %171 = vector.broadcast %cst_44 : f32 to vector<1x256xf32>
    %172 = arith.addf %171, %170 : vector<1x256xf32>
    %173 = arith.divf %171, %172 : vector<1x256xf32>
    %174 = vector.extract_strided_slice %167 {offsets = [0, 256], sizes = [1, 256], strides = [1, 1]} : vector<1x1024xf32> to vector<1x256xf32>
    %175 = arith.negf %174 : vector<1x256xf32>
    %176 = math.exp %175 : vector<1x256xf32>
    %cst_45 = arith.constant 1.000000e+00 : f32
    %177 = vector.broadcast %cst_45 : f32 to vector<1x256xf32>
    %178 = arith.addf %177, %176 : vector<1x256xf32>
    %179 = arith.divf %177, %178 : vector<1x256xf32>
    %180 = vector.extract_strided_slice %167 {offsets = [0, 512], sizes = [1, 256], strides = [1, 1]} : vector<1x1024xf32> to vector<1x256xf32>
    %181 = math.tanh %180 : vector<1x256xf32>
    %182 = vector.extract_strided_slice %167 {offsets = [0, 768], sizes = [1, 256], strides = [1, 1]} : vector<1x1024xf32> to vector<1x256xf32>
    %183 = arith.negf %182 : vector<1x256xf32>
    %184 = math.exp %183 : vector<1x256xf32>
    %cst_46 = arith.constant 1.000000e+00 : f32
    %185 = vector.broadcast %cst_46 : f32 to vector<1x256xf32>
    %186 = arith.addf %185, %184 : vector<1x256xf32>
    %187 = arith.divf %185, %186 : vector<1x256xf32>
    %188 = arith.mulf %179, %130 : vector<1x256xf32>
    %189 = arith.mulf %173, %181 : vector<1x256xf32>
    %190 = arith.addf %188, %189 : vector<1x256xf32>
    %191 = math.tanh %190 : vector<1x256xf32>
    %192 = arith.mulf %187, %191 : vector<1x256xf32>
    %c2 = arith.constant 2 : index
    %c0_47 = arith.constant 0 : index
    %193 = vector.load %arg10[%c2, %c0_47] : memref<8x256xf32, #tpu.memory_space<vmem>>, vector<1x256xf32>
    tpu.vector_store %arg10[%c2, %c0_47], %192 {strides = array<i32>} : memref<8x256xf32, #tpu.memory_space<vmem>>, vector<1x256xf32>,
    %194 = arith.truncf %164 : vector<1x128xf32> to vector<1x128xbf16>
    %cst_48 = arith.constant dense<0.000000e+00> : vector<1x512xf32>
    %195 = tpu.matmul %194, %0, %cst_48 {dimension_numbers = #tpu.dot_dimension_numbers<[1], [0], [0], [1], [0, 0, 1, 1], [], []>} : vector<1x128xbf16>, vector<128x512xbf16>, vector<1x512xf32> -> vector<1x512xf32>
    %196 = arith.addf %9, %195 : vector<1x512xf32>
    %197 = arith.truncf %192 : vector<1x256xf32> to vector<1x256xbf16>
    %cst_49 = arith.constant dense<0.000000e+00> : vector<1x1024xf32>
    %198 = tpu.matmul %197, %2, %cst_49 {dimension_numbers = #tpu.dot_dimension_numbers<[1], [0], [0], [1], [0, 0, 1, 1], [], []>} : vector<1x256xbf16>, vector<256x1024xbf16>, vector<1x1024xf32> -> vector<1x1024xf32>
    %199 = arith.addf %198, %3 : vector<1x1024xf32>
    %200 = vector.extract_strided_slice %196 {offsets = [0, 0], sizes = [1, 128], strides = [1, 1]} : vector<1x512xf32> to vector<1x128xf32>
    %201 = arith.negf %200 : vector<1x128xf32>
    %202 = math.exp %201 : vector<1x128xf32>
    %cst_50 = arith.constant 1.000000e+00 : f32
    %203 = vector.broadcast %cst_50 : f32 to vector<1x128xf32>
    %204 = arith.addf %203, %202 : vector<1x128xf32>
    %205 = arith.divf %203, %204 : vector<1x128xf32>
    %206 = vector.extract_strided_slice %196 {offsets = [0, 128], sizes = [1, 128], strides = [1, 1]} : vector<1x512xf32> to vector<1x128xf32>
    %207 = arith.negf %206 : vector<1x128xf32>
    %208 = math.exp %207 : vector<1x128xf32>
    %cst_51 = arith.constant 1.000000e+00 : f32
    %209 = vector.broadcast %cst_51 : f32 to vector<1x128xf32>
    %210 = arith.addf %209, %208 : vector<1x128xf32>
    %211 = arith.divf %209, %210 : vector<1x128xf32>
    %212 = vector.extract_strided_slice %196 {offsets = [0, 256], sizes = [1, 128], strides = [1, 1]} : vector<1x512xf32> to vector<1x128xf32>
    %213 = math.tanh %212 : vector<1x128xf32>
    %214 = vector.extract_strided_slice %196 {offsets = [0, 384], sizes = [1, 128], strides = [1, 1]} : vector<1x512xf32> to vector<1x128xf32>
    %215 = arith.negf %214 : vector<1x128xf32>
    %216 = math.exp %215 : vector<1x128xf32>
    %cst_52 = arith.constant 1.000000e+00 : f32
    %217 = vector.broadcast %cst_52 : f32 to vector<1x128xf32>
    %218 = arith.addf %217, %216 : vector<1x128xf32>
    %219 = arith.divf %217, %218 : vector<1x128xf32>
    %220 = arith.mulf %211, %162 : vector<1x128xf32>
    %221 = arith.mulf %205, %213 : vector<1x128xf32>
    %222 = arith.addf %220, %221 : vector<1x128xf32>
    %223 = math.tanh %222 : vector<1x128xf32>
    %224 = arith.mulf %219, %223 : vector<1x128xf32>
    %225 = arith.truncf %224 : vector<1x128xf32> to vector<1x128xbf16>
    %cst_53 = arith.constant dense<0.000000e+00> : vector<1x1024xf32>
    %226 = tpu.matmul %225, %1, %cst_53 {dimension_numbers = #tpu.dot_dimension_numbers<[1], [0], [0], [1], [0, 0, 1, 1], [], []>} : vector<1x128xbf16>, vector<128x1024xbf16>, vector<1x1024xf32> -> vector<1x1024xf32>
    %227 = arith.addf %199, %226 : vector<1x1024xf32>
    %228 = vector.extract_strided_slice %227 {offsets = [0, 0], sizes = [1, 256], strides = [1, 1]} : vector<1x1024xf32> to vector<1x256xf32>
    %229 = arith.negf %228 : vector<1x256xf32>
    %230 = math.exp %229 : vector<1x256xf32>
    %cst_54 = arith.constant 1.000000e+00 : f32
    %231 = vector.broadcast %cst_54 : f32 to vector<1x256xf32>
    %232 = arith.addf %231, %230 : vector<1x256xf32>
    %233 = arith.divf %231, %232 : vector<1x256xf32>
    %234 = vector.extract_strided_slice %227 {offsets = [0, 256], sizes = [1, 256], strides = [1, 1]} : vector<1x1024xf32> to vector<1x256xf32>
    %235 = arith.negf %234 : vector<1x256xf32>
    %236 = math.exp %235 : vector<1x256xf32>
    %cst_55 = arith.constant 1.000000e+00 : f32
    %237 = vector.broadcast %cst_55 : f32 to vector<1x256xf32>
    %238 = arith.addf %237, %236 : vector<1x256xf32>
    %239 = arith.divf %237, %238 : vector<1x256xf32>
    %240 = vector.extract_strided_slice %227 {offsets = [0, 512], sizes = [1, 256], strides = [1, 1]} : vector<1x1024xf32> to vector<1x256xf32>
    %241 = math.tanh %240 : vector<1x256xf32>
    %242 = vector.extract_strided_slice %227 {offsets = [0, 768], sizes = [1, 256], strides = [1, 1]} : vector<1x1024xf32> to vector<1x256xf32>
    %243 = arith.negf %242 : vector<1x256xf32>
    %244 = math.exp %243 : vector<1x256xf32>
    %cst_56 = arith.constant 1.000000e+00 : f32
    %245 = vector.broadcast %cst_56 : f32 to vector<1x256xf32>
    %246 = arith.addf %245, %244 : vector<1x256xf32>
    %247 = arith.divf %245, %246 : vector<1x256xf32>
    %248 = arith.mulf %239, %190 : vector<1x256xf32>
    %249 = arith.mulf %233, %241 : vector<1x256xf32>
    %250 = arith.addf %248, %249 : vector<1x256xf32>
    %251 = math.tanh %250 : vector<1x256xf32>
    %252 = arith.mulf %247, %251 : vector<1x256xf32>
    %c3 = arith.constant 3 : index
    %c0_57 = arith.constant 0 : index
    %253 = vector.load %arg10[%c3, %c0_57] : memref<8x256xf32, #tpu.memory_space<vmem>>, vector<1x256xf32>
    tpu.vector_store %arg10[%c3, %c0_57], %252 {strides = array<i32>} : memref<8x256xf32, #tpu.memory_space<vmem>>, vector<1x256xf32>,
    %254 = arith.truncf %224 : vector<1x128xf32> to vector<1x128xbf16>
    %cst_58 = arith.constant dense<0.000000e+00> : vector<1x512xf32>
    %255 = tpu.matmul %254, %0, %cst_58 {dimension_numbers = #tpu.dot_dimension_numbers<[1], [0], [0], [1], [0, 0, 1, 1], [], []>} : vector<1x128xbf16>, vector<128x512xbf16>, vector<1x512xf32> -> vector<1x512xf32>
    %256 = arith.addf %9, %255 : vector<1x512xf32>
    %257 = arith.truncf %252 : vector<1x256xf32> to vector<1x256xbf16>
    %cst_59 = arith.constant dense<0.000000e+00> : vector<1x1024xf32>
    %258 = tpu.matmul %257, %2, %cst_59 {dimension_numbers = #tpu.dot_dimension_numbers<[1], [0], [0], [1], [0, 0, 1, 1], [], []>} : vector<1x256xbf16>, vector<256x1024xbf16>, vector<1x1024xf32> -> vector<1x1024xf32>
    %259 = arith.addf %258, %3 : vector<1x1024xf32>
    %260 = vector.extract_strided_slice %256 {offsets = [0, 0], sizes = [1, 128], strides = [1, 1]} : vector<1x512xf32> to vector<1x128xf32>
    %261 = arith.negf %260 : vector<1x128xf32>
    %262 = math.exp %261 : vector<1x128xf32>
    %cst_60 = arith.constant 1.000000e+00 : f32
    %263 = vector.broadcast %cst_60 : f32 to vector<1x128xf32>
    %264 = arith.addf %263, %262 : vector<1x128xf32>
    %265 = arith.divf %263, %264 : vector<1x128xf32>
    %266 = vector.extract_strided_slice %256 {offsets = [0, 128], sizes = [1, 128], strides = [1, 1]} : vector<1x512xf32> to vector<1x128xf32>
    %267 = arith.negf %266 : vector<1x128xf32>
    %268 = math.exp %267 : vector<1x128xf32>
    %cst_61 = arith.constant 1.000000e+00 : f32
    %269 = vector.broadcast %cst_61 : f32 to vector<1x128xf32>
    %270 = arith.addf %269, %268 : vector<1x128xf32>
    %271 = arith.divf %269, %270 : vector<1x128xf32>
    %272 = vector.extract_strided_slice %256 {offsets = [0, 256], sizes = [1, 128], strides = [1, 1]} : vector<1x512xf32> to vector<1x128xf32>
    %273 = math.tanh %272 : vector<1x128xf32>
    %274 = vector.extract_strided_slice %256 {offsets = [0, 384], sizes = [1, 128], strides = [1, 1]} : vector<1x512xf32> to vector<1x128xf32>
    %275 = arith.negf %274 : vector<1x128xf32>
    %276 = math.exp %275 : vector<1x128xf32>
    %cst_62 = arith.constant 1.000000e+00 : f32
    %277 = vector.broadcast %cst_62 : f32 to vector<1x128xf32>
    %278 = arith.addf %277, %276 : vector<1x128xf32>
    %279 = arith.divf %277, %278 : vector<1x128xf32>
    %280 = arith.mulf %271, %222 : vector<1x128xf32>
    %281 = arith.mulf %265, %273 : vector<1x128xf32>
    %282 = arith.addf %280, %281 : vector<1x128xf32>
    %283 = math.tanh %282 : vector<1x128xf32>
    %284 = arith.mulf %279, %283 : vector<1x128xf32>
    %285 = arith.truncf %284 : vector<1x128xf32> to vector<1x128xbf16>
    %cst_63 = arith.constant dense<0.000000e+00> : vector<1x1024xf32>
    %286 = tpu.matmul %285, %1, %cst_63 {dimension_numbers = #tpu.dot_dimension_numbers<[1], [0], [0], [1], [0, 0, 1, 1], [], []>} : vector<1x128xbf16>, vector<128x1024xbf16>, vector<1x1024xf32> -> vector<1x1024xf32>
    %287 = arith.addf %259, %286 : vector<1x1024xf32>
    %288 = vector.extract_strided_slice %287 {offsets = [0, 0], sizes = [1, 256], strides = [1, 1]} : vector<1x1024xf32> to vector<1x256xf32>
    %289 = arith.negf %288 : vector<1x256xf32>
    %290 = math.exp %289 : vector<1x256xf32>
    %cst_64 = arith.constant 1.000000e+00 : f32
    %291 = vector.broadcast %cst_64 : f32 to vector<1x256xf32>
    %292 = arith.addf %291, %290 : vector<1x256xf32>
    %293 = arith.divf %291, %292 : vector<1x256xf32>
    %294 = vector.extract_strided_slice %287 {offsets = [0, 256], sizes = [1, 256], strides = [1, 1]} : vector<1x1024xf32> to vector<1x256xf32>
    %295 = arith.negf %294 : vector<1x256xf32>
    %296 = math.exp %295 : vector<1x256xf32>
    %cst_65 = arith.constant 1.000000e+00 : f32
    %297 = vector.broadcast %cst_65 : f32 to vector<1x256xf32>
    %298 = arith.addf %297, %296 : vector<1x256xf32>
    %299 = arith.divf %297, %298 : vector<1x256xf32>
    %300 = vector.extract_strided_slice %287 {offsets = [0, 512], sizes = [1, 256], strides = [1, 1]} : vector<1x1024xf32> to vector<1x256xf32>
    %301 = math.tanh %300 : vector<1x256xf32>
    %302 = vector.extract_strided_slice %287 {offsets = [0, 768], sizes = [1, 256], strides = [1, 1]} : vector<1x1024xf32> to vector<1x256xf32>
    %303 = arith.negf %302 : vector<1x256xf32>
    %304 = math.exp %303 : vector<1x256xf32>
    %cst_66 = arith.constant 1.000000e+00 : f32
    %305 = vector.broadcast %cst_66 : f32 to vector<1x256xf32>
    %306 = arith.addf %305, %304 : vector<1x256xf32>
    %307 = arith.divf %305, %306 : vector<1x256xf32>
    %308 = arith.mulf %299, %250 : vector<1x256xf32>
    %309 = arith.mulf %293, %301 : vector<1x256xf32>
    %310 = arith.addf %308, %309 : vector<1x256xf32>
    %311 = math.tanh %310 : vector<1x256xf32>
    %312 = arith.mulf %307, %311 : vector<1x256xf32>
    %c4 = arith.constant 4 : index
    %c0_67 = arith.constant 0 : index
    %313 = vector.load %arg10[%c4, %c0_67] : memref<8x256xf32, #tpu.memory_space<vmem>>, vector<1x256xf32>
    tpu.vector_store %arg10[%c4, %c0_67], %312 {strides = array<i32>} : memref<8x256xf32, #tpu.memory_space<vmem>>, vector<1x256xf32>,
    %314 = arith.truncf %284 : vector<1x128xf32> to vector<1x128xbf16>
    %cst_68 = arith.constant dense<0.000000e+00> : vector<1x512xf32>
    %315 = tpu.matmul %314, %0, %cst_68 {dimension_numbers = #tpu.dot_dimension_numbers<[1], [0], [0], [1], [0, 0, 1, 1], [], []>} : vector<1x128xbf16>, vector<128x512xbf16>, vector<1x512xf32> -> vector<1x512xf32>
    %316 = arith.addf %9, %315 : vector<1x512xf32>
    %317 = arith.truncf %312 : vector<1x256xf32> to vector<1x256xbf16>
    %cst_69 = arith.constant dense<0.000000e+00> : vector<1x1024xf32>
    %318 = tpu.matmul %317, %2, %cst_69 {dimension_numbers = #tpu.dot_dimension_numbers<[1], [0], [0], [1], [0, 0, 1, 1], [], []>} : vector<1x256xbf16>, vector<256x1024xbf16>, vector<1x1024xf32> -> vector<1x1024xf32>
    %319 = arith.addf %318, %3 : vector<1x1024xf32>
    %320 = vector.extract_strided_slice %316 {offsets = [0, 0], sizes = [1, 128], strides = [1, 1]} : vector<1x512xf32> to vector<1x128xf32>
    %321 = arith.negf %320 : vector<1x128xf32>
    %322 = math.exp %321 : vector<1x128xf32>
    %cst_70 = arith.constant 1.000000e+00 : f32
    %323 = vector.broadcast %cst_70 : f32 to vector<1x128xf32>
    %324 = arith.addf %323, %322 : vector<1x128xf32>
    %325 = arith.divf %323, %324 : vector<1x128xf32>
    %326 = vector.extract_strided_slice %316 {offsets = [0, 128], sizes = [1, 128], strides = [1, 1]} : vector<1x512xf32> to vector<1x128xf32>
    %327 = arith.negf %326 : vector<1x128xf32>
    %328 = math.exp %327 : vector<1x128xf32>
    %cst_71 = arith.constant 1.000000e+00 : f32
    %329 = vector.broadcast %cst_71 : f32 to vector<1x128xf32>
    %330 = arith.addf %329, %328 : vector<1x128xf32>
    %331 = arith.divf %329, %330 : vector<1x128xf32>
    %332 = vector.extract_strided_slice %316 {offsets = [0, 256], sizes = [1, 128], strides = [1, 1]} : vector<1x512xf32> to vector<1x128xf32>
    %333 = math.tanh %332 : vector<1x128xf32>
    %334 = vector.extract_strided_slice %316 {offsets = [0, 384], sizes = [1, 128], strides = [1, 1]} : vector<1x512xf32> to vector<1x128xf32>
    %335 = arith.negf %334 : vector<1x128xf32>
    %336 = math.exp %335 : vector<1x128xf32>
    %cst_72 = arith.constant 1.000000e+00 : f32
    %337 = vector.broadcast %cst_72 : f32 to vector<1x128xf32>
    %338 = arith.addf %337, %336 : vector<1x128xf32>
    %339 = arith.divf %337, %338 : vector<1x128xf32>
    %340 = arith.mulf %331, %282 : vector<1x128xf32>
    %341 = arith.mulf %325, %333 : vector<1x128xf32>
    %342 = arith.addf %340, %341 : vector<1x128xf32>
    %343 = math.tanh %342 : vector<1x128xf32>
    %344 = arith.mulf %339, %343 : vector<1x128xf32>
    %345 = arith.truncf %344 : vector<1x128xf32> to vector<1x128xbf16>
    %cst_73 = arith.constant dense<0.000000e+00> : vector<1x1024xf32>
    %346 = tpu.matmul %345, %1, %cst_73 {dimension_numbers = #tpu.dot_dimension_numbers<[1], [0], [0], [1], [0, 0, 1, 1], [], []>} : vector<1x128xbf16>, vector<128x1024xbf16>, vector<1x1024xf32> -> vector<1x1024xf32>
    %347 = arith.addf %319, %346 : vector<1x1024xf32>
    %348 = vector.extract_strided_slice %347 {offsets = [0, 0], sizes = [1, 256], strides = [1, 1]} : vector<1x1024xf32> to vector<1x256xf32>
    %349 = arith.negf %348 : vector<1x256xf32>
    %350 = math.exp %349 : vector<1x256xf32>
    %cst_74 = arith.constant 1.000000e+00 : f32
    %351 = vector.broadcast %cst_74 : f32 to vector<1x256xf32>
    %352 = arith.addf %351, %350 : vector<1x256xf32>
    %353 = arith.divf %351, %352 : vector<1x256xf32>
    %354 = vector.extract_strided_slice %347 {offsets = [0, 256], sizes = [1, 256], strides = [1, 1]} : vector<1x1024xf32> to vector<1x256xf32>
    %355 = arith.negf %354 : vector<1x256xf32>
    %356 = math.exp %355 : vector<1x256xf32>
    %cst_75 = arith.constant 1.000000e+00 : f32
    %357 = vector.broadcast %cst_75 : f32 to vector<1x256xf32>
    %358 = arith.addf %357, %356 : vector<1x256xf32>
    %359 = arith.divf %357, %358 : vector<1x256xf32>
    %360 = vector.extract_strided_slice %347 {offsets = [0, 512], sizes = [1, 256], strides = [1, 1]} : vector<1x1024xf32> to vector<1x256xf32>
    %361 = math.tanh %360 : vector<1x256xf32>
    %362 = vector.extract_strided_slice %347 {offsets = [0, 768], sizes = [1, 256], strides = [1, 1]} : vector<1x1024xf32> to vector<1x256xf32>
    %363 = arith.negf %362 : vector<1x256xf32>
    %364 = math.exp %363 : vector<1x256xf32>
    %cst_76 = arith.constant 1.000000e+00 : f32
    %365 = vector.broadcast %cst_76 : f32 to vector<1x256xf32>
    %366 = arith.addf %365, %364 : vector<1x256xf32>
    %367 = arith.divf %365, %366 : vector<1x256xf32>
    %368 = arith.mulf %359, %310 : vector<1x256xf32>
    %369 = arith.mulf %353, %361 : vector<1x256xf32>
    %370 = arith.addf %368, %369 : vector<1x256xf32>
    %371 = math.tanh %370 : vector<1x256xf32>
    %372 = arith.mulf %367, %371 : vector<1x256xf32>
    %c5 = arith.constant 5 : index
    %c0_77 = arith.constant 0 : index
    %373 = vector.load %arg10[%c5, %c0_77] : memref<8x256xf32, #tpu.memory_space<vmem>>, vector<1x256xf32>
    tpu.vector_store %arg10[%c5, %c0_77], %372 {strides = array<i32>} : memref<8x256xf32, #tpu.memory_space<vmem>>, vector<1x256xf32>,
    %374 = arith.truncf %344 : vector<1x128xf32> to vector<1x128xbf16>
    %cst_78 = arith.constant dense<0.000000e+00> : vector<1x512xf32>
    %375 = tpu.matmul %374, %0, %cst_78 {dimension_numbers = #tpu.dot_dimension_numbers<[1], [0], [0], [1], [0, 0, 1, 1], [], []>} : vector<1x128xbf16>, vector<128x512xbf16>, vector<1x512xf32> -> vector<1x512xf32>
    %376 = arith.addf %9, %375 : vector<1x512xf32>
    %377 = arith.truncf %372 : vector<1x256xf32> to vector<1x256xbf16>
    %cst_79 = arith.constant dense<0.000000e+00> : vector<1x1024xf32>
    %378 = tpu.matmul %377, %2, %cst_79 {dimension_numbers = #tpu.dot_dimension_numbers<[1], [0], [0], [1], [0, 0, 1, 1], [], []>} : vector<1x256xbf16>, vector<256x1024xbf16>, vector<1x1024xf32> -> vector<1x1024xf32>
    %379 = arith.addf %378, %3 : vector<1x1024xf32>
    %380 = vector.extract_strided_slice %376 {offsets = [0, 0], sizes = [1, 128], strides = [1, 1]} : vector<1x512xf32> to vector<1x128xf32>
    %381 = arith.negf %380 : vector<1x128xf32>
    %382 = math.exp %381 : vector<1x128xf32>
    %cst_80 = arith.constant 1.000000e+00 : f32
    %383 = vector.broadcast %cst_80 : f32 to vector<1x128xf32>
    %384 = arith.addf %383, %382 : vector<1x128xf32>
    %385 = arith.divf %383, %384 : vector<1x128xf32>
    %386 = vector.extract_strided_slice %376 {offsets = [0, 128], sizes = [1, 128], strides = [1, 1]} : vector<1x512xf32> to vector<1x128xf32>
    %387 = arith.negf %386 : vector<1x128xf32>
    %388 = math.exp %387 : vector<1x128xf32>
    %cst_81 = arith.constant 1.000000e+00 : f32
    %389 = vector.broadcast %cst_81 : f32 to vector<1x128xf32>
    %390 = arith.addf %389, %388 : vector<1x128xf32>
    %391 = arith.divf %389, %390 : vector<1x128xf32>
    %392 = vector.extract_strided_slice %376 {offsets = [0, 256], sizes = [1, 128], strides = [1, 1]} : vector<1x512xf32> to vector<1x128xf32>
    %393 = math.tanh %392 : vector<1x128xf32>
    %394 = vector.extract_strided_slice %376 {offsets = [0, 384], sizes = [1, 128], strides = [1, 1]} : vector<1x512xf32> to vector<1x128xf32>
    %395 = arith.negf %394 : vector<1x128xf32>
    %396 = math.exp %395 : vector<1x128xf32>
    %cst_82 = arith.constant 1.000000e+00 : f32
    %397 = vector.broadcast %cst_82 : f32 to vector<1x128xf32>
    %398 = arith.addf %397, %396 : vector<1x128xf32>
    %399 = arith.divf %397, %398 : vector<1x128xf32>
    %400 = arith.mulf %391, %342 : vector<1x128xf32>
    %401 = arith.mulf %385, %393 : vector<1x128xf32>
    %402 = arith.addf %400, %401 : vector<1x128xf32>
    %403 = math.tanh %402 : vector<1x128xf32>
    %404 = arith.mulf %399, %403 : vector<1x128xf32>
    %405 = arith.truncf %404 : vector<1x128xf32> to vector<1x128xbf16>
    %cst_83 = arith.constant dense<0.000000e+00> : vector<1x1024xf32>
    %406 = tpu.matmul %405, %1, %cst_83 {dimension_numbers = #tpu.dot_dimension_numbers<[1], [0], [0], [1], [0, 0, 1, 1], [], []>} : vector<1x128xbf16>, vector<128x1024xbf16>, vector<1x1024xf32> -> vector<1x1024xf32>
    %407 = arith.addf %379, %406 : vector<1x1024xf32>
    %408 = vector.extract_strided_slice %407 {offsets = [0, 0], sizes = [1, 256], strides = [1, 1]} : vector<1x1024xf32> to vector<1x256xf32>
    %409 = arith.negf %408 : vector<1x256xf32>
    %410 = math.exp %409 : vector<1x256xf32>
    %cst_84 = arith.constant 1.000000e+00 : f32
    %411 = vector.broadcast %cst_84 : f32 to vector<1x256xf32>
    %412 = arith.addf %411, %410 : vector<1x256xf32>
    %413 = arith.divf %411, %412 : vector<1x256xf32>
    %414 = vector.extract_strided_slice %407 {offsets = [0, 256], sizes = [1, 256], strides = [1, 1]} : vector<1x1024xf32> to vector<1x256xf32>
    %415 = arith.negf %414 : vector<1x256xf32>
    %416 = math.exp %415 : vector<1x256xf32>
    %cst_85 = arith.constant 1.000000e+00 : f32
    %417 = vector.broadcast %cst_85 : f32 to vector<1x256xf32>
    %418 = arith.addf %417, %416 : vector<1x256xf32>
    %419 = arith.divf %417, %418 : vector<1x256xf32>
    %420 = vector.extract_strided_slice %407 {offsets = [0, 512], sizes = [1, 256], strides = [1, 1]} : vector<1x1024xf32> to vector<1x256xf32>
    %421 = math.tanh %420 : vector<1x256xf32>
    %422 = vector.extract_strided_slice %407 {offsets = [0, 768], sizes = [1, 256], strides = [1, 1]} : vector<1x1024xf32> to vector<1x256xf32>
    %423 = arith.negf %422 : vector<1x256xf32>
    %424 = math.exp %423 : vector<1x256xf32>
    %cst_86 = arith.constant 1.000000e+00 : f32
    %425 = vector.broadcast %cst_86 : f32 to vector<1x256xf32>
    %426 = arith.addf %425, %424 : vector<1x256xf32>
    %427 = arith.divf %425, %426 : vector<1x256xf32>
    %428 = arith.mulf %419, %370 : vector<1x256xf32>
    %429 = arith.mulf %413, %421 : vector<1x256xf32>
    %430 = arith.addf %428, %429 : vector<1x256xf32>
    %431 = math.tanh %430 : vector<1x256xf32>
    %432 = arith.mulf %427, %431 : vector<1x256xf32>
    %c6 = arith.constant 6 : index
    %c0_87 = arith.constant 0 : index
    %433 = vector.load %arg10[%c6, %c0_87] : memref<8x256xf32, #tpu.memory_space<vmem>>, vector<1x256xf32>
    tpu.vector_store %arg10[%c6, %c0_87], %432 {strides = array<i32>} : memref<8x256xf32, #tpu.memory_space<vmem>>, vector<1x256xf32>,
    %434 = arith.truncf %404 : vector<1x128xf32> to vector<1x128xbf16>
    %cst_88 = arith.constant dense<0.000000e+00> : vector<1x512xf32>
    %435 = tpu.matmul %434, %0, %cst_88 {dimension_numbers = #tpu.dot_dimension_numbers<[1], [0], [0], [1], [0, 0, 1, 1], [], []>} : vector<1x128xbf16>, vector<128x512xbf16>, vector<1x512xf32> -> vector<1x512xf32>
    %436 = arith.addf %9, %435 : vector<1x512xf32>
    %437 = arith.truncf %432 : vector<1x256xf32> to vector<1x256xbf16>
    %cst_89 = arith.constant dense<0.000000e+00> : vector<1x1024xf32>
    %438 = tpu.matmul %437, %2, %cst_89 {dimension_numbers = #tpu.dot_dimension_numbers<[1], [0], [0], [1], [0, 0, 1, 1], [], []>} : vector<1x256xbf16>, vector<256x1024xbf16>, vector<1x1024xf32> -> vector<1x1024xf32>
    %439 = arith.addf %438, %3 : vector<1x1024xf32>
    %440 = vector.extract_strided_slice %436 {offsets = [0, 0], sizes = [1, 128], strides = [1, 1]} : vector<1x512xf32> to vector<1x128xf32>
    %441 = arith.negf %440 : vector<1x128xf32>
    %442 = math.exp %441 : vector<1x128xf32>
    %cst_90 = arith.constant 1.000000e+00 : f32
    %443 = vector.broadcast %cst_90 : f32 to vector<1x128xf32>
    %444 = arith.addf %443, %442 : vector<1x128xf32>
    %445 = arith.divf %443, %444 : vector<1x128xf32>
    %446 = vector.extract_strided_slice %436 {offsets = [0, 128], sizes = [1, 128], strides = [1, 1]} : vector<1x512xf32> to vector<1x128xf32>
    %447 = arith.negf %446 : vector<1x128xf32>
    %448 = math.exp %447 : vector<1x128xf32>
    %cst_91 = arith.constant 1.000000e+00 : f32
    %449 = vector.broadcast %cst_91 : f32 to vector<1x128xf32>
    %450 = arith.addf %449, %448 : vector<1x128xf32>
    %451 = arith.divf %449, %450 : vector<1x128xf32>
    %452 = vector.extract_strided_slice %436 {offsets = [0, 256], sizes = [1, 128], strides = [1, 1]} : vector<1x512xf32> to vector<1x128xf32>
    %453 = math.tanh %452 : vector<1x128xf32>
    %454 = vector.extract_strided_slice %436 {offsets = [0, 384], sizes = [1, 128], strides = [1, 1]} : vector<1x512xf32> to vector<1x128xf32>
    %455 = arith.negf %454 : vector<1x128xf32>
    %456 = math.exp %455 : vector<1x128xf32>
    %cst_92 = arith.constant 1.000000e+00 : f32
    %457 = vector.broadcast %cst_92 : f32 to vector<1x128xf32>
    %458 = arith.addf %457, %456 : vector<1x128xf32>
    %459 = arith.divf %457, %458 : vector<1x128xf32>
    %460 = arith.mulf %451, %402 : vector<1x128xf32>
    %461 = arith.mulf %445, %453 : vector<1x128xf32>
    %462 = arith.addf %460, %461 : vector<1x128xf32>
    %463 = math.tanh %462 : vector<1x128xf32>
    %464 = arith.mulf %459, %463 : vector<1x128xf32>
    %465 = arith.truncf %464 : vector<1x128xf32> to vector<1x128xbf16>
    %cst_93 = arith.constant dense<0.000000e+00> : vector<1x1024xf32>
    %466 = tpu.matmul %465, %1, %cst_93 {dimension_numbers = #tpu.dot_dimension_numbers<[1], [0], [0], [1], [0, 0, 1, 1], [], []>} : vector<1x128xbf16>, vector<128x1024xbf16>, vector<1x1024xf32> -> vector<1x1024xf32>
    %467 = arith.addf %439, %466 : vector<1x1024xf32>
    %468 = vector.extract_strided_slice %467 {offsets = [0, 0], sizes = [1, 256], strides = [1, 1]} : vector<1x1024xf32> to vector<1x256xf32>
    %469 = arith.negf %468 : vector<1x256xf32>
    %470 = math.exp %469 : vector<1x256xf32>
    %cst_94 = arith.constant 1.000000e+00 : f32
    %471 = vector.broadcast %cst_94 : f32 to vector<1x256xf32>
    %472 = arith.addf %471, %470 : vector<1x256xf32>
    %473 = arith.divf %471, %472 : vector<1x256xf32>
    %474 = vector.extract_strided_slice %467 {offsets = [0, 256], sizes = [1, 256], strides = [1, 1]} : vector<1x1024xf32> to vector<1x256xf32>
    %475 = arith.negf %474 : vector<1x256xf32>
    %476 = math.exp %475 : vector<1x256xf32>
    %cst_95 = arith.constant 1.000000e+00 : f32
    %477 = vector.broadcast %cst_95 : f32 to vector<1x256xf32>
    %478 = arith.addf %477, %476 : vector<1x256xf32>
    %479 = arith.divf %477, %478 : vector<1x256xf32>
    %480 = vector.extract_strided_slice %467 {offsets = [0, 512], sizes = [1, 256], strides = [1, 1]} : vector<1x1024xf32> to vector<1x256xf32>
    %481 = math.tanh %480 : vector<1x256xf32>
    %482 = vector.extract_strided_slice %467 {offsets = [0, 768], sizes = [1, 256], strides = [1, 1]} : vector<1x1024xf32> to vector<1x256xf32>
    %483 = arith.negf %482 : vector<1x256xf32>
    %484 = math.exp %483 : vector<1x256xf32>
    %cst_96 = arith.constant 1.000000e+00 : f32
    %485 = vector.broadcast %cst_96 : f32 to vector<1x256xf32>
    %486 = arith.addf %485, %484 : vector<1x256xf32>
    %487 = arith.divf %485, %486 : vector<1x256xf32>
    %488 = arith.mulf %479, %430 : vector<1x256xf32>
    %489 = arith.mulf %473, %481 : vector<1x256xf32>
    %490 = arith.addf %488, %489 : vector<1x256xf32>
    %491 = math.tanh %490 : vector<1x256xf32>
    %492 = arith.mulf %487, %491 : vector<1x256xf32>
    %c7 = arith.constant 7 : index
    %c0_97 = arith.constant 0 : index
    %493 = vector.load %arg10[%c7, %c0_97] : memref<8x256xf32, #tpu.memory_space<vmem>>, vector<1x256xf32>
    tpu.vector_store %arg10[%c7, %c0_97], %492 {strides = array<i32>} : memref<8x256xf32, #tpu.memory_space<vmem>>, vector<1x256xf32>,
    %c0_98 = arith.constant 0 : index
    %c0_99 = arith.constant 0 : index
    %494 = vector.load %arg10[%c0_98, %c0_99] : memref<8x256xf32, #tpu.memory_space<vmem>>, vector<8x256xf32>
    %495 = arith.truncf %494 : vector<8x256xf32> to vector<8x256xbf16>
    %c0_100 = arith.constant 0 : index
    %c0_101 = arith.constant 0 : index
    %496 = vector.load %arg7[%c0_100, %c0_101] : memref<256x128xbf16, #tpu.memory_space<vmem>>, vector<256x128xbf16>
    %cst_102 = arith.constant dense<0.000000e+00> : vector<8x128xf32>
    %497 = tpu.matmul %495, %496, %cst_102 {dimension_numbers = #tpu.dot_dimension_numbers<[1], [0], [0], [1], [0, 0, 1, 1], [], []>} : vector<8x256xbf16>, vector<256x128xbf16>, vector<8x128xf32> -> vector<8x128xf32>
    %c0_103 = arith.constant 0 : index
    %c0_104 = arith.constant 0 : index
    %498 = vector.load %arg8[%c0_103, %c0_104] : memref<1x128xf32, #tpu.memory_space<vmem>>, vector<1x128xf32>
    %499 = vector.broadcast %498 : vector<1x128xf32> to vector<8x128xf32>
    %500 = arith.addf %497, %499 : vector<8x128xf32>
    %c0_105 = arith.constant 0 : index
    %c0_106 = arith.constant 0 : index
    %501 = vector.load %arg9[%c0_105, %c0_106] : memref<8x128xf32, #tpu.memory_space<vmem>>, vector<8x128xf32>
    tpu.vector_store %arg9[%c0_105, %c0_106], %500 {strides = array<i32>} : memref<8x128xf32, #tpu.memory_space<vmem>>, vector<8x128xf32>,
    return
  }
}

</mosaic_0001>

<bundles_post_ra>
// kernel: tpu_custom_call.1
= control target key start
LH: loop header
LB: loop body
LE: loop exit
PB: predicated region body
PF: predicated region fallthrough
CT: control target
= control target key end

     0   :  { %14 = vsyncpa [#allocation4], 0  ;;  %s12495_s0 = inlined_call_operand.hbm [shape: f32[1,128], index: 0, kind: input, shape index: {}]   ;;  %s12496_s1 = inlined_call_operand.hbm [shape: bf16[128,512], index: 1, kind: input, shape index: {}]   ;;  %s12497_s2 = inlined_call_operand.hbm [shape: bf16[128,512], index: 2, kind: input, shape index: {}]   ;;  %s12498_s3 = inlined_call_operand.hbm [shape: f32[1,512], index: 3, kind: input, shape index: {}]   ;;  %s12499_s4 = inlined_call_operand.hbm [shape: bf16[128,1024], index: 4, kind: input, shape index: {}]   ;;  %s12500_s5 = inlined_call_operand.hbm [shape: bf16[256,1024], index: 5, kind: input, shape index: {}]   ;;  %s12501_s6 = inlined_call_operand.hbm [shape: f32[1,1024], index: 6, kind: input, shape index: {}]   ;;  %s12502_s7 = inlined_call_operand.hbm [shape: bf16[256,128], index: 7, kind: input, shape index: {}]   ;;  %s12503_s8 = inlined_call_operand.vmem [shape: f32[1,128], index: 8, kind: input, shape index: {}]   ;;  %s12504_s9 = inlined_call_operand.hbm [shape: f32[8,128], index: 9, kind: output, shape index: {}]  }
   0x1   :  { %15 = vsyncpa [#allocation7], 0 }
   0x2   :  { %16 = vsyncpa [#allocation10], 0 }
   0x3   :  { %17 = vsyncpa [#allocation13], 0 }
   0x4   :  { %18 = vsyncpa [#allocation16], 0  ;;  %s35_s11 = sshll.u32 %s12496_s1, 4  ;;  %s36_s11 = int_to_ptr.hbm [resolvable:$true] %s35_s11 }
   0x5   :  { %19 = vsyncpa [#allocation5], 0  ;;  %s8626_s12 = smov [#allocation6]   ;;  %s62_s16 = sshll.u32 %s12498_s3, 4  ;;  %s63_s16 = int_to_ptr.hbm [resolvable:$true] %s62_s16 }
   0x6   :  { %s37_s13 = sshll.u32 %s8626_s12, 4  ;;  %s8627_s17 = smov 256   ;;  %s38_s13 = int_to_ptr.vmem [resolvable:$true] %s37_s13 }
   0x7   :  { %s8628_s18 = smov 16   ;;  %s8629_s19 = smov [#allocation9]  }
   0x8   :  { %43 = dma.hbm_to_vmem [thread:$0]  %s36_s11, 4096, %s38_s13, [#allocation7], %s8627_s17, %s8627_s17, %s8628_s18  }
   0x9   :  { %s64_s20 = sshll.u32 %s8629_s19, 4  ;;  %s85_s22 = sshll.u32 %s12500_s5, 4  ;;  %s65_s20 = int_to_ptr.vmem [resolvable:$true] %s64_s20  ;;  %s86_s22 = int_to_ptr.hbm [resolvable:$true] %s85_s22 }
   0xa   :  { %67 = dma.hbm_to_vmem [thread:$0]  %s63_s16, 64, %s65_s20, [#allocation10]  }
   0xb   :  { %s8630_s23 = smov [#allocation12]   ;;  %s25_s26 = sshll.u32 %s12495_s0, 4  ;;  %s26_s26 = int_to_ptr.hbm [resolvable:$true] %s25_s26 }
   0xc   :  { %s87_s24 = sshll.u32 %s8630_s23, 4  ;;  %s8631_s27 = smov 512   ;;  %s88_s24 = int_to_ptr.vmem [resolvable:$true] %s87_s24 }
   0xd   :  { %s8632_s28 = smov 32   ;;  %s8633_s29 = smov [#allocation3]  }
   0xe   :  { %93 = dma.hbm_to_vmem [thread:$0]  %s86_s22, 16384, %s88_s24, [#allocation13], %s8631_s27, %s8631_s27, %s8632_s28  }
   0xf   :  { %s27_s30 = sshll.u32 %s8633_s29, 4  ;;  %s48_s12 = sshll.u32 %s12497_s2, 4  ;;  %s28_s30 = int_to_ptr.vmem [resolvable:$true] %s27_s30  ;;  %s49_s12 = int_to_ptr.hbm [resolvable:$true] %s48_s12 }
  0x10   :  { %30 = dma.hbm_to_vmem [thread:$0]  %s26_s26, 16, %s28_s30, [#allocation4]  }
  0x11   :  { %s72_s14 = sshll.u32 %s12499_s4, 4  ;;  %s8634_s15 = smov [#allocation8]   ;;  %s73_s14 = int_to_ptr.hbm [resolvable:$true] %s72_s14 }
  0x12   :  { %s50_s16 = sshll.u32 %s8634_s15, 4  ;;  %s8635_s0 = smov [#allocation11]   ;;  %s51_s16 = int_to_ptr.vmem [resolvable:$true] %s50_s16 }
  0x13   :  { %56 = dma.hbm_to_vmem [thread:$0]  %s49_s12, 4096, %s51_s16, [#allocation7], %s8627_s17, %s8627_s17, %s8628_s18  }
  0x14   :  { %s74_s19 = sshll.u32 %s8635_s0, 4  ;;  %s99_s2 = sshll.u32 %s12501_s6, 4  ;;  %s75_s19 = int_to_ptr.vmem [resolvable:$true] %s74_s19  ;;  %s100_s2 = int_to_ptr.hbm [resolvable:$true] %s99_s2 }
  0x15   :  { %80 = dma.hbm_to_vmem [thread:$0]  %s73_s14, 8192, %s75_s19, [#allocation10], %s8631_s27, %s8631_s27, %s8632_s28  }
  0x16   :  { %s109_s4 = sshll.u32 %s12502_s7, 4  ;;  %s8636_s23 = smov [#allocation14]   ;;  %s110_s4 = int_to_ptr.hbm [resolvable:$true] %s109_s4 }
  0x17   :  { %s101_s24 = sshll.u32 %s8636_s23, 4  ;;  %s8637_s3 = smov [#allocation15]   ;;  %s102_s24 = int_to_ptr.vmem [resolvable:$true] %s101_s24 }
  0x18   :  { %104 = dma.hbm_to_vmem [thread:$0]  %s100_s2, 128, %s102_s24, [#allocation13]  }
  0x19   :  { %s111_s17 = sshll.u32 %s8637_s3, 4  ;;  %s8638_s18 = smov 64   ;;  %s112_s17 = int_to_ptr.vmem [resolvable:$true] %s111_s17 }
  0x1a   :  { %s8639_s25 = smov 4  }
  0x1b   :  { %117 = dma.hbm_to_vmem [thread:$0]  %s110_s4, 2048, %s112_s17, [#allocation16], %s8638_s18, %s8638_s18, %s8639_s25  }
  0x1c   :  { %8614 = dma.done.wait [#allocation4], 16  }
  0x1d   :  { %8615 = vsyncadd [#allocation4], 4294967280 }
  0x1e   :  { %8616 = dma.done.wait [#allocation7], 8192  }
  0x1f   :  { %8617 = vsyncadd [#allocation7], 4294959104 }
  0x20   :  { %8618 = dma.done.wait [#allocation10], 8256  }
  0x21   :  { %8619 = vsyncadd [#allocation10], 4294959040 }
  0x22   :  { %8620 = dma.done.wait [#allocation13], 16512  }
  0x23   :  { %8621 = vsyncadd [#allocation13], 4294950784 }
  0x24   :  { %8622 = dma.done.wait [#allocation16], 2048  }
  0x25   :  { %8623 = vsyncadd [#allocation16], 4294965248  ;;  %v6679_v0 = vld [vmem:[#allocation6 + $0xe0] sm:$0xf]  ;;  %v7979_v1 = vld [vmem:[#allocation6 + $0xec] sm:$0xf0] }
  0x26   :  { %v7977_v2 = vld [vmem:[#allocation6 + $0xe4] sm:$0xf]  ;;  %v6680_v3 = vor.u32 %v7979_v1, %v6679_v0  ;;  %v6681_v4 = vld [vmem:[#allocation6 + $0xf0] sm:$0xf0]  ;;  %v6687_v5 = vld [vmem:[#allocation6 + $0xe8] sm:$0xf] }
  0x27   :  { %v7980_v6 = vld [vmem:[#allocation6 + $0xf4] sm:$0xf0]  ;;  %v6684_v7 = vor.u32 %v7977_v2, %v6681_v4  ;;  %v7978_v9 = vld [vmem:[#allocation6 + $0xec] sm:$0xf]  ;;  %v6689_v10 = vld [vmem:[#allocation6 + $0xf8] sm:$0xf0] }
  0x28   :  { %v6688_v8 = vor.u32 %v7980_v6, %v6687_v5  ;;  %v6663_v11 = vld [vmem:[#allocation6 + $0xc0] sm:$0xf]  ;;  %582 = vmatpush.bf16.msra.mxu0 %v6680_v3  ;;  %v6692_v12 = vor.u32 %v7978_v9, %v6689_v10  ;;  %v7975_v13 = vld [vmem:[#allocation6 + $0xcc] sm:$0xf0]  ;;  %v7973_v14 = vld [vmem:[#allocation6 + $0xc4] sm:$0xf] }
  0x29   :  { %v6665_v15 = vld [vmem:[#allocation6 + $0xd0] sm:$0xf0]  ;;  %595 = vmatpush.bf16.msra.mxu1 %v6684_v7  ;;  %v6664_v16 = vor.u32 %v7975_v13, %v6663_v11  ;;  %v6671_v18 = vld [vmem:[#allocation6 + $0xc8] sm:$0xf]  ;;  %v7976_v19 = vld [vmem:[#allocation6 + $0xd4] sm:$0xf0] }
  0x2a   :  { %608 = vmatpush.bf16.msra.mxu2 %v6688_v8  ;;  %v6668_v17 = vor.u32 %v7973_v14, %v6665_v15  ;;  %v7974_v20 = vld [vmem:[#allocation6 + $0xcc] sm:$0xf]  ;;  %621 = vmatpush.bf16.msra.mxu3 %v6692_v12  ;;  %v6672_v21 = vor.u32 %v7976_v19, %v6671_v18  ;;  %v6673_v22 = vld [vmem:[#allocation6 + $0xd8] sm:$0xf0]  ;;  %v6647_v23 = vld [vmem:[#allocation6 + $0xa0] sm:$0xf] }
  0x2b   :  { %v7971_v24 = vld [vmem:[#allocation6 + $0xac] sm:$0xf0]  ;;  %v6676_v25 = vor.u32 %v7974_v20, %v6673_v22  ;;  %v7969_v26 = vld [vmem:[#allocation6 + $0xa4] sm:$0xf]  ;;  %v6649_v27 = vld [vmem:[#allocation6 + $0xb0] sm:$0xf0] }
  0x2c   :  { %v6655_v28 = vld [vmem:[#allocation6 + $0xa8] sm:$0xf]  ;;  %583 = vmatpush.bf16.msra.mxu0 %v6664_v16  ;;  %v6648_v29 = vor.u32 %v7971_v24, %v6647_v23  ;;  %v7972_v30 = vld [vmem:[#allocation6 + $0xb4] sm:$0xf0]  ;;  %v7970_v31 = vld [vmem:[#allocation6 + $0xac] sm:$0xf]  ;;  %v6652_v33 = vor.u32 %v7969_v26, %v6649_v27 }
  0x2d   :  { %v6657_v32 = vld [vmem:[#allocation6 + $0xb8] sm:$0xf0]  ;;  %596 = vmatpush.bf16.msra.mxu1 %v6668_v17  ;;  %v6656_v34 = vor.u32 %v7972_v30, %v6655_v28  ;;  %v6631_v35 = vld [vmem:[#allocation6 + $0x80] sm:$0xf]  ;;  %v7967_v36 = vld [vmem:[#allocation6 + $0x8c] sm:$0xf0] }
  0x2e   :  { %609 = vmatpush.bf16.msra.mxu2 %v6672_v21  ;;  %v7965_v37 = vld [vmem:[#allocation6 + $0x84] sm:$0xf]  ;;  %622 = vmatpush.bf16.msra.mxu3 %v6676_v25  ;;  %v6660_v38 = vor.u32 %v7970_v31, %v6657_v32  ;;  %v6633_v39 = vld [vmem:[#allocation6 + $0x90] sm:$0xf0]  ;;  %v6639_v40 = vld [vmem:[#allocation6 + $0x88] sm:$0xf]  ;;  %v6632_v44 = vor.u32 %v7967_v36, %v6631_v35 }
  0x2f   :  { %v7968_v41 = vld [vmem:[#allocation6 + $0x94] sm:$0xf0]  ;;  %v7966_v42 = vld [vmem:[#allocation6 + $0x8c] sm:$0xf]  ;;  %v6641_v43 = vld [vmem:[#allocation6 + $0x98] sm:$0xf0]  ;;  %v6636_v45 = vor.u32 %v7965_v37, %v6633_v39 }
  0x30   :  { %584 = vmatpush.bf16.msra.mxu0 %v6648_v29  ;;  %v6640_v46 = vor.u32 %v7968_v41, %v6639_v40  ;;  %v6615_v47 = vld [vmem:[#allocation6 + $0x60] sm:$0xf]  ;;  %v7963_v48 = vld [vmem:[#allocation6 + $0x6c] sm:$0xf0]  ;;  %v7961_v49 = vld [vmem:[#allocation6 + $0x64] sm:$0xf]  ;;  %v6644_v50 = vor.u32 %v7966_v42, %v6641_v43 }
  0x31   :  { %597 = vmatpush.bf16.msra.mxu1 %v6652_v33  ;;  %v6617_v51 = vld [vmem:[#allocation6 + $0x70] sm:$0xf0]  ;;  %v6623_v52 = vld [vmem:[#allocation6 + $0x68] sm:$0xf]  ;;  %v7964_v53 = vld [vmem:[#allocation6 + $0x74] sm:$0xf0]  ;;  %v6616_v56 = vor.u32 %v7963_v48, %v6615_v47 }
  0x32   :  { %610 = vmatpush.bf16.msra.mxu2 %v6656_v34  ;;  %623 = vmatpush.bf16.msra.mxu3 %v6660_v38  ;;  %v7962_v54 = vld [vmem:[#allocation6 + $0x6c] sm:$0xf]  ;;  %v6625_v55 = vld [vmem:[#allocation6 + $0x78] sm:$0xf0]  ;;  %v6620_v57 = vor.u32 %v7961_v49, %v6617_v51  ;;  %v6624_v58 = vor.u32 %v7964_v53, %v6623_v52  ;;  %v6599_v59 = vld [vmem:[#allocation6 + $0x40] sm:$0xf] }
  0x33   :  { %v7959_v60 = vld [vmem:[#allocation6 + $0x4c] sm:$0xf0]  ;;  %v7957_v61 = vld [vmem:[#allocation6 + $0x44] sm:$0xf]  ;;  %v6628_v62 = vor.u32 %v7962_v54, %v6625_v55  ;;  %v6601_v63 = vld [vmem:[#allocation6 + $0x50] sm:$0xf0] }
  0x34   :  { %585 = vmatpush.bf16.msra.mxu0 %v6632_v44  ;;  %v6607_v0 = vld [vmem:[#allocation6 + $0x48] sm:$0xf]  ;;  %v7960_v1 = vld [vmem:[#allocation6 + $0x54] sm:$0xf0]  ;;  %v7958_v2 = vld [vmem:[#allocation6 + $0x4c] sm:$0xf]  ;;  %v6600_v4 = vor.u32 %v7959_v60, %v6599_v59  ;;  %v6604_v5 = vor.u32 %v7957_v61, %v6601_v63 }
  0x35   :  { %598 = vmatpush.bf16.msra.mxu1 %v6636_v45  ;;  %v6609_v3 = vld [vmem:[#allocation6 + $0x58] sm:$0xf0]  ;;  %v6608_v6 = vor.u32 %v7960_v1, %v6607_v0  ;;  %v6583_v7 = vld [vmem:[#allocation6 + $0x20] sm:$0xf]  ;;  %v7955_v8 = vld [vmem:[#allocation6 + $0x2c] sm:$0xf0] }
  0x36   :  { %611 = vmatpush.bf16.msra.mxu2 %v6640_v46  ;;  %624 = vmatpush.bf16.msra.mxu3 %v6644_v50  ;;  %v7953_v9 = vld [vmem:[#allocation6 + $0x24] sm:$0xf]  ;;  %v6612_v10 = vor.u32 %v7958_v2, %v6609_v3  ;;  %v6585_v11 = vld [vmem:[#allocation6 + $0x30] sm:$0xf0]  ;;  %v6591_v12 = vld [vmem:[#allocation6 + $0x28] sm:$0xf]  ;;  %v6584_v16 = vor.u32 %v7955_v8, %v6583_v7 }
  0x37   :  { %v7956_v13 = vld [vmem:[#allocation6 + $0x34] sm:$0xf0]  ;;  %v7954_v14 = vld [vmem:[#allocation6 + $0x2c] sm:$0xf]  ;;  %v6593_v15 = vld [vmem:[#allocation6 + $0x38] sm:$0xf0]  ;;  %v6588_v19 = vor.u32 %v7953_v9, %v6585_v11 }
  0x38   :  { %586 = vmatpush.bf16.msra.mxu0 %v6616_v56  ;;  %v6567_v17 = vld [vmem:[#allocation6] sm:$0xf]  ;;  %v7951_v18 = vld [vmem:[#allocation6 + $0xc] sm:$0xf0]  ;;  %v6592_v20 = vor.u32 %v7956_v13, %v6591_v12  ;;  %v7949_v21 = vld [vmem:[#allocation6 + $0x4] sm:$0xf]  ;;  %v6596_v24 = vor.u32 %v7954_v14, %v6593_v15 }
  0x39   :  { %599 = vmatpush.bf16.msra.mxu1 %v6620_v57  ;;  %v6569_v22 = vld [vmem:[#allocation6 + $0x10] sm:$0xf0]  ;;  %v6575_v23 = vld [vmem:[#allocation6 + $0x8] sm:$0xf]  ;;  %v7952_v25 = vld [vmem:[#allocation6 + $0x14] sm:$0xf0]  ;;  %v6568_v31 = vor.u32 %v7951_v18, %v6567_v17 }
  0x3a   :  { %612 = vmatpush.bf16.msra.mxu2 %v6624_v58  ;;  %625 = vmatpush.bf16.msra.mxu3 %v6628_v62  ;;  %v7950_v26 = vld [vmem:[#allocation6 + $0xc] sm:$0xf]  ;;  %v6577_v27 = vld [vmem:[#allocation6 + $0x18] sm:$0xf0]  ;;  %v6807_v28 = vld [vmem:[#allocation8 + $0xe0] sm:$0xf]  ;;  %v6572_v35 = vor.u32 %v7949_v21, %v6569_v22  ;;  %v6576_v36 = vor.u32 %v7952_v25, %v6575_v23 }
  0x3b   :  { %v7755_v29 = vld [vmem:[#allocation8 + $0xec] sm:$0xf0]  ;;  %v7753_v30 = vld [vmem:[#allocation8 + $0xe4] sm:$0xf]  ;;  %v6809_v32 = vld [vmem:[#allocation8 + $0xf0] sm:$0xf0]  ;;  %v6580_v40 = vor.u32 %v7950_v26, %v6577_v27 }
  0x3c   :  { %587 = vmatpush.bf16.msra.mxu0 %v6600_v4  ;;  %v6815_v33 = vld [vmem:[#allocation8 + $0xe8] sm:$0xf]  ;;  %v7756_v34 = vld [vmem:[#allocation8 + $0xf4] sm:$0xf0]  ;;  %v7754_v37 = vld [vmem:[#allocation8 + $0xec] sm:$0xf]  ;;  %v8722_v41 = vor.u32 %v7755_v29, %v6807_v28  ;;  %v8724_v42 = vor.u32 %v7753_v30, %v6809_v32 }
  0x3d   :  { %600 = vmatpush.bf16.msra.mxu1 %v6604_v5  ;;  %v6817_v38 = vld [vmem:[#allocation8 + $0xf8] sm:$0xf0]  ;;  %v8726_v43 = vor.u32 %v7756_v34, %v6815_v33  ;;  %v6791_v44 = vld [vmem:[#allocation8 + $0xc0] sm:$0xf]  ;;  %v7751_v45 = vld [vmem:[#allocation8 + $0xcc] sm:$0xf0] }
  0x3e   :  { %613 = vmatpush.bf16.msra.mxu2 %v6608_v6  ;;  %626 = vmatpush.bf16.msra.mxu3 %v6612_v10  ;;  %v378_v39 = vld [vmem:[#allocation3] sm:$0x1]  ;;  %13007 = vst [vmem:[#allocation24_spill] sm:$0xff] %v8722_v41  ;;  %v7749_v46 = vld [vmem:[#allocation8 + $0xc4] sm:$0xf]  ;;  %v8728_v47 = vor.u32 %v7754_v37, %v6817_v38  ;;  %v8731_v54 = vor.u32 %v7751_v45, %v6791_v44  ;;  %s8641_s26 = smov [#allocation17]  }
  0x3f   :  { %13008 = vst [vmem:[#allocation25_spill] sm:$0xff] %v8724_v42  ;;  %v6793_v48 = vld [vmem:[#allocation8 + $0xd0] sm:$0xf0]  ;;  %v6799_v49 = vld [vmem:[#allocation8 + $0xc8] sm:$0xf]  ;;  %v379_v51 = vpack.c.bf16 %v378_v39, %v378_v39  ;;  %s6549_s27 = sshll.u32 %s8641_s26, 4  ;;  %s6550_s27 = int_to_ptr.vmem [resolvable:$true] %s6549_s27 }
  0x40   :  { %588 = vmatpush.bf16.msra.mxu0 %v6584_v16  ;;  %13009 = vst [vmem:[#allocation26_spill] sm:$0xff] %v8726_v43  ;;  %v7752_v50 = vld [vmem:[#allocation8 + $0xd4] sm:$0xf0]  ;;  %v7750_v52 = vld [vmem:[#allocation8 + $0xcc] sm:$0xf]  ;;  %v8735_v55 = vor.u32 %v7749_v46, %v6793_v48  ;;  %s6551_s30 = sshll.u32 %s12504_s9, 4  ;;  %s6552_s30 = int_to_ptr.hbm [resolvable:$true] %s6551_s30 }
  0x41   :  { %601 = vmatpush.bf16.msra.mxu1 %v6588_v19  ;;  %13010 = vst [vmem:[#allocation27_spill] sm:$0xff] %v8728_v47  ;;  %v6801_v53 = vld [vmem:[#allocation8 + $0xd8] sm:$0xf0]  ;;  %v8737_v56 = vor.u32 %v7752_v50, %v6799_v49  ;;  %v6775_v57 = vld [vmem:[#allocation8 + $0xa0] sm:$0xf] }
  0x42   :  { %614 = vmatpush.bf16.msra.mxu2 %v6592_v20  ;;  %627 = vmatpush.bf16.msra.mxu3 %v6596_v24  ;;  %13011 = vst [vmem:[#allocation28_spill] sm:$0xff] %v8731_v54  ;;  %v7747_v58 = vld [vmem:[#allocation8 + $0xac] sm:$0xf0]  ;;  %v7745_v59 = vld [vmem:[#allocation8 + $0xa4] sm:$0xf]  ;;  %v8740_v60 = vor.u32 %v7750_v52, %v6801_v53 }
  0x43   :  { %13012 = vst [vmem:[#allocation29_spill] sm:$0xff] %v8735_v55  ;;  %v6777_v61 = vld [vmem:[#allocation8 + $0xb0] sm:$0xf0]  ;;  %v6783_v62 = vld [vmem:[#allocation8 + $0xa8] sm:$0xf]  ;;  %v8743_v2 = vor.u32 %v7747_v58, %v6775_v57 }
  0x44   :  { %589 = vmatpush.bf16.msra.mxu0 %v6568_v31  ;;  %13013 = vst [vmem:[#allocation30_spill] sm:$0xff] %v8737_v56  ;;  %v7748_v63 = vld [vmem:[#allocation8 + $0xb4] sm:$0xf0]  ;;  %v7746_v0 = vld [vmem:[#allocation8 + $0xac] sm:$0xf]  ;;  %v8747_v3 = vor.u32 %v7745_v59, %v6777_v61 }
  0x45   :  { %602 = vmatpush.bf16.msra.mxu1 %v6572_v35  ;;  %13014 = vst [vmem:[#allocation31_spill] sm:$0xff] %v8740_v60  ;;  %v6785_v1 = vld [vmem:[#allocation8 + $0xb8] sm:$0xf0]  ;;  %v8749_v4 = vor.u32 %v7748_v63, %v6783_v62  ;;  %v6759_v5 = vld [vmem:[#allocation8 + $0x80] sm:$0xf] }
  0x46   :  { %615 = vmatpush.bf16.msra.mxu2 %v6576_v36  ;;  %628 = vmatpush.bf16.msra.mxu3 %v6580_v40  ;;  %13015 = vst [vmem:[#allocation32_spill] sm:$0xff] %v8743_v2  ;;  %v7743_v6 = vld [vmem:[#allocation8 + $0x8c] sm:$0xf0]  ;;  %v7741_v7 = vld [vmem:[#allocation8 + $0x84] sm:$0xf]  ;;  %v8752_v8 = vor.u32 %v7746_v0, %v6785_v1 }
  0x47   :  { %590 = vmatmul.bf16.vlgmr.msra.gmra.mxu0 %v379_v51  ;;  %13016 = vst [vmem:[#allocation33_spill] sm:$0xff] %v8747_v3  ;;  %v6761_v9 = vld [vmem:[#allocation8 + $0x90] sm:$0xf0]  ;;  %v6767_v10 = vld [vmem:[#allocation8 + $0x88] sm:$0xf]  ;;  %v8755_v14 = vor.u32 %v7743_v6, %v6759_v5 }
  0x48   :  { %794 = vmatpush.bf16.msrb.mxu0 %v8722_v41  ;;  %603 = vmatmul.bf16.vlgmr.msra.gmra.mxu1 %v379_v51  ;;  %13017 = vst [vmem:[#allocation34_spill] sm:$0xff] %v8749_v4  ;;  %v7744_v11 = vld [vmem:[#allocation8 + $0x94] sm:$0xf0]  ;;  %v7742_v12 = vld [vmem:[#allocation8 + $0x8c] sm:$0xf]  ;;  %v8759_v15 = vor.u32 %v7741_v7, %v6761_v9 }
  0x49   :  { %807 = vmatpush.bf16.msrb.mxu1 %v8724_v42  ;;  %629 = vmatmul.bf16.vlgmr.msra.gmra.mxu3 %v379_v51  ;;  %13018 = vst [vmem:[#allocation35_spill] sm:$0xff] %v8752_v8  ;;  %v6769_v13 = vld [vmem:[#allocation8 + $0x98] sm:$0xf0]  ;;  %v8761_v16 = vor.u32 %v7744_v11, %v6767_v10  ;;  %v6743_v17 = vld [vmem:[#allocation8 + $0x60] sm:$0xf] }
  0x4a   :  { %820 = vmatpush.bf16.msrb.mxu2 %v8726_v43  ;;  %833 = vmatpush.bf16.msrb.mxu3 %v8728_v47  ;;  %13019 = vst [vmem:[#allocation36_spill] sm:$0xff] %v8755_v14  ;;  %v7739_v18 = vld [vmem:[#allocation8 + $0x6c] sm:$0xf0]  ;;  %v7737_v19 = vld [vmem:[#allocation8 + $0x64] sm:$0xf]  ;;  %v8764_v20 = vor.u32 %v7742_v12, %v6769_v13 }
  0x4b   :  { %616 = vmatmul.bf16.vlgmr.msra.gmra.mxu2 %v379_v51  ;;  %13020 = vst [vmem:[#allocation37_spill] sm:$0xff] %v8759_v15  ;;  %v6745_v21 = vld [vmem:[#allocation8 + $0x70] sm:$0xf0]  ;;  %v6751_v22 = vld [vmem:[#allocation8 + $0x68] sm:$0xf]  ;;  %v8767_v26 = vor.u32 %v7739_v18, %v6743_v17 }
  0x4c   :  { %795 = vmatpush.bf16.msrb.mxu0 %v8731_v54  ;;  %13021 = vst [vmem:[#allocation38_spill] sm:$0xff] %v8761_v16  ;;  %v7740_v23 = vld [vmem:[#allocation8 + $0x74] sm:$0xf0]  ;;  %v7738_v24 = vld [vmem:[#allocation8 + $0x6c] sm:$0xf]  ;;  %v8771_v27 = vor.u32 %v7737_v19, %v6745_v21 }
  0x4d   :  { %808 = vmatpush.bf16.msrb.mxu1 %v8735_v55  ;;  %13022 = vst [vmem:[#allocation39_spill] sm:$0xff] %v8764_v20  ;;  %v6753_v25 = vld [vmem:[#allocation8 + $0x78] sm:$0xf0]  ;;  %v8773_v28 = vor.u32 %v7740_v23, %v6751_v22  ;;  %v6727_v29 = vld [vmem:[#allocation8 + $0x40] sm:$0xf] }
  0x4e   :  { %821 = vmatpush.bf16.msrb.mxu2 %v8737_v56  ;;  %834 = vmatpush.bf16.msrb.mxu3 %v8740_v60  ;;  %13023 = vst [vmem:[#allocation40_spill] sm:$0xff] %v8767_v26  ;;  %v7735_v30 = vld [vmem:[#allocation8 + $0x4c] sm:$0xf0]  ;;  %v7733_v31 = vld [vmem:[#allocation8 + $0x44] sm:$0xf]  ;;  %v8776_v32 = vor.u32 %v7738_v24, %v6753_v25 }
  0x4f   :  { %13024 = vst [vmem:[#allocation41_spill] sm:$0xff] %v8771_v27  ;;  %v6729_v33 = vld [vmem:[#allocation8 + $0x50] sm:$0xf0]  ;;  %v6735_v34 = vld [vmem:[#allocation8 + $0x48] sm:$0xf]  ;;  %v8779_v38 = vor.u32 %v7735_v30, %v6727_v29 }
  0x50   :  { %796 = vmatpush.bf16.msrb.mxu0 %v8743_v2  ;;  %13025 = vst [vmem:[#allocation42_spill] sm:$0xff] %v8773_v28  ;;  %v7736_v35 = vld [vmem:[#allocation8 + $0x54] sm:$0xf0]  ;;  %v7734_v36 = vld [vmem:[#allocation8 + $0x4c] sm:$0xf]  ;;  %v8783_v39 = vor.u32 %v7733_v31, %v6729_v33 }
  0x51   :  { %809 = vmatpush.bf16.msrb.mxu1 %v8747_v3  ;;  %13026 = vst [vmem:[#allocation43_spill] sm:$0xff] %v8776_v32  ;;  %v6737_v37 = vld [vmem:[#allocation8 + $0x58] sm:$0xf0]  ;;  %v8785_v40 = vor.u32 %v7736_v35, %v6735_v34  ;;  %v6711_v44 = vld [vmem:[#allocation8 + $0x20] sm:$0xf] }
  0x52   :  { %822 = vmatpush.bf16.msrb.mxu2 %v8749_v4  ;;  %835 = vmatpush.bf16.msrb.mxu3 %v8752_v8  ;;  %13027 = vst [vmem:[#allocation44_spill] sm:$0xff] %v8779_v38  ;;  %v7731_v45 = vld [vmem:[#allocation8 + $0x2c] sm:$0xf0]  ;;  %v7729_v46 = vld [vmem:[#allocation8 + $0x24] sm:$0xf]  ;;  %v8788_v48 = vor.u32 %v7734_v36, %v6737_v37 }
  0x53   :  { %13028 = vst [vmem:[#allocation45_spill] sm:$0xff] %v8783_v39  ;;  %v6713_v49 = vld [vmem:[#allocation8 + $0x30] sm:$0xf0]  ;;  %v6719_v50 = vld [vmem:[#allocation8 + $0x28] sm:$0xf]  ;;  %v8791_v57 = vor.u32 %v7731_v45, %v6711_v44 }
  0x54   :  { %797 = vmatpush.bf16.msrb.mxu0 %v8755_v14  ;;  %13029 = vst [vmem:[#allocation46_spill] sm:$0xff] %v8785_v40  ;;  %v7732_v51 = vld [vmem:[#allocation8 + $0x34] sm:$0xf0]  ;;  %v7730_v52 = vld [vmem:[#allocation8 + $0x2c] sm:$0xf]  ;;  %v8795_v61 = vor.u32 %v7729_v46, %v6713_v49 }
  0x55   :  { %810 = vmatpush.bf16.msrb.mxu1 %v8759_v15  ;;  %13030 = vst [vmem:[#allocation47_spill] sm:$0xff] %v8788_v48  ;;  %v6721_v53 = vld [vmem:[#allocation8 + $0x38] sm:$0xf0]  ;;  %v6695_v58 = vld [vmem:[#allocation8] sm:$0xf]  ;;  %v8797_v62 = vor.u32 %v7732_v51, %v6719_v50 }
  0x56   :  { %823 = vmatpush.bf16.msrb.mxu2 %v8761_v16  ;;  %836 = vmatpush.bf16.msrb.mxu3 %v8764_v20  ;;  %13031 = vst [vmem:[#allocation48_spill] sm:$0xff] %v8791_v57  ;;  %v7727_v59 = vld [vmem:[#allocation8 + $0xc] sm:$0xf0]  ;;  %v7725_v63 = vld [vmem:[#allocation8 + $0x4] sm:$0xf]  ;;  %v8800_v5 = vor.u32 %v7730_v52, %v6721_v53 }
  0x57   :  { %13032 = vst [vmem:[#allocation49_spill] sm:$0xff] %v8795_v61  ;;  %v6697_v0 = vld [vmem:[#allocation8 + $0x10] sm:$0xf0]  ;;  %v6703_v1 = vld [vmem:[#allocation8 + $0x8] sm:$0xf]  ;;  %v8803_v13 = vor.u32 %v7727_v59, %v6695_v58 }
  0x58   :  { %798 = vmatpush.bf16.msrb.mxu0 %v8767_v26  ;;  %13033 = vst [vmem:[#allocation50_spill] sm:$0xff] %v8797_v62  ;;  %v7728_v6 = vld [vmem:[#allocation8 + $0x14] sm:$0xf0]  ;;  %v7726_v7 = vld [vmem:[#allocation8 + $0xc] sm:$0xf]  ;;  %v8807_v21 = vor.u32 %v7725_v63, %v6697_v0  ;;  %v12505_v63 = vmov 0  }
  0x59   :  { %811 = vmatpush.bf16.msrb.mxu1 %v8771_v27  ;;  %13034 = vst [vmem:[#allocation51_spill] sm:$0xff] %v8800_v5  ;;  %v6705_v9 = vld [vmem:[#allocation8 + $0x18] sm:$0xf0]  ;;  %v7047_v10 = vld [vmem:[#allocation12 + $0x1c0] sm:$0xf]  ;;  %v8809_v22 = vor.u32 %v7728_v6, %v6703_v1 }
  0x5a   :  { %824 = vmatpush.bf16.msrb.mxu2 %v8773_v28  ;;  %837 = vmatpush.bf16.msrb.mxu3 %v8776_v32  ;;  %v7881_v11 = vld [vmem:[#allocation12 + $0x1dc] sm:$0xf0]  ;;  %13035 = vst [vmem:[#allocation52_spill] sm:$0xff] %v8803_v13  ;;  %v7877_v18 = vld [vmem:[#allocation12 + $0x1c4] sm:$0xf]  ;;  %v8812_v25 = vor.u32 %v7726_v7, %v6705_v9 }
  0x5b   :  { %v7303_v12 = vld [vmem:[#allocation12 + $0x3c0] sm:$0xf]  ;;  %v7049_v19 = vld [vmem:[#allocation12 + $0x1e0] sm:$0xf0]  ;;  %13036 = vst [vmem:[#allocation53_spill] sm:$0xff] %v8807_v21  ;;  %v8814_v29 = vor.u32 %v7881_v11, %v7047_v10 }
  0x5c   :  { %799 = vmatpush.bf16.msrb.mxu0 %v8779_v38  ;;  %v7945_v17 = vld [vmem:[#allocation12 + $0x3dc] sm:$0xf0]  ;;  %13037 = vst [vmem:[#allocation54_spill] sm:$0xff] %v8809_v22  ;;  %v7941_v23 = vld [vmem:[#allocation12 + $0x3c4] sm:$0xf]  ;;  %v8818_v31 = vor.u32 %v7877_v18, %v7049_v19 }
  0x5d   :  { %812 = vmatpush.bf16.msrb.mxu1 %v8783_v39  ;;  %v7305_v24 = vld [vmem:[#allocation12 + $0x3e0] sm:$0xf0]  ;;  %13038 = vst [vmem:[#allocation55_spill] sm:$0xff] %v8812_v25  ;;  %v8816_v30 = vor.u32 %v7945_v17, %v7303_v12  ;;  %v7015_v33 = vld [vmem:[#allocation12 + $0x180] sm:$0xf] }
  0x5e   :  { %825 = vmatpush.bf16.msrb.mxu2 %v8785_v40  ;;  %838 = vmatpush.bf16.msrb.mxu3 %v8788_v48  ;;  %13039 = vst [vmem:[#allocation56_spill] sm:$0xff] %v8814_v29  ;;  %v7873_v34 = vld [vmem:[#allocation12 + $0x19c] sm:$0xf0]  ;;  %v8821_v36 = vor.u32 %v7941_v23, %v7305_v24  ;;  %v7869_v44 = vld [vmem:[#allocation12 + $0x184] sm:$0xf] }
  0x5f   :  { %13040 = vst [vmem:[#allocation57_spill] sm:$0xff] %v8816_v30  ;;  %v7271_v35 = vld [vmem:[#allocation12 + $0x380] sm:$0xf]  ;;  %v7017_v45 = vld [vmem:[#allocation12 + $0x1a0] sm:$0xf0]  ;;  %v8827_v50 = vor.u32 %v7873_v34, %v7015_v33 }
  0x60   :  { %800 = vmatpush.bf16.msrb.mxu0 %v8791_v57  ;;  %13041 = vst [vmem:[#allocation58_spill] sm:$0xff] %v8818_v31  ;;  %v7937_v37 = vld [vmem:[#allocation12 + $0x39c] sm:$0xf0]  ;;  %v7933_v46 = vld [vmem:[#allocation12 + $0x384] sm:$0xf]  ;;  %v8833_v52 = vor.u32 %v7869_v44, %v7017_v45 }
  0x61   :  { %813 = vmatpush.bf16.msrb.mxu1 %v8795_v61  ;;  %13042 = vst [vmem:[#allocation59_spill] sm:$0xff] %v8821_v36  ;;  %v7273_v49 = vld [vmem:[#allocation12 + $0x3a0] sm:$0xf0]  ;;  %v8831_v51 = vor.u32 %v7937_v37, %v7271_v35  ;;  %v6983_v53 = vld [vmem:[#allocation12 + $0x140] sm:$0xf] }
  0x62   :  { %826 = vmatpush.bf16.msrb.mxu2 %v8797_v62  ;;  %839 = vmatpush.bf16.msrb.mxu3 %v8800_v5  ;;  %13043 = vst [vmem:[#allocation60_spill] sm:$0xff] %v8827_v50  ;;  %v7865_v58 = vld [vmem:[#allocation12 + $0x15c] sm:$0xf0]  ;;  %v8837_v0 = vor.u32 %v7933_v46, %v7273_v49  ;;  %v7861_v6 = vld [vmem:[#allocation12 + $0x144] sm:$0xf] }
  0x63   :  { %13044 = vst [vmem:[#allocation61_spill] sm:$0xff] %v8831_v51  ;;  %v7239_v59 = vld [vmem:[#allocation12 + $0x340] sm:$0xf]  ;;  %v6985_v7 = vld [vmem:[#allocation12 + $0x160] sm:$0xf0]  ;;  %v8843_v11 = vor.u32 %v7865_v58, %v6983_v53 }
  0x64   :  { %801 = vmatpush.bf16.msrb.mxu0 %v8803_v13  ;;  %13045 = vst [vmem:[#allocation62_spill] sm:$0xff] %v8833_v52  ;;  %v7929_v1 = vld [vmem:[#allocation12 + $0x35c] sm:$0xf0]  ;;  %v7925_v9 = vld [vmem:[#allocation12 + $0x344] sm:$0xf]  ;;  %v8849_v17 = vor.u32 %v7861_v6, %v6985_v7 }
  0x65   :  { %814 = vmatpush.bf16.msrb.mxu1 %v8807_v21  ;;  %13046 = vst [vmem:[#allocation63_spill] sm:$0xff] %v8837_v0  ;;  %v7241_v10 = vld [vmem:[#allocation12 + $0x360] sm:$0xf0]  ;;  %v8847_v12 = vor.u32 %v7929_v1, %v7239_v59  ;;  %v6951_v18 = vld [vmem:[#allocation12 + $0x100] sm:$0xf] }
  0x66   :  { %827 = vmatpush.bf16.msrb.mxu2 %v8809_v22  ;;  %840 = vmatpush.bf16.msrb.mxu3 %v8812_v25  ;;  %13047 = vst [vmem:[#allocation64_spill] sm:$0xff] %v8843_v11  ;;  %v7857_v19 = vld [vmem:[#allocation12 + $0x11c] sm:$0xf0]  ;;  %v8852_v24 = vor.u32 %v7925_v9, %v7241_v10  ;;  %v7853_v34 = vld [vmem:[#allocation12 + $0x104] sm:$0xf] }
  0x67   :  { %802 = vmatmul.bf16.vlgmr.msrb.gmra.mxu0 %v12505_v63  ;;  %13048 = vst [vmem:[#allocation65_spill] sm:$0xff] %v8847_v12  ;;  %v7207_v23 = vld [vmem:[#allocation12 + $0x300] sm:$0xf]  ;;  %v6953_v35 = vld [vmem:[#allocation12 + $0x120] sm:$0xf0]  ;;  %v8855_v45 = vor.u32 %v7857_v19, %v6951_v18 }
  0x68   :  { %1507 = vmatpush.bf16.msra.mxu0 %v8814_v29  ;;  %815 = vmatmul.bf16.vlgmr.msrb.gmra.mxu1 %v12505_v63  ;;  %13049 = vst [vmem:[#allocation66_spill] sm:$0xff] %v8849_v17  ;;  %v7921_v33 = vld [vmem:[#allocation12 + $0x31c] sm:$0xf0]  ;;  %v7917_v37 = vld [vmem:[#allocation12 + $0x304] sm:$0xf]  ;;  %v8861_v49 = vor.u32 %v7853_v34, %v6953_v35 }
  0x69   :  { %1520 = vmatpush.bf16.msra.mxu1 %v8816_v30  ;;  %841 = vmatmul.bf16.vlgmr.msrb.gmra.mxu3 %v12505_v63  ;;  %13050 = vst [vmem:[#allocation67_spill] sm:$0xff] %v8852_v24  ;;  %v7209_v44 = vld [vmem:[#allocation12 + $0x320] sm:$0xf0]  ;;  %v8859_v46 = vor.u32 %v7921_v33, %v7207_v23  ;;  %v6919_v53 = vld [vmem:[#allocation12 + $0xc0] sm:$0xf] }
  0x6a   :  { %1533 = vmatpush.bf16.msra.mxu2 %v8818_v31  ;;  %1546 = vmatpush.bf16.msra.mxu3 %v8821_v36  ;;  %13051 = vst [vmem:[#allocation68_spill] sm:$0xff] %v8855_v45  ;;  %v7849_v58 = vld [vmem:[#allocation12 + $0xdc] sm:$0xf0]  ;;  %v8864_v1 = vor.u32 %v7917_v37, %v7209_v44  ;;  %v7845_v7 = vld [vmem:[#allocation12 + $0xc4] sm:$0xf] }
  0x6b   :  { %828 = vmatmul.bf16.vlgmr.msrb.gmra.mxu2 %v12505_v63  ;;  %13052 = vst [vmem:[#allocation69_spill] sm:$0xff] %v8859_v46  ;;  %v7175_v59 = vld [vmem:[#allocation12 + $0x2c0] sm:$0xf]  ;;  %v6921_v9 = vld [vmem:[#allocation12 + $0xe0] sm:$0xf0]  ;;  %v8867_v19 = vor.u32 %v7849_v58, %v6919_v53 }
  0x6c   :  { %1508 = vmatpush.bf16.msra.mxu0 %v8827_v50  ;;  %13053 = vst [vmem:[#allocation70_spill] sm:$0xff] %v8861_v49  ;;  %v7913_v6 = vld [vmem:[#allocation12 + $0x2dc] sm:$0xf0]  ;;  %v7909_v10 = vld [vmem:[#allocation12 + $0x2c4] sm:$0xf]  ;;  %v8873_v33 = vor.u32 %v7845_v7, %v6921_v9 }
  0x6d   :  { %1521 = vmatpush.bf16.msra.mxu1 %v8831_v51  ;;  %13054 = vst [vmem:[#allocation71_spill] sm:$0xff] %v8864_v1  ;;  %v7177_v18 = vld [vmem:[#allocation12 + $0x2e0] sm:$0xf0]  ;;  %v8871_v23 = vor.u32 %v7913_v6, %v7175_v59  ;;  %v6887_v34 = vld [vmem:[#allocation12 + $0x80] sm:$0xf] }
  0x6e   :  { %1534 = vmatpush.bf16.msra.mxu2 %v8833_v52  ;;  %1547 = vmatpush.bf16.msra.mxu3 %v8837_v0  ;;  %13055 = vst [vmem:[#allocation72_spill] sm:$0xff] %v8867_v19  ;;  %v7841_v35 = vld [vmem:[#allocation12 + $0x9c] sm:$0xf0]  ;;  %v8876_v44 = vor.u32 %v7909_v10, %v7177_v18  ;;  %v7901_v53 = vld [vmem:[#allocation12 + $0x284] sm:$0xf] }
  0x6f   :  { %13056 = vst [vmem:[#allocation73_spill] sm:$0xff] %v8871_v23  ;;  %v7143_v37 = vld [vmem:[#allocation12 + $0x280] sm:$0xf]  ;;  %v7145_v58 = vld [vmem:[#allocation12 + $0x2a0] sm:$0xf0] }
  0x70   :  { %1509 = vmatpush.bf16.msra.mxu0 %v8843_v11  ;;  %13057 = vst [vmem:[#allocation74_spill] sm:$0xff] %v8873_v33  ;;  %v7905_v63 = vld [vmem:[#allocation12 + $0x29c] sm:$0xf0]  ;;  %v8888_v18 = vor.u32 %v7901_v53, %v7145_v58  ;;  %v7311_v11 = vld [vmem:[#allocation12 + $0x3c8] sm:$0xf] }
  0x71   :  { %1522 = vmatpush.bf16.msra.mxu1 %v8847_v12  ;;  %13058 = vst [vmem:[#allocation75_spill] sm:$0xff] %v8876_v44  ;;  %v8883_v59 = vor.u32 %v7905_v63, %v7143_v37  ;;  %v6855_v7 = vld [vmem:[#allocation12 + $0x40] sm:$0xf]  ;;  %v7882_v12 = vld [vmem:[#allocation12 + $0x1e4] sm:$0xf0] }
  0x72   :  { %1535 = vmatpush.bf16.msra.mxu2 %v8849_v17  ;;  %1548 = vmatpush.bf16.msra.mxu3 %v8852_v24  ;;  %v7837_v24 = vld [vmem:[#allocation12 + $0x84] sm:$0xf]  ;;  %v7833_v9 = vld [vmem:[#allocation12 + $0x5c] sm:$0xf0]  ;;  %13062 = vst [vmem:[#allocation79_spill] sm:$0xff] %v8888_v18 }
  0x73   :  { %13060 = vst [vmem:[#allocation77_spill] sm:$0xff] %v8883_v59  ;;  %v7111_v10 = vld [vmem:[#allocation12 + $0x240] sm:$0xf]  ;;  %v7055_v17 = vld [vmem:[#allocation12 + $0x1c8] sm:$0xf] }
  0x74   :  { %1510 = vmatpush.bf16.msra.mxu0 %v8855_v45  ;;  %v6889_v45 = vld [vmem:[#allocation12 + $0xa0] sm:$0xf0]  ;;  %v6823_v63 = vld [vmem:[#allocation12] sm:$0xf]  ;;  %v7023_v0 = vld [vmem:[#allocation12 + $0x188] sm:$0xf] }
  0x75   :  { %1523 = vmatpush.bf16.msra.mxu1 %v8859_v46  ;;  %v8879_v46 = vor.u32 %v7841_v35, %v6887_v34  ;;  %v8885_v6 = vor.u32 %v7837_v24, %v6889_v45  ;;  %v7893_v34 = vld [vmem:[#allocation12 + $0x244] sm:$0xf]  ;;  %v7825_v37 = vld [vmem:[#allocation12 + $0x1c] sm:$0xf0]  ;;  %v7279_v52 = vld [vmem:[#allocation12 + $0x388] sm:$0xf] }
  0x76   :  { %1536 = vmatpush.bf16.msra.mxu2 %v8861_v49  ;;  %1549 = vmatpush.bf16.msra.mxu3 %v8864_v1  ;;  %v7897_v1 = vld [vmem:[#allocation12 + $0x25c] sm:$0xf0]  ;;  %v7829_v49 = vld [vmem:[#allocation12 + $0x44] sm:$0xf]  ;;  %v7287_v51 = vld [vmem:[#allocation12 + $0x390] sm:$0xf] }
  0x77   :  { %13059 = vst [vmem:[#allocation76_spill] sm:$0xff] %v8879_v46  ;;  %v7113_v35 = vld [vmem:[#allocation12 + $0x260] sm:$0xf0]  ;;  %v8895_v24 = vor.u32 %v7897_v1, %v7111_v10  ;;  %v7079_v53 = vld [vmem:[#allocation12 + $0x200] sm:$0xf] }
  0x78   :  { %1511 = vmatpush.bf16.msra.mxu0 %v8867_v19  ;;  %13061 = vst [vmem:[#allocation78_spill] sm:$0xff] %v8885_v6  ;;  %v6857_v19 = vld [vmem:[#allocation12 + $0x60] sm:$0xf0]  ;;  %v7889_v58 = vld [vmem:[#allocation12 + $0x21c] sm:$0xf0] }
  0x79   :  { %1524 = vmatpush.bf16.msra.mxu1 %v8871_v23  ;;  %v8891_v23 = vor.u32 %v7833_v9, %v6855_v7  ;;  %13064 = vst [vmem:[#allocation81_spill] sm:$0xff] %v8895_v24  ;;  %v8897_v45 = vor.u32 %v7829_v49, %v6857_v19  ;;  %v7885_v7 = vld [vmem:[#allocation12 + $0x204] sm:$0xf]  ;;  %v7946_v1 = vld [vmem:[#allocation12 + $0x3e4] sm:$0xf0]  ;;  %v8907_v10 = vor.u32 %v7889_v58, %v7079_v53 }
  0x7a   :  { %1537 = vmatpush.bf16.msra.mxu2 %v8873_v33  ;;  %1550 = vmatpush.bf16.msra.mxu3 %v8876_v44  ;;  %v7821_v44 = vld [vmem:[#allocation12 + $0x4] sm:$0xf]  ;;  %v8900_v33 = vor.u32 %v7893_v34, %v7113_v35  ;;  %v7878_v49 = vld [vmem:[#allocation12 + $0x1cc] sm:$0xf]  ;;  %v7562_v50 = vld [vmem:[#allocation11 + $0x1c0] sm:$0xf] }
  0x7b   :  { %13063 = vst [vmem:[#allocation80_spill] sm:$0xff] %v8891_v23  ;;  %v7081_v9 = vld [vmem:[#allocation12 + $0x220] sm:$0xf0]  ;;  %v7057_v19 = vld [vmem:[#allocation12 + $0x1e8] sm:$0xf0] }
  0x7c   :  { %1512 = vmatpush.bf16.msra.mxu0 %v8879_v46  ;;  %13065 = vst [vmem:[#allocation82_spill] sm:$0xff] %v8897_v45  ;;  %v6825_v46 = vld [vmem:[#allocation12 + $0x20] sm:$0xf0]  ;;  %v7942_v35 = vld [vmem:[#allocation12 + $0x3cc] sm:$0xf] }
  0x7d   :  { %1525 = vmatpush.bf16.msra.mxu1 %v8883_v59  ;;  %13066 = vst [vmem:[#allocation83_spill] sm:$0xff] %v8900_v33  ;;  %v8909_v34 = vor.u32 %v7821_v44, %v6825_v46  ;;  %v8912_v59 = vor.u32 %v7885_v7, %v7081_v9  ;;  %v7938_v46 = vld [vmem:[#allocation12 + $0x3a4] sm:$0xf0]  ;;  %v7870_v44 = vld [vmem:[#allocation12 + $0x18c] sm:$0xf] }
  0x7e   :  { %1538 = vmatpush.bf16.msra.mxu2 %v8885_v6  ;;  %1551 = vmatpush.bf16.msra.mxu3 %v8888_v18  ;;  %v8903_v6 = vor.u32 %v7825_v37, %v6823_v63  ;;  %13068 = vst [vmem:[#allocation85_spill] sm:$0xff] %v8907_v10  ;;  %v7313_v18 = vld [vmem:[#allocation12 + $0x3e8] sm:$0xf0]  ;;  %v8916_v63 = vor.u32 %v7946_v1, %v7311_v11  ;;  %v6991_v9 = vld [vmem:[#allocation12 + $0x148] sm:$0xf] }
  0x7f   :  { %13069 = vst [vmem:[#allocation86_spill] sm:$0xff] %v8909_v34  ;;  %v8918_v37 = vor.u32 %v7878_v49, %v7057_v19  ;;  %v8921_v53 = vor.u32 %v7942_v35, %v7313_v18  ;;  %v7025_v58 = vld [vmem:[#allocation12 + $0x1a8] sm:$0xf0]  ;;  %v8931_v18 = vor.u32 %v7938_v46, %v7279_v52  ;;  %v7866_v1 = vld [vmem:[#allocation12 + $0x164] sm:$0xf0] }
  0x80   :  { %1513 = vmatpush.bf16.msra.mxu0 %v8891_v23  ;;  %13067 = vst [vmem:[#allocation84_spill] sm:$0xff] %v8903_v6  ;;  %v8914_v23 = vor.u32 %v7882_v12, %v7055_v17  ;;  %v7934_v12 = vld [vmem:[#allocation12 + $0x38c] sm:$0xf]  ;;  %v8933_v7 = vor.u32 %v7870_v44, %v7025_v58  ;;  %v7247_v49 = vld [vmem:[#allocation12 + $0x348] sm:$0xf]  ;;  %v8942_v52 = vor.u32 %v7866_v1, %v6991_v9 }
  0x81   :  { %1526 = vmatpush.bf16.msra.mxu1 %v8895_v24  ;;  %13070 = vst [vmem:[#allocation87_spill] sm:$0xff] %v8912_v59  ;;  %v7874_v24 = vld [vmem:[#allocation12 + $0x1a4] sm:$0xf0]  ;;  %v7281_v17 = vld [vmem:[#allocation12 + $0x3a8] sm:$0xf0] }
  0x82   :  { %1539 = vmatpush.bf16.msra.mxu2 %v8897_v45  ;;  %1552 = vmatpush.bf16.msra.mxu3 %v8900_v33  ;;  %13071 = vst [vmem:[#allocation88_spill] sm:$0xff] %v8914_v23  ;;  %v8927_v11 = vor.u32 %v7874_v24, %v7023_v0  ;;  %v8936_v19 = vor.u32 %v7934_v12, %v7281_v17  ;;  %v7930_v35 = vld [vmem:[#allocation12 + $0x364] sm:$0xf0]  ;;  %v13079_v0 = vmov 0   ;;  %v7926_v24 = vld [vmem:[#allocation12 + $0x34c] sm:$0xf] }
  0x83   :  { %13072 = vst [vmem:[#allocation89_spill] sm:$0xff] %v8916_v63  ;;  %v8947_v46 = vor.u32 %v7930_v35, %v7247_v49  ;;  %v6959_v58 = vld [vmem:[#allocation12 + $0x108] sm:$0xf]  ;;  %v7854_v9 = vld [vmem:[#allocation12 + $0x10c] sm:$0xf] }
  0x84   :  { %13073 = vst [vmem:[#allocation90_spill] sm:$0xff] %v8918_v37  ;;  %1514 = vmatpush.bf16.msra.mxu0 %v8903_v6  ;;  %v7858_v12 = vld [vmem:[#allocation12 + $0x124] sm:$0xf0]  ;;  %v6961_v1 = vld [vmem:[#allocation12 + $0x128] sm:$0xf0] }
  0x85   :  { %13074 = vst [vmem:[#allocation91_spill] sm:$0xff] %v8921_v53  ;;  %1527 = vmatpush.bf16.msra.mxu1 %v8907_v10  ;;  %v7215_v17 = vld [vmem:[#allocation12 + $0x308] sm:$0xf]  ;;  %v7063_v10 = vld [vmem:[#allocation12 + $0x1d0] sm:$0xf] }
  0x86   :  { %1540 = vmatpush.bf16.msra.mxu2 %v8909_v34  ;;  %1553 = vmatpush.bf16.msra.mxu3 %v8912_v59  ;;  %13075 = vst [vmem:[#allocation92_spill] sm:$0xff] %v8927_v11  ;;  %v7862_v59 = vld [vmem:[#allocation12 + $0x14c] sm:$0xf]  ;;  %v6927_v49 = vld [vmem:[#allocation12 + $0xc8] sm:$0xf] }
  0x87   :  { %13076 = vst [vmem:[#allocation93_spill] sm:$0xff] %v8931_v18  ;;  %v6993_v34 = vld [vmem:[#allocation12 + $0x168] sm:$0xf0]  ;;  %1515 = vmatmul.bf16.vlgmr.msra.gmra.mxu0 %v13079_v0  ;;  %v7183_v35 = vld [vmem:[#allocation12 + $0x2c8] sm:$0xf] }
  0x88   :  { %1559 = vmatpush.bf16.msrb.mxu0 %v8914_v23  ;;  %13077 = vst [vmem:[#allocation94_spill] sm:$0xff] %v8933_v7  ;;  %1528 = vmatmul.bf16.vlgmr.msra.gmra.mxu1 %v13079_v0  ;;  %v8949_v44 = vor.u32 %v7862_v59, %v6993_v34  ;;  %v7217_v23 = vld [vmem:[#allocation12 + $0x328] sm:$0xf0]  ;;  %v8961_v34 = vor.u32 %v7854_v9, %v6961_v1  ;;  %v6895_v9 = vld [vmem:[#allocation12 + $0x88] sm:$0xf] }
  0x89   :  { %1572 = vmatpush.bf16.msrb.mxu1 %v8916_v63  ;;  %13078 = vst [vmem:[#allocation95_spill] sm:$0xff] %v8936_v19  ;;  %v7249_v63 = vld [vmem:[#allocation12 + $0x368] sm:$0xf0]  ;;  %1541 = vmatmul.bf16.vlgmr.msra.gmra.mxu2 %v13079_v0  ;;  %v7883_v6 = vld [vmem:[#allocation12 + $0x1ec] sm:$0xf0] }
  0x8a   :  { %1585 = vmatpush.bf16.msrb.mxu2 %v8918_v37  ;;  %1598 = vmatpush.bf16.msrb.mxu3 %v8921_v53  ;;  %13080 = vst [vmem:[#allocation96_spill] sm:$0xff] %v8942_v52  ;;  %v8952_v53 = vor.u32 %v7926_v24, %v7249_v63  ;;  %v7918_v37 = vld [vmem:[#allocation12 + $0x30c] sm:$0xf]  ;;  %v7850_v63 = vld [vmem:[#allocation12 + $0xe4] sm:$0xf0] }
  0x8b   :  { %1554 = vmatmul.bf16.vlgmr.msra.gmra.mxu3 %v13079_v0  ;;  %13081 = vst [vmem:[#allocation97_spill] sm:$0xff] %v8947_v46  ;;  %v8964_v24 = vor.u32 %v7918_v37, %v7217_v23  ;;  %v7842_v23 = vld [vmem:[#allocation12 + $0xa4] sm:$0xf0]  ;;  %v7319_v33 = vld [vmem:[#allocation12 + $0x3d0] sm:$0xf] }
  0x8c   :  { %1560 = vmatpush.bf16.msrb.mxu0 %v8927_v11  ;;  %13082 = vst [vmem:[#allocation98_spill] sm:$0xff] %v8949_v44  ;;  %v7922_v11 = vld [vmem:[#allocation12 + $0x324] sm:$0xf0]  ;;  %v7031_v45 = vld [vmem:[#allocation12 + $0x190] sm:$0xf] }
  0x8d   :  { %1573 = vmatpush.bf16.msrb.mxu1 %v8931_v18  ;;  %13083 = vst [vmem:[#allocation99_spill] sm:$0xff] %v8952_v53  ;;  %v8955_v18 = vor.u32 %v7858_v12, %v6959_v58  ;;  %v8959_v59 = vor.u32 %v7922_v11, %v7215_v17  ;;  %v7910_v58 = vld [vmem:[#allocation12 + $0x2cc] sm:$0xf]  ;;  %v7151_v37 = vld [vmem:[#allocation12 + $0x288] sm:$0xf] }
  0x8e   :  { %1586 = vmatpush.bf16.msrb.mxu2 %v8933_v7  ;;  %1599 = vmatpush.bf16.msrb.mxu3 %v8936_v19  ;;  %13086 = vst [vmem:[#allocation102_spill] sm:$0xff] %v8961_v34  ;;  %v7914_v19 = vld [vmem:[#allocation12 + $0x2e4] sm:$0xf0]  ;;  %v7846_v7 = vld [vmem:[#allocation12 + $0xcc] sm:$0xf] }
  0x8f   :  { %13084 = vst [vmem:[#allocation100_spill] sm:$0xff] %v8955_v18  ;;  %v7185_v12 = vld [vmem:[#allocation12 + $0x2e8] sm:$0xf0]  ;;  %v8971_v11 = vor.u32 %v7914_v19, %v7183_v35  ;;  %v7834_v35 = vld [vmem:[#allocation12 + $0x64] sm:$0xf0] }
  0x90   :  { %1561 = vmatpush.bf16.msrb.mxu0 %v8942_v52  ;;  %13085 = vst [vmem:[#allocation101_spill] sm:$0xff] %v8959_v59  ;;  %v6929_v52 = vld [vmem:[#allocation12 + $0xe8] sm:$0xf0]  ;;  %v8976_v1 = vor.u32 %v7910_v58, %v7185_v12  ;;  %v7119_v58 = vld [vmem:[#allocation12 + $0x248] sm:$0xf] }
  0x91   :  { %1574 = vmatpush.bf16.msrb.mxu1 %v8947_v46  ;;  %13087 = vst [vmem:[#allocation103_spill] sm:$0xff] %v8964_v24  ;;  %v8967_v46 = vor.u32 %v7850_v63, %v6927_v49  ;;  %v8973_v17 = vor.u32 %v7846_v7, %v6929_v52  ;;  %v7902_v49 = vld [vmem:[#allocation12 + $0x28c] sm:$0xf]  ;;  %v6863_v52 = vld [vmem:[#allocation12 + $0x48] sm:$0xf] }
  0x92   :  { %1587 = vmatpush.bf16.msrb.mxu2 %v8949_v44  ;;  %1600 = vmatpush.bf16.msrb.mxu3 %v8952_v53  ;;  %13089 = vst [vmem:[#allocation105_spill] sm:$0xff] %v8971_v11  ;;  %v7906_v53 = vld [vmem:[#allocation12 + $0x2a4] sm:$0xf0]  ;;  %v7838_v44 = vld [vmem:[#allocation12 + $0x8c] sm:$0xf] }
  0x93   :  { %13088 = vst [vmem:[#allocation104_spill] sm:$0xff] %v8967_v46  ;;  %v7153_v63 = vld [vmem:[#allocation12 + $0x2a8] sm:$0xf0]  ;;  %v8983_v7 = vor.u32 %v7906_v53, %v7151_v37  ;;  %v6831_v53 = vld [vmem:[#allocation12 + $0x8] sm:$0xf] }
  0x94   :  { %1562 = vmatpush.bf16.msrb.mxu0 %v8955_v18  ;;  %13090 = vst [vmem:[#allocation106_spill] sm:$0xff] %v8973_v17  ;;  %v6897_v18 = vld [vmem:[#allocation12 + $0xa8] sm:$0xf0]  ;;  %v8988_v12 = vor.u32 %v7902_v49, %v7153_v63  ;;  %v7826_v37 = vld [vmem:[#allocation12 + $0x24] sm:$0xf0] }
  0x95   :  { %1575 = vmatpush.bf16.msrb.mxu1 %v8959_v59  ;;  %13091 = vst [vmem:[#allocation107_spill] sm:$0xff] %v8976_v1  ;;  %v8979_v59 = vor.u32 %v7842_v23, %v6895_v9  ;;  %v8985_v19 = vor.u32 %v7838_v44, %v6897_v18  ;;  %v7894_v9 = vld [vmem:[#allocation12 + $0x24c] sm:$0xf]  ;;  %v7087_v49 = vld [vmem:[#allocation12 + $0x208] sm:$0xf] }
  0x96   :  { %1588 = vmatpush.bf16.msrb.mxu2 %v8961_v34  ;;  %1601 = vmatpush.bf16.msrb.mxu3 %v8964_v24  ;;  %13093 = vst [vmem:[#allocation109_spill] sm:$0xff] %v8983_v7  ;;  %v7898_v24 = vld [vmem:[#allocation12 + $0x264] sm:$0xf0]  ;;  %v7830_v34 = vld [vmem:[#allocation12 + $0x4c] sm:$0xf] }
  0x97   :  { %13092 = vst [vmem:[#allocation108_spill] sm:$0xff] %v8979_v59  ;;  %v7121_v23 = vld [vmem:[#allocation12 + $0x268] sm:$0xf0]  ;;  %v8995_v18 = vor.u32 %v7898_v24, %v7119_v58  ;;  %v7890_v63 = vld [vmem:[#allocation12 + $0x224] sm:$0xf0] }
  0x98   :  { %1563 = vmatpush.bf16.msrb.mxu0 %v8967_v46  ;;  %13094 = vst [vmem:[#allocation110_spill] sm:$0xff] %v8985_v19  ;;  %v6865_v46 = vld [vmem:[#allocation12 + $0x68] sm:$0xf0]  ;;  %v7947_v24 = vld [vmem:[#allocation12 + $0x3ec] sm:$0xf0]  ;;  %v9007_v58 = vor.u32 %v7890_v63, %v7087_v49 }
  0x99   :  { %1576 = vmatpush.bf16.msrb.mxu1 %v8971_v11  ;;  %13095 = vst [vmem:[#allocation111_spill] sm:$0xff] %v8988_v12  ;;  %v8991_v11 = vor.u32 %v7834_v35, %v6863_v52  ;;  %v8997_v44 = vor.u32 %v7830_v34, %v6865_v46  ;;  %v7886_v52 = vld [vmem:[#allocation12 + $0x20c] sm:$0xf]  ;;  %v7879_v46 = vld [vmem:[#allocation12 + $0x1d4] sm:$0xf] }
  0x9a   :  { %1589 = vmatpush.bf16.msrb.mxu2 %v8973_v17  ;;  %1602 = vmatpush.bf16.msrb.mxu3 %v8976_v1  ;;  %13097 = vst [vmem:[#allocation113_spill] sm:$0xff] %v8995_v18  ;;  %v7822_v1 = vld [vmem:[#allocation12 + $0xc] sm:$0xf]  ;;  %v9000_v17 = vor.u32 %v7894_v9, %v7121_v23  ;;  %v7065_v34 = vld [vmem:[#allocation12 + $0x1f0] sm:$0xf0] }
  0x9b   :  { %13096 = vst [vmem:[#allocation112_spill] sm:$0xff] %v8991_v11  ;;  %v7089_v35 = vld [vmem:[#allocation12 + $0x228] sm:$0xf0]  ;;  %v7943_v23 = vld [vmem:[#allocation12 + $0x3d4] sm:$0xf] }
  0x9c   :  { %1564 = vmatpush.bf16.msrb.mxu0 %v8979_v59  ;;  %13098 = vst [vmem:[#allocation114_spill] sm:$0xff] %v8997_v44  ;;  %v6833_v59 = vld [vmem:[#allocation12 + $0x28] sm:$0xf0]  ;;  %v7033_v63 = vld [vmem:[#allocation12 + $0x1b0] sm:$0xf0] }
  0x9d   :  { %1577 = vmatpush.bf16.msrb.mxu1 %v8983_v7  ;;  %13099 = vst [vmem:[#allocation115_spill] sm:$0xff] %v9000_v17  ;;  %v9009_v9 = vor.u32 %v7822_v1, %v6833_v59  ;;  %v9012_v7 = vor.u32 %v7886_v52, %v7089_v35  ;;  %v7939_v59 = vld [vmem:[#allocation12 + $0x3ac] sm:$0xf0]  ;;  %v7871_v1 = vld [vmem:[#allocation12 + $0x194] sm:$0xf] }
  0x9e   :  { %1590 = vmatpush.bf16.msrb.mxu2 %v8985_v19  ;;  %1603 = vmatpush.bf16.msrb.mxu3 %v8988_v12  ;;  %v9003_v19 = vor.u32 %v7826_v37, %v6831_v53  ;;  %13101 = vst [vmem:[#allocation117_spill] sm:$0xff] %v9007_v58  ;;  %v7321_v12 = vld [vmem:[#allocation12 + $0x3f0] sm:$0xf0]  ;;  %v9016_v53 = vor.u32 %v7947_v24, %v7319_v33  ;;  %v6999_v35 = vld [vmem:[#allocation12 + $0x150] sm:$0xf] }
  0x9f   :  { %13102 = vst [vmem:[#allocation118_spill] sm:$0xff] %v9009_v9  ;;  %v9018_v37 = vor.u32 %v7879_v46, %v7065_v34  ;;  %v9021_v49 = vor.u32 %v7943_v23, %v7321_v12  ;;  %v9031_v12 = vor.u32 %v7939_v59, %v7287_v51  ;;  %v9033_v52 = vor.u32 %v7871_v1, %v7033_v63  ;;  %v7867_v24 = vld [vmem:[#allocation12 + $0x16c] sm:$0xf0]  ;;  %v7817_v36 = vld [vmem:[#allocation11 + $0x1dc] sm:$0xf0] }
  0xa0   :  { %1565 = vmatpush.bf16.msrb.mxu0 %v8991_v11  ;;  %13100 = vst [vmem:[#allocation116_spill] sm:$0xff] %v9003_v19  ;;  %v9014_v11 = vor.u32 %v7883_v6, %v7063_v10  ;;  %v7935_v6 = vld [vmem:[#allocation12 + $0x394] sm:$0xf]  ;;  %v7255_v46 = vld [vmem:[#allocation12 + $0x350] sm:$0xf]  ;;  %v9042_v51 = vor.u32 %v7867_v24, %v6999_v35 }
  0xa1   :  { %1578 = vmatpush.bf16.msrb.mxu1 %v8995_v18  ;;  %13103 = vst [vmem:[#allocation119_spill] sm:$0xff] %v9012_v7  ;;  %v7875_v18 = vld [vmem:[#allocation12 + $0x1ac] sm:$0xf0]  ;;  %v7289_v10 = vld [vmem:[#allocation12 + $0x3b0] sm:$0xf0] }
  0xa2   :  { %1591 = vmatpush.bf16.msrb.mxu2 %v8997_v44  ;;  %1604 = vmatpush.bf16.msrb.mxu3 %v9000_v17  ;;  %13104 = vst [vmem:[#allocation120_spill] sm:$0xff] %v9014_v11  ;;  %v9027_v33 = vor.u32 %v7875_v18, %v7031_v45  ;;  %v9036_v34 = vor.u32 %v7935_v6, %v7289_v10  ;;  %v7931_v23 = vld [vmem:[#allocation12 + $0x36c] sm:$0xf0]  ;;  %v7927_v45 = vld [vmem:[#allocation12 + $0x354] sm:$0xf] }
  0xa3   :  { %13105 = vst [vmem:[#allocation121_spill] sm:$0xff] %v9016_v53  ;;  %v7257_v18 = vld [vmem:[#allocation12 + $0x370] sm:$0xf0]  ;;  %v9047_v59 = vor.u32 %v7931_v23, %v7255_v46  ;;  %v6967_v63 = vld [vmem:[#allocation12 + $0x110] sm:$0xf] }
  0xa4   :  { %13106 = vst [vmem:[#allocation122_spill] sm:$0xff] %v9018_v37  ;;  %1566 = vmatpush.bf16.msrb.mxu0 %v9003_v19  ;;  %v7859_v6 = vld [vmem:[#allocation12 + $0x12c] sm:$0xf0]  ;;  %v7855_v35 = vld [vmem:[#allocation12 + $0x114] sm:$0xf] }
  0xa5   :  { %13107 = vst [vmem:[#allocation123_spill] sm:$0xff] %v9021_v49  ;;  %1579 = vmatpush.bf16.msrb.mxu1 %v9007_v58  ;;  %v7223_v10 = vld [vmem:[#allocation12 + $0x310] sm:$0xf]  ;;  %v6969_v24 = vld [vmem:[#allocation12 + $0x130] sm:$0xf0] }
  0xa6   :  { %1592 = vmatpush.bf16.msrb.mxu2 %v9009_v9  ;;  %1605 = vmatpush.bf16.msrb.mxu3 %v9012_v7  ;;  %13108 = vst [vmem:[#allocation124_spill] sm:$0xff] %v9027_v33  ;;  %v7863_v7 = vld [vmem:[#allocation12 + $0x154] sm:$0xf]  ;;  %v6935_v46 = vld [vmem:[#allocation12 + $0xd0] sm:$0xf] }
  0xa7   :  { %13109 = vst [vmem:[#allocation125_spill] sm:$0xff] %v9031_v12  ;;  %1567 = vmatmul.bf16.vlgmr.msrb.gmra.mxu0 %v13079_v0  ;;  %v7851_v23 = vld [vmem:[#allocation12 + $0xec] sm:$0xf0]  ;;  %v7071_v9 = vld [vmem:[#allocation12 + $0x1d8] sm:$0xf] }
  0xa8   :  { %1611 = vmatpush.bf16.msra.mxu0 %v9014_v11  ;;  %13110 = vst [vmem:[#allocation126_spill] sm:$0xff] %v9033_v52  ;;  %v7001_v11 = vld [vmem:[#allocation12 + $0x170] sm:$0xf0]  ;;  %1580 = vmatmul.bf16.vlgmr.msrb.gmra.mxu1 %v13079_v0  ;;  %v7884_v58 = vld [vmem:[#allocation12 + $0x1f4] sm:$0xf0] }
  0xa9   :  { %1624 = vmatpush.bf16.msra.mxu1 %v9016_v53  ;;  %13111 = vst [vmem:[#allocation127_spill] sm:$0xff] %v9036_v34  ;;  %1593 = vmatmul.bf16.vlgmr.msrb.gmra.mxu2 %v13079_v0  ;;  %v9049_v1 = vor.u32 %v7863_v7, %v7001_v11  ;;  %v7919_v53 = vld [vmem:[#allocation12 + $0x314] sm:$0xf]  ;;  %v9061_v7 = vor.u32 %v7855_v35, %v6969_v24  ;;  %v6903_v35 = vld [vmem:[#allocation12 + $0x90] sm:$0xf] }
  0xaa   :  { %1637 = vmatpush.bf16.msra.mxu2 %v9018_v37  ;;  %1650 = vmatpush.bf16.msra.mxu3 %v9021_v49  ;;  %13112 = vst [vmem:[#allocation128_spill] sm:$0xff] %v9042_v51  ;;  %v9052_v49 = vor.u32 %v7927_v45, %v7257_v18  ;;  %v7225_v37 = vld [vmem:[#allocation12 + $0x330] sm:$0xf0]  ;;  %v7191_v45 = vld [vmem:[#allocation12 + $0x2d0] sm:$0xf] }
  0xab   :  { %1606 = vmatmul.bf16.vlgmr.msrb.gmra.mxu3 %v13079_v0  ;;  %13113 = vst [vmem:[#allocation129_spill] sm:$0xff] %v9047_v59  ;;  %v9064_v18 = vor.u32 %v7919_v53, %v7225_v37  ;;  %v7843_v53 = vld [vmem:[#allocation12 + $0xac] sm:$0xf0]  ;;  %v7327_v19 = vld [vmem:[#allocation12 + $0x3d8] sm:$0xf] }
  0xac   :  { %1612 = vmatpush.bf16.msra.mxu0 %v9027_v33  ;;  %13114 = vst [vmem:[#allocation130_spill] sm:$0xff] %v9049_v1  ;;  %v7923_v33 = vld [vmem:[#allocation12 + $0x32c] sm:$0xf0]  ;;  %v7039_v17 = vld [vmem:[#allocation12 + $0x198] sm:$0xf] }
  0xad   :  { %1625 = vmatpush.bf16.msra.mxu1 %v9031_v12  ;;  %13115 = vst [vmem:[#allocation131_spill] sm:$0xff] %v9052_v49  ;;  %v9055_v12 = vor.u32 %v7859_v6, %v6967_v63  ;;  %v9059_v11 = vor.u32 %v7923_v33, %v7223_v10  ;;  %v7911_v63 = vld [vmem:[#allocation12 + $0x2d4] sm:$0xf]  ;;  %v7159_v37 = vld [vmem:[#allocation12 + $0x290] sm:$0xf] }
  0xae   :  { %1638 = vmatpush.bf16.msra.mxu2 %v9033_v52  ;;  %1651 = vmatpush.bf16.msra.mxu3 %v9036_v34  ;;  %13118 = vst [vmem:[#allocation134_spill] sm:$0xff] %v9061_v7  ;;  %v7915_v34 = vld [vmem:[#allocation12 + $0x2ec] sm:$0xf0]  ;;  %v7847_v52 = vld [vmem:[#allocation12 + $0xd4] sm:$0xf] }
  0xaf   :  { %13116 = vst [vmem:[#allocation132_spill] sm:$0xff] %v9055_v12  ;;  %v7193_v6 = vld [vmem:[#allocation12 + $0x2f0] sm:$0xf0]  ;;  %v9071_v33 = vor.u32 %v7915_v34, %v7191_v45  ;;  %v7835_v45 = vld [vmem:[#allocation12 + $0x6c] sm:$0xf0] }
  0xb0   :  { %1613 = vmatpush.bf16.msra.mxu0 %v9042_v51  ;;  %13117 = vst [vmem:[#allocation133_spill] sm:$0xff] %v9059_v11  ;;  %v6937_v51 = vld [vmem:[#allocation12 + $0xf0] sm:$0xf0]  ;;  %v9076_v24 = vor.u32 %v7911_v63, %v7193_v6  ;;  %v7127_v63 = vld [vmem:[#allocation12 + $0x250] sm:$0xf] }
  0xb1   :  { %1626 = vmatpush.bf16.msra.mxu1 %v9047_v59  ;;  %13119 = vst [vmem:[#allocation135_spill] sm:$0xff] %v9064_v18  ;;  %v9067_v59 = vor.u32 %v7851_v23, %v6935_v46  ;;  %v9073_v10 = vor.u32 %v7847_v52, %v6937_v51  ;;  %v7903_v46 = vld [vmem:[#allocation12 + $0x294] sm:$0xf]  ;;  %v6871_v51 = vld [vmem:[#allocation12 + $0x50] sm:$0xf] }
  0xb2   :  { %1639 = vmatpush.bf16.msra.mxu2 %v9049_v1  ;;  %1652 = vmatpush.bf16.msra.mxu3 %v9052_v49  ;;  %13121 = vst [vmem:[#allocation137_spill] sm:$0xff] %v9071_v33  ;;  %v7907_v49 = vld [vmem:[#allocation12 + $0x2ac] sm:$0xf0]  ;;  %v7839_v1 = vld [vmem:[#allocation12 + $0x94] sm:$0xf] }
  0xb3   :  { %13120 = vst [vmem:[#allocation136_spill] sm:$0xff] %v9067_v59  ;;  %v7161_v23 = vld [vmem:[#allocation12 + $0x2b0] sm:$0xf0]  ;;  %v9083_v52 = vor.u32 %v7907_v49, %v7159_v37  ;;  %v6839_v49 = vld [vmem:[#allocation12 + $0x10] sm:$0xf] }
  0xb4   :  { %1614 = vmatpush.bf16.msra.mxu0 %v9055_v12  ;;  %13122 = vst [vmem:[#allocation138_spill] sm:$0xff] %v9073_v10  ;;  %v6905_v12 = vld [vmem:[#allocation12 + $0xb0] sm:$0xf0]  ;;  %v9088_v6 = vor.u32 %v7903_v46, %v7161_v23  ;;  %v7827_v37 = vld [vmem:[#allocation12 + $0x2c] sm:$0xf0] }
  0xb5   :  { %1627 = vmatpush.bf16.msra.mxu1 %v9059_v11  ;;  %13123 = vst [vmem:[#allocation139_spill] sm:$0xff] %v9076_v24  ;;  %v9079_v11 = vor.u32 %v7843_v53, %v6903_v35  ;;  %v9085_v34 = vor.u32 %v7839_v1, %v6905_v12  ;;  %v7895_v35 = vld [vmem:[#allocation12 + $0x254] sm:$0xf]  ;;  %v7095_v46 = vld [vmem:[#allocation12 + $0x210] sm:$0xf] }
  0xb6   :  { %1640 = vmatpush.bf16.msra.mxu2 %v9061_v7  ;;  %1653 = vmatpush.bf16.msra.mxu3 %v9064_v18  ;;  %13125 = vst [vmem:[#allocation141_spill] sm:$0xff] %v9083_v52  ;;  %v7899_v18 = vld [vmem:[#allocation12 + $0x26c] sm:$0xf0]  ;;  %v7831_v7 = vld [vmem:[#allocation12 + $0x54] sm:$0xf] }
  0xb7   :  { %13124 = vst [vmem:[#allocation140_spill] sm:$0xff] %v9079_v11  ;;  %v7129_v53 = vld [vmem:[#allocation12 + $0x270] sm:$0xf0]  ;;  %v9095_v12 = vor.u32 %v7899_v18, %v7127_v63  ;;  %v7891_v23 = vld [vmem:[#allocation12 + $0x22c] sm:$0xf0] }
  0xb8   :  { %1615 = vmatpush.bf16.msra.mxu0 %v9067_v59  ;;  %13126 = vst [vmem:[#allocation142_spill] sm:$0xff] %v9085_v34  ;;  %v6873_v59 = vld [vmem:[#allocation12 + $0x70] sm:$0xf0]  ;;  %v7948_v18 = vld [vmem:[#allocation12 + $0x3f4] sm:$0xf0]  ;;  %v9107_v63 = vor.u32 %v7891_v23, %v7095_v46 }
  0xb9   :  { %1628 = vmatpush.bf16.msra.mxu1 %v9071_v33  ;;  %13127 = vst [vmem:[#allocation143_spill] sm:$0xff] %v9088_v6  ;;  %v9091_v33 = vor.u32 %v7835_v45, %v6871_v51  ;;  %v9097_v1 = vor.u32 %v7831_v7, %v6873_v59  ;;  %v7887_v51 = vld [vmem:[#allocation12 + $0x214] sm:$0xf]  ;;  %v7880_v59 = vld [vmem:[#allocation12 + $0x1dc] sm:$0xf] }
  0xba   :  { %1641 = vmatpush.bf16.msra.mxu2 %v9073_v10  ;;  %1654 = vmatpush.bf16.msra.mxu3 %v9076_v24  ;;  %13129 = vst [vmem:[#allocation145_spill] sm:$0xff] %v9095_v12  ;;  %v7823_v24 = vld [vmem:[#allocation12 + $0x14] sm:$0xf]  ;;  %v9100_v10 = vor.u32 %v7895_v35, %v7129_v53  ;;  %v7073_v7 = vld [vmem:[#allocation12 + $0x1f8] sm:$0xf0] }
  0xbb   :  { %13128 = vst [vmem:[#allocation144_spill] sm:$0xff] %v9091_v33  ;;  %v7097_v45 = vld [vmem:[#allocation12 + $0x230] sm:$0xf0]  ;;  %v7944_v53 = vld [vmem:[#allocation12 + $0x3dc] sm:$0xf] }
  0xbc   :  { %1616 = vmatpush.bf16.msra.mxu0 %v9079_v11  ;;  %13130 = vst [vmem:[#allocation146_spill] sm:$0xff] %v9097_v1  ;;  %v6841_v11 = vld [vmem:[#allocation12 + $0x30] sm:$0xf0]  ;;  %v7295_v44 = vld [vmem:[#allocation12 + $0x398] sm:$0xf] }
  0xbd   :  { %1629 = vmatpush.bf16.msra.mxu1 %v9083_v52  ;;  %13131 = vst [vmem:[#allocation147_spill] sm:$0xff] %v9100_v10  ;;  %v9103_v52 = vor.u32 %v7827_v37, %v6839_v49  ;;  %v9109_v35 = vor.u32 %v7823_v24, %v6841_v11  ;;  %v9116_v49 = vor.u32 %v7948_v18, %v7327_v19  ;;  %v7940_v11 = vld [vmem:[#allocation12 + $0x3b4] sm:$0xf0]  ;;  %v7872_v24 = vld [vmem:[#allocation12 + $0x19c] sm:$0xf] }
  0xbe   :  { %1642 = vmatpush.bf16.msra.mxu2 %v9085_v34  ;;  %1655 = vmatpush.bf16.msra.mxu3 %v9088_v6  ;;  %13133 = vst [vmem:[#allocation149_spill] sm:$0xff] %v9107_v63  ;;  %v7329_v6 = vld [vmem:[#allocation12 + $0x3f8] sm:$0xf0]  ;;  %v9112_v34 = vor.u32 %v7887_v51, %v7097_v45  ;;  %v9118_v37 = vor.u32 %v7880_v59, %v7073_v7  ;;  %v7007_v45 = vld [vmem:[#allocation12 + $0x158] sm:$0xf] }
  0xbf   :  { %13132 = vst [vmem:[#allocation148_spill] sm:$0xff] %v9103_v52  ;;  %v9121_v46 = vor.u32 %v7944_v53, %v7329_v6  ;;  %v7041_v23 = vld [vmem:[#allocation12 + $0x1b8] sm:$0xf0]  ;;  %v9131_v6 = vor.u32 %v7940_v11, %v7295_v44  ;;  %v7868_v18 = vld [vmem:[#allocation12 + $0x174] sm:$0xf0] }
  0xc0   :  { %1617 = vmatpush.bf16.msra.mxu0 %v9091_v33  ;;  %13134 = vst [vmem:[#allocation150_spill] sm:$0xff] %v9109_v35  ;;  %v9114_v33 = vor.u32 %v7884_v58, %v7071_v9  ;;  %v7936_v58 = vld [vmem:[#allocation12 + $0x39c] sm:$0xf]  ;;  %v9133_v51 = vor.u32 %v7872_v24, %v7041_v23  ;;  %v7263_v59 = vld [vmem:[#allocation12 + $0x358] sm:$0xf]  ;;  %v9142_v44 = vor.u32 %v7868_v18, %v7007_v45 }
  0xc1   :  { %1630 = vmatpush.bf16.msra.mxu1 %v9095_v12  ;;  %13135 = vst [vmem:[#allocation151_spill] sm:$0xff] %v9112_v34  ;;  %v7876_v12 = vld [vmem:[#allocation12 + $0x1b4] sm:$0xf0]  ;;  %v7297_v9 = vld [vmem:[#allocation12 + $0x3b8] sm:$0xf0] }
  0xc2   :  { %1643 = vmatpush.bf16.msra.mxu2 %v9097_v1  ;;  %1656 = vmatpush.bf16.msra.mxu3 %v9100_v10  ;;  %13136 = vst [vmem:[#allocation152_spill] sm:$0xff] %v9114_v33  ;;  %v9127_v19 = vor.u32 %v7876_v12, %v7039_v17  ;;  %v9136_v7 = vor.u32 %v7936_v58, %v7297_v9  ;;  %v7932_v53 = vld [vmem:[#allocation12 + $0x374] sm:$0xf0]  ;;  %v7928_v17 = vld [vmem:[#allocation12 + $0x35c] sm:$0xf] }
  0xc3   :  { %13137 = vst [vmem:[#allocation153_spill] sm:$0xff] %v9116_v49  ;;  %v7265_v12 = vld [vmem:[#allocation12 + $0x378] sm:$0xf0]  ;;  %v9147_v11 = vor.u32 %v7932_v53, %v7263_v59  ;;  %v6975_v23 = vld [vmem:[#allocation12 + $0x118] sm:$0xf] }
  0xc4   :  { %13138 = vst [vmem:[#allocation154_spill] sm:$0xff] %v9118_v37  ;;  %1618 = vmatpush.bf16.msra.mxu0 %v9103_v52  ;;  %v7860_v58 = vld [vmem:[#allocation12 + $0x134] sm:$0xf0]  ;;  %v7856_v45 = vld [vmem:[#allocation12 + $0x11c] sm:$0xf] }
  0xc5   :  { %13139 = vst [vmem:[#allocation155_spill] sm:$0xff] %v9121_v46  ;;  %1631 = vmatpush.bf16.msra.mxu1 %v9107_v63  ;;  %v7009_v63 = vld [vmem:[#allocation12 + $0x178] sm:$0xf0]  ;;  %v7231_v9 = vld [vmem:[#allocation12 + $0x318] sm:$0xf]  ;;  %v9157_v59 = vor.u32 %v7860_v58, %v6975_v23 }
  0xc6   :  { %1644 = vmatpush.bf16.msra.mxu2 %v9109_v35  ;;  %1657 = vmatpush.bf16.msra.mxu3 %v9112_v34  ;;  %13140 = vst [vmem:[#allocation156_spill] sm:$0xff] %v9127_v19  ;;  %v7864_v34 = vld [vmem:[#allocation12 + $0x15c] sm:$0xf]  ;;  %v7900_v10 = vld [vmem:[#allocation12 + $0x274] sm:$0xf0] }
  0xc7   :  { %13141 = vst [vmem:[#allocation157_spill] sm:$0xff] %v9131_v6  ;;  %1619 = vmatmul.bf16.vlgmr.msra.gmra.mxu0 %v13079_v0  ;;  %v9149_v24 = vor.u32 %v7864_v34, %v7009_v63  ;;  %v6977_v18 = vld [vmem:[#allocation12 + $0x138] sm:$0xf0]  ;;  %v9159_v34 = vpop.f32.mrf.mxu1  ;;  %v7810_v30 = vld [vmem:[#allocation11 + $0x1a4] sm:$0xf0] }
  0xc8   :  { %1663 = vmatpush.bf16.msrb.mxu0 %v9114_v33  ;;  %13142 = vst [vmem:[#allocation158_spill] sm:$0xff] %v9133_v51  ;;  %1632 = vmatmul.bf16.vlgmr.msra.gmra.mxu1 %v13079_v0  ;;  %v9154_v33 = vpop.f32.mrf.mxu0  ;;  %v9165_v53 = vor.u32 %v7856_v45, %v6977_v18  ;;  %v7848_v23 = vld [vmem:[#allocation12 + $0xdc] sm:$0xf]  ;;  %v6911_v45 = vld [vmem:[#allocation12 + $0x98] sm:$0xf] }
  0xc9   :  { %1676 = vmatpush.bf16.msrb.mxu1 %v9116_v49  ;;  %13143 = vst [vmem:[#allocation159_spill] sm:$0xff] %v9136_v7  ;;  %1645 = vmatmul.bf16.vlgmr.msra.gmra.mxu2 %v13079_v0  ;;  %v7920_v49 = vld [vmem:[#allocation12 + $0x31c] sm:$0xf] }
  0xca   :  { %1689 = vmatpush.bf16.msrb.mxu2 %v9118_v37  ;;  %1702 = vmatpush.bf16.msrb.mxu3 %v9121_v46  ;;  %13144 = vst [vmem:[#allocation160_spill] sm:$0xff] %v9142_v44  ;;  %v9152_v46 = vor.u32 %v7928_v17, %v7265_v12  ;;  %v7233_v37 = vld [vmem:[#allocation12 + $0x338] sm:$0xf0]  ;;  %v6943_v17 = vld [vmem:[#allocation12 + $0xd8] sm:$0xf] }
  0xcb   :  { %1658 = vmatmul.bf16.vlgmr.msra.gmra.mxu3 %v13079_v0  ;;  %13145 = vst [vmem:[#allocation161_spill] sm:$0xff] %v9147_v11  ;;  %v7852_v12 = vld [vmem:[#allocation12 + $0xf4] sm:$0xf0]  ;;  %v6945_v58 = vld [vmem:[#allocation12 + $0xf8] sm:$0xf0] }
  0xcc   :  { %1664 = vmatpush.bf16.msrb.mxu0 %v9127_v19  ;;  %13146 = vst [vmem:[#allocation162_spill] sm:$0xff] %v9149_v24  ;;  %v7924_v19 = vld [vmem:[#allocation12 + $0x334] sm:$0xf0]  ;;  %v7201_v35 = vld [vmem:[#allocation12 + $0x2f8] sm:$0xf0] }
  0xcd   :  { %1677 = vmatpush.bf16.msrb.mxu1 %v9131_v6  ;;  %13147 = vst [vmem:[#allocation163_spill] sm:$0xff] %v9152_v46  ;;  %v9163_v63 = vor.u32 %v7924_v19, %v7231_v9  ;;  %v9168_v6 = vor.u32 %v7920_v49, %v7233_v37  ;;  %v9177_v9 = vor.u32 %v7848_v23, %v6945_v58  ;;  %v7844_v49 = vld [vmem:[#allocation12 + $0xb4] sm:$0xf0] }
  0xce   :  { %1690 = vmatpush.bf16.msrb.mxu2 %v9133_v51  ;;  %1703 = vmatpush.bf16.msrb.mxu3 %v9136_v7  ;;  %13148 = vst [vmem:[#allocation164_spill] sm:$0xff] %v9157_v59  ;;  %v7199_v7 = vld [vmem:[#allocation12 + $0x2d8] sm:$0xf]  ;;  %v7912_v51 = vld [vmem:[#allocation12 + $0x2dc] sm:$0xf] }
  0xcf   :  { %13149 = vst [vmem:[#allocation165_spill] sm:$0xff] %v9163_v63  ;;  %v7167_v37 = vld [vmem:[#allocation12 + $0x298] sm:$0xf]  ;;  %v9180_v18 = vor.u32 %v7912_v51, %v7201_v35 }
  0xd0   :  { %1665 = vmatpush.bf16.msrb.mxu0 %v9142_v44  ;;  %13150 = vst [vmem:[#allocation166_spill] sm:$0xff] %v9165_v53  ;;  %v7916_v44 = vld [vmem:[#allocation12 + $0x2f4] sm:$0xf0]  ;;  %v593_v52 = vpop.f32.mrf.mxu0 }
  0xd1   :  { %1678 = vmatpush.bf16.msrb.mxu1 %v9147_v11  ;;  %13151 = vst [vmem:[#allocation167_spill] sm:$0xff] %v9168_v6  ;;  %v9171_v11 = vor.u32 %v7852_v12, %v6943_v17  ;;  %v9175_v19 = vor.u32 %v7916_v44, %v7199_v7  ;;  %v9182_v17 = vpop.f32.mrf.mxu3  ;;  %v7904_v12 = vld [vmem:[#allocation12 + $0x29c] sm:$0xf]  ;;  %v9187_v7 = vor.u32 %v7844_v49, %v6911_v45  ;;  %v606_v44 = vpop.f32.mrf.mxu1  ;;  %v6879_v23 = vld [vmem:[#allocation12 + $0x58] sm:$0xf] }
  0xd2   :  { %1691 = vmatpush.bf16.msrb.mxu2 %v9149_v24  ;;  %1704 = vmatpush.bf16.msrb.mxu3 %v9152_v46  ;;  %13154 = vst [vmem:[#allocation170_spill] sm:$0xff] %v9177_v9  ;;  %v7908_v46 = vld [vmem:[#allocation12 + $0x2b4] sm:$0xf0]  ;;  %v7840_v24 = vld [vmem:[#allocation12 + $0x9c] sm:$0xf] }
  0xd3   :  { %13152 = vst [vmem:[#allocation168_spill] sm:$0xff] %v9171_v11  ;;  %v9191_v35 = vor.u32 %v7908_v46, %v7167_v37  ;;  %v7836_v58 = vld [vmem:[#allocation12 + $0x74] sm:$0xf0]  ;;  %v6881_v45 = vld [vmem:[#allocation12 + $0x78] sm:$0xf0] }
  0xd4   :  { %1666 = vmatpush.bf16.msrb.mxu0 %v9157_v59  ;;  %13153 = vst [vmem:[#allocation169_spill] sm:$0xff] %v9175_v19  ;;  %v6913_v59 = vld [vmem:[#allocation12 + $0xb8] sm:$0xf0]  ;;  %v6847_v46 = vld [vmem:[#allocation12 + $0x18] sm:$0xf] }
  0xd5   :  { %1679 = vmatpush.bf16.msrb.mxu1 %v9163_v63  ;;  %13155 = vst [vmem:[#allocation171_spill] sm:$0xff] %v9180_v18  ;;  %v7169_v63 = vld [vmem:[#allocation12 + $0x2b8] sm:$0xf0]  ;;  %v9193_v51 = vor.u32 %v7840_v24, %v6913_v59  ;;  %v7828_v37 = vld [vmem:[#allocation12 + $0x34] sm:$0xf0] }
  0xd6   :  { %1692 = vmatpush.bf16.msrb.mxu2 %v9165_v53  ;;  %1705 = vmatpush.bf16.msrb.mxu3 %v9168_v6  ;;  %v9184_v53 = vpop.f32.mrf.mxu2  ;;  %13156 = vst [vmem:[#allocation172_spill] sm:$0xff] %v9187_v7  ;;  %v7135_v6 = vld [vmem:[#allocation12 + $0x258] sm:$0xf]  ;;  %v9196_v52 = vor.u32 %v7904_v12, %v7169_v63  ;;  %v7896_v49 = vld [vmem:[#allocation12 + $0x25c] sm:$0xf] }
  0xd7   :  { %13157 = vst [vmem:[#allocation173_spill] sm:$0xff] %v9191_v35  ;;  %v7137_v44 = vld [vmem:[#allocation12 + $0x278] sm:$0xf0]  ;;  %v9203_v24 = vor.u32 %v7900_v10, %v7135_v6  ;;  %v7103_v63 = vld [vmem:[#allocation12 + $0x218] sm:$0xf]  ;;  %v9211_v10 = vor.u32 %v7828_v37, %v6847_v46  ;;  %v9224_v46 = vor.u32 %v7817_v36, %v7562_v50 }
  0xd8   :  { %1667 = vmatpush.bf16.msrb.mxu0 %v9171_v11  ;;  %13158 = vst [vmem:[#allocation174_spill] sm:$0xff] %v9193_v51  ;;  %v7832_v11 = vld [vmem:[#allocation12 + $0x5c] sm:$0xf]  ;;  %v7892_v12 = vld [vmem:[#allocation12 + $0x234] sm:$0xf0] }
  0xd9   :  { %1680 = vmatpush.bf16.msrb.mxu1 %v9175_v19  ;;  %13159 = vst [vmem:[#allocation175_spill] sm:$0xff] %v9196_v52  ;;  %v9199_v19 = vor.u32 %v7836_v58, %v6879_v23  ;;  %v9205_v59 = vor.u32 %v7832_v11, %v6881_v45  ;;  %v7888_v23 = vld [vmem:[#allocation12 + $0x21c] sm:$0xf]  ;;  %v632_v1 = vpop.f32.mrf.mxu3  ;;  %v7564_v6 = vld [vmem:[#allocation11 + $0x1e0] sm:$0xf0] }
  0xda   :  { %1693 = vmatpush.bf16.msrb.mxu2 %v9177_v9  ;;  %1706 = vmatpush.bf16.msrb.mxu3 %v9180_v18  ;;  %13161 = vst [vmem:[#allocation177_spill] sm:$0xff] %v9203_v24  ;;  %v7824_v18 = vld [vmem:[#allocation12 + $0x1c] sm:$0xf]  ;;  %v9208_v9 = vor.u32 %v7896_v49, %v7137_v44  ;;  %v7570_v11 = vld [vmem:[#allocation11 + $0x1c8] sm:$0xf]  ;;  %v9215_v49 = vor.u32 %v7892_v12, %v7103_v63 }
  0xdb   :  { %13160 = vst [vmem:[#allocation176_spill] sm:$0xff] %v9199_v19  ;;  %v7105_v58 = vld [vmem:[#allocation12 + $0x238] sm:$0xf0]  ;;  %v7818_v45 = vld [vmem:[#allocation11 + $0x1e4] sm:$0xf0] }
  0xdc   :  { %1668 = vmatpush.bf16.msrb.mxu0 %v9187_v7  ;;  %13162 = vst [vmem:[#allocation178_spill] sm:$0xff] %v9205_v59  ;;  %v6849_v7 = vld [vmem:[#allocation12 + $0x38] sm:$0xf0]  ;;  %v7814_v1 = vld [vmem:[#allocation11 + $0x1cc] sm:$0xf] }
  0xdd   :  { %1681 = vmatpush.bf16.msrb.mxu1 %v9191_v35  ;;  %13163 = vst [vmem:[#allocation179_spill] sm:$0xff] %v9208_v9  ;;  %v7813_v35 = vld [vmem:[#allocation11 + $0x1c4] sm:$0xf]  ;;  %v9217_v44 = vor.u32 %v7824_v18, %v6849_v7  ;;  %v7538_v12 = vld [vmem:[#allocation11 + $0x188] sm:$0xf] }
  0xde   :  { %1694 = vmatpush.bf16.msrb.mxu2 %v9193_v51  ;;  %1707 = vmatpush.bf16.msrb.mxu3 %v9196_v52  ;;  %v619_v31 = vpop.f32.mrf.mxu2  ;;  %13164 = vst [vmem:[#allocation180_spill] sm:$0xff] %v9211_v10  ;;  %v7572_v52 = vld [vmem:[#allocation11 + $0x1e8] sm:$0xf0]  ;;  %v9219_v51 = vld [vmem:[#allocation9] sm:$0xf]  ;;  %v9226_v37 = vor.u32 %v7813_v35, %v7564_v6 }
  0xdf   :  { %13165 = vst [vmem:[#allocation181_spill] sm:$0xff] %v9215_v49  ;;  %v9222_v31 = vor.u32 %v7888_v23, %v7105_v58  ;;  %v7805_v63 = vld [vmem:[#allocation11 + $0x184] sm:$0xf]  ;;  %v9231_v18 = vor.u32 %v7814_v1, %v7572_v52  ;;  %v7806_v36 = vld [vmem:[#allocation11 + $0x18c] sm:$0xf]  ;;  %v574_v35 = vperm.slane %v9219_v51, 0  ;;  %v9244_v58 = vor.u32 %v7810_v30, %v7538_v12 }
  0xe0   :  { %1669 = vmatpush.bf16.msrb.mxu0 %v9199_v19  ;;  %13166 = vst [vmem:[#allocation182_spill] sm:$0xff] %v9217_v44  ;;  %v9228_v19 = vor.u32 %v7818_v45, %v7570_v11  ;;  %v7532_v7 = vld [vmem:[#allocation11 + $0x1a0] sm:$0xf0]  ;;  %v7540_v50 = vld [vmem:[#allocation11 + $0x1a8] sm:$0xf0] }
  0xe1   :  { %1682 = vmatpush.bf16.msrb.mxu1 %v9203_v24  ;;  %13167 = vst [vmem:[#allocation183_spill] sm:$0xff] %v9222_v31  ;;  %v7530_v24 = vld [vmem:[#allocation11 + $0x180] sm:$0xf]  ;;  %v9242_v52 = vor.u32 %v7805_v63, %v7532_v7  ;;  %v7797_v45 = vld [vmem:[#allocation11 + $0x144] sm:$0xf]  ;;  %v9247_v1 = vor.u32 %v7806_v36, %v7540_v50 }
  0xe2   :  { %1695 = vmatpush.bf16.msrb.mxu2 %v9205_v59  ;;  %1708 = vmatpush.bf16.msrb.mxu3 %v9208_v9  ;;  %13168 = vst [vmem:[#allocation184_spill] sm:$0xff] %v9224_v46  ;;  %v7809_v59 = vld [vmem:[#allocation11 + $0x19c] sm:$0xf0]  ;;  %v7789_v50 = vld [vmem:[#allocation11 + $0x104] sm:$0xf] }
  0xe3   :  { %13169 = vst [vmem:[#allocation185_spill] sm:$0xff] %v9226_v37  ;;  %v9238_v23 = vor.u32 %v7809_v59, %v7530_v24  ;;  %v7498_v6 = vld [vmem:[#allocation11 + $0x140] sm:$0xf]  ;;  %v575_v24 = vperm.slane %v9219_v51, 1  ;;  %v7798_v59 = vld [vmem:[#allocation11 + $0x14c] sm:$0xf] }
  0xe4   :  { %13170 = vst [vmem:[#allocation186_spill] sm:$0xff] %v9228_v19  ;;  %1670 = vmatpush.bf16.msrb.mxu0 %v9211_v10  ;;  %v7801_v11 = vld [vmem:[#allocation11 + $0x15c] sm:$0xf0]  ;;  %v7444_v9 = vld [vmem:[#allocation11 + $0xe8] sm:$0xf0] }
  0xe5   :  { %13171 = vst [vmem:[#allocation187_spill] sm:$0xff] %v9231_v18  ;;  %1683 = vmatpush.bf16.msrb.mxu1 %v9215_v49  ;;  %v7506_v49 = vld [vmem:[#allocation11 + $0x148] sm:$0xf]  ;;  %v9254_v30 = vor.u32 %v7801_v11, %v7498_v6  ;;  %v7466_v12 = vld [vmem:[#allocation11 + $0x100] sm:$0xf] }
  0xe6   :  { %1696 = vmatpush.bf16.msrb.mxu2 %v9217_v44  ;;  %1709 = vmatpush.bf16.msrb.mxu3 %v9222_v31  ;;  %13172 = vst [vmem:[#allocation188_spill] sm:$0xff] %v9238_v23  ;;  %v7500_v31 = vld [vmem:[#allocation11 + $0x160] sm:$0xf0]  ;;  %v7793_v36 = vld [vmem:[#allocation11 + $0x11c] sm:$0xf0] }
  0xe7   :  { %13173 = vst [vmem:[#allocation189_spill] sm:$0xff] %v9242_v52  ;;  %1671 = vmatmul.bf16.vlgmr.msrb.gmra.mxu0 %v13079_v0  ;;  %v9259_v63 = vor.u32 %v7797_v45, %v7500_v31  ;;  %v7468_v11 = vld [vmem:[#allocation11 + $0x120] sm:$0xf0]  ;;  %v803_v31 = vpop.f32.mrf.mxu0  ;;  %v7790_v45 = vld [vmem:[#allocation11 + $0x10c] sm:$0xf] }
  0xe8   :  { %2099 = vmatpush.bf16.msra.mxu0 %v9224_v46  ;;  %13174 = vst [vmem:[#allocation190_spill] sm:$0xff] %v9244_v58  ;;  %v7802_v46 = vld [vmem:[#allocation11 + $0x164] sm:$0xf0]  ;;  %1684 = vmatmul.bf16.vlgmr.msrb.gmra.mxu1 %v13079_v0  ;;  %v7436_v44 = vld [vmem:[#allocation11 + $0xe0] sm:$0xf0] }
  0xe9   :  { %2112 = vmatpush.bf16.msra.mxu1 %v9226_v37  ;;  %13175 = vst [vmem:[#allocation191_spill] sm:$0xff] %v9247_v1  ;;  %1697 = vmatmul.bf16.vlgmr.msrb.gmra.mxu2 %v13079_v0  ;;  %v9261_v7 = vor.u32 %v7802_v46, %v7506_v49  ;;  %v7476_v49 = vld [vmem:[#allocation11 + $0x128] sm:$0xf0]  ;;  %v577_v46 = vperm.slane %v9219_v51, 3  ;;  %v7781_v37 = vld [vmem:[#allocation11 + $0xc4] sm:$0xf] }
  0xea   :  { %2125 = vmatpush.bf16.msra.mxu2 %v9228_v19  ;;  %2138 = vmatpush.bf16.msra.mxu3 %v9231_v18  ;;  %v7508_v19 = vld [vmem:[#allocation11 + $0x168] sm:$0xf0]  ;;  %13176 = vst [vmem:[#allocation192_spill] sm:$0xff] %v9254_v30  ;;  %v9264_v18 = vadd.f32 %v9154_v33, %v574_v35  ;;  %v816_v35 = vpop.f32.mrf.mxu1 }
  0xeb   :  { %1710 = vmatmul.bf16.vlgmr.msrb.gmra.mxu3 %v13079_v0  ;;  %13177 = vst [vmem:[#allocation193_spill] sm:$0xff] %v9259_v63  ;;  %v9267_v6 = vor.u32 %v7798_v59, %v7508_v19  ;;  %v7474_v0 = vld [vmem:[#allocation11 + $0x108] sm:$0xf]  ;;  %v7434_v19 = vld [vmem:[#allocation11 + $0xc0] sm:$0xf] }
  0xec   :  { %2100 = vmatpush.bf16.msra.mxu0 %v9238_v23  ;;  %13178 = vst [vmem:[#allocation194_spill] sm:$0xff] %v9261_v7  ;;  %v7794_v23 = vld [vmem:[#allocation11 + $0x124] sm:$0xf0]  ;;  %v846_v33 = vadd.f32 %v803_v31, %v9264_v18 }
  0xed   :  { %2113 = vmatpush.bf16.msra.mxu1 %v9242_v52  ;;  %13179 = vst [vmem:[#allocation195_spill] sm:$0xff] %v9264_v18  ;;  %v9270_v52 = vadd.f32 %v9159_v34, %v575_v24  ;;  %v9280_v24 = vor.u32 %v7789_v50, %v7468_v11  ;;  %v9282_v59 = vor.u32 %v7794_v23, %v7474_v0  ;;  %v7807_v18 = vld [vmem:[#allocation11 + $0x194] sm:$0xf] }
  0xee   :  { %2126 = vmatpush.bf16.msra.mxu2 %v9244_v58  ;;  %2139 = vmatpush.bf16.msra.mxu3 %v9247_v1  ;;  %13180 = vst [vmem:[#allocation196_spill] sm:$0xff] %v9267_v6  ;;  %v9275_v58 = vor.u32 %v7793_v36, %v7466_v12  ;;  %v7785_v1 = vld [vmem:[#allocation11 + $0xdc] sm:$0xf0]  ;;  %v7333_v31 = vmul.f32 -1.442695, %v846_v33  ;;  %v9291_v23 = vadd.f32 %v9182_v17, %v577_v46 }
  0xef   :  { %13181 = vst [vmem:[#allocation197_spill] sm:$0xff] %v9270_v52  ;;  %v847_v34 = vadd.f32 %v816_v35, %v9270_v52  ;;  %v7442_v12 = vld [vmem:[#allocation11 + $0xc8] sm:$0xf]  ;;  %v9288_v50 = vor.u32 %v7785_v1, %v7434_v19  ;;  %v9295_v11 = vor.u32 %v7781_v37, %v7436_v44  ;;  %v7773_v33 = vld [vmem:[#allocation11 + $0x84] sm:$0xf]  ;;  %v842_v1 = vpop.f32.mrf.mxu3 }
  0xf0   :  { %2101 = vmatpush.bf16.msra.mxu0 %v9254_v30  ;;  %13182 = vst [vmem:[#allocation198_spill] sm:$0xff] %v9275_v58  ;;  %v9285_v30 = vor.u32 %v7790_v45, %v7476_v49  ;;  %v7786_v36 = vld [vmem:[#allocation11 + $0xe4] sm:$0xf0]  ;;  %8014 = vpow2.f32 %v7333_v31  ;;  %v7402_v45 = vld [vmem:[#allocation11 + $0x80] sm:$0xf]  ;;  %v805_v31 = vpop.f32.mrf.mxu0 }
  0xf1   :  { %2114 = vmatpush.bf16.msra.mxu1 %v9259_v63  ;;  %13183 = vst [vmem:[#allocation199_spill] sm:$0xff] %v9280_v24  ;;  %v7334_v10 = vmul.f32 -1.442695, %v847_v34  ;;  %v7782_v63 = vld [vmem:[#allocation11 + $0xcc] sm:$0xf]  ;;  %v9297_v0 = vor.u32 %v7786_v36, %v7442_v12  ;;  %v9303_v34 = vpop.f32.mrf.mxu2 }
  0xf2   :  { %2127 = vmatpush.bf16.msra.mxu2 %v9261_v7  ;;  %13184 = vst [vmem:[#allocation200_spill] sm:$0xff] %v9282_v59  ;;  %2140 = vmatpush.bf16.msra.mxu3 %v9267_v6  ;;  %v7777_v49 = vld [vmem:[#allocation11 + $0x9c] sm:$0xf0]  ;;  %v9300_v35 = vor.u32 %v7782_v63, %v7444_v9  ;;  %v7404_v19 = vld [vmem:[#allocation11 + $0xa0] sm:$0xf0]  ;;  %v818_v12 = vpop.f32.mrf.mxu1 }
  0xf3   :  { %13185 = vst [vmem:[#allocation201_spill] sm:$0xff] %v9285_v30  ;;  %8016 = vpow2.f32 %v7334_v10  ;;  %v7410_v17 = vld [vmem:[#allocation11 + $0x88] sm:$0xf]  ;;  %v849_v10 = vadd.f32 %v842_v1, %v9291_v23  ;;  %v7774_v44 = vld [vmem:[#allocation11 + $0x8c] sm:$0xf]  ;;  %v9306_v36 = vor.u32 %v7777_v49, %v7402_v45  ;;  %v9310_v63 = vor.u32 %v7773_v33, %v7404_v19 }
  0xf4   :  { %2102 = vmatpush.bf16.msra.mxu0 %v9275_v58  ;;  %13186 = vst [vmem:[#allocation202_spill] sm:$0xff] %v9288_v50  ;;  %v7778_v46 = vld [vmem:[#allocation11 + $0xa4] sm:$0xf0]  ;;  %v7412_v37 = vld [vmem:[#allocation11 + $0xa8] sm:$0xf0] }
  0xf5   :  { %13187 = vst [vmem:[#allocation203_spill] sm:$0xff] %v9291_v23  ;;  %2115 = vmatpush.bf16.msra.mxu1 %v9280_v24  ;;  %v7335_v9 = vmul.f32 -1.442695, %v849_v10  ;;  %v7769_v1 = vld [vmem:[#allocation11 + $0x5c] sm:$0xf0]  ;;  %v9315_v58 = vor.u32 %v7774_v44, %v7412_v37 }
  0xf6   :  { %2128 = vmatpush.bf16.msra.mxu2 %v9282_v59  ;;  %13188 = vst [vmem:[#allocation204_spill] sm:$0xff] %v9295_v11  ;;  %2141 = vmatpush.bf16.msra.mxu3 %v9285_v30  ;;  %v7370_v59 = vld [vmem:[#allocation11 + $0x40] sm:$0xf]  ;;  %v9312_v30 = vor.u32 %v7778_v46, %v7410_v17  ;;  %v7765_v24 = vld [vmem:[#allocation11 + $0x44] sm:$0xf]  ;;  %v8015_v31 = vpop.eup %8014 }
  0xf7   :  { %13189 = vst [vmem:[#allocation205_spill] sm:$0xff] %v9297_v0  ;;  %v7372_v12 = vld [vmem:[#allocation11 + $0x60] sm:$0xf0]  ;;  %v7378_v45 = vld [vmem:[#allocation11 + $0x48] sm:$0xf]  ;;  %v9318_v6 = vadd.f32 1.0, %v8015_v31  ;;  %8018 = vpow2.f32 %v7335_v9  ;;  %v9323_v46 = vor.u32 %v7769_v1, %v7370_v59  ;;  %v844_v1 = vpop.f32.mrf.mxu3 }
  0xf8   :  { %13190 = vst [vmem:[#allocation206_spill] sm:$0xff] %v9300_v35  ;;  %2103 = vmatpush.bf16.msra.mxu0 %v9288_v50  ;;  %v7770_v49 = vld [vmem:[#allocation11 + $0x64] sm:$0xf0]  ;;  %v7766_v33 = vld [vmem:[#allocation11 + $0x4c] sm:$0xf] }
  0xf9   :  { %13191 = vst [vmem:[#allocation207_spill] sm:$0xff] %v9306_v36  ;;  %2116 = vmatpush.bf16.msra.mxu1 %v9295_v11  ;;  %v8017_v50 = vpop.eup %8016  ;;  %v576_v11 = vperm.slane %v9219_v51, 2  ;;  %v7380_v19 = vld [vmem:[#allocation11 + $0x68] sm:$0xf0]  ;;  %v7338_v10 = vld [vmem:[#allocation11] sm:$0xf]  ;;  %8020 = vrcp.f32 %v9318_v6  ;;  %v9328_v51 = vor.u32 %v7765_v24, %v7372_v12  ;;  %v9330_v37 = vor.u32 %v7770_v49, %v7378_v45  ;;  %v831_v49 = vpop.f32.mrf.mxu2 }
  0xfa   :  { %2129 = vmatpush.bf16.msra.mxu2 %v9297_v0  ;;  %13192 = vst [vmem:[#allocation208_spill] sm:$0xff] %v9310_v63  ;;  %2142 = vmatpush.bf16.msra.mxu3 %v9300_v35  ;;  %v9320_v17 = vadd.f32 1.0, %v8017_v50  ;;  %v7761_v44 = vld [vmem:[#allocation11 + $0x1c] sm:$0xf0]  ;;  %v7757_v9 = vld [vmem:[#allocation11 + $0x4] sm:$0xf]  ;;  %v9334_v59 = vor.u32 %v7766_v33, %v7380_v19  ;;  %vm1724_vm2 = vweird.f32 %v9318_v6 }
  0xfb   :  { %13193 = vst [vmem:[#allocation209_spill] sm:$0xff] %v9312_v30  ;;  %v7340_v31 = vld [vmem:[#allocation11 + $0x20] sm:$0xf0]  ;;  %v7346_v50 = vld [vmem:[#allocation11 + $0x8] sm:$0xf] }
  0xfc   :  { %13194 = vst [vmem:[#allocation210_spill] sm:$0xff] %v9315_v58  ;;  %2104 = vmatpush.bf16.msra.mxu0 %v9306_v36  ;;  %8022 = vrcp.f32 %v9320_v17  ;;  %v7762_v36 = vld [vmem:[#allocation11 + $0x24] sm:$0xf0]  ;;  %v7758_v35 = vld [vmem:[#allocation11 + $0xc] sm:$0xf]  ;;  %v9344_v19 = vor.u32 %v7757_v9, %v7340_v31  ;;  %vm1743_vm3 = vweird.f32 %v9320_v17 }
  0xfd   :  { %13195 = vst [vmem:[#allocation211_spill] sm:$0xff] %v9323_v46  ;;  %2117 = vmatpush.bf16.msra.mxu1 %v9310_v63  ;;  %v7348_v0 = vld [vmem:[#allocation11 + $0x28] sm:$0xf0]  ;;  %v9337_v63 = vadd.f32 %v9184_v53, %v576_v11  ;;  %v7578_v24 = vld [vmem:[#allocation11 + $0x1d0] sm:$0xf]  ;;  %v8019_v33 = vpop.eup %8018  ;;  %v9346_v53 = vor.u32 %v7762_v36, %v7346_v50 }
  0xfe   :  { %2130 = vmatpush.bf16.msra.mxu2 %v9312_v30  ;;  %13196 = vst [vmem:[#allocation212_spill] sm:$0xff] %v9328_v51  ;;  %2143 = vmatpush.bf16.msra.mxu3 %v9315_v58  ;;  %v7819_v12 = vld [vmem:[#allocation11 + $0x1ec] sm:$0xf0]  ;;  %v7815_v45 = vld [vmem:[#allocation11 + $0x1d4] sm:$0xf]  ;;  %v9340_v30 = vor.u32 %v7761_v44, %v7338_v10  ;;  %v9348_v49 = vadd.f32 1.0, %v8019_v33  ;;  %v9351_v10 = vor.u32 %v7758_v35, %v7348_v0 }
  0xff   :  { %13197 = vst [vmem:[#allocation213_spill] sm:$0xff] %v9330_v37  ;;  %v7580_v7 = vld [vmem:[#allocation11 + $0x1f0] sm:$0xf0]  ;;  %v7586_v23 = vld [vmem:[#allocation11 + $0x1d8] sm:$0xf]  ;;  %v9353_v44 = vor.u32 %v7819_v12, %v7578_v24  ;;  %v848_v9 = vadd.f32 %v9303_v34, %v9337_v63 }
 0x100   :  { %13198 = vst [vmem:[#allocation214_spill] sm:$0xff] %v9334_v59  ;;  %2105 = vmatpush.bf16.msra.mxu0 %v9323_v46  ;;  %v7820_v58 = vld [vmem:[#allocation11 + $0x1f4] sm:$0xf0]  ;;  %v7816_v11 = vld [vmem:[#allocation11 + $0x1dc] sm:$0xf]  ;;  %v9359_v36 = vor.u32 %v7815_v45, %v7580_v7  ;;  %8024 = vrcp.f32 %v9348_v49  ;;  %vm1763_vm9 = vweird.f32 %v9348_v49 }
 0x101   :  { %13199 = vst [vmem:[#allocation215_spill] sm:$0xff] %v9337_v63  ;;  %2118 = vmatpush.bf16.msra.mxu1 %v9328_v51  ;;  %v7588_v1 = vld [vmem:[#allocation11 + $0x1f8] sm:$0xf0]  ;;  %v7546_v52 = vld [vmem:[#allocation11 + $0x190] sm:$0xf]  ;;  %v9355_v51 = vpop.eup %8020  ;;  %v9361_v31 = vor.u32 %v7820_v58, %v7586_v23  ;;  %8026 = vtanh.f32 %v848_v9 }
 0x102   :  { %13200 = vst [vmem:[#allocation216_spill] sm:$0xff] %v9340_v30  ;;  %2131 = vmatpush.bf16.msra.mxu2 %v9330_v37  ;;  %2144 = vmatpush.bf16.msra.mxu3 %v9334_v59  ;;  %v7811_v46 = vld [vmem:[#allocation11 + $0x1ac] sm:$0xf0]  ;;  %v7548_v50 = vld [vmem:[#allocation11 + $0x1b0] sm:$0xf0]  ;;  %v9363_v29 = vpop.eup %8022  ;;  %v1720_v0 = vmul.f32 %v9355_v51, %v9318_v6  ;;  %v9369_v35 = vor.u32 %v7816_v11, %v7588_v1  ;;  %vm1725_vm0 = vweird.f32 %v9355_v51 }
 0x103   :  { %13201 = vst [vmem:[#allocation217_spill] sm:$0xff] %v9344_v19  ;;  %v7554_v33 = vld [vmem:[#allocation11 + $0x198] sm:$0xf]  ;;  %v7808_v24 = vld [vmem:[#allocation11 + $0x19c] sm:$0xf]  ;;  %v1739_v58 = vmul.f32 %v9363_v29, %v9320_v17  ;;  %v9377_v45 = vor.u32 %v7811_v46, %v7546_v52  ;;  %v9379_v11 = vor.u32 %v7807_v18, %v7548_v50  ;;  %v1749_v52 = vand.u32 2147483648, %v9320_v17  ;;  %vm9412_vm4 = vmor %vm1724_vm2, %vm1725_vm0 }
 0x104   :  { %13202 = vst [vmem:[#allocation218_spill] sm:$0xff] %v9346_v53  ;;  %v7812_v37 = vld [vmem:[#allocation11 + $0x1b4] sm:$0xf0]  ;;  %2106 = vmatpush.bf16.msra.mxu0 %v9340_v30  ;;  %v7556_v34 = vld [vmem:[#allocation11 + $0x1b8] sm:$0xf0]  ;;  %v1721_v12 = vsub.f32 1.0, %v1720_v0  ;;  %vm1744_vm1 = vweird.f32 %v9363_v29 }
 0x105   :  { %13203 = vst [vmem:[#allocation219_spill] sm:$0xff] %v9351_v10  ;;  %2119 = vmatpush.bf16.msra.mxu1 %v9344_v19  ;;  %v7514_v7 = vld [vmem:[#allocation11 + $0x150] sm:$0xf]  ;;  %v9381_v1 = vor.u32 %v7812_v37, %v7554_v33  ;;  %v7799_v30 = vld [vmem:[#allocation11 + $0x154] sm:$0xf]  ;;  %v1740_v63 = vsub.f32 1.0, %v1739_v58  ;;  %v9386_v0 = vor.u32 %v7808_v24, %v7556_v34  ;;  %vm1745_vm6 = vmor %vm1743_vm3, %vm1744_vm1 }
 0x106   :  { %13204 = vst [vmem:[#allocation220_spill] sm:$0xff] %v9353_v44  ;;  %2132 = vmatpush.bf16.msra.mxu2 %v9346_v53  ;;  %v7803_v23 = vld [vmem:[#allocation11 + $0x16c] sm:$0xf0]  ;;  %2145 = vmatpush.bf16.msra.mxu3 %v9351_v10  ;;  %v7516_v59 = vld [vmem:[#allocation11 + $0x170] sm:$0xf0]  ;;  %v1730_v19 = vand.u32 2147483648, %v9318_v6  ;;  %v1722_v18 = vmul.f32 %v9355_v51, %v1721_v12  ;;  %v9398_v34 = vpop.eup %8024 }
 0x107   :  { %13205 = vst [vmem:[#allocation221_spill] sm:$0xff] %v9359_v36  ;;  %v7522_v10 = vld [vmem:[#allocation11 + $0x158] sm:$0xf]  ;;  %v1728_v46 = vand.u32 2147483647, %v9318_v6  ;;  %v1741_v37 = vmul.f32 %v9363_v29, %v1740_v63  ;;  %v9396_v50 = vor.u32 %v7803_v23, %v7514_v7  ;;  %v9403_v12 = vor.u32 %v7799_v30, %v7516_v59 }
 0x108   :  { %13206 = vst [vmem:[#allocation222_spill] sm:$0xff] %v9361_v31  ;;  %2151 = vmatpush.bf16.msrb.mxu0 %v9353_v44  ;;  %v7804_v44 = vld [vmem:[#allocation11 + $0x174] sm:$0xf0]  ;;  %v1747_v9 = vand.u32 2147483647, %v9320_v17  ;;  %v1723_v58 = vadd.f32 %v9355_v51, %v1722_v18  ;;  %v1759_v7 = vmul.f32 %v9398_v34, %v9348_v49  ;;  %v1731_v6 = vor.u32 1.1754944e-38, %v1730_v19 }
 0x109   :  { %13207 = vst [vmem:[#allocation223_spill] sm:$0xff] %v9369_v35  ;;  %2164 = vmatpush.bf16.msrb.mxu1 %v9359_v36  ;;  %v7800_v33 = vld [vmem:[#allocation11 + $0x15c] sm:$0xf]  ;;  %v7482_v63 = vld [vmem:[#allocation11 + $0x110] sm:$0xf]  ;;  %v1742_v18 = vadd.f32 %v9363_v29, %v1741_v37  ;;  %vm1729_vm5 = vcmp.eq.f32.partialorder %v1728_v46, 8.507059e+37  ;;  %vm1764_vm8 = vweird.f32 %v9398_v34 }
 0x10a   :  { %13208 = vst [vmem:[#allocation224_spill] sm:$0xff] %v9377_v45  ;;  %2177 = vmatpush.bf16.msrb.mxu2 %v9361_v31  ;;  %2190 = vmatpush.bf16.msrb.mxu3 %v9369_v35  ;;  %v7524_v24 = vld [vmem:[#allocation11 + $0x178] sm:$0xf0]  ;;  %v9405_v35 = vor.u32 %v7804_v44, %v7522_v10  ;;  %v7795_v31 = vld [vmem:[#allocation11 + $0x12c] sm:$0xf0]  ;;  %v1750_v10 = vor.u32 1.1754944e-38, %v1749_v52  ;;  %v1727_v17 = vsel %vm9412_vm4, %v9355_v51, %v1723_v58  ;;  %vm9463_vm10 = vmor %vm1763_vm9, %vm1764_vm8 }
 0x10b   :  { %13209 = vst [vmem:[#allocation225_spill] sm:$0xff] %v9379_v11  ;;  %v7791_v30 = vld [vmem:[#allocation11 + $0x114] sm:$0xf]  ;;  %v9425_v19 = vor.u32 %v7800_v33, %v7524_v24  ;;  %v7490_v44 = vld [vmem:[#allocation11 + $0x118] sm:$0xf]  ;;  %v1746_v36 = vsel %vm1745_vm6, %v9363_v29, %v1742_v18  ;;  %vm1748_vm7 = vcmp.eq.f32.partialorder %v1747_v9, 8.507059e+37  ;;  %v9429_v46 = vor.u32 %v7795_v31, %v7482_v63 }
 0x10c   :  { %13210 = vst [vmem:[#allocation226_spill] sm:$0xff] %v9381_v1  ;;  %2152 = vmatpush.bf16.msrb.mxu0 %v9377_v45  ;;  %v7484_v59 = vld [vmem:[#allocation11 + $0x130] sm:$0xf0]  ;;  %v7796_v37 = vld [vmem:[#allocation11 + $0x134] sm:$0xf0]  ;;  %v1760_v45 = vsub.f32 1.0, %v1759_v7  ;;  %v1751_v23 = vsel %vm1748_vm7, %v1750_v10, %v1746_v36 }
 0x10d   :  { %13211 = vst [vmem:[#allocation227_spill] sm:$0xff] %v9386_v0  ;;  %2165 = vmatpush.bf16.msrb.mxu1 %v9379_v11  ;;  %v8027_v11 = vpop.eup %8026  ;;  %v7792_v52 = vld [vmem:[#allocation11 + $0x11c] sm:$0xf]  ;;  %v7450_v58 = vld [vmem:[#allocation11 + $0xd0] sm:$0xf]  ;;  %v1773_v24 = vmul.f32 0.0, %v1751_v23  ;;  %v9434_v7 = vor.u32 %v7791_v30, %v7484_v59  ;;  %v9436_v29 = vor.u32 %v7796_v37, %v7490_v44 }
 0x10e   :  { %13212 = vst [vmem:[#allocation228_spill] sm:$0xff] %v9396_v50  ;;  %2178 = vmatpush.bf16.msrb.mxu2 %v9381_v1  ;;  %2191 = vmatpush.bf16.msrb.mxu3 %v9386_v0  ;;  %v1732_v1 = vsel %vm1729_vm5, %v1731_v6, %v1727_v17  ;;  %v7492_v53 = vld [vmem:[#allocation11 + $0x138] sm:$0xf0]  ;;  %v1761_v33 = vmul.f32 %v9398_v34, %v1760_v45  ;;  %v7787_v9 = vld [vmem:[#allocation11 + $0xec] sm:$0xf0] }
 0x10f   :  { %13213 = vst [vmem:[#allocation229_spill] sm:$0xff] %v9403_v12  ;;  %v1774_v51 = vmul.f32 %v8027_v11, %v1732_v1  ;;  %v7783_v6 = vld [vmem:[#allocation11 + $0xd4] sm:$0xf]  ;;  %v9439_v36 = vor.u32 %v7792_v52, %v7492_v53  ;;  %v7458_v11 = vld [vmem:[#allocation11 + $0xd8] sm:$0xf]  ;;  %v9446_v30 = vor.u32 %v7787_v9, %v7450_v58  ;;  %v1769_v53 = vand.u32 2147483648, %v9348_v49 }
 0x110   :  { %13214 = vst [vmem:[#allocation230_spill] sm:$0xff] %v9405_v35  ;;  %2153 = vmatpush.bf16.msrb.mxu0 %v9396_v50  ;;  %v7452_v31 = vld [vmem:[#allocation11 + $0xf0] sm:$0xf0]  ;;  %v7788_v1 = vld [vmem:[#allocation11 + $0xf4] sm:$0xf0]  ;;  %v1762_v10 = vadd.f32 %v9398_v34, %v1761_v33 }
 0x111   :  { %13217 = vst [vmem:[#allocation231_spill] sm:$0xff] %v9425_v19  ;;  %2166 = vmatpush.bf16.msrb.mxu1 %v9403_v12  ;;  %v9441_v63 = vadd.f32 %v1774_v51, %v1773_v24  ;;  %v7784_v45 = vld [vmem:[#allocation11 + $0xdc] sm:$0xf]  ;;  %v7418_v59 = vld [vmem:[#allocation11 + $0x90] sm:$0xf]  ;;  %v9452_v44 = vor.u32 %v7783_v6, %v7452_v31  ;;  %v9454_v37 = vor.u32 %v7788_v1, %v7458_v11 }
 0x112   :  { %13218 = vst [vmem:[#allocation232_spill] sm:$0xff] %v9429_v46  ;;  %2179 = vmatpush.bf16.msrb.mxu2 %v9405_v35  ;;  %2192 = vmatpush.bf16.msrb.mxu3 %v9425_v19  ;;  %v7460_v18 = vld [vmem:[#allocation11 + $0xf8] sm:$0xf0]  ;;  %v7779_v17 = vld [vmem:[#allocation11 + $0xac] sm:$0xf0]  ;;  %v1766_v11 = vsel %vm9463_vm10, %v9398_v34, %v1762_v10 }
 0x113   :  { %13219 = vst [vmem:[#allocation233_spill] sm:$0xff] %v9434_v7  ;;  %8028 = vtanh.f32 %v9441_v63  ;;  %v7775_v52 = vld [vmem:[#allocation11 + $0x94] sm:$0xf]  ;;  %v1767_v51 = vand.u32 2147483647, %v9348_v49  ;;  %v9459_v58 = vor.u32 %v7784_v45, %v7460_v18  ;;  %v9471_v49 = vor.u32 %v7779_v17, %v7418_v59  ;;  %v1555_v18 = vpop.f32.mrf.mxu3 }
 0x114   :  { %13220 = vst [vmem:[#allocation234_spill] sm:$0xff] %v9436_v29  ;;  %2154 = vmatpush.bf16.msrb.mxu0 %v9429_v46  ;;  %v7420_v23 = vld [vmem:[#allocation11 + $0xb0] sm:$0xf0]  ;;  %v7426_v33 = vld [vmem:[#allocation11 + $0x98] sm:$0xf] }
 0x115   :  { %13221 = vst [vmem:[#allocation235_spill] sm:$0xff] %v9439_v36  ;;  %2167 = vmatpush.bf16.msrb.mxu1 %v9434_v7  ;;  %v7780_v24 = vld [vmem:[#allocation11 + $0xb4] sm:$0xf0]  ;;  %v7776_v6 = vld [vmem:[#allocation11 + $0x9c] sm:$0xf]  ;;  %vm1768_vm11 = vcmp.eq.f32.partialorder %v1767_v51, 8.507059e+37 }
 0x116   :  { %13222 = vst [vmem:[#allocation236_spill] sm:$0xff] %v9446_v30  ;;  %2180 = vmatpush.bf16.msrb.mxu2 %v9436_v29  ;;  %2193 = vmatpush.bf16.msrb.mxu3 %v9439_v36  ;;  %v7428_v31 = vld [vmem:[#allocation11 + $0xb8] sm:$0xf0]  ;;  %v7386_v1 = vld [vmem:[#allocation11 + $0x50] sm:$0xf]  ;;  %v1770_v36 = vor.u32 1.1754944e-38, %v1769_v53  ;;  %v9475_v29 = vor.u32 %v7775_v52, %v7420_v23  ;;  %v9477_v7 = vor.u32 %v7780_v24, %v7426_v33  ;;  %v1542_v24 = vpop.f32.mrf.mxu2 }
 0x117   :  { %13223 = vst [vmem:[#allocation237_spill] sm:$0xff] %v9452_v44  ;;  %v7771_v45 = vld [vmem:[#allocation11 + $0x6c] sm:$0xf0]  ;;  %v7767_v46 = vld [vmem:[#allocation11 + $0x54] sm:$0xf]  ;;  %v9480_v34 = vor.u32 %v7776_v6, %v7428_v31  ;;  %v9485_v33 = vld [vmem:[#allocation14] sm:$0xff] }
 0x118   :  { %13224 = vst [vmem:[#allocation238_spill] sm:$0xff] %v9454_v37  ;;  %2155 = vmatpush.bf16.msrb.mxu0 %v9446_v30  ;;  %v7388_v19 = vld [vmem:[#allocation11 + $0x70] sm:$0xf0]  ;;  %v7394_v10 = vld [vmem:[#allocation11 + $0x58] sm:$0xf]  ;;  %v1771_v9 = vsel %vm1768_vm11, %v1770_v36, %v1766_v11  ;;  %v9483_v52 = vor.u32 %v7771_v45, %v7386_v1  ;;  %v9494_v11 = vperm.slane %v9485_v33, 1 }
 0x119   :  { %13225 = vst [vmem:[#allocation239_spill] sm:$0xff] %v9459_v58  ;;  %2168 = vmatpush.bf16.msrb.mxu1 %v9452_v44  ;;  %v7772_v59 = vld [vmem:[#allocation11 + $0x74] sm:$0xf0]  ;;  %v8029_v17 = vpop.eup %8028  ;;  %v7768_v53 = vld [vmem:[#allocation11 + $0x5c] sm:$0xf]  ;;  %v9489_v51 = vor.u32 %v7767_v46, %v7388_v19 }
 0x11a   :  { %13228 = vst [vmem:[#allocation240_spill] sm:$0xff] %v9471_v49  ;;  %2181 = vmatpush.bf16.msrb.mxu2 %v9454_v37  ;;  %2194 = vmatpush.bf16.msrb.mxu3 %v9459_v58  ;;  %v7396_v30 = vld [vmem:[#allocation11 + $0x78] sm:$0xf0]  ;;  %v1777_v44 = vmul.f32 %v8029_v17, %v1771_v9  ;;  %v7354_v23 = vld [vmem:[#allocation11 + $0x10] sm:$0xf]  ;;  %v9491_v6 = vor.u32 %v7772_v59, %v7394_v10 }
 0x11b   :  { %13229 = vst [vmem:[#allocation241_spill] sm:$0xff] %v9475_v29  ;;  %v7763_v36 = vld [vmem:[#allocation11 + $0x2c] sm:$0xf0]  ;;  %v7759_v31 = vld [vmem:[#allocation11 + $0x14] sm:$0xf]  ;;  %v9499_v1 = vor.u32 %v7768_v53, %v7396_v30  ;;  %v1557_v46 = vpop.f32.mrf.mxu3  ;;  %v1543_v10 = vadd.f32 %v1542_v24, %v9494_v11  ;;  %v1529_v53 = vpop.f32.mrf.mxu1 }
 0x11c   :  { %13230 = vst [vmem:[#allocation242_spill] sm:$0xff] %v9477_v7  ;;  %2156 = vmatpush.bf16.msrb.mxu0 %v9471_v49  ;;  %v9496_v17 = vpack.c.bf16 %v1777_v44, %v1777_v44  ;;  %v7356_v45 = vld [vmem:[#allocation11 + $0x30] sm:$0xf0]  ;;  %v7362_v9 = vld [vmem:[#allocation11 + $0x18] sm:$0xf]  ;;  %v9503_v19 = vor.u32 %v7763_v36, %v7354_v23 }
 0x11d   :  { %13231 = vst [vmem:[#allocation243_spill] sm:$0xff] %v9480_v34  ;;  %2169 = vmatpush.bf16.msrb.mxu1 %v9475_v29  ;;  %v7764_v29 = vld [vmem:[#allocation11 + $0x34] sm:$0xf0]  ;;  %v7760_v49 = vld [vmem:[#allocation11 + $0x1c] sm:$0xf]  ;;  %v9507_v44 = vor.u32 %v7759_v31, %v7356_v45 }
 0x11e   :  { %13232 = vst [vmem:[#allocation244_spill] sm:$0xff] %v9483_v52  ;;  %2182 = vmatpush.bf16.msrb.mxu2 %v9477_v7  ;;  %2195 = vmatpush.bf16.msrb.mxu3 %v9480_v34  ;;  %v7364_v7 = vld [vmem:[#allocation11 + $0x38] sm:$0xf0]  ;;  %v9509_v30 = vor.u32 %v7764_v29, %v7362_v9  ;;  %v1544_v23 = vpop.f32.mrf.mxu2  ;;  %v9521_v29 = vadd.f32 %v1555_v18, %v1543_v10 }
 0x11f   :  { %13233 = vst [vmem:[#allocation245_spill] sm:$0xff] %v9489_v51  ;;  %2120 = vmatmul.bf16.vlgmr.msra.gmra.mxu1 %v9496_v17  ;;  %2107 = vmatmul.bf16.vlgmr.msra.gmra.mxu0 %v9496_v17  ;;  %v9514_v59 = vor.u32 %v7760_v49, %v7364_v7  ;;  %v9528_v7 = vperm.slane %v9485_v33, 0  ;;  %v1516_v49 = vpop.f32.mrf.mxu0 }
 0x120   :  { %13234 = vst [vmem:[#allocation246_spill] sm:$0xff] %v9491_v6  ;;  %2157 = vmatpush.bf16.msrb.mxu0 %v9483_v52  ;;  %2133 = vmatmul.bf16.vlgmr.msra.gmra.mxu2 %v9496_v17 }
 0x121   :  { %13235 = vst [vmem:[#allocation247_spill] sm:$0xff] %v9494_v11  ;;  %2170 = vmatpush.bf16.msrb.mxu1 %v9489_v51  ;;  %2146 = vmatmul.bf16.vlgmr.msra.gmra.mxu3 %v9496_v17  ;;  %v1517_v18 = vadd.f32 %v1516_v49, %v9528_v7 }
 0x122   :  { %13236 = vst [vmem:[#allocation248_spill] sm:$0xff] %v9499_v1  ;;  %2183 = vmatpush.bf16.msrb.mxu2 %v9491_v6  ;;  %2196 = vmatpush.bf16.msrb.mxu3 %v9499_v1 }
 0x123   :  { %13237 = vst [vmem:[#allocation249_spill] sm:$0xff] %v9503_v19  ;;  %v1531_v24 = vpop.f32.mrf.mxu1  ;;  %v9539_v31 = vadd.f32 %v1529_v53, %v1517_v18  ;;  %v9556_v53 = vperm.slane %v9485_v33, 3 }
 0x124   :  { %13238 = vst [vmem:[#allocation250_spill] sm:$0xff] %v9507_v44  ;;  %2158 = vmatpush.bf16.msrb.mxu0 %v9503_v19 }
 0x125   :  { %13239 = vst [vmem:[#allocation251_spill] sm:$0xff] %v9509_v30  ;;  %2171 = vmatpush.bf16.msrb.mxu1 %v9507_v44 }
 0x126   :  { %13240 = vst [vmem:[#allocation252_spill] sm:$0xff] %v9514_v59  ;;  %2184 = vmatpush.bf16.msrb.mxu2 %v9509_v30  ;;  %2197 = vmatpush.bf16.msrb.mxu3 %v9514_v59 }
 0x127   :  { %13241 = vst [vmem:[#allocation253_spill] sm:$0xff] %v9528_v7  ;;  %v1518_v36 = vpop.f32.mrf.mxu0 }
 0x128   :  { %2349 = vmatpush.bf16.msra.mxu0 %v8722_v41  ;;  %13242 = vst [vmem:[#allocation254_spill] sm:$0xff] %v9556_v53 }
 0x129   :  { %2362 = vmatpush.bf16.msra.mxu1 %v8724_v42 }
 0x12a   :  { %2375 = vmatpush.bf16.msra.mxu2 %v8726_v43  ;;  %2388 = vmatpush.bf16.msra.mxu3 %v8728_v47 }
 0x12b   :  { %v1581_v9 = vpop.f32.mrf.mxu1 }
 0x12c   :  { %2350 = vmatpush.bf16.msra.mxu0 %v8731_v54  ;;  %v1594_v45 = vpop.f32.mrf.mxu2 }
 0x12d   :  { %2363 = vmatpush.bf16.msra.mxu1 %v8735_v55  ;;  %v1595_v24 = vadd.f32 %v1594_v45, %v9556_v53  ;;  %v13244_v45 = vld [vmem:[#allocation56_spill] sm:$0xff] }
 0x12e   :  { %2376 = vmatpush.bf16.msra.mxu2 %v8737_v56  ;;  %2389 = vmatpush.bf16.msra.mxu3 %v8740_v60  ;;  %v1607_v46 = vpop.f32.mrf.mxu3  ;;  %v13252_v53 = vld [vmem:[#allocation64_spill] sm:$0xff] }
 0x12f   :  { %2172 = vmatmul.bf16.vlgmr.msrb.gmra.mxu1 %v9496_v17  ;;  %2159 = vmatmul.bf16.vlgmr.msrb.gmra.mxu0 %v9496_v17  ;;  %v1568_v10 = vpop.f32.mrf.mxu0 }
 0x130   :  { %2351 = vmatpush.bf16.msra.mxu0 %v8743_v2  ;;  %2185 = vmatmul.bf16.vlgmr.msrb.gmra.mxu2 %v9496_v17 }
 0x131   :  { %2364 = vmatpush.bf16.msra.mxu1 %v8747_v3  ;;  %2198 = vmatmul.bf16.vlgmr.msrb.gmra.mxu3 %v9496_v17 }
 0x132   :  { %2377 = vmatpush.bf16.msra.mxu2 %v8749_v4  ;;  %2390 = vmatpush.bf16.msra.mxu3 %v8752_v8 }
 0x133   :  { %v1583_v49 = vpop.f32.mrf.mxu1 }
 0x134   :  { %2352 = vmatpush.bf16.msra.mxu0 %v8755_v14  ;;  %v1596_v23 = vpop.f32.mrf.mxu2  ;;  %v13245_v49 = vld [vmem:[#allocation57_spill] sm:$0xff] }
 0x135   :  { %2365 = vmatpush.bf16.msra.mxu1 %v8759_v15  ;;  %v9573_v23 = vperm.slane %v9485_v33, 2 }
 0x136   :  { %2378 = vmatpush.bf16.msra.mxu2 %v8761_v16  ;;  %2391 = vmatpush.bf16.msra.mxu3 %v8764_v20  ;;  %v1609_v18 = vpop.f32.mrf.mxu3 }
 0x137   :  { %v1570_v36 = vpop.f32.mrf.mxu0  ;;  %13243 = vst [vmem:[#allocation255_spill] sm:$0xff] %v9573_v23  ;;  %v1569_v18 = vadd.f32 %v1568_v10, %v9573_v23  ;;  %v13255_v10 = vld [vmem:[#allocation67_spill] sm:$0xff] }
 0x138   :  { %2353 = vmatpush.bf16.msra.mxu0 %v8767_v26  ;;  %v13248_v36 = vld [vmem:[#allocation60_spill] sm:$0xff] }
 0x139   :  { %2366 = vmatpush.bf16.msra.mxu1 %v8771_v27 }
 0x13a   :  { %2379 = vmatpush.bf16.msra.mxu2 %v8773_v28  ;;  %2392 = vmatpush.bf16.msra.mxu3 %v8776_v32 }
 0x13c   :  { %2354 = vmatpush.bf16.msra.mxu0 %v8779_v38 }
 0x13d   :  { %2367 = vmatpush.bf16.msra.mxu1 %v8783_v39  ;;  %v9567_v39 = vadd.f32 %v1607_v46, %v1595_v24  ;;  %v13246_v46 = vld [vmem:[#allocation58_spill] sm:$0xff]  ;;  %v13247_v24 = vld [vmem:[#allocation59_spill] sm:$0xff] }
 0x13e   :  { %2380 = vmatpush.bf16.msra.mxu2 %v8785_v40  ;;  %2393 = vmatpush.bf16.msra.mxu3 %v8788_v48 }
 0x140   :  { %2355 = vmatpush.bf16.msra.mxu0 %v8791_v57 }
 0x141   :  { %2368 = vmatpush.bf16.msra.mxu1 %v8795_v61  ;;  %v13270_v61 = vld [vmem:[#allocation81_spill] sm:$0xff] }
 0x142   :  { %2381 = vmatpush.bf16.msra.mxu2 %v8797_v62  ;;  %2394 = vmatpush.bf16.msra.mxu3 %v8800_v5  ;;  %v13258_v62 = vld [vmem:[#allocation70_spill] sm:$0xff] }
 0x144   :  { %2356 = vmatpush.bf16.msra.mxu0 %v8803_v13  ;;  %v9588_v13 = vadd.f32 %v1581_v9, %v1569_v18  ;;  %v13259_v9 = vld [vmem:[#allocation71_spill] sm:$0xff]  ;;  %v13260_v18 = vld [vmem:[#allocation72_spill] sm:$0xff] }
 0x145   :  { %2369 = vmatpush.bf16.msra.mxu1 %v8807_v21  ;;  %v13251_v21 = vld [vmem:[#allocation63_spill] sm:$0xff] }
 0x146   :  { %2382 = vmatpush.bf16.msra.mxu2 %v8809_v22  ;;  %2395 = vmatpush.bf16.msra.mxu3 %v8812_v25  ;;  %v13249_v25 = vld [vmem:[#allocation61_spill] sm:$0xff]  ;;  %v13250_v22 = vld [vmem:[#allocation62_spill] sm:$0xff] }
 0x147   :  { %2357 = vmatmul.bf16.vlgmr.msra.gmra.mxu0 %v9496_v17 }
 0x148   :  { %2407 = vmatpush.bf16.msrb.mxu0 %v13244_v45  ;;  %2370 = vmatmul.bf16.vlgmr.msra.gmra.mxu1 %v9496_v17  ;;  %v1620_v45 = vpop.f32.mrf.mxu0 }
 0x149   :  { %2420 = vmatpush.bf16.msrb.mxu1 %v13245_v49  ;;  %2383 = vmatmul.bf16.vlgmr.msra.gmra.mxu2 %v9496_v17  ;;  %v1633_v49 = vpop.f32.mrf.mxu1 }
 0x14a   :  { %2396 = vmatmul.bf16.vlgmr.msra.gmra.mxu3 %v9496_v17  ;;  %2433 = vmatpush.bf16.msrb.mxu2 %v13246_v46  ;;  %v13253_v17 = vld [vmem:[#allocation65_spill] sm:$0xff]  ;;  %v13254_v46 = vld [vmem:[#allocation66_spill] sm:$0xff] }
 0x14b   :  { %2446 = vmatpush.bf16.msrb.mxu3 %v13247_v24  ;;  %v13256_v24 = vld [vmem:[#allocation68_spill] sm:$0xff] }
 0x14c   :  { %2408 = vmatpush.bf16.msrb.mxu0 %v13248_v36  ;;  %v13257_v36 = vld [vmem:[#allocation69_spill] sm:$0xff] }
 0x14d   :  { %2421 = vmatpush.bf16.msrb.mxu1 %v13249_v25  ;;  %v1646_v25 = vpop.f32.mrf.mxu2 }
 0x14e   :  { %2434 = vmatpush.bf16.msrb.mxu2 %v13250_v22  ;;  %v1659_v5 = vpop.f32.mrf.mxu3 }
 0x14f   :  { %2447 = vmatpush.bf16.msrb.mxu3 %v13251_v21 }
 0x150   :  { %2409 = vmatpush.bf16.msrb.mxu0 %v13252_v53  ;;  %v1622_v22 = vpop.f32.mrf.mxu0  ;;  %v13261_v53 = vld [vmem:[#allocation73_spill] sm:$0xff] }
 0x151   :  { %2422 = vmatpush.bf16.msrb.mxu1 %v13253_v17  ;;  %v1635_v21 = vpop.f32.mrf.mxu1  ;;  %v13266_v17 = vld [vmem:[#allocation77_spill] sm:$0xff] }
 0x152   :  { %2435 = vmatpush.bf16.msrb.mxu2 %v13254_v46  ;;  %v9601_v46 = vperm.slane %v9485_v33, 5 }
 0x153   :  { %2448 = vmatpush.bf16.msrb.mxu3 %v13255_v10  ;;  %v13263_v10 = vld [vmem:[#allocation74_spill] sm:$0xff] }
 0x154   :  { %2410 = vmatpush.bf16.msrb.mxu0 %v13256_v24  ;;  %13262 = vst [vmem:[#allocation256_spill] sm:$0xff] %v9601_v46  ;;  %v13264_v24 = vld [vmem:[#allocation75_spill] sm:$0xff]  ;;  %v1647_v21 = vadd.f32 %v1646_v25, %v9601_v46  ;;  %v13276_v25 = vld [vmem:[#allocation88_spill] sm:$0xff] }
 0x155   :  { %2423 = vmatpush.bf16.msrb.mxu1 %v13257_v36  ;;  %v13265_v36 = vld [vmem:[#allocation76_spill] sm:$0xff]  ;;  %v1648_v22 = vpop.f32.mrf.mxu2  ;;  %v13290_v46 = vld [vmem:[#allocation99_spill] sm:$0xff] }
 0x156   :  { %2436 = vmatpush.bf16.msrb.mxu2 %v13258_v62  ;;  %v1661_v62 = vpop.f32.mrf.mxu3  ;;  %v9612_v57 = vadd.f32 %v1659_v5, %v1647_v21  ;;  %v9618_v22 = vperm.slane %v9485_v33, 4  ;;  %v13280_v5 = vld [vmem:[#allocation90_spill] sm:$0xff] }
 0x157   :  { %2449 = vmatpush.bf16.msrb.mxu3 %v13259_v9  ;;  %v13267_v9 = vld [vmem:[#allocation78_spill] sm:$0xff]  ;;  %v13275_v62 = vld [vmem:[#allocation85_spill] sm:$0xff] }
 0x158   :  { %2411 = vmatpush.bf16.msrb.mxu0 %v13260_v18  ;;  %v13268_v18 = vld [vmem:[#allocation79_spill] sm:$0xff]  ;;  %13274 = vst [vmem:[#allocation257_spill] sm:$0xff] %v9618_v22  ;;  %v1621_v21 = vadd.f32 %v1620_v45, %v9618_v22 }
 0x159   :  { %2424 = vmatpush.bf16.msrb.mxu1 %v13261_v53  ;;  %v13269_v53 = vld [vmem:[#allocation80_spill] sm:$0xff]  ;;  %v13294_v22 = vld [vmem:[#allocation103_spill] sm:$0xff] }
 0x15a   :  { %2437 = vmatpush.bf16.msrb.mxu2 %v13263_v10  ;;  %v13271_v10 = vld [vmem:[#allocation82_spill] sm:$0xff] }
 0x15b   :  { %2450 = vmatpush.bf16.msrb.mxu3 %v13264_v24  ;;  %v13272_v24 = vld [vmem:[#allocation83_spill] sm:$0xff] }
 0x15c   :  { %2412 = vmatpush.bf16.msrb.mxu0 %v13265_v36  ;;  %v13273_v36 = vld [vmem:[#allocation84_spill] sm:$0xff] }
 0x15d   :  { %2425 = vmatpush.bf16.msrb.mxu1 %v13266_v17  ;;  %v13289_v17 = vld [vmem:[#allocation98_spill] sm:$0xff] }
 0x15e   :  { %2438 = vmatpush.bf16.msrb.mxu2 %v13267_v9  ;;  %v9634_v9 = vadd.f32 %v1633_v49, %v1621_v21  ;;  %v13293_v21 = vld [vmem:[#allocation102_spill] sm:$0xff] }
 0x15f   :  { %2451 = vmatpush.bf16.msrb.mxu3 %v13268_v18  ;;  %v13277_v18 = vld [vmem:[#allocation89_spill] sm:$0xff] }
 0x160   :  { %2413 = vmatpush.bf16.msrb.mxu0 %v13269_v53  ;;  %v13278_v53 = vld [vmem:[#allocation86_spill] sm:$0xff] }
 0x161   :  { %2426 = vmatpush.bf16.msrb.mxu1 %v13270_v61  ;;  %v13279_v61 = vld [vmem:[#allocation87_spill] sm:$0xff] }
 0x162   :  { %2439 = vmatpush.bf16.msrb.mxu2 %v13271_v10  ;;  %v9630_v10 = vperm.slane %v9485_v33, 6 }
 0x163   :  { %2452 = vmatpush.bf16.msrb.mxu3 %v13272_v24  ;;  %v13281_v24 = vld [vmem:[#allocation91_spill] sm:$0xff] }
 0x164   :  { %2414 = vmatpush.bf16.msrb.mxu0 %v13273_v36  ;;  %v13282_v36 = vld [vmem:[#allocation92_spill] sm:$0xff]  ;;  %13283 = vst [vmem:[#allocation258_spill] sm:$0xff] %v9630_v10 }
 0x165   :  { %2427 = vmatpush.bf16.msrb.mxu1 %v13275_v62  ;;  %v13284_v62 = vld [vmem:[#allocation93_spill] sm:$0xff] }
 0x166   :  { %2440 = vmatpush.bf16.msrb.mxu2 %v13278_v53  ;;  %v13286_v53 = vld [vmem:[#allocation95_spill] sm:$0xff] }
 0x167   :  { %2453 = vmatpush.bf16.msrb.mxu3 %v13279_v61  ;;  %v13287_v61 = vld [vmem:[#allocation96_spill] sm:$0xff] }
 0x168   :  { %2459 = vmatpush.bf16.msra.mxu0 %v13276_v25  ;;  %v13285_v25 = vld [vmem:[#allocation94_spill] sm:$0xff] }
 0x169   :  { %2472 = vmatpush.bf16.msra.mxu1 %v13277_v18  ;;  %v1672_v18 = vpop.f32.mrf.mxu0 }
 0x16a   :  { %2485 = vmatpush.bf16.msra.mxu2 %v13280_v5  ;;  %v1673_v45 = vadd.f32 %v1672_v18, %v9630_v10  ;;  %v1685_v5 = vpop.f32.mrf.mxu1  ;;  %v13295_v18 = vld [vmem:[#allocation104_spill] sm:$0xff] }
 0x16b   :  { %2498 = vmatpush.bf16.msra.mxu3 %v13281_v24  ;;  %v13288_v24 = vld [vmem:[#allocation97_spill] sm:$0xff] }
 0x16c   :  { %2460 = vmatpush.bf16.msra.mxu0 %v13282_v36  ;;  %v9640_v36 = vadd.f32 %v1685_v5, %v1673_v45  ;;  %v1698_v49 = vpop.f32.mrf.mxu2  ;;  %v13296_v5 = vld [vmem:[#allocation105_spill] sm:$0xff]  ;;  %v9651_v45 = vperm.slane %v9485_v33, 7 }
 0x16d   :  { %2473 = vmatpush.bf16.msra.mxu1 %v13284_v62  ;;  %v13291_v62 = vld [vmem:[#allocation100_spill] sm:$0xff]  ;;  %v13305_v33 = vld [vmem:[#allocation113_spill] sm:$0xff] }
 0x16e   :  { %2486 = vmatpush.bf16.msra.mxu2 %v13285_v25  ;;  %v13292_v25 = vld [vmem:[#allocation101_spill] sm:$0xff]  ;;  %13297 = vst [vmem:[#allocation259_spill] sm:$0xff] %v9651_v45 }
 0x16f   :  { %2499 = vmatpush.bf16.msra.mxu3 %v13286_v53  ;;  %v1711_v53 = vpop.f32.mrf.mxu3 }
 0x170   :  { %2461 = vmatpush.bf16.msra.mxu0 %v13287_v61 }
 0x171   :  { %2474 = vmatpush.bf16.msra.mxu1 %v13288_v24  ;;  %v1674_v61 = vpop.f32.mrf.mxu0 }
 0x172   :  { %2487 = vmatpush.bf16.msra.mxu2 %v13289_v17  ;;  %v1687_v10 = vpop.f32.mrf.mxu1  ;;  %v13301_v17 = vld [vmem:[#allocation109_spill] sm:$0xff]  ;;  %v1699_v61 = vadd.f32 %v1698_v49, %v9651_v45  ;;  %v13310_v49 = vld [vmem:[#allocation118_spill] sm:$0xff] }
 0x173   :  { %2500 = vmatpush.bf16.msra.mxu3 %v13290_v46  ;;  %v13298_v46 = vld [vmem:[#allocation106_spill] sm:$0xff]  ;;  %v13303_v10 = vld [vmem:[#allocation111_spill] sm:$0xff] }
 0x174   :  { %2462 = vmatpush.bf16.msra.mxu0 %v13291_v62  ;;  %v13299_v62 = vld [vmem:[#allocation107_spill] sm:$0xff]  ;;  %v9662_v24 = vadd.f32 %v1711_v53, %v1699_v61 }
 0x175   :  { %2475 = vmatpush.bf16.msra.mxu1 %v13292_v25  ;;  %v13300_v25 = vld [vmem:[#allocation108_spill] sm:$0xff] }
 0x176   :  { %2488 = vmatpush.bf16.msra.mxu2 %v13293_v21  ;;  %v1700_v21 = vpop.f32.mrf.mxu2 }
 0x177   :  { %2501 = vmatpush.bf16.msra.mxu3 %v13294_v22  ;;  %v13302_v22 = vld [vmem:[#allocation110_spill] sm:$0xff]  ;;  %v13311_v21 = vld [vmem:[#allocation119_spill] sm:$0xff] }
 0x178   :  { %2463 = vmatpush.bf16.msra.mxu0 %v13295_v18  ;;  %v1713_v18 = vpop.f32.mrf.mxu3 }
 0x179   :  { %2476 = vmatpush.bf16.msra.mxu1 %v13296_v5  ;;  %v13304_v5 = vld [vmem:[#allocation112_spill] sm:$0xff] }
 0x17a   :  { %2489 = vmatpush.bf16.msra.mxu2 %v13298_v46  ;;  %v13306_v46 = vld [vmem:[#allocation114_spill] sm:$0xff] }
 0x17b   :  { %2502 = vmatpush.bf16.msra.mxu3 %v13299_v62  ;;  %v13307_v62 = vld [vmem:[#allocation115_spill] sm:$0xff] }
 0x17c   :  { %2464 = vmatpush.bf16.msra.mxu0 %v13300_v25  ;;  %v13308_v25 = vld [vmem:[#allocation116_spill] sm:$0xff] }
 0x17d   :  { %2477 = vmatpush.bf16.msra.mxu1 %v13301_v17  ;;  %v13309_v17 = vld [vmem:[#allocation117_spill] sm:$0xff] }
 0x17e   :  { %2490 = vmatpush.bf16.msra.mxu2 %v13302_v22 }
 0x17f   :  { %2503 = vmatpush.bf16.msra.mxu3 %v13303_v10 }
 0x180   :  { %2465 = vmatpush.bf16.msra.mxu0 %v13304_v5 }
 0x181   :  { %2478 = vmatpush.bf16.msra.mxu1 %v13305_v33 }
 0x182   :  { %2491 = vmatpush.bf16.msra.mxu2 %v13306_v46 }
 0x183   :  { %2504 = vmatpush.bf16.msra.mxu3 %v13307_v62 }
 0x184   :  { %2466 = vmatpush.bf16.msra.mxu0 %v13308_v25 }
 0x185   :  { %2479 = vmatpush.bf16.msra.mxu1 %v13309_v17 }
 0x186   :  { %2492 = vmatpush.bf16.msra.mxu2 %v13310_v49 }
 0x187   :  { %2505 = vmatpush.bf16.msra.mxu3 %v13311_v21 }
 0x19c   :  { %v2121_v18 = vpop.f32.mrf.mxu1  ;;  %v2108_v5 = vpop.f32.mrf.mxu0 }
 0x19d   :  { %v2204_v45 = vadd.f32 %v2121_v18, %v9521_v29  ;;  %v2203_v33 = vadd.f32 %v2108_v5, %v9539_v31 }
 0x19f   :  { %v7593_v53 = vmul.f32 -1.442695, %v2204_v45  ;;  %v7592_v61 = vmul.f32 -1.442695, %v2203_v33 }
 0x1a1   :  { %8030 = vpow2.f32 %v7593_v53 }
 0x1a2   :  { %8032 = vpow2.f32 %v7592_v61 }
 0x1a3   :  { %v2134_v62 = vpop.f32.mrf.mxu2 }
 0x1a4   :  { %v2123_v46 = vpop.f32.mrf.mxu1  ;;  %v2147_v10 = vpop.f32.mrf.mxu3  ;;  %v2205_v25 = vadd.f32 %v2134_v62, %v9588_v13 }
 0x1a5   :  { %v2206_v17 = vadd.f32 %v2147_v10, %v9567_v39  ;;  %v2110_v49 = vpop.f32.mrf.mxu0 }
 0x1a6   :  { %v7594_v23 = vmul.f32 -1.442695, %v2205_v25 }
 0x1a7   :  { %v8031_v22 = vpop.eup %8030  ;;  %v7595_v29 = vmul.f32 -1.442695, %v2206_v17 }
 0x1a8   :  { %v2218_v21 = vadd.f32 1.0, %v8031_v22  ;;  %v8033_v48 = vpop.eup %8032 }
 0x1a9   :  { %v2217_v18 = vadd.f32 1.0, %v8033_v48 }
 0x1aa   :  { %8034 = vrcp.f32 %v2218_v21  ;;  %v2243_v53 = vand.u32 2147483647, %v2218_v21  ;;  %v2245_v61 = vand.u32 2147483648, %v2218_v21  ;;  %vm2239_vm13 = vweird.f32 %v2218_v21 }
 0x1ab   :  { %8036 = vpow2.f32 %v7594_v23  ;;  %v2136_v5 = vpop.f32.mrf.mxu2  ;;  %vm2224_vm0 = vweird.f32 %v2217_v18 }
 0x1ac   :  { %8038 = vrcp.f32 %v2217_v18  ;;  %v2173_v31 = vpop.f32.mrf.mxu1  ;;  %v2149_v46 = vpop.f32.mrf.mxu3  ;;  %vm2244_vm1 = vcmp.eq.f32.partialorder %v2243_v53, 8.507059e+37 }
 0x1ad   :  { %8040 = vpow2.f32 %v7595_v29  ;;  %v2208_v45 = vadd.f32 %v2173_v31, %v9612_v57  ;;  %v2160_v13 = vpop.f32.mrf.mxu0  ;;  %v2228_v46 = vand.u32 2147483647, %v2217_v18 }
 0x1ae   :  { %v2207_v10 = vadd.f32 %v2160_v13, %v9634_v9  ;;  %v2230_v9 = vand.u32 2147483648, %v2217_v18 }
 0x1af   :  { %8042 = vtanh.f32 %v2208_v45  ;;  %vm2229_vm3 = vcmp.eq.f32.partialorder %v2228_v46, 8.507059e+37 }
 0x1b0   :  { %v8035_v33 = vpop.eup %8034 }
 0x1b1   :  { %v8037_v62 = vpop.eup %8036  ;;  %v2235_v39 = vmul.f32 %v8035_v33, %v2218_v21  ;;  %vm2240_vm12 = vweird.f32 %v8035_v33  ;;  %v2231_v21 = vor.u32 1.1754944e-38, %v2230_v9 }
 0x1b2   :  { %v8039_v22 = vpop.eup %8038  ;;  %v9676_v25 = vadd.f32 1.0, %v8037_v62  ;;  %vm2241_vm15 = vmor %vm2239_vm13, %vm2240_vm12 }
 0x1b3   :  { %v8041_v17 = vpop.eup %8040  ;;  %v2220_v48 = vmul.f32 %v8039_v22, %v2217_v18  ;;  %v2236_v49 = vsub.f32 1.0, %v2235_v39  ;;  %vm2225_vm14 = vweird.f32 %v8039_v22  ;;  %v2186_v45 = vpop.f32.mrf.mxu2  ;;  %v2246_v39 = vor.u32 1.1754944e-38, %v2245_v61 }
 0x1b4   :  { %8044 = vrcp.f32 %v9676_v25  ;;  %v9679_v23 = vadd.f32 1.0, %v8041_v17  ;;  %v2175_v57 = vpop.f32.mrf.mxu1  ;;  %v2199_v62 = vpop.f32.mrf.mxu3  ;;  %v2209_v17 = vadd.f32 %v2186_v45, %v9640_v36  ;;  %vm2226_vm2 = vmor %vm2224_vm0, %vm2225_vm14  ;;  %v2268_v53 = vand.u32 2147483648, %v9676_v25 }
 0x1b5   :  { %v2221_v29 = vsub.f32 1.0, %v2220_v48  ;;  %8046 = vtanh.f32 %v2207_v10  ;;  %v2237_v31 = vmul.f32 %v8035_v33, %v2236_v49  ;;  %v2210_v57 = vadd.f32 %v2199_v62, %v9662_v24  ;;  %v2162_v48 = vpop.f32.mrf.mxu0  ;;  %v8043_v10 = vpop.eup %8042 }
 0x1b6   :  { %8048 = vrcp.f32 %v9679_v23  ;;  %v2266_v9 = vand.u32 2147483647, %v9676_v25  ;;  %vm2262_vm5 = vweird.f32 %v9676_v25  ;;  %v2269_v48 = vor.u32 1.1754944e-38, %v2268_v53 }
 0x1b7   :  { %v2222_v5 = vmul.f32 %v8039_v22, %v2221_v29  ;;  %v2238_v13 = vadd.f32 %v8035_v33, %v2237_v31  ;;  %v7596_v31 = vmul.f32 -1.442695, %v2209_v17  ;;  %v7597_v32 = vmul.f32 -1.442695, %v2210_v57 }
 0x1b8   :  { %v2281_v17 = vand.u32 2147483647, %v9679_v23  ;;  %vm2277_vm7 = vweird.f32 %v9679_v23  ;;  %vm2267_vm9 = vcmp.eq.f32.partialorder %v2266_v9, 8.507059e+37 }
 0x1b9   :  { %v2223_v49 = vadd.f32 %v8039_v22, %v2222_v5  ;;  %v2242_v40 = vsel %vm2241_vm15, %v8035_v33, %v2238_v13  ;;  %8050 = vpow2.f32 %v7596_v31  ;;  %v13313_v31 = vld [vmem:[#allocation197_spill] sm:$0xff] }
 0x1ba   :  { %v8045_v38 = vpop.eup %8044  ;;  %v2247_v29 = vsel %vm2244_vm1, %v2246_v39, %v2242_v40  ;;  %8052 = vpow2.f32 %v7597_v32  ;;  %v13312_v32 = vld [vmem:[#allocation195_spill] sm:$0xff]  ;;  %vm2282_vm11 = vcmp.eq.f32.partialorder %v2281_v17, 8.507059e+37 }
 0x1bb   :  { %v8047_v28 = vpop.eup %8046  ;;  %v2258_v61 = vmul.f32 %v8045_v38, %v9676_v25  ;;  %v2227_v27 = vsel %vm2226_vm2, %v8039_v22, %v2223_v49  ;;  %v2330_v36 = vmul.f32 %v8043_v10, %v2247_v29  ;;  %vm2263_vm4 = vweird.f32 %v8045_v38  ;;  %v2188_v62 = vpop.f32.mrf.mxu2 }
 0x1bc   :  { %v8049_v24 = vpop.eup %8048  ;;  %v2232_v45 = vsel %vm2229_vm3, %v2231_v21, %v2227_v27  ;;  %v2201_v39 = vpop.f32.mrf.mxu3  ;;  %v2283_v22 = vand.u32 2147483648, %v9679_v23  ;;  %vm2264_vm8 = vmor %vm2262_vm5, %vm2263_vm4  ;;  %vm2340_vm4 = vcmask 1040384  }
 0x1bd   :  { %v2259_v5 = vsub.f32 1.0, %v2258_v61  ;;  %v2273_v18 = vmul.f32 %v8049_v24, %v9679_v23  ;;  %v2329_v33 = vmul.f32 %v8047_v28, %v2232_v45  ;;  %vm2278_vm6 = vweird.f32 %v8049_v24 }
 0x1be   :  { %vm2279_vm10 = vmor %vm2277_vm7, %vm2278_vm6 }
 0x1bf   :  { %v2260_v40 = vmul.f32 %v8045_v38, %v2259_v5  ;;  %v2274_v13 = vsub.f32 1.0, %v2273_v18  ;;  %v8051_v57 = vpop.eup %8050  ;;  %v2284_v5 = vor.u32 1.1754944e-38, %v2283_v22 }
 0x1c0   :  { %v2295_v25 = vadd.f32 1.0, %v8051_v57  ;;  %v8053_v45 = vpop.eup %8052 }
 0x1c1   :  { %v2275_v27 = vmul.f32 %v8049_v24, %v2274_v13  ;;  %v2261_v46 = vadd.f32 %v8045_v38, %v2260_v40  ;;  %v2296_v9 = vadd.f32 1.0, %v8053_v45 }
 0x1c2   :  { %8054 = vrcp.f32 %v2295_v25  ;;  %vm2302_vm13 = vweird.f32 %v2295_v25 }
 0x1c3   :  { %v2265_v21 = vsel %vm2264_vm8, %v8045_v38, %v2261_v46  ;;  %v2276_v29 = vadd.f32 %v8049_v24, %v2275_v27  ;;  %vm2317_vm1 = vweird.f32 %v2296_v9 }
 0x1c4   :  { %v2358_v28 = vpop.f32.mrf.mxu0  ;;  %v2270_v18 = vsel %vm2267_vm9, %v2269_v48, %v2265_v21  ;;  %v2308_v21 = vand.u32 2147483648, %v2295_v25 }
 0x1c5   :  { %v2401_v10 = vadd.f32 %v2358_v28, %v13312_v32  ;;  %v2371_v49 = vpop.f32.mrf.mxu1  ;;  %v2327_v13 = vmul.f32 0.0, %v2270_v18  ;;  %v2280_v53 = vsel %vm2279_vm10, %v8049_v24, %v2276_v29 }
 0x1c6   :  { %v2402_v61 = vadd.f32 %v2371_v49, %v13313_v31  ;;  %v2285_v23 = vsel %vm2282_vm11, %v2284_v5, %v2280_v53 }
 0x1c7   :  { %v7598_v40 = vmul.f32 -1.442695, %v2401_v10  ;;  %v9696_v62 = vadd.f32 %v2329_v33, %v2327_v13  ;;  %v2328_v39 = vmul.f32 0.0, %v2285_v23  ;;  %v2309_v23 = vor.u32 1.1754944e-38, %v2308_v21 }
 0x1c8   :  { %v7599_v38 = vmul.f32 -1.442695, %v2402_v61  ;;  %v8055_v48 = vpop.eup %8054 }
 0x1c9   :  { %8056 = vpow2.f32 %v7598_v40  ;;  %v9698_v46 = vadd.f32 %v2330_v36, %v2328_v39  ;;  %v2298_v24 = vmul.f32 %v8055_v48, %v2295_v25  ;;  %vm2303_vm12 = vweird.f32 %v8055_v48 }
 0x1ca   :  { %8058 = vrcp.f32 %v2296_v9  ;;  %v2306_v36 = vand.u32 2147483647, %v2295_v25  ;;  %v2323_v39 = vand.u32 2147483648, %v2296_v9  ;;  %vm2304_vm14 = vmor %vm2302_vm13, %vm2303_vm12 }
 0x1cb   :  { %8060 = vpow2.f32 %v7599_v38  ;;  %v2299_v49 = vsub.f32 1.0, %v2298_v24 }
 0x1cc   :  { %v2384_v27 = vpop.f32.mrf.mxu2  ;;  %v2360_v28 = vpop.f32.mrf.mxu0  ;;  %8062 = vtanh.f32 %v9696_v62  ;;  %vm2307_vm0 = vcmp.eq.f32.partialorder %v2306_v36, 8.507059e+37 }
 0x1cd   :  { %v9700_v22 = vpop.f32.mrf.mxu3  ;;  %v2373_v57 = vpop.f32.mrf.mxu1  ;;  %v2300_v45 = vmul.f32 %v8055_v48, %v2299_v49  ;;  %v2321_v28 = vand.u32 2147483647, %v2296_v9  ;;  %v2343_v49 = vlaneseq }
 0x1cf   :  { %v8057_v17 = vpop.eup %8056  ;;  %v2301_v53 = vadd.f32 %v8055_v48, %v2300_v45  ;;  %v13314_v45 = vld [vmem:[#allocation215_spill] sm:$0xff]  ;;  %vm2322_vm3 = vcmp.eq.f32.partialorder %v2321_v28, 8.507059e+37  ;;  %vm9714_vm5 = vcmp.lt.s32.totalorder %v2343_v49, 256 }
 0x1d0   :  { %v8059_v10 = vpop.eup %8058  ;;  %v9702_v33 = vadd.f32 1.0, %v8057_v17  ;;  %v2403_v21 = vadd.f32 %v2384_v27, %v13314_v45  ;;  %v13323_v45 = vld [vmem:[#allocation125_spill] sm:$0xff] }
 0x1d1   :  { %v2313_v29 = vmul.f32 %v8059_v10, %v2296_v9  ;;  %v8061_v61 = vpop.eup %8060  ;;  %vm2318_vm15 = vweird.f32 %v8059_v10  ;;  %v2305_v57 = vsel %vm2304_vm14, %v8055_v48, %v2301_v53 }
 0x1d2   :  { %8064 = vrcp.f32 %v9702_v33  ;;  %v9706_v40 = vadd.f32 1.0, %v8061_v61  ;;  %v8063_v24 = vpop.eup %8062  ;;  %v2310_v17 = vsel %vm2307_vm0, %v2309_v23, %v2305_v57  ;;  %vm2319_vm2 = vmor %vm2317_vm1, %vm2318_vm15  ;;  %v2628_v27 = vand.u32 2147483647, %v9702_v33  ;;  %v13317_v57 = vld [vmem:[#allocation120_spill] sm:$0xff] }
 0x1d3   :  { %v2314_v18 = vsub.f32 1.0, %v2313_v29  ;;  %8066 = vtanh.f32 %v9698_v46  ;;  %v2335_v61 = vmul.f32 %v8063_v24, %v2310_v17  ;;  %v13318_v24 = vld [vmem:[#allocation122_spill] sm:$0xff]  ;;  %vm2624_vm7 = vweird.f32 %v9702_v33 }
 0x1d4   :  { %v2386_v5 = vpop.f32.mrf.mxu2  ;;  %8068 = vrcp.f32 %v9706_v40  ;;  %v2649_v49 = vand.u32 2147483648, %v9706_v40  ;;  %vm2629_vm10 = vcmp.eq.f32.partialorder %v2628_v27, 8.507059e+37  ;;  %vm2643_vm11 = vweird.f32 %v9706_v40  ;;  %v13325_v27 = vld [vmem:[#allocation128_spill] sm:$0xff] }
 0x1d5   :  { %v2399_v13 = vpop.f32.mrf.mxu3  ;;  %v2315_v38 = vmul.f32 %v8059_v10, %v2314_v18  ;;  %v2324_v5 = vor.u32 1.1754944e-38, %v2323_v39  ;;  %v9712_v32 = vpack.c.bf16 %v2335_v61, %v2335_v61  ;;  %8070 = vtanh.f32 %v2403_v21 }
 0x1d7   :  { %v2316_v25 = vadd.f32 %v8059_v10, %v2315_v38  ;;  %2415 = vmatmul.bf16.vlgmr.msrb.gmra.mxu0 %v9712_v32  ;;  %2441 = vmatmul.bf16.vlgmr.msrb.gmra.mxu2 %v9712_v32 }
 0x1d8   :  { %v8065_v29 = vpop.eup %8064  ;;  %2511 = vmatpush.bf16.msrb.mxu0 %v13317_v57  ;;  %2537 = vmatpush.bf16.msrb.mxu2 %v13318_v24  ;;  %v13324_v24 = vld [vmem:[#allocation127_spill] sm:$0xff] }
 0x1d9   :  { %v2320_v13 = vsel %vm2319_vm2, %v8059_v10, %v2316_v25  ;;  %v2620_v18 = vmul.f32 %v8065_v29, %v9702_v33  ;;  %v8067_v31 = vpop.eup %8066  ;;  %v2630_v10 = vand.u32 2147483648, %v9702_v33  ;;  %vm2625_vm6 = vweird.f32 %v8065_v29  ;;  %v13321_v33 = vld [vmem:[#allocation124_spill] sm:$0xff] }
 0x1da   :  { %v2325_v48 = vsel %vm2322_vm3, %v2324_v5, %v2320_v13  ;;  %v8069_v36 = vpop.eup %8068  ;;  %vm2626_vm9 = vmor %vm2624_vm7, %vm2625_vm6 }
 0x1db   :  { %v2336_v53 = vmul.f32 %v8067_v31, %v2325_v48  ;;  %v2621_v23 = vsub.f32 1.0, %v2620_v18  ;;  %v2639_v39 = vmul.f32 %v8069_v36, %v9706_v40  ;;  %vm2644_vm8 = vweird.f32 %v8069_v36  ;;  %v13319_v48 = vld [vmem:[#allocation121_spill] sm:$0xff] }
 0x1dc   :  { %v2631_v13 = vor.u32 1.1754944e-38, %v2630_v10  ;;  %v2647_v18 = vand.u32 2147483647, %v9706_v40  ;;  %2512 = vmatpush.bf16.msrb.mxu0 %v13321_v33  ;;  %vm2645_vm12 = vmor %vm2643_vm11, %vm2644_vm8  ;;  %v13328_v40 = vld [vmem:[#allocation129_spill] sm:$0xff] }
 0x1dd   :  { %v2339_v38 = vrot.slane %v2336_v53, 7  ;;  %v9723_v28 = vpack.c.bf16 %v2336_v53, %v2336_v53  ;;  %v2622_v31 = vmul.f32 %v8065_v29, %v2621_v23  ;;  %v2640_v17 = vsub.f32 1.0, %v2639_v39  ;;  %v13322_v23 = vld [vmem:[#allocation126_spill] sm:$0xff]  ;;  %v8071_v39 = vpop.eup %8070 }
 0x1de   :  { %2538 = vmatpush.bf16.msrb.mxu2 %v13322_v23  ;;  %vm2648_vm13 = vcmp.eq.f32.partialorder %v2647_v18, 8.507059e+37  ;;  %v13333_v18 = vld [vmem:[#allocation135_spill] sm:$0xff] }
 0x1df   :  { %v2341_v25 = vsel %vm2340_vm4, %v2335_v61, %v2339_v38  ;;  %v2623_v5 = vadd.f32 %v8065_v29, %v2622_v31  ;;  %2428 = vmatmul.bf16.vlgmr.msrb.gmra.mxu1 %v9723_v28  ;;  %2454 = vmatmul.bf16.vlgmr.msrb.gmra.mxu3 %v9723_v28  ;;  %v2641_v21 = vmul.f32 %v8069_v36, %v2640_v17  ;;  %v13320_v61 = vld [vmem:[#allocation123_spill] sm:$0xff]  ;;  %v2650_v17 = vor.u32 1.1754944e-38, %v2649_v49  ;;  %v13330_v49 = vld [vmem:[#allocation132_spill] sm:$0xff] }
 0x1e0   :  { %2347 = vst.msk [vmem:[#allocation2] ss:$8 sm:$0x3] %vm9714_vm5, %v2341_v25  ;;  %2524 = vmatpush.bf16.msrb.mxu1 %v13319_v48  ;;  %2550 = vmatpush.bf16.msrb.mxu3 %v13320_v61 }
 0x1e1   :  { %v2627_v53 = vsel %vm2626_vm9, %v8065_v29, %v2623_v5  ;;  %v2642_v31 = vadd.f32 %v8069_v36, %v2641_v21  ;;  %2513 = vmatpush.bf16.msrb.mxu0 %v13325_v27  ;;  %v13326_v5 = vld [vmem:[#allocation130_spill] sm:$0xff]  ;;  %v13329_v21 = vld [vmem:[#allocation131_spill] sm:$0xff] }
 0x1e2   :  { %v2632_v38 = vsel %vm2629_vm10, %v2631_v13, %v2627_v53  ;;  %2539 = vmatpush.bf16.msrb.mxu2 %v13326_v5  ;;  %v13332_v13 = vld [vmem:[#allocation133_spill] sm:$0xff]  ;;  %v13334_v53 = vld [vmem:[#allocation136_spill] sm:$0xff] }
 0x1e3   :  { %v2674_v10 = vmul.f32 %v8071_v39, %v2632_v38  ;;  %v2646_v25 = vsel %vm2645_vm12, %v8069_v36, %v2642_v31  ;;  %v13331_v36 = vld [vmem:[#allocation134_spill] sm:$0xff]  ;;  %v13337_v39 = vld [vmem:[#allocation139_spill] sm:$0xff]  ;;  %v13338_v38 = vld [vmem:[#allocation140_spill] sm:$0xff] }
 0x1e4   :  { %2525 = vmatpush.bf16.msrb.mxu1 %v13323_v45  ;;  %2551 = vmatpush.bf16.msrb.mxu3 %v13324_v24  ;;  %v2651_v29 = vsel %vm2648_vm13, %v2650_v17, %v2646_v25  ;;  %v13339_v31 = vld [vmem:[#allocation142_spill] sm:$0xff]  ;;  %v13340_v17 = vld [vmem:[#allocation141_spill] sm:$0xff]  ;;  %v13342_v25 = vld [vmem:[#allocation144_spill] sm:$0xff] }
 0x1e5   :  { %v2673_v23 = vmul.f32 %v2651_v29, %v9441_v63  ;;  %2514 = vmatpush.bf16.msrb.mxu0 %v13330_v49  ;;  %v13335_v63 = vld [vmem:[#allocation138_spill] sm:$0xff] }
 0x1e6   :  { %2540 = vmatpush.bf16.msrb.mxu2 %v13331_v36  ;;  %v13343_v29 = vld [vmem:[#allocation146_spill] sm:$0xff]  ;;  %v13363_v36 = vld [vmem:[#allocation164_spill] sm:$0xff] }
 0x1e7   :  { %v9745_v33 = vadd.f32 %v2674_v10, %v2673_v23  ;;  %2467 = vmatmul.bf16.vlgmr.msra.gmra.mxu0 %v9712_v32  ;;  %2493 = vmatmul.bf16.vlgmr.msra.gmra.mxu2 %v9712_v32  ;;  %v13336_v23 = vld [vmem:[#allocation137_spill] sm:$0xff]  ;;  %v13341_v10 = vld [vmem:[#allocation143_spill] sm:$0xff] }
 0x1e8   :  { %2526 = vmatpush.bf16.msrb.mxu1 %v13328_v40  ;;  %2552 = vmatpush.bf16.msrb.mxu3 %v13329_v21 }
 0x1e9   :  { %13327 = vst [vmem:[#allocation120_spill] sm:$0xff] %v9745_v33  ;;  %2515 = vmatpush.bf16.msrb.mxu0 %v13334_v53  ;;  %v13345_v53 = vld [vmem:[#allocation147_spill] sm:$0xff] }
 0x1ea   :  { %2541 = vmatpush.bf16.msrb.mxu2 %v13335_v63  ;;  %v13344_v63 = vld [vmem:[#allocation145_spill] sm:$0xff] }
 0x1ec   :  { %2527 = vmatpush.bf16.msrb.mxu1 %v13332_v13  ;;  %2553 = vmatpush.bf16.msrb.mxu3 %v13333_v18  ;;  %v13346_v18 = vld [vmem:[#allocation148_spill] sm:$0xff]  ;;  %v13412_v13 = vld [vmem:[#allocation217_spill] sm:$0xff] }
 0x1ed   :  { %2516 = vmatpush.bf16.msrb.mxu0 %v13338_v38  ;;  %v13349_v38 = vld [vmem:[#allocation154_spill] sm:$0xff] }
 0x1ee   :  { %2542 = vmatpush.bf16.msrb.mxu2 %v13339_v31  ;;  %v13350_v31 = vld [vmem:[#allocation149_spill] sm:$0xff] }
 0x1ef   :  { %2480 = vmatmul.bf16.vlgmr.msra.gmra.mxu1 %v9723_v28  ;;  %2506 = vmatmul.bf16.vlgmr.msra.gmra.mxu3 %v9723_v28 }
 0x1f0   :  { %2528 = vmatpush.bf16.msrb.mxu1 %v13336_v23  ;;  %2554 = vmatpush.bf16.msrb.mxu3 %v13337_v39  ;;  %v13347_v23 = vld [vmem:[#allocation150_spill] sm:$0xff]  ;;  %v13348_v39 = vld [vmem:[#allocation152_spill] sm:$0xff] }
 0x1f1   :  { %2517 = vmatpush.bf16.msrb.mxu0 %v13342_v25  ;;  %v13353_v25 = vld [vmem:[#allocation155_spill] sm:$0xff] }
 0x1f2   :  { %2543 = vmatpush.bf16.msrb.mxu2 %v13343_v29  ;;  %v13362_v29 = vld [vmem:[#allocation163_spill] sm:$0xff] }
 0x1f4   :  { %2529 = vmatpush.bf16.msrb.mxu1 %v13340_v17  ;;  %2555 = vmatpush.bf16.msrb.mxu3 %v13341_v10  ;;  %v13351_v17 = vld [vmem:[#allocation151_spill] sm:$0xff]  ;;  %v13352_v10 = vld [vmem:[#allocation153_spill] sm:$0xff] }
 0x1f5   :  { %2518 = vmatpush.bf16.msrb.mxu0 %v13346_v18  ;;  %v13360_v18 = vld [vmem:[#allocation162_spill] sm:$0xff] }
 0x1f6   :  { %2544 = vmatpush.bf16.msrb.mxu2 %v13347_v23  ;;  %v13354_v23 = vld [vmem:[#allocation156_spill] sm:$0xff] }
 0x1f8   :  { %2530 = vmatpush.bf16.msrb.mxu1 %v13344_v63  ;;  %2556 = vmatpush.bf16.msrb.mxu3 %v13345_v53  ;;  %v13361_v53 = vld [vmem:[#allocation161_spill] sm:$0xff] }
 0x1f9   :  { %2563 = vmatpush.bf16.msra.mxu0 %v13348_v39  ;;  %2545 = vmatmul.bf16.vlgmr.msrb.gmra.mxu2 %v9712_v32  ;;  %v13355_v39 = vld [vmem:[#allocation158_spill] sm:$0xff] }
 0x1fa   :  { %2589 = vmatpush.bf16.msra.mxu2 %v13349_v38  ;;  %2519 = vmatmul.bf16.vlgmr.msrb.gmra.mxu0 %v9712_v32  ;;  %v13356_v38 = vld [vmem:[#allocation157_spill] sm:$0xff] }
 0x1fc   :  { %2531 = vmatpush.bf16.msrb.mxu1 %v13350_v31  ;;  %2557 = vmatpush.bf16.msrb.mxu3 %v13351_v17  ;;  %v13357_v31 = vld [vmem:[#allocation159_spill] sm:$0xff] }
 0x1fd   :  { %2564 = vmatpush.bf16.msra.mxu0 %v13354_v23  ;;  %v13358_v17 = vld [vmem:[#allocation203_spill] sm:$0xff]  ;;  %v13364_v23 = vld [vmem:[#allocation166_spill] sm:$0xff] }
 0x1fe   :  { %2590 = vmatpush.bf16.msra.mxu2 %v13355_v39  ;;  %v13365_v39 = vld [vmem:[#allocation165_spill] sm:$0xff] }
 0x1ff   :  { %2532 = vmatmul.bf16.vlgmr.msrb.gmra.mxu1 %v9723_v28  ;;  %2558 = vmatmul.bf16.vlgmr.msrb.gmra.mxu3 %v9723_v28 }
 0x200   :  { %2576 = vmatpush.bf16.msra.mxu1 %v13352_v10  ;;  %2602 = vmatpush.bf16.msra.mxu3 %v13353_v25  ;;  %v2404_v10 = vadd.f32 %v9700_v22, %v13358_v17  ;;  %v13359_v25 = vld [vmem:[#allocation160_spill] sm:$0xff]  ;;  %v13368_v22 = vld [vmem:[#allocation170_spill] sm:$0xff] }
 0x201   :  { %2565 = vmatpush.bf16.msra.mxu0 %v13359_v25  ;;  %v13369_v25 = vld [vmem:[#allocation169_spill] sm:$0xff]  ;;  %v13400_v17 = vld [vmem:[#allocation204_spill] sm:$0xff] }
 0x202   :  { %2591 = vmatpush.bf16.msra.mxu2 %v13360_v18  ;;  %v7600_v63 = vmul.f32 -1.442695, %v2404_v10  ;;  %v13370_v18 = vld [vmem:[#allocation171_spill] sm:$0xff]  ;;  %v13372_v10 = vld [vmem:[#allocation174_spill] sm:$0xff] }
 0x204   :  { %2577 = vmatpush.bf16.msra.mxu1 %v13356_v38  ;;  %2603 = vmatpush.bf16.msra.mxu3 %v13357_v31  ;;  %v13366_v38 = vld [vmem:[#allocation167_spill] sm:$0xff]  ;;  %8072 = vpow2.f32 %v7600_v63  ;;  %v13367_v31 = vld [vmem:[#allocation168_spill] sm:$0xff]  ;;  %v13376_v63 = vld [vmem:[#allocation178_spill] sm:$0xff] }
 0x205   :  { %2566 = vmatpush.bf16.msra.mxu0 %v13363_v36  ;;  %v13373_v36 = vld [vmem:[#allocation173_spill] sm:$0xff] }
 0x206   :  { %2592 = vmatpush.bf16.msra.mxu2 %v13364_v23  ;;  %v13374_v23 = vld [vmem:[#allocation175_spill] sm:$0xff] }
 0x208   :  { %2578 = vmatpush.bf16.msra.mxu1 %v13361_v53  ;;  %2604 = vmatpush.bf16.msra.mxu3 %v13362_v29  ;;  %v13371_v29 = vld [vmem:[#allocation172_spill] sm:$0xff] }
 0x209   :  { %2567 = vmatpush.bf16.msra.mxu0 %v13367_v31  ;;  %v13377_v31 = vld [vmem:[#allocation177_spill] sm:$0xff] }
 0x20a   :  { %2593 = vmatpush.bf16.msra.mxu2 %v13368_v22  ;;  %v8073_v53 = vpop.eup %8072  ;;  %v13378_v22 = vld [vmem:[#allocation179_spill] sm:$0xff] }
 0x20c   :  { %2579 = vmatpush.bf16.msra.mxu1 %v13365_v39  ;;  %2605 = vmatpush.bf16.msra.mxu3 %v13366_v38  ;;  %v2657_v39 = vadd.f32 1.0, %v8073_v53  ;;  %v13375_v38 = vld [vmem:[#allocation176_spill] sm:$0xff]  ;;  %v13384_v53 = vld [vmem:[#allocation185_spill] sm:$0xff] }
 0x20d   :  { %2568 = vmatpush.bf16.msra.mxu0 %v13371_v29  ;;  %v13381_v29 = vld [vmem:[#allocation181_spill] sm:$0xff] }
 0x20e   :  { %2594 = vmatpush.bf16.msra.mxu2 %v13372_v10  ;;  %8074 = vrcp.f32 %v2657_v39  ;;  %v13382_v10 = vld [vmem:[#allocation183_spill] sm:$0xff]  ;;  %vm2663_vm15 = vweird.f32 %v2657_v39 }
 0x20f   :  { %8076 = vtanh.f32 %v9745_v33 }
 0x210   :  { %2580 = vmatpush.bf16.msra.mxu1 %v13369_v25  ;;  %2606 = vmatpush.bf16.msra.mxu3 %v13370_v18  ;;  %v13379_v18 = vld [vmem:[#allocation180_spill] sm:$0xff]  ;;  %v13380_v25 = vld [vmem:[#allocation182_spill] sm:$0xff] }
 0x211   :  { %2569 = vmatpush.bf16.msra.mxu0 %v13375_v38  ;;  %v13385_v38 = vld [vmem:[#allocation186_spill] sm:$0xff] }
 0x212   :  { %2595 = vmatpush.bf16.msra.mxu2 %v13376_v63  ;;  %v13386_v63 = vld [vmem:[#allocation187_spill] sm:$0xff] }
 0x214   :  { %2581 = vmatpush.bf16.msra.mxu1 %v13373_v36  ;;  %2607 = vmatpush.bf16.msra.mxu3 %v13374_v23  ;;  %v13383_v36 = vld [vmem:[#allocation184_spill] sm:$0xff]  ;;  %v13395_v23 = vld [vmem:[#allocation198_spill] sm:$0xff] }
 0x215   :  { %2570 = vmatpush.bf16.msra.mxu0 %v13379_v18  ;;  %v13393_v18 = vld [vmem:[#allocation194_spill] sm:$0xff] }
 0x216   :  { %2596 = vmatpush.bf16.msra.mxu2 %v13380_v25  ;;  %v13387_v25 = vld [vmem:[#allocation188_spill] sm:$0xff] }
 0x218   :  { %2582 = vmatpush.bf16.msra.mxu1 %v13377_v31  ;;  %2608 = vmatpush.bf16.msra.mxu3 %v13378_v22  ;;  %v8075_v22 = vpop.eup %8074  ;;  %v13394_v31 = vld [vmem:[#allocation196_spill] sm:$0xff] }
 0x219   :  { %2679 = vmatpush.bf16.msrb.mxu0 %v13383_v36  ;;  %2597 = vmatmul.bf16.vlgmr.msra.gmra.mxu2 %v9712_v32  ;;  %v13389_v36 = vld [vmem:[#allocation190_spill] sm:$0xff]  ;;  %vm2664_vm14 = vweird.f32 %v8075_v22 }
 0x21a   :  { %2705 = vmatpush.bf16.msrb.mxu2 %v13385_v38  ;;  %2571 = vmatmul.bf16.vlgmr.msra.gmra.mxu0 %v9712_v32  ;;  %v2659_v38 = vmul.f32 %v8075_v22, %v2657_v39  ;;  %vm2665_vm0 = vmor %vm2663_vm15, %vm2664_vm14 }
 0x21c   :  { %2583 = vmatpush.bf16.msra.mxu1 %v13381_v29  ;;  %2609 = vmatpush.bf16.msra.mxu3 %v13382_v10  ;;  %v13388_v10 = vld [vmem:[#allocation189_spill] sm:$0xff]  ;;  %v13391_v29 = vld [vmem:[#allocation192_spill] sm:$0xff]  ;;  %v2660_v32 = vsub.f32 1.0, %v2659_v38 }
 0x21d   :  { %2680 = vmatpush.bf16.msrb.mxu0 %v13387_v25  ;;  %v13397_v25 = vld [vmem:[#allocation200_spill] sm:$0xff] }
 0x21e   :  { %2706 = vmatpush.bf16.msrb.mxu2 %v13389_v36  ;;  %v2661_v36 = vmul.f32 %v8075_v22, %v2660_v32  ;;  %v13405_v32 = vld [vmem:[#allocation209_spill] sm:$0xff] }
 0x21f   :  { %2584 = vmatmul.bf16.vlgmr.msra.gmra.mxu1 %v9723_v28  ;;  %2610 = vmatmul.bf16.vlgmr.msra.gmra.mxu3 %v9723_v28  ;;  %v13396_v28 = vld [vmem:[#allocation199_spill] sm:$0xff] }
 0x220   :  { %2692 = vmatpush.bf16.msrb.mxu1 %v13384_v53  ;;  %2718 = vmatpush.bf16.msrb.mxu3 %v13386_v63  ;;  %v13390_v53 = vld [vmem:[#allocation191_spill] sm:$0xff]  ;;  %v13392_v63 = vld [vmem:[#allocation193_spill] sm:$0xff]  ;;  %v2662_v38 = vadd.f32 %v8075_v22, %v2661_v36  ;;  %v13408_v36 = vld [vmem:[#allocation212_spill] sm:$0xff] }
 0x221   :  { %2681 = vmatpush.bf16.msrb.mxu0 %v13391_v29  ;;  %v13409_v29 = vld [vmem:[#allocation213_spill] sm:$0xff] }
 0x222   :  { %2707 = vmatpush.bf16.msrb.mxu2 %v13393_v18  ;;  %v13402_v18 = vld [vmem:[#allocation206_spill] sm:$0xff] }
 0x224   :  { %2693 = vmatpush.bf16.msrb.mxu1 %v13388_v10  ;;  %2719 = vmatpush.bf16.msrb.mxu3 %v13390_v53  ;;  %v13398_v10 = vld [vmem:[#allocation201_spill] sm:$0xff]  ;;  %v13399_v53 = vld [vmem:[#allocation202_spill] sm:$0xff] }
 0x225   :  { %2682 = vmatpush.bf16.msrb.mxu0 %v13395_v23  ;;  %v2669_v23 = vand.u32 2147483648, %v2657_v39 }
 0x226   :  { %2708 = vmatpush.bf16.msrb.mxu2 %v13397_v25  ;;  %v13404_v25 = vld [vmem:[#allocation208_spill] sm:$0xff] }
 0x227   :  { %v2670_v33 = vor.u32 1.1754944e-38, %v2669_v23 }
 0x228   :  { %2694 = vmatpush.bf16.msrb.mxu1 %v13392_v63  ;;  %2720 = vmatpush.bf16.msrb.mxu3 %v13394_v31  ;;  %v13401_v63 = vld [vmem:[#allocation205_spill] sm:$0xff]  ;;  %v13403_v31 = vld [vmem:[#allocation207_spill] sm:$0xff] }
 0x229   :  { %2683 = vmatpush.bf16.msrb.mxu0 %v13399_v53  ;;  %v13406_v53 = vld [vmem:[#allocation210_spill] sm:$0xff] }
 0x22a   :  { %2709 = vmatpush.bf16.msrb.mxu2 %v13401_v63  ;;  %v13407_v63 = vld [vmem:[#allocation211_spill] sm:$0xff] }
 0x22c   :  { %2695 = vmatpush.bf16.msrb.mxu1 %v13396_v28  ;;  %2721 = vmatpush.bf16.msrb.mxu3 %v13398_v10  ;;  %v2667_v28 = vand.u32 2147483647, %v2657_v39  ;;  %v8077_v10 = vpop.eup %8076  ;;  %v13410_v39 = vld [vmem:[#allocation214_spill] sm:$0xff] }
 0x22d   :  { %2684 = vmatpush.bf16.msrb.mxu0 %v13403_v31 }
 0x22e   :  { %2710 = vmatpush.bf16.msrb.mxu2 %v13405_v32  ;;  %vm2668_vm1 = vcmp.eq.f32.partialorder %v2667_v28, 8.507059e+37  ;;  %v13413_v32 = vld [vmem:[#allocation218_spill] sm:$0xff]  ;;  %v13415_v28 = vld [vmem:[#allocation220_spill] sm:$0xff] }
 0x230   :  { %2696 = vmatpush.bf16.msrb.mxu1 %v13400_v17  ;;  %2722 = vmatpush.bf16.msrb.mxu3 %v13402_v18  ;;  %v2666_v17 = vsel %vm2665_vm0, %v8075_v22, %v2662_v38  ;;  %v13414_v22 = vld [vmem:[#allocation219_spill] sm:$0xff]  ;;  %v13416_v38 = vld [vmem:[#allocation221_spill] sm:$0xff] }
 0x231   :  { %2685 = vmatpush.bf16.msrb.mxu0 %v13407_v63  ;;  %v2671_v18 = vsel %vm2668_vm1, %v2670_v33, %v2666_v17  ;;  %v13417_v33 = vld [vmem:[#allocation222_spill] sm:$0xff]  ;;  %v13418_v17 = vld [vmem:[#allocation223_spill] sm:$0xff] }
 0x232   :  { %2711 = vmatpush.bf16.msrb.mxu2 %v13409_v29  ;;  %v2677_v31 = vmul.f32 %v8077_v10, %v2671_v18  ;;  %v13419_v18 = vld [vmem:[#allocation224_spill] sm:$0xff]  ;;  %v13421_v10 = vld [vmem:[#allocation226_spill] sm:$0xff] }
 0x234   :  { %2697 = vmatpush.bf16.msrb.mxu1 %v13404_v25  ;;  %2723 = vmatpush.bf16.msrb.mxu3 %v13406_v53  ;;  %v13411_v25 = vld [vmem:[#allocation216_spill] sm:$0xff]  ;;  %v9848_v23 = vpack.c.bf16 %v2677_v31, %v2677_v31  ;;  %v13420_v31 = vld [vmem:[#allocation225_spill] sm:$0xff] }
 0x235   :  { %2686 = vmatpush.bf16.msrb.mxu0 %v13411_v25 }
 0x236   :  { %2712 = vmatpush.bf16.msrb.mxu2 %v13413_v32 }
 0x238   :  { %2698 = vmatpush.bf16.msrb.mxu1 %v13408_v36  ;;  %2724 = vmatpush.bf16.msrb.mxu3 %v13410_v39 }
 0x239   :  { %2731 = vmatpush.bf16.msra.mxu0 %v13415_v28  ;;  %2713 = vmatmul.bf16.vlgmr.msrb.gmra.mxu2 %v9848_v23  ;;  %v13425_v28 = vld [vmem:[#allocation234_spill] sm:$0xff] }
 0x23a   :  { %2757 = vmatpush.bf16.msra.mxu2 %v13417_v33  ;;  %2687 = vmatmul.bf16.vlgmr.msrb.gmra.mxu0 %v9848_v23  ;;  %v13423_v33 = vld [vmem:[#allocation232_spill] sm:$0xff] }
 0x23c   :  { %2699 = vmatpush.bf16.msrb.mxu1 %v13412_v13  ;;  %2725 = vmatpush.bf16.msrb.mxu3 %v13414_v22 }
 0x23d   :  { %2732 = vmatpush.bf16.msra.mxu0 %v13419_v18  ;;  %v13426_v18 = vld [vmem:[#allocation235_spill] sm:$0xff] }
 0x23e   :  { %2758 = vmatpush.bf16.msra.mxu2 %v13421_v10  ;;  %v13428_v10 = vld [vmem:[#allocation237_spill] sm:$0xff] }
 0x23f   :  { %2700 = vmatmul.bf16.vlgmr.msrb.gmra.mxu1 %v9848_v23  ;;  %2726 = vmatmul.bf16.vlgmr.msrb.gmra.mxu3 %v9848_v23 }
 0x240   :  { %2744 = vmatpush.bf16.msra.mxu1 %v13416_v38  ;;  %2770 = vmatpush.bf16.msra.mxu3 %v13418_v17  ;;  %v13422_v17 = vld [vmem:[#allocation231_spill] sm:$0xff]  ;;  %v13424_v38 = vld [vmem:[#allocation233_spill] sm:$0xff] }
 0x241   :  { %2733 = vmatpush.bf16.msra.mxu0 %v9396_v50 }
 0x242   :  { %2759 = vmatpush.bf16.msra.mxu2 %v9405_v35  ;;  %v13430_v35 = vld [vmem:[#allocation241_spill] sm:$0xff] }
 0x244   :  { %2745 = vmatpush.bf16.msra.mxu1 %v13420_v31  ;;  %2771 = vmatpush.bf16.msra.mxu3 %v9386_v0  ;;  %v13427_v31 = vld [vmem:[#allocation236_spill] sm:$0xff] }
 0x245   :  { %2734 = vmatpush.bf16.msra.mxu0 %v13423_v33 }
 0x246   :  { %2760 = vmatpush.bf16.msra.mxu2 %v13425_v28 }
 0x248   :  { %2746 = vmatpush.bf16.msra.mxu1 %v9403_v12  ;;  %2772 = vmatpush.bf16.msra.mxu3 %v13422_v17  ;;  %v13429_v12 = vld [vmem:[#allocation240_spill] sm:$0xff]  ;;  %v13431_v17 = vld [vmem:[#allocation242_spill] sm:$0xff] }
 0x249   :  { %2735 = vmatpush.bf16.msra.mxu0 %v13427_v31 }
 0x24a   :  { %2761 = vmatpush.bf16.msra.mxu2 %v9454_v37 }
 0x24c   :  { %2747 = vmatpush.bf16.msra.mxu1 %v13424_v38  ;;  %2773 = vmatpush.bf16.msra.mxu3 %v13426_v18 }
 0x24d   :  { %2736 = vmatpush.bf16.msra.mxu0 %v13429_v12 }
 0x24e   :  { %2762 = vmatpush.bf16.msra.mxu2 %v13431_v17 }
 0x250   :  { %2748 = vmatpush.bf16.msra.mxu1 %v13428_v10  ;;  %2774 = vmatpush.bf16.msra.mxu3 %v9459_v58 }
 0x251   :  { %2737 = vmatpush.bf16.msra.mxu0 %v9483_v52 }
 0x252   :  { %2763 = vmatpush.bf16.msra.mxu2 %v9491_v6 }
 0x254   :  { %2749 = vmatpush.bf16.msra.mxu1 %v13430_v35  ;;  %2775 = vmatpush.bf16.msra.mxu3 %v9480_v34 }
 0x255   :  { %2738 = vmatpush.bf16.msra.mxu0 %v9503_v19 }
 0x256   :  { %2764 = vmatpush.bf16.msra.mxu2 %v9509_v30  ;;  %v13505_v30 = vld [vmem:[#allocation110_spill] sm:$0xff] }
 0x258   :  { %2750 = vmatpush.bf16.msra.mxu1 %v9489_v51  ;;  %2776 = vmatpush.bf16.msra.mxu3 %v9499_v1 }
 0x259   :  { %2925 = vmatpush.bf16.msrb.mxu0 %v8722_v41  ;;  %2765 = vmatmul.bf16.vlgmr.msra.gmra.mxu2 %v9848_v23 }
 0x25a   :  { %2951 = vmatpush.bf16.msrb.mxu2 %v8726_v43  ;;  %2739 = vmatmul.bf16.vlgmr.msra.gmra.mxu0 %v9848_v23 }
 0x25c   :  { %2751 = vmatpush.bf16.msra.mxu1 %v9507_v44  ;;  %2777 = vmatpush.bf16.msra.mxu3 %v9514_v59  ;;  %v2416_v44 = vpop.f32.mrf.mxu0 }
 0x25d   :  { %2926 = vmatpush.bf16.msrb.mxu0 %v8731_v54  ;;  %v2417_v41 = vadd.f32 %v2416_v44, %v9528_v7  ;;  %v2442_v54 = vpop.f32.mrf.mxu2 }
 0x25e   :  { %2952 = vmatpush.bf16.msrb.mxu2 %v8737_v56 }
 0x25f   :  { %2752 = vmatmul.bf16.vlgmr.msra.gmra.mxu1 %v9848_v23  ;;  %2778 = vmatmul.bf16.vlgmr.msra.gmra.mxu3 %v9848_v23 }
 0x260   :  { %2938 = vmatpush.bf16.msrb.mxu1 %v8724_v42  ;;  %2964 = vmatpush.bf16.msrb.mxu3 %v8728_v47  ;;  %v2429_v47 = vpop.f32.mrf.mxu1 }
 0x261   :  { %v9899_v43 = vadd.f32 %v2429_v47, %v2417_v41  ;;  %2927 = vmatpush.bf16.msrb.mxu0 %v8743_v2  ;;  %v13445_v2 = vld [vmem:[#allocation52_spill] sm:$0xff] }
 0x262   :  { %2953 = vmatpush.bf16.msrb.mxu2 %v8749_v4  ;;  %v2455_v44 = vpop.f32.mrf.mxu3  ;;  %v13432_v4 = vld [vmem:[#allocation41_spill] sm:$0xff] }
 0x264   :  { %2939 = vmatpush.bf16.msrb.mxu1 %v8735_v55  ;;  %2965 = vmatpush.bf16.msrb.mxu3 %v8740_v60  ;;  %v2443_v55 = vadd.f32 %v2442_v54, %v9494_v11  ;;  %v2418_v42 = vpop.f32.mrf.mxu0  ;;  %v13434_v54 = vld [vmem:[#allocation43_spill] sm:$0xff] }
 0x265   :  { %2928 = vmatpush.bf16.msrb.mxu0 %v8755_v14  ;;  %v2444_v42 = vpop.f32.mrf.mxu2  ;;  %v13435_v14 = vld [vmem:[#allocation44_spill] sm:$0xff] }
 0x266   :  { %2954 = vmatpush.bf16.msrb.mxu2 %v8761_v16  ;;  %v9910_v41 = vadd.f32 %v2455_v44, %v2443_v55  ;;  %v13438_v55 = vld [vmem:[#allocation47_spill] sm:$0xff]  ;;  %v13442_v42 = vld [vmem:[#allocation50_spill] sm:$0xff] }
 0x267   :  { %v13439_v44 = vld [vmem:[#allocation255_spill] sm:$0xff] }
 0x268   :  { %2940 = vmatpush.bf16.msrb.mxu1 %v8747_v3  ;;  %2966 = vmatpush.bf16.msrb.mxu3 %v8752_v8  ;;  %v2431_v47 = vpop.f32.mrf.mxu1  ;;  %v13433_v8 = vld [vmem:[#allocation42_spill] sm:$0xff] }
 0x269   :  { %2929 = vmatpush.bf16.msrb.mxu0 %v8767_v26  ;;  %v13437_v3 = vld [vmem:[#allocation46_spill] sm:$0xff] }
 0x26a   :  { %2955 = vmatpush.bf16.msrb.mxu2 %v13433_v8  ;;  %v2457_v11 = vpop.f32.mrf.mxu3  ;;  %v13441_v8 = vld [vmem:[#allocation49_spill] sm:$0xff] }
 0x26b   :  { %v13444_v11 = vld [vmem:[#allocation254_spill] sm:$0xff] }
 0x26c   :  { %2941 = vmatpush.bf16.msrb.mxu1 %v8759_v15  ;;  %2967 = vmatpush.bf16.msrb.mxu3 %v8764_v20  ;;  %v13436_v15 = vld [vmem:[#allocation45_spill] sm:$0xff]  ;;  %v2468_v16 = vpop.f32.mrf.mxu0 }
 0x26d   :  { %2930 = vmatpush.bf16.msrb.mxu0 %v13435_v14  ;;  %v2469_v47 = vadd.f32 %v2468_v16, %v13439_v44  ;;  %v13443_v14 = vld [vmem:[#allocation51_spill] sm:$0xff]  ;;  %v13447_v44 = vld [vmem:[#allocation54_spill] sm:$0xff] }
 0x26e   :  { %2956 = vmatpush.bf16.msrb.mxu2 %v13437_v3  ;;  %v13446_v3 = vld [vmem:[#allocation53_spill] sm:$0xff] }
 0x270   :  { %2942 = vmatpush.bf16.msrb.mxu1 %v13432_v4  ;;  %2968 = vmatpush.bf16.msrb.mxu3 %v13434_v54  ;;  %v2481_v26 = vpop.f32.mrf.mxu1  ;;  %v13440_v4 = vld [vmem:[#allocation48_spill] sm:$0xff] }
 0x271   :  { %v9921_v20 = vadd.f32 %v2481_v26, %v2469_v47  ;;  %2931 = vmatpush.bf16.msrb.mxu0 %v13440_v4  ;;  %v13448_v26 = vld [vmem:[#allocation55_spill] sm:$0xff]  ;;  %v13449_v4 = vld [vmem:[#allocation56_spill] sm:$0xff] }
 0x272   :  { %2957 = vmatpush.bf16.msrb.mxu2 %v13442_v42  ;;  %v13450_v42 = vld [vmem:[#allocation57_spill] sm:$0xff] }
 0x274   :  { %2943 = vmatpush.bf16.msrb.mxu1 %v13436_v15  ;;  %2969 = vmatpush.bf16.msrb.mxu3 %v13438_v55  ;;  %v2494_v15 = vpop.f32.mrf.mxu2  ;;  %v2507_v55 = vpop.f32.mrf.mxu3 }
 0x275   :  { %v2495_v54 = vadd.f32 %v2494_v15, %v13444_v11  ;;  %2932 = vmatpush.bf16.msrb.mxu0 %v13445_v2  ;;  %v2470_v16 = vpop.f32.mrf.mxu0  ;;  %v13451_v15 = vld [vmem:[#allocation58_spill] sm:$0xff] }
 0x276   :  { %2958 = vmatpush.bf16.msrb.mxu2 %v13447_v44  ;;  %v13452_v16 = vld [vmem:[#allocation59_spill] sm:$0xff] }
 0x277   :  { %v9932_v47 = vadd.f32 %v2507_v55, %v2495_v54  ;;  %v13453_v54 = vld [vmem:[#allocation60_spill] sm:$0xff]  ;;  %v13456_v44 = vld [vmem:[#allocation63_spill] sm:$0xff] }
 0x278   :  { %2944 = vmatpush.bf16.msrb.mxu1 %v13441_v8  ;;  %2970 = vmatpush.bf16.msrb.mxu3 %v13443_v14  ;;  %v2483_v8 = vpop.f32.mrf.mxu1  ;;  %v13458_v14 = vld [vmem:[#allocation64_spill] sm:$0xff] }
 0x279   :  { %2983 = vmatpush.bf16.msra.mxu0 %v13449_v4  ;;  %2959 = vmatmul.bf16.vlgmr.msrb.gmra.mxu2 %v9848_v23  ;;  %v13454_v8 = vld [vmem:[#allocation61_spill] sm:$0xff] }
 0x27a   :  { %2933 = vmatmul.bf16.vlgmr.msrb.gmra.mxu0 %v9848_v23  ;;  %3009 = vmatpush.bf16.msra.mxu2 %v13451_v15 }
 0x27c   :  { %2945 = vmatpush.bf16.msrb.mxu1 %v13446_v3  ;;  %2971 = vmatpush.bf16.msrb.mxu3 %v13448_v26  ;;  %v2496_v26 = vpop.f32.mrf.mxu2  ;;  %v2509_v55 = vpop.f32.mrf.mxu3  ;;  %v13457_v3 = vld [vmem:[#allocation257_spill] sm:$0xff] }
 0x27d   :  { %2984 = vmatpush.bf16.msra.mxu0 %v13453_v54  ;;  %v2520_v4 = vpop.f32.mrf.mxu0  ;;  %v13460_v26 = vld [vmem:[#allocation66_spill] sm:$0xff]  ;;  %v13461_v54 = vld [vmem:[#allocation67_spill] sm:$0xff]  ;;  %v13463_v55 = vld [vmem:[#allocation69_spill] sm:$0xff] }
 0x27e   :  { %v2521_v2 = vadd.f32 %v2520_v4, %v13457_v3  ;;  %v13465_v3 = vld [vmem:[#allocation70_spill] sm:$0xff] }
 0x27f   :  { %2946 = vmatmul.bf16.vlgmr.msrb.gmra.mxu1 %v9848_v23  ;;  %2972 = vmatmul.bf16.vlgmr.msrb.gmra.mxu3 %v9848_v23  ;;  %v13459_v23 = vld [vmem:[#allocation65_spill] sm:$0xff] }
 0x280   :  { %2996 = vmatpush.bf16.msra.mxu1 %v13450_v42  ;;  %3022 = vmatpush.bf16.msra.mxu3 %v13452_v16  ;;  %v13455_v42 = vld [vmem:[#allocation62_spill] sm:$0xff]  ;;  %v2533_v11 = vpop.f32.mrf.mxu1  ;;  %v13464_v16 = vld [vmem:[#allocation256_spill] sm:$0xff] }
 0x281   :  { %3010 = vmatpush.bf16.msra.mxu2 %v13455_v42  ;;  %2985 = vmatpush.bf16.msra.mxu0 %v13458_v14  ;;  %v9949_v15 = vadd.f32 %v2533_v11, %v2521_v2  ;;  %v13466_v14 = vld [vmem:[#allocation71_spill] sm:$0xff]  ;;  %v13467_v11 = vld [vmem:[#allocation72_spill] sm:$0xff] }
 0x284   :  { %2997 = vmatpush.bf16.msra.mxu1 %v13454_v8  ;;  %3023 = vmatpush.bf16.msra.mxu3 %v13456_v44  ;;  %v13462_v8 = vld [vmem:[#allocation68_spill] sm:$0xff]  ;;  %v2546_v42 = vpop.f32.mrf.mxu2  ;;  %v2559_v60 = vpop.f32.mrf.mxu3 }
 0x285   :  { %3011 = vmatpush.bf16.msra.mxu2 %v13460_v26  ;;  %2986 = vmatpush.bf16.msra.mxu0 %v13462_v8  ;;  %v2547_v44 = vadd.f32 %v2546_v42, %v13464_v16  ;;  %v2522_v4 = vpop.f32.mrf.mxu0  ;;  %v13468_v26 = vld [vmem:[#allocation73_spill] sm:$0xff]  ;;  %v13470_v8 = vld [vmem:[#allocation75_spill] sm:$0xff] }
 0x286   :  { %v13472_v42 = vld [vmem:[#allocation77_spill] sm:$0xff] }
 0x288   :  { %2998 = vmatpush.bf16.msra.mxu1 %v13459_v23  ;;  %3024 = vmatpush.bf16.msra.mxu3 %v13461_v54  ;;  %v9958_v23 = vadd.f32 %v2559_v60, %v2547_v44  ;;  %v2535_v2 = vpop.f32.mrf.mxu1  ;;  %v13469_v54 = vld [vmem:[#allocation74_spill] sm:$0xff]  ;;  %v13475_v60 = vld [vmem:[#allocation80_spill] sm:$0xff]  ;;  %v13476_v44 = vld [vmem:[#allocation81_spill] sm:$0xff] }
 0x289   :  { %3012 = vmatpush.bf16.msra.mxu2 %v13465_v3  ;;  %2987 = vmatpush.bf16.msra.mxu0 %v13467_v11  ;;  %v13473_v3 = vld [vmem:[#allocation78_spill] sm:$0xff] }
 0x28a   :  { %v13477_v2 = vld [vmem:[#allocation82_spill] sm:$0xff] }
 0x28c   :  { %2999 = vmatpush.bf16.msra.mxu1 %v13463_v55  ;;  %3025 = vmatpush.bf16.msra.mxu3 %v13466_v14  ;;  %v13471_v55 = vld [vmem:[#allocation76_spill] sm:$0xff]  ;;  %v2548_v4 = vpop.f32.mrf.mxu2  ;;  %v2561_v16 = vpop.f32.mrf.mxu3  ;;  %v13474_v14 = vld [vmem:[#allocation79_spill] sm:$0xff] }
 0x28d   :  { %3013 = vmatpush.bf16.msra.mxu2 %v13469_v54  ;;  %2988 = vmatpush.bf16.msra.mxu0 %v13471_v55  ;;  %v13479_v54 = vld [vmem:[#allocation84_spill] sm:$0xff]  ;;  %v13482_v4 = vld [vmem:[#allocation89_spill] sm:$0xff]  ;;  %v13483_v16 = vld [vmem:[#allocation86_spill] sm:$0xff] }
 0x28e   :  { %v13481_v55 = vld [vmem:[#allocation88_spill] sm:$0xff] }
 0x290   :  { %3000 = vmatpush.bf16.msra.mxu1 %v13468_v26  ;;  %3026 = vmatpush.bf16.msra.mxu3 %v13470_v8  ;;  %v13478_v26 = vld [vmem:[#allocation83_spill] sm:$0xff]  ;;  %v13480_v8 = vld [vmem:[#allocation85_spill] sm:$0xff] }
 0x291   :  { %3014 = vmatpush.bf16.msra.mxu2 %v13473_v3  ;;  %2989 = vmatpush.bf16.msra.mxu0 %v13475_v60  ;;  %v13484_v3 = vld [vmem:[#allocation87_spill] sm:$0xff] }
 0x292   :  { %v13486_v60 = vld [vmem:[#allocation91_spill] sm:$0xff] }
 0x294   :  { %3001 = vmatpush.bf16.msra.mxu1 %v13472_v42  ;;  %3027 = vmatpush.bf16.msra.mxu3 %v13474_v14  ;;  %v13485_v14 = vld [vmem:[#allocation90_spill] sm:$0xff]  ;;  %v13498_v42 = vld [vmem:[#allocation103_spill] sm:$0xff] }
 0x295   :  { %3015 = vmatpush.bf16.msra.mxu2 %v13477_v2  ;;  %2990 = vmatpush.bf16.msra.mxu0 %v13479_v54  ;;  %v13488_v2 = vld [vmem:[#allocation93_spill] sm:$0xff]  ;;  %v13490_v54 = vld [vmem:[#allocation95_spill] sm:$0xff] }
 0x298   :  { %3002 = vmatpush.bf16.msra.mxu1 %v13476_v44  ;;  %3028 = vmatpush.bf16.msra.mxu3 %v13478_v26  ;;  %v13487_v44 = vld [vmem:[#allocation92_spill] sm:$0xff]  ;;  %v13489_v26 = vld [vmem:[#allocation94_spill] sm:$0xff] }
 0x299   :  { %3035 = vmatpush.bf16.msrb.mxu0 %v13481_v55  ;;  %3016 = vmatpush.bf16.msra.mxu2 %v13483_v16  ;;  %v13492_v16 = vld [vmem:[#allocation97_spill] sm:$0xff] }
 0x29c   :  { %3003 = vmatpush.bf16.msra.mxu1 %v13480_v8  ;;  %3029 = vmatpush.bf16.msra.mxu3 %v13484_v3  ;;  %v9984_v8 = vpop.f32.mrf.mxu0  ;;  %v9986_v55 = vpop.f32.mrf.mxu1  ;;  %v13493_v3 = vld [vmem:[#allocation98_spill] sm:$0xff] }
 0x29d   :  { %3061 = vmatpush.bf16.msrb.mxu2 %v13485_v14  ;;  %3036 = vmatpush.bf16.msrb.mxu0 %v13487_v44  ;;  %v13494_v14 = vld [vmem:[#allocation99_spill] sm:$0xff]  ;;  %v13496_v44 = vld [vmem:[#allocation101_spill] sm:$0xff] }
 0x2a0   :  { %3048 = vmatpush.bf16.msrb.mxu1 %v13482_v4  ;;  %3074 = vmatpush.bf16.msrb.mxu3 %v13486_v60  ;;  %v13491_v4 = vld [vmem:[#allocation96_spill] sm:$0xff] }
 0x2a1   :  { %3062 = vmatpush.bf16.msrb.mxu2 %v13489_v26  ;;  %3037 = vmatpush.bf16.msrb.mxu0 %v13491_v4  ;;  %v13495_v60 = vld [vmem:[#allocation100_spill] sm:$0xff] }
 0x2a2   :  { %v9994_v26 = vpop.f32.mrf.mxu3  ;;  %v13499_v4 = vld [vmem:[#allocation104_spill] sm:$0xff] }
 0x2a4   :  { %3049 = vmatpush.bf16.msrb.mxu1 %v13488_v2  ;;  %3075 = vmatpush.bf16.msrb.mxu3 %v13490_v54  ;;  %v2598_v2 = vpop.f32.mrf.mxu2  ;;  %v13497_v54 = vld [vmem:[#allocation102_spill] sm:$0xff]  ;;  %v2574_v11 = vpop.f32.mrf.mxu0 }
 0x2a5   :  { %3063 = vmatpush.bf16.msrb.mxu2 %v13493_v3  ;;  %3038 = vmatpush.bf16.msrb.mxu0 %v13495_v60  ;;  %v2587_v56 = vpop.f32.mrf.mxu1  ;;  %v13501_v3 = vld [vmem:[#allocation106_spill] sm:$0xff]  ;;  %v13503_v60 = vld [vmem:[#allocation108_spill] sm:$0xff] }
 0x2a6   :  { %v13507_v11 = vld [vmem:[#allocation112_spill] sm:$0xff]  ;;  %v13508_v56 = vld [vmem:[#allocation113_spill] sm:$0xff] }
 0x2a8   :  { %3050 = vmatpush.bf16.msrb.mxu1 %v13492_v16  ;;  %3076 = vmatpush.bf16.msrb.mxu3 %v13494_v14  ;;  %v13500_v16 = vld [vmem:[#allocation105_spill] sm:$0xff]  ;;  %v13502_v14 = vld [vmem:[#allocation107_spill] sm:$0xff] }
 0x2a9   :  { %3064 = vmatpush.bf16.msrb.mxu2 %v13497_v54  ;;  %3039 = vmatpush.bf16.msrb.mxu0 %v13499_v4  ;;  %v13506_v54 = vld [vmem:[#allocation111_spill] sm:$0xff]  ;;  %v13509_v4 = vld [vmem:[#allocation114_spill] sm:$0xff] }
 0x2aa   :  { %v2613_v59 = vpop.f32.mrf.mxu3 }
 0x2ac   :  { %3051 = vmatpush.bf16.msrb.mxu1 %v13496_v44  ;;  %3077 = vmatpush.bf16.msrb.mxu3 %v13498_v42  ;;  %v13504_v44 = vld [vmem:[#allocation109_spill] sm:$0xff]  ;;  %v2600_v7 = vpop.f32.mrf.mxu2 }
 0x2ad   :  { %3065 = vmatpush.bf16.msrb.mxu2 %v13501_v3  ;;  %3040 = vmatpush.bf16.msrb.mxu0 %v13503_v60  ;;  %v13511_v3 = vld [vmem:[#allocation116_spill] sm:$0xff]  ;;  %v13513_v60 = vld [vmem:[#allocation118_spill] sm:$0xff]  ;;  %v13514_v7 = vld [vmem:[#allocation119_spill] sm:$0xff] }
 0x2b0   :  { %3052 = vmatpush.bf16.msrb.mxu1 %v13500_v16  ;;  %3078 = vmatpush.bf16.msrb.mxu3 %v13502_v14  ;;  %v13510_v16 = vld [vmem:[#allocation115_spill] sm:$0xff]  ;;  %v13512_v14 = vld [vmem:[#allocation117_spill] sm:$0xff] }
 0x2b1   :  { %3066 = vmatpush.bf16.msrb.mxu2 %v13505_v30  ;;  %3041 = vmatpush.bf16.msrb.mxu0 %v13507_v11 }
 0x2b4   :  { %3053 = vmatpush.bf16.msrb.mxu1 %v13504_v44  ;;  %3079 = vmatpush.bf16.msrb.mxu3 %v13506_v54 }
 0x2b5   :  { %3067 = vmatpush.bf16.msrb.mxu2 %v13509_v4  ;;  %3042 = vmatpush.bf16.msrb.mxu0 %v13511_v3 }
 0x2b7   :  { %v2688_v59 = vpop.f32.mrf.mxu0 }
 0x2b8   :  { %3054 = vmatpush.bf16.msrb.mxu1 %v13508_v56  ;;  %3080 = vmatpush.bf16.msrb.mxu3 %v13510_v16  ;;  %v2783_v54 = vadd.f32 %v2688_v59, %v9899_v43 }
 0x2b9   :  { %3068 = vmatpush.bf16.msrb.mxu2 %v13513_v60 }
 0x2ba   :  { %v7601_v44 = vmul.f32 -1.442695, %v2783_v54 }
 0x2bc   :  { %3055 = vmatpush.bf16.msrb.mxu1 %v13512_v14  ;;  %3081 = vmatpush.bf16.msrb.mxu3 %v13514_v7  ;;  %v2701_v30 = vpop.f32.mrf.mxu1  ;;  %8078 = vpow2.f32 %v7601_v44  ;;  %v2714_v4 = vpop.f32.mrf.mxu2 }
 0x2bd   :  { %v2784_v11 = vadd.f32 %v2701_v30, %v9910_v41  ;;  %v2785_v3 = vadd.f32 %v2714_v4, %v9921_v20 }
 0x2bf   :  { %v7602_v56 = vmul.f32 -1.442695, %v2784_v11  ;;  %v2690_v42 = vpop.f32.mrf.mxu0  ;;  %v7603_v19 = vmul.f32 -1.442695, %v2785_v3 }
 0x2c1   :  { %8080 = vpow2.f32 %v7602_v56 }
 0x2c2   :  { %v2727_v16 = vpop.f32.mrf.mxu3  ;;  %v8079_v1 = vpop.eup %8078  ;;  %8082 = vpow2.f32 %v7603_v19 }
 0x2c3   :  { %v2786_v14 = vadd.f32 %v2727_v16, %v9932_v47  ;;  %v2797_v51 = vadd.f32 1.0, %v8079_v1  ;;  %v13515_v1 = vld [vmem:[#allocation258_spill] sm:$0xff] }
 0x2c4   :  { %v2703_v60 = vpop.f32.mrf.mxu1  ;;  %v2716_v30 = vpop.f32.mrf.mxu2  ;;  %v2573_v19 = vadd.f32 %v9984_v8, %v13515_v1 }
 0x2c5   :  { %v7604_v7 = vmul.f32 -1.442695, %v2786_v14  ;;  %v13516_v60 = vld [vmem:[#allocation259_spill] sm:$0xff]  ;;  %v2808_v56 = vand.u32 2147483647, %v2797_v51  ;;  %vm2804_vm2 = vweird.f32 %v2797_v51 }
 0x2c6   :  { %v2599_v4 = vadd.f32 %v2598_v2, %v13516_v60  ;;  %v2586_v59 = vadd.f32 %v9986_v55, %v2573_v19 }
 0x2c7   :  { %v8081_v6 = vpop.eup %8080  ;;  %8084 = vpow2.f32 %v7604_v7  ;;  %vm10044_vm7 = vcmp.eq.f32.partialorder %v2808_v56, 8.507059e+37 }
 0x2c8   :  { %v10018_v43 = vadd.f32 1.0, %v8081_v6  ;;  %8086 = vrcp.f32 %v2797_v51  ;;  %v8083_v54 = vpop.eup %8082  ;;  %v2612_v30 = vadd.f32 %v9994_v26, %v2599_v4 }
 0x2c9   :  { %v2835_v44 = vadd.f32 1.0, %v8083_v54 }
 0x2ca   :  { %8088 = vrcp.f32 %v10018_v43  ;;  %v2729_v41 = vpop.f32.mrf.mxu3  ;;  %vm2819_vm3 = vweird.f32 %v10018_v43 }
 0x2cb   :  { %8090 = vrcp.f32 %v2835_v44  ;;  %v2810_v41 = vand.u32 2147483648, %v2797_v51  ;;  %v2848_v8 = vand.u32 2147483648, %v2835_v44  ;;  %vm2842_vm12 = vweird.f32 %v2835_v44 }
 0x2cd   :  { %v8085_v20 = vpop.eup %8084 }
 0x2ce   :  { %v10021_v47 = vpop.eup %8086  ;;  %v10023_v42 = vadd.f32 1.0, %v8085_v20 }
 0x2cf   :  { %v2800_v14 = vmul.f32 %v10021_v47, %v2797_v51  ;;  %vm2805_vm6 = vweird.f32 %v10021_v47 }
 0x2d0   :  { %v10025_v3 = vpop.eup %8088  ;;  %8092 = vrcp.f32 %v10023_v42  ;;  %v2863_v26 = vand.u32 2147483648, %v10023_v42  ;;  %vm10054_vm11 = vmor %vm2804_vm2, %vm2805_vm6  ;;  %vm2857_vm15 = vweird.f32 %v10023_v42 }
 0x2d1   :  { %v2815_v6 = vmul.f32 %v10025_v3, %v10018_v43  ;;  %v2801_v16 = vsub.f32 1.0, %v2800_v14  ;;  %v8091_v7 = vpop.eup %8090  ;;  %v2823_v14 = vand.u32 2147483647, %v10018_v43  ;;  %vm2820_vm8 = vweird.f32 %v10025_v3 }
 0x2d2   :  { %v2838_v20 = vmul.f32 %v8091_v7, %v2835_v44  ;;  %vm2843_vm9 = vweird.f32 %v8091_v7  ;;  %vm10061_vm13 = vmor %vm2819_vm3, %vm2820_vm8 }
 0x2d3   :  { %v2816_v11 = vsub.f32 1.0, %v2815_v6  ;;  %v2802_v52 = vmul.f32 %v10021_v47, %v2801_v16  ;;  %v2825_v6 = vand.u32 2147483648, %v10018_v43  ;;  %v2846_v16 = vand.u32 2147483647, %v2835_v44  ;;  %vm2844_vm14 = vmor %vm2842_vm12, %vm2843_vm9 }
 0x2d4   :  { %v2839_v55 = vsub.f32 1.0, %v2838_v20  ;;  %vm2824_vm3 = vcmp.eq.f32.partialorder %v2823_v14, 8.507059e+37 }
 0x2d5   :  { %v2817_v34 = vmul.f32 %v10025_v3, %v2816_v11  ;;  %v2803_v20 = vadd.f32 %v10021_v47, %v2802_v52  ;;  %v2864_v52 = vor.u32 1.1754944e-38, %v2863_v26  ;;  %vm2847_vm1 = vcmp.eq.f32.partialorder %v2846_v16, 8.507059e+37 }
 0x2d6   :  { %v8093_v54 = vpop.eup %8092  ;;  %v2840_v35 = vmul.f32 %v8091_v7, %v2839_v55 }
 0x2d7   :  { %v2853_v2 = vmul.f32 %v8093_v54, %v10023_v42  ;;  %v2740_v19 = vpop.f32.mrf.mxu0  ;;  %v2818_v12 = vadd.f32 %v10025_v3, %v2817_v34  ;;  %vm2858_vm10 = vweird.f32 %v8093_v54  ;;  %v2849_v34 = vor.u32 1.1754944e-38, %v2848_v8 }
 0x2d8   :  { %v2787_v1 = vadd.f32 %v2740_v19, %v9949_v15  ;;  %v2861_v15 = vand.u32 2147483647, %v10023_v42  ;;  %vm2859_vm0 = vmor %vm2857_vm15, %vm2858_vm10  ;;  %v2807_v44 = vsel %vm10054_vm11, %v10021_v47, %v2803_v20 }
 0x2d9   :  { %v2854_v60 = vsub.f32 1.0, %v2853_v2  ;;  %v2841_v2 = vadd.f32 %v8091_v7, %v2840_v35  ;;  %v2822_v35 = vsel %vm10061_vm13, %v10025_v3, %v2818_v12 }
 0x2da   :  { %8094 = vtanh.f32 %v2787_v1  ;;  %vm2862_vm2 = vcmp.eq.f32.partialorder %v2861_v15, 8.507059e+37 }
 0x2db   :  { %v2855_v58 = vmul.f32 %v8093_v54, %v2854_v60  ;;  %v2845_v1 = vsel %vm2844_vm14, %v8091_v7, %v2841_v2  ;;  %v2826_v60 = vor.u32 1.1754944e-38, %v2825_v6 }
 0x2dc   :  { %v2753_v11 = vpop.f32.mrf.mxu1  ;;  %v2850_v43 = vsel %vm2847_vm1, %v2849_v34, %v2845_v1 }
 0x2dd   :  { %v2788_v17 = vadd.f32 %v2753_v11, %v9958_v23  ;;  %v2811_v23 = vor.u32 1.1754944e-38, %v2810_v41  ;;  %v2856_v51 = vadd.f32 %v8093_v54, %v2855_v58  ;;  %v2766_v41 = vpop.f32.mrf.mxu2  ;;  %v2827_v7 = vsel %vm2824_vm3, %v2826_v60, %v2822_v35 }
 0x2de   :  { %v2789_v58 = vadd.f32 %v2766_v41, %v2586_v59  ;;  %v2907_v12 = vmul.f32 %v2850_v43, %v9696_v62 }
 0x2df   :  { %8096 = vtanh.f32 %v2788_v17  ;;  %v2860_v17 = vsel %vm2859_vm0, %v8093_v54, %v2856_v51  ;;  %v2742_v19 = vpop.f32.mrf.mxu0  ;;  %v2812_v47 = vsel %vm10044_vm7, %v2811_v23, %v2807_v44 }
 0x2e0   :  { %v2865_v42 = vsel %vm2862_vm2, %v2864_v52, %v2860_v17  ;;  %v8095_v56 = vpop.eup %8094  ;;  %v7605_v6 = vmul.f32 -1.442695, %v2789_v58 }
 0x2e1   :  { %v2909_v3 = vmul.f32 %v8095_v56, %v2812_v47  ;;  %v2908_v20 = vmul.f32 %v2865_v42, %v9698_v46 }
 0x2e2   :  { %v2779_v8 = vpop.f32.mrf.mxu3  ;;  %8098 = vpow2.f32 %v7605_v6 }
 0x2e3   :  { %v2790_v26 = vadd.f32 %v2779_v8, %v2612_v30  ;;  %v10076_v14 = vadd.f32 %v2909_v3, %v2907_v12 }
 0x2e4   :  { %v2755_v11 = vpop.f32.mrf.mxu1 }
 0x2e5   :  { %v8097_v16 = vpop.eup %8096  ;;  %v7606_v54 = vmul.f32 -1.442695, %v2790_v26  ;;  %v2768_v30 = vpop.f32.mrf.mxu2 }
 0x2e6   :  { %v2910_v15 = vmul.f32 %v8097_v16, %v2827_v7 }
 0x2e7   :  { %8100 = vpow2.f32 %v7606_v54 }
 0x2e8   :  { %v10078_v59 = vadd.f32 %v2910_v15, %v2908_v20  ;;  %v8099_v4 = vpop.eup %8098 }
 0x2e9   :  { %v2875_v55 = vadd.f32 1.0, %v8099_v4 }
 0x2ea   :  { %v2781_v2 = vpop.f32.mrf.mxu3 }
 0x2eb   :  { %8102 = vrcp.f32 %v2875_v55  ;;  %v2888_v43 = vand.u32 2147483648, %v2875_v55  ;;  %v2886_v41 = vand.u32 2147483647, %v2875_v55  ;;  %vm2882_vm8 = vweird.f32 %v2875_v55 }
 0x2ed   :  { %v8101_v23 = vpop.eup %8100  ;;  %v2889_v19 = vor.u32 1.1754944e-38, %v2888_v43  ;;  %vm2887_vm11 = vcmp.eq.f32.partialorder %v2886_v41, 8.507059e+37  ;;  %v13525_v43 = vld [vmem:[#allocation126_spill] sm:$0xff]  ;;  %v13528_v41 = vld [vmem:[#allocation135_spill] sm:$0xff] }
 0x2ee   :  { %v2876_v34 = vadd.f32 1.0, %v8101_v23 }
 0x2f0   :  { %8104 = vrcp.f32 %v2876_v34  ;;  %v2903_v8 = vand.u32 2147483648, %v2876_v34  ;;  %v2901_v58 = vand.u32 2147483647, %v2876_v34  ;;  %vm2897_vm10 = vweird.f32 %v2876_v34 }
 0x2f1   :  { %v8103_v62 = vpop.eup %8102  ;;  %8106 = vtanh.f32 %v10076_v14 }
 0x2f2   :  { %v2878_v51 = vmul.f32 %v8103_v62, %v2875_v55  ;;  %8108 = vtanh.f32 %v10078_v59  ;;  %vm2883_vm6 = vweird.f32 %v8103_v62  ;;  %v2904_v7 = vor.u32 1.1754944e-38, %v2903_v8  ;;  %v13529_v8 = vld [vmem:[#allocation195_spill] sm:$0xff] }
 0x2f3   :  { %vm2884_vm9 = vmor %vm2882_vm8, %vm2883_vm6  ;;  %vm2902_vm13 = vcmp.eq.f32.partialorder %v2901_v58, 8.507059e+37  ;;  %v13530_v58 = vld [vmem:[#allocation136_spill] sm:$0xff] }
 0x2f4   :  { %v2879_v35 = vsub.f32 1.0, %v2878_v51 }
 0x2f6   :  { %v8105_v52 = vpop.eup %8104  ;;  %v2880_v17 = vmul.f32 %v8103_v62, %v2879_v35  ;;  %v13524_v35 = vld [vmem:[#allocation124_spill] sm:$0xff] }
 0x2f7   :  { %v2893_v44 = vmul.f32 %v8105_v52, %v2876_v34  ;;  %v10080_v46 = vpop.f32.mrf.mxu0  ;;  %vm2898_vm7 = vweird.f32 %v8105_v52  ;;  %v8107_v56 = vpop.eup %8106 }
 0x2f8   :  { %v2881_v26 = vadd.f32 %v8103_v62, %v2880_v17  ;;  %vm2899_vm12 = vmor %vm2897_vm10, %vm2898_vm7  ;;  %v8109_v3 = vpop.eup %8108  ;;  %v13527_v17 = vld [vmem:[#allocation134_spill] sm:$0xff] }
 0x2f9   :  { %v2894_v60 = vsub.f32 1.0, %v2893_v44  ;;  %v13523_v44 = vld [vmem:[#allocation122_spill] sm:$0xff] }
 0x2fa   :  { %v2885_v47 = vsel %vm2884_vm9, %v8103_v62, %v2881_v26  ;;  %v13531_v26 = vld [vmem:[#allocation137_spill] sm:$0xff] }
 0x2fb   :  { %v2895_v42 = vmul.f32 %v8105_v52, %v2894_v60  ;;  %v2890_v6 = vsel %vm2887_vm11, %v2889_v19, %v2885_v47  ;;  %v13526_v60 = vld [vmem:[#allocation133_spill] sm:$0xff]  ;;  %v13534_v47 = vld [vmem:[#allocation139_spill] sm:$0xff] }
 0x2fc   :  { %v10082_v1 = vpop.f32.mrf.mxu1  ;;  %v10086_v16 = vpop.f32.mrf.mxu2  ;;  %v2915_v30 = vmul.f32 %v8107_v56, %v2890_v6  ;;  %v13532_v19 = vld [vmem:[#allocation197_spill] sm:$0xff]  ;;  %v13533_v56 = vld [vmem:[#allocation138_spill] sm:$0xff] }
 0x2fd   :  { %v2896_v11 = vadd.f32 %v8105_v52, %v2895_v42  ;;  %v2977_v42 = vadd.f32 %v10080_v46, %v13529_v8  ;;  %v13536_v6 = vld [vmem:[#allocation141_spill] sm:$0xff]  ;;  %v13538_v46 = vld [vmem:[#allocation143_spill] sm:$0xff] }
 0x2fe   :  { %v10090_v23 = vpack.c.bf16 %v2915_v30, %v2915_v30 }
 0x2ff   :  { %v2900_v54 = vsel %vm2899_vm12, %v8105_v52, %v2896_v11  ;;  %v2936_v20 = vpop.f32.mrf.mxu0  ;;  %v2978_v11 = vadd.f32 %v10082_v1, %v13532_v19  ;;  %v13541_v1 = vld [vmem:[#allocation146_spill] sm:$0xff] }
 0x300   :  { %v2905_v2 = vsel %vm2902_vm13, %v2904_v7, %v2900_v54  ;;  %2991 = vmatmul.bf16.vlgmr.msra.gmra.mxu0 %v10090_v23  ;;  %3017 = vmatmul.bf16.vlgmr.msra.gmra.mxu2 %v10090_v23  ;;  %v7607_v7 = vmul.f32 -1.442695, %v2977_v42  ;;  %v13537_v20 = vld [vmem:[#allocation142_spill] sm:$0xff]  ;;  %v13547_v42 = vld [vmem:[#allocation152_spill] sm:$0xff] }
 0x301   :  { %v2916_v4 = vmul.f32 %v8109_v3, %v2905_v2  ;;  %3087 = vmatpush.bf16.msra.mxu0 %v13317_v57  ;;  %3113 = vmatpush.bf16.msra.mxu2 %v13523_v44  ;;  %v13535_v3 = vld [vmem:[#allocation140_spill] sm:$0xff]  ;;  %v7608_v54 = vmul.f32 -1.442695, %v2978_v11  ;;  %v13542_v2 = vld [vmem:[#allocation147_spill] sm:$0xff]  ;;  %v13548_v11 = vld [vmem:[#allocation153_spill] sm:$0xff] }
 0x302   :  { %v10088_v12 = vpop.f32.mrf.mxu3  ;;  %8110 = vpow2.f32 %v7607_v7 }
 0x303   :  { %v2919_v55 = vrot.slane %v2916_v4, 7  ;;  %v10092_v34 = vpack.c.bf16 %v2916_v4, %v2916_v4  ;;  %8112 = vpow2.f32 %v7608_v54  ;;  %v13543_v4 = vld [vmem:[#allocation148_spill] sm:$0xff]  ;;  %v13550_v54 = vld [vmem:[#allocation155_spill] sm:$0xff] }
 0x304   :  { %v2949_v15 = vpop.f32.mrf.mxu1  ;;  %v2962_v52 = vpop.f32.mrf.mxu2 }
 0x305   :  { %v2920_v62 = vsel %vm2340_vm4, %v2915_v30, %v2919_v55  ;;  %3004 = vmatmul.bf16.vlgmr.msra.gmra.mxu1 %v10092_v34  ;;  %3030 = vmatmul.bf16.vlgmr.msra.gmra.mxu3 %v10092_v34  ;;  %v13539_v15 = vld [vmem:[#allocation144_spill] sm:$0xff]  ;;  %v13540_v30 = vld [vmem:[#allocation145_spill] sm:$0xff]  ;;  %v13546_v52 = vld [vmem:[#allocation151_spill] sm:$0xff] }
 0x306   :  { %2923 = vst.msk [vmem:[#allocation2 + $0x1] ss:$8 sm:$0x3] %vm9714_vm5, %v2920_v62  ;;  %3100 = vmatpush.bf16.msra.mxu1 %v13319_v48  ;;  %3126 = vmatpush.bf16.msra.mxu3 %v13320_v61  ;;  %v13544_v55 = vld [vmem:[#allocation149_spill] sm:$0xff]  ;;  %v13545_v62 = vld [vmem:[#allocation150_spill] sm:$0xff] }
 0x307   :  { %3088 = vmatpush.bf16.msra.mxu0 %v13524_v35  ;;  %3114 = vmatpush.bf16.msra.mxu2 %v13525_v43 }
 0x30a   :  { %v2975_v51 = vpop.f32.mrf.mxu3  ;;  %3101 = vmatpush.bf16.msra.mxu1 %v13323_v45  ;;  %3127 = vmatpush.bf16.msra.mxu3 %v13324_v24 }
 0x30b   :  { %3089 = vmatpush.bf16.msra.mxu0 %v13325_v27  ;;  %3115 = vmatpush.bf16.msra.mxu2 %v13326_v5  ;;  %v8111_v51 = vpop.eup %8110 }
 0x30c   :  { %v8113_v7 = vpop.eup %8112 }
 0x30e   :  { %3102 = vmatpush.bf16.msra.mxu1 %v13328_v40  ;;  %3128 = vmatpush.bf16.msra.mxu3 %v13329_v21 }
 0x30f   :  { %3090 = vmatpush.bf16.msra.mxu0 %v13330_v49  ;;  %3116 = vmatpush.bf16.msra.mxu2 %v13527_v17 }
 0x310   :  { %3043 = vmatmul.bf16.vlgmr.msrb.gmra.mxu0 %v10090_v23  ;;  %3069 = vmatmul.bf16.vlgmr.msrb.gmra.mxu2 %v10090_v23 }
 0x312   :  { %3103 = vmatpush.bf16.msra.mxu1 %v13526_v60  ;;  %3129 = vmatpush.bf16.msra.mxu3 %v13528_v41 }
 0x313   :  { %3091 = vmatpush.bf16.msra.mxu0 %v13530_v58  ;;  %3117 = vmatpush.bf16.msra.mxu2 %v13533_v56 }
 0x315   :  { %3056 = vmatmul.bf16.vlgmr.msrb.gmra.mxu1 %v10092_v34  ;;  %3082 = vmatmul.bf16.vlgmr.msrb.gmra.mxu3 %v10092_v34 }
 0x316   :  { %3104 = vmatpush.bf16.msra.mxu1 %v13531_v26  ;;  %3130 = vmatpush.bf16.msra.mxu3 %v13534_v47  ;;  %v13574_v47 = vld [vmem:[#allocation178_spill] sm:$0xff] }
 0x317   :  { %3092 = vmatpush.bf16.msra.mxu0 %v13535_v3  ;;  %3118 = vmatpush.bf16.msra.mxu2 %v13537_v20  ;;  %v13573_v3 = vld [vmem:[#allocation177_spill] sm:$0xff] }
 0x31a   :  { %3105 = vmatpush.bf16.msra.mxu1 %v13536_v6  ;;  %3131 = vmatpush.bf16.msra.mxu3 %v13538_v46  ;;  %v13572_v6 = vld [vmem:[#allocation176_spill] sm:$0xff] }
 0x31b   :  { %3093 = vmatpush.bf16.msra.mxu0 %v13539_v15  ;;  %3119 = vmatpush.bf16.msra.mxu2 %v13541_v1  ;;  %v13560_v1 = vld [vmem:[#allocation164_spill] sm:$0xff] }
 0x31e   :  { %3106 = vmatpush.bf16.msra.mxu1 %v13540_v30  ;;  %3132 = vmatpush.bf16.msra.mxu3 %v13542_v2  ;;  %v13549_v30 = vld [vmem:[#allocation154_spill] sm:$0xff]  ;;  %v13557_v2 = vld [vmem:[#allocation161_spill] sm:$0xff] }
 0x31f   :  { %3094 = vmatpush.bf16.msra.mxu0 %v13543_v4  ;;  %3120 = vmatpush.bf16.msra.mxu2 %v13545_v62  ;;  %v10147_v4 = vadd.f32 1.0, %v8111_v51  ;;  %v13553_v62 = vld [vmem:[#allocation158_spill] sm:$0xff]  ;;  %v13556_v51 = vld [vmem:[#allocation160_spill] sm:$0xff] }
 0x321   :  { %8114 = vrcp.f32 %v10147_v4  ;;  %vm3200_vm0 = vweird.f32 %v10147_v4 }
 0x322   :  { %3107 = vmatpush.bf16.msra.mxu1 %v13544_v55  ;;  %3133 = vmatpush.bf16.msra.mxu3 %v13546_v52  ;;  %v10151_v52 = vadd.f32 1.0, %v8113_v7  ;;  %v13558_v7 = vld [vmem:[#allocation162_spill] sm:$0xff] }
 0x323   :  { %3139 = vmatpush.bf16.msrb.mxu0 %v13547_v42  ;;  %3165 = vmatpush.bf16.msrb.mxu2 %v13549_v30  ;;  %v13551_v42 = vld [vmem:[#allocation156_spill] sm:$0xff]  ;;  %v13554_v30 = vld [vmem:[#allocation159_spill] sm:$0xff] }
 0x324   :  { %3095 = vmatmul.bf16.vlgmr.msra.gmra.mxu0 %v10090_v23  ;;  %3121 = vmatmul.bf16.vlgmr.msra.gmra.mxu2 %v10090_v23  ;;  %8116 = vrcp.f32 %v10151_v52  ;;  %vm3219_vm1 = vweird.f32 %v10151_v52 }
 0x325   :  { %3108 = vmatmul.bf16.vlgmr.msra.gmra.mxu1 %v10092_v34  ;;  %3134 = vmatmul.bf16.vlgmr.msra.gmra.mxu3 %v10092_v34 }
 0x326   :  { %3152 = vmatpush.bf16.msrb.mxu1 %v13548_v11  ;;  %3178 = vmatpush.bf16.msrb.mxu3 %v13550_v54  ;;  %v13552_v11 = vld [vmem:[#allocation157_spill] sm:$0xff]  ;;  %v13555_v54 = vld [vmem:[#allocation203_spill] sm:$0xff] }
 0x327   :  { %3140 = vmatpush.bf16.msrb.mxu0 %v13551_v42  ;;  %3166 = vmatpush.bf16.msrb.mxu2 %v13553_v62  ;;  %v2980_v55 = vadd.f32 %v10088_v12, %v13555_v54  ;;  %v13559_v42 = vld [vmem:[#allocation163_spill] sm:$0xff]  ;;  %v13561_v62 = vld [vmem:[#allocation165_spill] sm:$0xff]  ;;  %v13562_v12 = vld [vmem:[#allocation166_spill] sm:$0xff] }
 0x328   :  { %v13563_v54 = vld [vmem:[#allocation167_spill] sm:$0xff] }
 0x32a   :  { %3153 = vmatpush.bf16.msrb.mxu1 %v13552_v11  ;;  %3179 = vmatpush.bf16.msrb.mxu3 %v13554_v30  ;;  %v7609_v11 = vmul.f32 -1.442695, %v2980_v55  ;;  %v10167_v30 = vpop.eup %8114 }
 0x32b   :  { %3141 = vmatpush.bf16.msrb.mxu0 %v13556_v51  ;;  %3167 = vmatpush.bf16.msrb.mxu2 %v13558_v7  ;;  %v10171_v15 = vpop.eup %8116  ;;  %v13564_v51 = vld [vmem:[#allocation168_spill] sm:$0xff]  ;;  %v3196_v55 = vmul.f32 %v10167_v30, %v10147_v4  ;;  %vm3201_vm14 = vweird.f32 %v10167_v30 }
 0x32c   :  { %8118 = vpow2.f32 %v7609_v11  ;;  %v13568_v7 = vld [vmem:[#allocation172_spill] sm:$0xff]  ;;  %vm3220_vm15 = vweird.f32 %v10171_v15  ;;  %vm10210_vm2 = vmor %vm3200_vm0, %vm3201_vm14 }
 0x32d   :  { %v3197_v11 = vsub.f32 1.0, %v3196_v55  ;;  %vm10220_vm3 = vmor %vm3219_vm1, %vm3220_vm15 }
 0x32e   :  { %3154 = vmatpush.bf16.msrb.mxu1 %v13557_v2  ;;  %3180 = vmatpush.bf16.msrb.mxu3 %v13559_v42  ;;  %v13565_v2 = vld [vmem:[#allocation169_spill] sm:$0xff]  ;;  %v13567_v42 = vld [vmem:[#allocation171_spill] sm:$0xff] }
 0x32f   :  { %3142 = vmatpush.bf16.msrb.mxu0 %v13560_v1  ;;  %3168 = vmatpush.bf16.msrb.mxu2 %v13562_v12  ;;  %v3215_v1 = vmul.f32 %v10171_v15, %v10151_v52 }
 0x331   :  { %v3216_v46 = vsub.f32 1.0, %v3215_v1  ;;  %v13576_v1 = vld [vmem:[#allocation215_spill] sm:$0xff] }
 0x332   :  { %3155 = vmatpush.bf16.msrb.mxu1 %v13561_v62  ;;  %3181 = vmatpush.bf16.msrb.mxu3 %v13563_v54  ;;  %v13566_v62 = vld [vmem:[#allocation170_spill] sm:$0xff]  ;;  %v8119_v12 = vpop.eup %8118  ;;  %v13569_v54 = vld [vmem:[#allocation173_spill] sm:$0xff]  ;;  %v2979_v55 = vadd.f32 %v10086_v16, %v13576_v1  ;;  %v3206_v16 = vand.u32 2147483648, %v10147_v4  ;;  %v13581_v1 = vld [vmem:[#allocation184_spill] sm:$0xff] }
 0x333   :  { %3143 = vmatpush.bf16.msrb.mxu0 %v13564_v51  ;;  %3169 = vmatpush.bf16.msrb.mxu2 %v13566_v62  ;;  %v13570_v51 = vld [vmem:[#allocation174_spill] sm:$0xff]  ;;  %v10185_v20 = vadd.f32 1.0, %v8119_v12  ;;  %v3217_v62 = vmul.f32 %v10171_v15, %v3216_v46  ;;  %v13577_v12 = vld [vmem:[#allocation180_spill] sm:$0xff] }
 0x335   :  { %8120 = vrcp.f32 %v10185_v20  ;;  %vm3239_vm9 = vweird.f32 %v10185_v20 }
 0x336   :  { %3156 = vmatpush.bf16.msrb.mxu1 %v13565_v2  ;;  %3182 = vmatpush.bf16.msrb.mxu3 %v13567_v42  ;;  %v13571_v2 = vld [vmem:[#allocation175_spill] sm:$0xff]  ;;  %v3198_v42 = vmul.f32 %v10167_v30, %v3197_v11  ;;  %v3218_v11 = vadd.f32 %v10171_v15, %v3217_v62  ;;  %v3204_v62 = vand.u32 2147483647, %v10147_v4  ;;  %8122 = vtanh.f32 %v2979_v55  ;;  %v13589_v55 = vld [vmem:[#allocation188_spill] sm:$0xff] }
 0x337   :  { %3144 = vmatpush.bf16.msrb.mxu0 %v13568_v7  ;;  %3170 = vmatpush.bf16.msrb.mxu2 %v13570_v51  ;;  %v13575_v7 = vld [vmem:[#allocation179_spill] sm:$0xff]  ;;  %v13591_v51 = vld [vmem:[#allocation190_spill] sm:$0xff] }
 0x338   :  { %v3199_v46 = vadd.f32 %v10167_v30, %v3198_v42  ;;  %vm3205_vm6 = vcmp.eq.f32.partialorder %v3204_v62, 8.507059e+37  ;;  %v13592_v42 = vld [vmem:[#allocation191_spill] sm:$0xff]  ;;  %v13597_v62 = vld [vmem:[#allocation196_spill] sm:$0xff] }
 0x33a   :  { %3157 = vmatpush.bf16.msrb.mxu1 %v13569_v54  ;;  %3183 = vmatpush.bf16.msrb.mxu3 %v13571_v2  ;;  %v3203_v4 = vsel %vm10210_vm2, %v10167_v30, %v3199_v46  ;;  %v13590_v2 = vld [vmem:[#allocation189_spill] sm:$0xff] }
 0x33b   :  { %3145 = vmatpush.bf16.msrb.mxu0 %v13572_v6  ;;  %3171 = vmatpush.bf16.msrb.mxu2 %v13574_v47  ;;  %v13578_v6 = vld [vmem:[#allocation181_spill] sm:$0xff]  ;;  %v13579_v47 = vld [vmem:[#allocation182_spill] sm:$0xff] }
 0x33e   :  { %3158 = vmatpush.bf16.msrb.mxu1 %v13573_v3  ;;  %3184 = vmatpush.bf16.msrb.mxu3 %v13575_v7  ;;  %v13580_v7 = vld [vmem:[#allocation183_spill] sm:$0xff]  ;;  %v3225_v3 = vand.u32 2147483648, %v10151_v52 }
 0x33f   :  { %3146 = vmatpush.bf16.msrb.mxu0 %v13577_v12  ;;  %3172 = vmatpush.bf16.msrb.mxu2 %v13579_v47  ;;  %v13582_v12 = vld [vmem:[#allocation185_spill] sm:$0xff]  ;;  %v13585_v47 = vld [vmem:[#allocation186_spill] sm:$0xff] }
 0x342   :  { %3159 = vmatpush.bf16.msrb.mxu1 %v13578_v6  ;;  %3185 = vmatpush.bf16.msrb.mxu3 %v13580_v7  ;;  %v3223_v7 = vand.u32 2147483647, %v10151_v52  ;;  %v13586_v6 = vld [vmem:[#allocation187_spill] sm:$0xff]  ;;  %v3222_v52 = vsel %vm10220_vm3, %v10171_v15, %v3218_v11 }
 0x343   :  { %3255 = vmatpush.bf16.msra.mxu0 %v13581_v1  ;;  %3281 = vmatpush.bf16.msra.mxu2 %v13585_v47  ;;  %v3207_v47 = vor.u32 1.1754944e-38, %v3206_v16 }
 0x344   :  { %3147 = vmatmul.bf16.vlgmr.msrb.gmra.mxu0 %v10090_v23  ;;  %3173 = vmatmul.bf16.vlgmr.msrb.gmra.mxu2 %v10090_v23  ;;  %vm3224_vm7 = vcmp.eq.f32.partialorder %v3223_v7, 8.507059e+37  ;;  %v13593_v23 = vld [vmem:[#allocation192_spill] sm:$0xff] }
 0x345   :  { %3160 = vmatmul.bf16.vlgmr.msrb.gmra.mxu1 %v10092_v34  ;;  %3186 = vmatmul.bf16.vlgmr.msrb.gmra.mxu3 %v10092_v34  ;;  %v3208_v30 = vsel %vm3205_vm6, %v3207_v47, %v3203_v4  ;;  %v13594_v34 = vld [vmem:[#allocation193_spill] sm:$0xff] }
 0x346   :  { %3268 = vmatpush.bf16.msra.mxu1 %v13582_v12  ;;  %3294 = vmatpush.bf16.msra.mxu3 %v13586_v6  ;;  %v8121_v12 = vpop.eup %8120  ;;  %v3226_v6 = vor.u32 1.1754944e-38, %v3225_v3  ;;  %v13595_v3 = vld [vmem:[#allocation120_spill] sm:$0xff]  ;;  %v13601_v4 = vld [vmem:[#allocation201_spill] sm:$0xff] }
 0x347   :  { %3256 = vmatpush.bf16.msra.mxu0 %v13589_v55  ;;  %3282 = vmatpush.bf16.msra.mxu2 %v13591_v51  ;;  %v3235_v15 = vmul.f32 %v8121_v12, %v10185_v20  ;;  %v8123_v1 = vpop.eup %8122  ;;  %v13596_v55 = vld [vmem:[#allocation194_spill] sm:$0xff]  ;;  %vm3240_vm8 = vweird.f32 %v8121_v12 }
 0x348   :  { %v3227_v46 = vsel %vm3224_vm7, %v3226_v6, %v3222_v52  ;;  %v3250_v16 = vmul.f32 %v8123_v1, %v3208_v30  ;;  %v13598_v51 = vld [vmem:[#allocation198_spill] sm:$0xff]  ;;  %v13600_v6 = vld [vmem:[#allocation200_spill] sm:$0xff]  ;;  %v13604_v30 = vld [vmem:[#allocation205_spill] sm:$0xff] }
 0x349   :  { %v3249_v11 = vmul.f32 %v3227_v46, %v13595_v3  ;;  %v3236_v7 = vsub.f32 1.0, %v3235_v15  ;;  %v13603_v46 = vld [vmem:[#allocation204_spill] sm:$0xff]  ;;  %v13605_v15 = vld [vmem:[#allocation206_spill] sm:$0xff]  ;;  %v3245_v3 = vand.u32 2147483648, %v10185_v20  ;;  %vm3241_vm10 = vmor %vm3239_vm9, %vm3240_vm8 }
 0x34a   :  { %3269 = vmatpush.bf16.msra.mxu1 %v13590_v2  ;;  %3295 = vmatpush.bf16.msra.mxu3 %v13592_v42  ;;  %v13599_v42 = vld [vmem:[#allocation199_spill] sm:$0xff] }
 0x34b   :  { %3257 = vmatpush.bf16.msra.mxu0 %v13593_v23  ;;  %3283 = vmatpush.bf16.msra.mxu2 %v13596_v55  ;;  %v10246_v47 = vadd.f32 %v3250_v16, %v3249_v11  ;;  %v3237_v52 = vmul.f32 %v8121_v12, %v3236_v7  ;;  %v3243_v11 = vand.u32 2147483647, %v10185_v20  ;;  %v13606_v16 = vld [vmem:[#allocation207_spill] sm:$0xff]  ;;  %v13607_v7 = vld [vmem:[#allocation208_spill] sm:$0xff] }
 0x34d   :  { %8124 = vtanh.f32 %v10246_v47  ;;  %v3238_v1 = vadd.f32 %v8121_v12, %v3237_v52  ;;  %vm3244_vm11 = vcmp.eq.f32.partialorder %v3243_v11, 8.507059e+37  ;;  %v13614_v11 = vld [vmem:[#allocation225_spill] sm:$0xff] }
 0x34e   :  { %3270 = vmatpush.bf16.msra.mxu1 %v13594_v34  ;;  %3296 = vmatpush.bf16.msra.mxu3 %v13597_v62  ;;  %v13602_v34 = vld [vmem:[#allocation202_spill] sm:$0xff] }
 0x34f   :  { %3258 = vmatpush.bf16.msra.mxu0 %v13598_v51  ;;  %3284 = vmatpush.bf16.msra.mxu2 %v13600_v6 }
 0x352   :  { %3271 = vmatpush.bf16.msra.mxu1 %v13599_v42  ;;  %3297 = vmatpush.bf16.msra.mxu3 %v13601_v4 }
 0x353   :  { %3259 = vmatpush.bf16.msra.mxu0 %v13602_v34  ;;  %3285 = vmatpush.bf16.msra.mxu2 %v13604_v30  ;;  %v3242_v30 = vsel %vm3241_vm10, %v8121_v12, %v3238_v1  ;;  %v8125_v34 = vpop.eup %8124  ;;  %v13609_v1 = vld [vmem:[#allocation220_spill] sm:$0xff] }
 0x356   :  { %3272 = vmatpush.bf16.msra.mxu1 %v13603_v46  ;;  %3298 = vmatpush.bf16.msra.mxu3 %v13605_v15  ;;  %v13608_v46 = vld [vmem:[#allocation209_spill] sm:$0xff]  ;;  %v3246_v15 = vor.u32 1.1754944e-38, %v3245_v3 }
 0x357   :  { %3260 = vmatpush.bf16.msra.mxu0 %v13606_v16  ;;  %3286 = vmatpush.bf16.msra.mxu2 %v13608_v46  ;;  %v13610_v3 = vld [vmem:[#allocation221_spill] sm:$0xff] }
 0x358   :  { %v3247_v52 = vsel %vm3244_vm11, %v3246_v15, %v3242_v30  ;;  %v13611_v30 = vld [vmem:[#allocation222_spill] sm:$0xff]  ;;  %v13612_v15 = vld [vmem:[#allocation223_spill] sm:$0xff] }
 0x359   :  { %v3253_v20 = vmul.f32 %v8125_v34, %v3247_v52  ;;  %v13613_v34 = vld [vmem:[#allocation224_spill] sm:$0xff]  ;;  %v13615_v52 = vld [vmem:[#allocation226_spill] sm:$0xff] }
 0x35a   :  { %3273 = vmatpush.bf16.msra.mxu1 %v13607_v7  ;;  %3299 = vmatpush.bf16.msra.mxu3 %v13406_v53 }
 0x35b   :  { %3261 = vmatpush.bf16.msra.mxu0 %v13407_v63  ;;  %3287 = vmatpush.bf16.msra.mxu2 %v13409_v29  ;;  %v10270_v12 = vpack.c.bf16 %v3253_v20, %v3253_v20  ;;  %v13616_v20 = vld [vmem:[#allocation229_spill] sm:$0xff] }
 0x35e   :  { %3274 = vmatpush.bf16.msra.mxu1 %v13408_v36  ;;  %3300 = vmatpush.bf16.msra.mxu3 %v13410_v39  ;;  %v13724_v39 = vld [vmem:[#allocation110_spill] sm:$0xff] }
 0x35f   :  { %3262 = vmatpush.bf16.msra.mxu0 %v13411_v25  ;;  %3288 = vmatpush.bf16.msra.mxu2 %v13413_v32 }
 0x362   :  { %3275 = vmatpush.bf16.msra.mxu1 %v13412_v13  ;;  %3301 = vmatpush.bf16.msra.mxu3 %v13414_v22  ;;  %v13683_v22 = vld [vmem:[#allocation256_spill] sm:$0xff] }
 0x363   :  { %3307 = vmatpush.bf16.msrb.mxu0 %v13609_v1  ;;  %3333 = vmatpush.bf16.msrb.mxu2 %v13611_v30  ;;  %v13618_v30 = vld [vmem:[#allocation231_spill] sm:$0xff] }
 0x364   :  { %3263 = vmatmul.bf16.vlgmr.msra.gmra.mxu0 %v10270_v12  ;;  %3289 = vmatmul.bf16.vlgmr.msra.gmra.mxu2 %v10270_v12 }
 0x365   :  { %3276 = vmatmul.bf16.vlgmr.msra.gmra.mxu1 %v10270_v12  ;;  %3302 = vmatmul.bf16.vlgmr.msra.gmra.mxu3 %v10270_v12 }
 0x366   :  { %3320 = vmatpush.bf16.msrb.mxu1 %v13610_v3  ;;  %3346 = vmatpush.bf16.msrb.mxu3 %v13612_v15  ;;  %v13617_v15 = vld [vmem:[#allocation230_spill] sm:$0xff]  ;;  %v13654_v3 = vld [vmem:[#allocation44_spill] sm:$0xff] }
 0x367   :  { %3308 = vmatpush.bf16.msrb.mxu0 %v13613_v34  ;;  %3334 = vmatpush.bf16.msrb.mxu2 %v13615_v52  ;;  %v13644_v52 = vld [vmem:[#allocation35_spill] sm:$0xff] }
 0x36a   :  { %3321 = vmatpush.bf16.msrb.mxu1 %v13614_v11  ;;  %3347 = vmatpush.bf16.msrb.mxu3 %v9386_v0  ;;  %v13643_v0 = vld [vmem:[#allocation34_spill] sm:$0xff]  ;;  %v13645_v11 = vld [vmem:[#allocation247_spill] sm:$0xff] }
 0x36b   :  { %3309 = vmatpush.bf16.msrb.mxu0 %v9396_v50  ;;  %3335 = vmatpush.bf16.msrb.mxu2 %v13617_v15  ;;  %v13619_v50 = vld [vmem:[#allocation239_spill] sm:$0xff]  ;;  %v13621_v15 = vld [vmem:[#allocation241_spill] sm:$0xff] }
 0x36e   :  { %3322 = vmatpush.bf16.msrb.mxu1 %v13616_v20  ;;  %3348 = vmatpush.bf16.msrb.mxu3 %v13618_v30  ;;  %v13620_v20 = vld [vmem:[#allocation240_spill] sm:$0xff]  ;;  %v13622_v30 = vld [vmem:[#allocation242_spill] sm:$0xff] }
 0x36f   :  { %3310 = vmatpush.bf16.msrb.mxu0 %v13423_v33  ;;  %3336 = vmatpush.bf16.msrb.mxu2 %v13425_v28  ;;  %v13623_v33 = vld [vmem:[#allocation243_spill] sm:$0xff]  ;;  %v13625_v28 = vld [vmem:[#allocation245_spill] sm:$0xff] }
 0x372   :  { %3323 = vmatpush.bf16.msrb.mxu1 %v13424_v38  ;;  %3349 = vmatpush.bf16.msrb.mxu3 %v13426_v18  ;;  %v13624_v38 = vld [vmem:[#allocation244_spill] sm:$0xff]  ;;  %v13626_v18 = vld [vmem:[#allocation246_spill] sm:$0xff] }
 0x373   :  { %3311 = vmatpush.bf16.msrb.mxu0 %v13427_v31  ;;  %3337 = vmatpush.bf16.msrb.mxu2 %v9454_v37  ;;  %v13627_v31 = vld [vmem:[#allocation248_spill] sm:$0xff]  ;;  %v13629_v37 = vld [vmem:[#allocation250_spill] sm:$0xff] }
 0x376   :  { %3324 = vmatpush.bf16.msrb.mxu1 %v13428_v10  ;;  %3350 = vmatpush.bf16.msrb.mxu3 %v13619_v50  ;;  %v13628_v10 = vld [vmem:[#allocation249_spill] sm:$0xff]  ;;  %v13630_v50 = vld [vmem:[#allocation251_spill] sm:$0xff] }
 0x377   :  { %3312 = vmatpush.bf16.msrb.mxu0 %v13620_v20  ;;  %3338 = vmatpush.bf16.msrb.mxu2 %v13622_v30  ;;  %v13631_v20 = vld [vmem:[#allocation252_spill] sm:$0xff]  ;;  %v13633_v30 = vld [vmem:[#allocation25_spill] sm:$0xff] }
 0x37a   :  { %3325 = vmatpush.bf16.msrb.mxu1 %v13621_v15  ;;  %3351 = vmatpush.bf16.msrb.mxu3 %v13623_v33  ;;  %v13632_v15 = vld [vmem:[#allocation24_spill] sm:$0xff]  ;;  %v13634_v33 = vld [vmem:[#allocation26_spill] sm:$0xff] }
 0x37b   :  { %3313 = vmatpush.bf16.msrb.mxu0 %v13624_v38  ;;  %3339 = vmatpush.bf16.msrb.mxu2 %v13626_v18  ;;  %v13635_v38 = vld [vmem:[#allocation27_spill] sm:$0xff]  ;;  %v13641_v18 = vld [vmem:[#allocation32_spill] sm:$0xff] }
 0x37e   :  { %3326 = vmatpush.bf16.msrb.mxu1 %v13625_v28  ;;  %3352 = vmatpush.bf16.msrb.mxu3 %v13627_v31  ;;  %v13639_v31 = vld [vmem:[#allocation30_spill] sm:$0xff]  ;;  %v13642_v28 = vld [vmem:[#allocation33_spill] sm:$0xff] }
 0x37f   :  { %3314 = vmatpush.bf16.msrb.mxu0 %v13628_v10  ;;  %3340 = vmatpush.bf16.msrb.mxu2 %v13630_v50  ;;  %v13636_v50 = vld [vmem:[#allocation28_spill] sm:$0xff] }
 0x382   :  { %3327 = vmatpush.bf16.msrb.mxu1 %v13629_v37  ;;  %3353 = vmatpush.bf16.msrb.mxu3 %v13631_v20  ;;  %v2992_v37 = vpop.f32.mrf.mxu0  ;;  %v13637_v20 = vld [vmem:[#allocation29_spill] sm:$0xff] }
 0x383   :  { %3501 = vmatpush.bf16.msra.mxu0 %v13632_v15  ;;  %3527 = vmatpush.bf16.msra.mxu2 %v13634_v33  ;;  %v13638_v15 = vld [vmem:[#allocation253_spill] sm:$0xff]  ;;  %v13640_v33 = vld [vmem:[#allocation31_spill] sm:$0xff] }
 0x384   :  { %3315 = vmatmul.bf16.vlgmr.msrb.gmra.mxu0 %v10270_v12  ;;  %3341 = vmatmul.bf16.vlgmr.msrb.gmra.mxu2 %v10270_v12  ;;  %v2993_v10 = vadd.f32 %v2992_v37, %v13638_v15  ;;  %v13646_v15 = vld [vmem:[#allocation36_spill] sm:$0xff] }
 0x385   :  { %3328 = vmatmul.bf16.vlgmr.msrb.gmra.mxu1 %v10270_v12  ;;  %3354 = vmatmul.bf16.vlgmr.msrb.gmra.mxu3 %v10270_v12 }
 0x386   :  { %3514 = vmatpush.bf16.msra.mxu1 %v13633_v30  ;;  %3540 = vmatpush.bf16.msra.mxu3 %v13635_v38  ;;  %v3005_v30 = vpop.f32.mrf.mxu1 }
 0x387   :  { %3502 = vmatpush.bf16.msra.mxu0 %v13636_v50  ;;  %3528 = vmatpush.bf16.msra.mxu2 %v13639_v31  ;;  %v10321_v38 = vadd.f32 %v3005_v30, %v2993_v10  ;;  %v3018_v50 = vpop.f32.mrf.mxu2  ;;  %v13647_v31 = vld [vmem:[#allocation37_spill] sm:$0xff]  ;;  %v13648_v30 = vld [vmem:[#allocation38_spill] sm:$0xff] }
 0x388   :  { %v3031_v34 = vpop.f32.mrf.mxu3 }
 0x38a   :  { %3515 = vmatpush.bf16.msra.mxu1 %v13637_v20  ;;  %3541 = vmatpush.bf16.msra.mxu3 %v13640_v33  ;;  %v3019_v20 = vadd.f32 %v3018_v50, %v13645_v11  ;;  %v2994_v37 = vpop.f32.mrf.mxu0  ;;  %v13653_v50 = vld [vmem:[#allocation43_spill] sm:$0xff] }
 0x38b   :  { %3503 = vmatpush.bf16.msra.mxu0 %v13641_v18  ;;  %3529 = vmatpush.bf16.msra.mxu2 %v13643_v0  ;;  %v13649_v18 = vld [vmem:[#allocation39_spill] sm:$0xff]  ;;  %v13651_v0 = vld [vmem:[#allocation41_spill] sm:$0xff] }
 0x38c   :  { %v10330_v33 = vadd.f32 %v3031_v34, %v3019_v20  ;;  %v13655_v34 = vld [vmem:[#allocation45_spill] sm:$0xff]  ;;  %v13656_v20 = vld [vmem:[#allocation255_spill] sm:$0xff] }
 0x38e   :  { %3516 = vmatpush.bf16.msra.mxu1 %v13642_v28  ;;  %3542 = vmatpush.bf16.msra.mxu3 %v13644_v52  ;;  %v3007_v10 = vpop.f32.mrf.mxu1  ;;  %v13650_v28 = vld [vmem:[#allocation40_spill] sm:$0xff]  ;;  %v13652_v52 = vld [vmem:[#allocation42_spill] sm:$0xff] }
 0x38f   :  { %3504 = vmatpush.bf16.msra.mxu0 %v13646_v15  ;;  %3530 = vmatpush.bf16.msra.mxu2 %v13648_v30  ;;  %v3020_v37 = vpop.f32.mrf.mxu2 }
 0x390   :  { %v3033_v11 = vpop.f32.mrf.mxu3  ;;  %v13661_v37 = vld [vmem:[#allocation50_spill] sm:$0xff] }
 0x391   :  { %v13662_v11 = vld [vmem:[#allocation51_spill] sm:$0xff] }
 0x392   :  { %3517 = vmatpush.bf16.msra.mxu1 %v13647_v31  ;;  %3543 = vmatpush.bf16.msra.mxu3 %v13649_v18  ;;  %v3044_v15 = vpop.f32.mrf.mxu0  ;;  %v13657_v31 = vld [vmem:[#allocation46_spill] sm:$0xff]  ;;  %v13658_v18 = vld [vmem:[#allocation47_spill] sm:$0xff] }
 0x393   :  { %3505 = vmatpush.bf16.msra.mxu0 %v13650_v28  ;;  %3531 = vmatpush.bf16.msra.mxu2 %v13652_v52  ;;  %v3045_v10 = vadd.f32 %v3044_v15, %v13656_v20  ;;  %v13660_v52 = vld [vmem:[#allocation49_spill] sm:$0xff]  ;;  %v13664_v20 = vld [vmem:[#allocation52_spill] sm:$0xff] }
 0x396   :  { %3518 = vmatpush.bf16.msra.mxu1 %v13651_v0  ;;  %3544 = vmatpush.bf16.msra.mxu3 %v13653_v50  ;;  %v3057_v30 = vpop.f32.mrf.mxu1  ;;  %v13659_v0 = vld [vmem:[#allocation48_spill] sm:$0xff]  ;;  %v13663_v50 = vld [vmem:[#allocation254_spill] sm:$0xff] }
 0x397   :  { %3506 = vmatpush.bf16.msra.mxu0 %v13654_v3  ;;  %3532 = vmatpush.bf16.msra.mxu2 %v13657_v31  ;;  %v10343_v28 = vadd.f32 %v3057_v30, %v3045_v10  ;;  %v3070_v3 = vpop.f32.mrf.mxu2  ;;  %v13665_v31 = vld [vmem:[#allocation53_spill] sm:$0xff]  ;;  %v13666_v10 = vld [vmem:[#allocation54_spill] sm:$0xff] }
 0x398   :  { %v3083_v1 = vpop.f32.mrf.mxu3 }
 0x39a   :  { %3519 = vmatpush.bf16.msra.mxu1 %v13655_v34  ;;  %3545 = vmatpush.bf16.msra.mxu3 %v13658_v18  ;;  %v3071_v34 = vadd.f32 %v3070_v3, %v13663_v50  ;;  %v3046_v15 = vpop.f32.mrf.mxu0 }
 0x39b   :  { %3507 = vmatpush.bf16.msra.mxu0 %v13659_v0  ;;  %3533 = vmatpush.bf16.msra.mxu2 %v13661_v37  ;;  %v13667_v0 = vld [vmem:[#allocation55_spill] sm:$0xff]  ;;  %v13669_v37 = vld [vmem:[#allocation57_spill] sm:$0xff] }
 0x39c   :  { %v10352_v18 = vadd.f32 %v3083_v1, %v3071_v34  ;;  %v13670_v1 = vld [vmem:[#allocation58_spill] sm:$0xff]  ;;  %v13671_v34 = vld [vmem:[#allocation59_spill] sm:$0xff] }
 0x39e   :  { %3520 = vmatpush.bf16.msra.mxu1 %v13660_v52  ;;  %3546 = vmatpush.bf16.msra.mxu3 %v13662_v11  ;;  %v3059_v30 = vpop.f32.mrf.mxu1  ;;  %v13668_v52 = vld [vmem:[#allocation56_spill] sm:$0xff] }
 0x39f   :  { %3508 = vmatpush.bf16.msra.mxu0 %v13664_v20  ;;  %3534 = vmatpush.bf16.msra.mxu2 %v13666_v10  ;;  %v3072_v3 = vpop.f32.mrf.mxu2  ;;  %v13672_v30 = vld [vmem:[#allocation60_spill] sm:$0xff]  ;;  %v13674_v10 = vld [vmem:[#allocation62_spill] sm:$0xff]  ;;  %v13676_v20 = vld [vmem:[#allocation257_spill] sm:$0xff] }
 0x3a0   :  { %v3085_v15 = vpop.f32.mrf.mxu3  ;;  %v13677_v11 = vld [vmem:[#allocation64_spill] sm:$0xff] }
 0x3a1   :  { %v13680_v15 = vld [vmem:[#allocation67_spill] sm:$0xff] }
 0x3a2   :  { %3521 = vmatpush.bf16.msra.mxu1 %v13665_v31  ;;  %3547 = vmatpush.bf16.msra.mxu3 %v13667_v0  ;;  %v13673_v0 = vld [vmem:[#allocation61_spill] sm:$0xff]  ;;  %v13675_v31 = vld [vmem:[#allocation63_spill] sm:$0xff] }
 0x3a3   :  { %3559 = vmatpush.bf16.msrb.mxu0 %v13668_v52  ;;  %3535 = vmatmul.bf16.vlgmr.msra.gmra.mxu2 %v10270_v12  ;;  %v3096_v52 = vpop.f32.mrf.mxu0 }
 0x3a4   :  { %3509 = vmatmul.bf16.vlgmr.msra.gmra.mxu0 %v10270_v12  ;;  %3585 = vmatpush.bf16.msrb.mxu2 %v13670_v1  ;;  %v3097_v50 = vadd.f32 %v3096_v52, %v13676_v20  ;;  %v13684_v20 = vld [vmem:[#allocation70_spill] sm:$0xff] }
 0x3a5   :  { %3522 = vmatmul.bf16.vlgmr.msra.gmra.mxu1 %v10270_v12  ;;  %3548 = vmatmul.bf16.vlgmr.msra.gmra.mxu3 %v10270_v12  ;;  %v13678_v12 = vld [vmem:[#allocation65_spill] sm:$0xff] }
 0x3a6   :  { %3572 = vmatpush.bf16.msrb.mxu1 %v13669_v37  ;;  %3598 = vmatpush.bf16.msrb.mxu3 %v13671_v34  ;;  %v3109_v37 = vpop.f32.mrf.mxu1  ;;  %v13679_v34 = vld [vmem:[#allocation66_spill] sm:$0xff] }
 0x3a7   :  { %3560 = vmatpush.bf16.msrb.mxu0 %v13672_v30  ;;  %v10371_v3 = vadd.f32 %v3109_v37, %v3097_v50  ;;  %v13681_v30 = vld [vmem:[#allocation68_spill] sm:$0xff]  ;;  %v3122_v1 = vpop.f32.mrf.mxu2  ;;  %v13687_v37 = vld [vmem:[#allocation73_spill] sm:$0xff] }
 0x3a8   :  { %3586 = vmatpush.bf16.msrb.mxu2 %v13674_v10  ;;  %v3135_v10 = vpop.f32.mrf.mxu3  ;;  %v13686_v50 = vld [vmem:[#allocation72_spill] sm:$0xff] }
 0x3aa   :  { %3573 = vmatpush.bf16.msrb.mxu1 %v13673_v0  ;;  %3599 = vmatpush.bf16.msrb.mxu3 %v13675_v31  ;;  %v13682_v0 = vld [vmem:[#allocation69_spill] sm:$0xff]  ;;  %v3123_v31 = vadd.f32 %v3122_v1, %v13683_v22 }
 0x3ab   :  { %3561 = vmatpush.bf16.msrb.mxu0 %v13677_v11  ;;  %v3098_v32 = vpop.f32.mrf.mxu0  ;;  %v13685_v11 = vld [vmem:[#allocation71_spill] sm:$0xff] }
 0x3ac   :  { %3587 = vmatpush.bf16.msrb.mxu2 %v13679_v34  ;;  %v10382_v34 = vadd.f32 %v3135_v10, %v3123_v31  ;;  %v13696_v31 = vld [vmem:[#allocation82_spill] sm:$0xff]  ;;  %v13697_v10 = vld [vmem:[#allocation83_spill] sm:$0xff] }
 0x3ae   :  { %3574 = vmatpush.bf16.msrb.mxu1 %v13678_v12  ;;  %3600 = vmatpush.bf16.msrb.mxu3 %v13680_v15  ;;  %v3111_v52 = vpop.f32.mrf.mxu1  ;;  %v13688_v15 = vld [vmem:[#allocation74_spill] sm:$0xff]  ;;  %v13691_v12 = vld [vmem:[#allocation77_spill] sm:$0xff] }
 0x3af   :  { %3562 = vmatpush.bf16.msrb.mxu0 %v13681_v30  ;;  %v13689_v30 = vld [vmem:[#allocation75_spill] sm:$0xff]  ;;  %v3124_v32 = vpop.f32.mrf.mxu2  ;;  %v13692_v52 = vld [vmem:[#allocation78_spill] sm:$0xff] }
 0x3b0   :  { %3588 = vmatpush.bf16.msrb.mxu2 %v13684_v20  ;;  %v3137_v1 = vpop.f32.mrf.mxu3  ;;  %v13693_v20 = vld [vmem:[#allocation79_spill] sm:$0xff]  ;;  %v13701_v32 = vld [vmem:[#allocation89_spill] sm:$0xff] }
 0x3b1   :  { %v13702_v1 = vld [vmem:[#allocation86_spill] sm:$0xff] }
 0x3b2   :  { %3575 = vmatpush.bf16.msrb.mxu1 %v13682_v0  ;;  %3601 = vmatpush.bf16.msrb.mxu3 %v13685_v11  ;;  %v13690_v0 = vld [vmem:[#allocation76_spill] sm:$0xff] }
 0x3b3   :  { %3563 = vmatpush.bf16.msrb.mxu0 %v13686_v50  ;;  %v13694_v11 = vld [vmem:[#allocation80_spill] sm:$0xff]  ;;  %v13695_v50 = vld [vmem:[#allocation81_spill] sm:$0xff] }
 0x3b4   :  { %3589 = vmatpush.bf16.msrb.mxu2 %v13688_v15  ;;  %v13698_v15 = vld [vmem:[#allocation84_spill] sm:$0xff] }
 0x3b6   :  { %3576 = vmatpush.bf16.msrb.mxu1 %v13687_v37  ;;  %3602 = vmatpush.bf16.msrb.mxu3 %v13689_v30  ;;  %v13699_v30 = vld [vmem:[#allocation85_spill] sm:$0xff] }
 0x3b7   :  { %3564 = vmatpush.bf16.msrb.mxu0 %v13690_v0  ;;  %v13700_v0 = vld [vmem:[#allocation88_spill] sm:$0xff] }
 0x3b8   :  { %3590 = vmatpush.bf16.msrb.mxu2 %v13692_v52  ;;  %v13703_v52 = vld [vmem:[#allocation87_spill] sm:$0xff] }
 0x3ba   :  { %3577 = vmatpush.bf16.msrb.mxu1 %v13691_v12  ;;  %3603 = vmatpush.bf16.msrb.mxu3 %v13693_v20  ;;  %v13704_v20 = vld [vmem:[#allocation90_spill] sm:$0xff]  ;;  %v13717_v12 = vld [vmem:[#allocation103_spill] sm:$0xff] }
 0x3bb   :  { %3565 = vmatpush.bf16.msrb.mxu0 %v13694_v11  ;;  %v13705_v11 = vld [vmem:[#allocation91_spill] sm:$0xff] }
 0x3bc   :  { %3591 = vmatpush.bf16.msrb.mxu2 %v13696_v31  ;;  %v13707_v31 = vld [vmem:[#allocation93_spill] sm:$0xff] }
 0x3be   :  { %3578 = vmatpush.bf16.msrb.mxu1 %v13695_v50  ;;  %3604 = vmatpush.bf16.msrb.mxu3 %v13697_v10  ;;  %v13706_v50 = vld [vmem:[#allocation92_spill] sm:$0xff]  ;;  %v13708_v10 = vld [vmem:[#allocation94_spill] sm:$0xff] }
 0x3bf   :  { %3566 = vmatpush.bf16.msrb.mxu0 %v13698_v15  ;;  %v13709_v15 = vld [vmem:[#allocation95_spill] sm:$0xff] }
 0x3c0   :  { %3592 = vmatpush.bf16.msrb.mxu2 %v13702_v1  ;;  %v13711_v1 = vld [vmem:[#allocation97_spill] sm:$0xff] }
 0x3c2   :  { %3579 = vmatpush.bf16.msrb.mxu1 %v13699_v30  ;;  %3605 = vmatpush.bf16.msrb.mxu3 %v13703_v52  ;;  %v10406_v30 = vpop.f32.mrf.mxu0  ;;  %v13712_v52 = vld [vmem:[#allocation98_spill] sm:$0xff] }
 0x3c3   :  { %3611 = vmatpush.bf16.msra.mxu0 %v13700_v0  ;;  %v10408_v0 = vpop.f32.mrf.mxu1 }
 0x3c4   :  { %3637 = vmatpush.bf16.msra.mxu2 %v13704_v20  ;;  %v13713_v20 = vld [vmem:[#allocation99_spill] sm:$0xff] }
 0x3c6   :  { %3624 = vmatpush.bf16.msra.mxu1 %v13701_v32  ;;  %3650 = vmatpush.bf16.msra.mxu3 %v13705_v11  ;;  %v13710_v32 = vld [vmem:[#allocation96_spill] sm:$0xff] }
 0x3c7   :  { %3612 = vmatpush.bf16.msra.mxu0 %v13706_v50  ;;  %v13714_v11 = vld [vmem:[#allocation100_spill] sm:$0xff]  ;;  %v13715_v50 = vld [vmem:[#allocation101_spill] sm:$0xff] }
 0x3c8   :  { %3638 = vmatpush.bf16.msra.mxu2 %v13708_v10  ;;  %v10416_v10 = vpop.f32.mrf.mxu3 }
 0x3ca   :  { %3625 = vmatpush.bf16.msra.mxu1 %v13707_v31  ;;  %3651 = vmatpush.bf16.msra.mxu3 %v13709_v15  ;;  %v3174_v31 = vpop.f32.mrf.mxu2  ;;  %v13716_v15 = vld [vmem:[#allocation102_spill] sm:$0xff]  ;;  %v3150_v37 = vpop.f32.mrf.mxu0 }
 0x3cb   :  { %3613 = vmatpush.bf16.msra.mxu0 %v13710_v32  ;;  %v3163_v22 = vpop.f32.mrf.mxu1  ;;  %v13718_v32 = vld [vmem:[#allocation104_spill] sm:$0xff] }
 0x3cc   :  { %3639 = vmatpush.bf16.msra.mxu2 %v13712_v52  ;;  %v13720_v52 = vld [vmem:[#allocation106_spill] sm:$0xff]  ;;  %v13726_v37 = vld [vmem:[#allocation112_spill] sm:$0xff]  ;;  %v13727_v22 = vld [vmem:[#allocation113_spill] sm:$0xff] }
 0x3ce   :  { %3626 = vmatpush.bf16.msra.mxu1 %v13711_v1  ;;  %3652 = vmatpush.bf16.msra.mxu3 %v13713_v20  ;;  %v13719_v1 = vld [vmem:[#allocation105_spill] sm:$0xff]  ;;  %v13721_v20 = vld [vmem:[#allocation107_spill] sm:$0xff] }
 0x3cf   :  { %3614 = vmatpush.bf16.msra.mxu0 %v13714_v11  ;;  %v13722_v11 = vld [vmem:[#allocation108_spill] sm:$0xff] }
 0x3d0   :  { %3640 = vmatpush.bf16.msra.mxu2 %v13716_v15  ;;  %v3189_v25 = vpop.f32.mrf.mxu3  ;;  %v13725_v15 = vld [vmem:[#allocation111_spill] sm:$0xff] }
 0x3d2   :  { %3627 = vmatpush.bf16.msra.mxu1 %v13715_v50  ;;  %3653 = vmatpush.bf16.msra.mxu3 %v13717_v12  ;;  %v13723_v50 = vld [vmem:[#allocation109_spill] sm:$0xff]  ;;  %v3176_v13 = vpop.f32.mrf.mxu2 }
 0x3d3   :  { %3615 = vmatpush.bf16.msra.mxu0 %v13718_v32  ;;  %v13728_v32 = vld [vmem:[#allocation114_spill] sm:$0xff]  ;;  %v13733_v13 = vld [vmem:[#allocation119_spill] sm:$0xff] }
 0x3d4   :  { %3641 = vmatpush.bf16.msra.mxu2 %v13720_v52  ;;  %v13730_v52 = vld [vmem:[#allocation116_spill] sm:$0xff] }
 0x3d6   :  { %3628 = vmatpush.bf16.msra.mxu1 %v13719_v1  ;;  %3654 = vmatpush.bf16.msra.mxu3 %v13721_v20  ;;  %v13729_v1 = vld [vmem:[#allocation115_spill] sm:$0xff]  ;;  %v13731_v20 = vld [vmem:[#allocation117_spill] sm:$0xff] }
 0x3d7   :  { %3616 = vmatpush.bf16.msra.mxu0 %v13722_v11  ;;  %v13732_v11 = vld [vmem:[#allocation118_spill] sm:$0xff] }
 0x3d8   :  { %3642 = vmatpush.bf16.msra.mxu2 %v13724_v39 }
 0x3da   :  { %3629 = vmatpush.bf16.msra.mxu1 %v13723_v50  ;;  %3655 = vmatpush.bf16.msra.mxu3 %v13725_v15 }
 0x3db   :  { %3617 = vmatpush.bf16.msra.mxu0 %v13726_v37 }
 0x3dc   :  { %3643 = vmatpush.bf16.msra.mxu2 %v13728_v32 }
 0x3de   :  { %3630 = vmatpush.bf16.msra.mxu1 %v13727_v22  ;;  %3656 = vmatpush.bf16.msra.mxu3 %v13729_v1 }
 0x3df   :  { %3618 = vmatpush.bf16.msra.mxu0 %v13730_v52 }
 0x3e0   :  { %3644 = vmatpush.bf16.msra.mxu2 %v13732_v11 }
 0x3e1   :  { %v3264_v25 = vpop.f32.mrf.mxu0 }
 0x3e2   :  { %3631 = vmatpush.bf16.msra.mxu1 %v13731_v20  ;;  %3657 = vmatpush.bf16.msra.mxu3 %v13733_v13  ;;  %v3277_v39 = vpop.f32.mrf.mxu1  ;;  %v3359_v15 = vadd.f32 %v3264_v25, %v10321_v38 }
 0x3e3   :  { %v3360_v37 = vadd.f32 %v3277_v39, %v10330_v33 }
 0x3e4   :  { %v7610_v50 = vmul.f32 -1.442695, %v3359_v15 }
 0x3e5   :  { %v7611_v22 = vmul.f32 -1.442695, %v3360_v37 }
 0x3e6   :  { %8126 = vpow2.f32 %v7610_v50 }
 0x3e7   :  { %8128 = vpow2.f32 %v7611_v22  ;;  %v3290_v32 = vpop.f32.mrf.mxu2 }
 0x3e8   :  { %v3303_v1 = vpop.f32.mrf.mxu3  ;;  %v3361_v52 = vadd.f32 %v3290_v32, %v10343_v28 }
 0x3e9   :  { %v3362_v20 = vadd.f32 %v3303_v1, %v10352_v18  ;;  %v3266_v12 = vpop.f32.mrf.mxu0 }
 0x3ea   :  { %v3279_v11 = vpop.f32.mrf.mxu1  ;;  %v7612_v29 = vmul.f32 -1.442695, %v3361_v52  ;;  %v13735_v52 = vld [vmem:[#allocation259_spill] sm:$0xff] }
 0x3eb   :  { %v7613_v13 = vmul.f32 -1.442695, %v3362_v20  ;;  %v3175_v32 = vadd.f32 %v3174_v31, %v13735_v52 }
 0x3ec   :  { %v8127_v36 = vpop.eup %8126  ;;  %8130 = vpow2.f32 %v7612_v29 }
 0x3ed   :  { %v8129_v63 = vpop.eup %8128  ;;  %v3373_v53 = vadd.f32 1.0, %v8127_v36  ;;  %8132 = vpow2.f32 %v7613_v13 }
 0x3ee   :  { %v10440_v38 = vadd.f32 1.0, %v8129_v63  ;;  %v13734_v63 = vld [vmem:[#allocation258_spill] sm:$0xff] }
 0x3ef   :  { %8134 = vrcp.f32 %v3373_v53  ;;  %v3292_v39 = vpop.f32.mrf.mxu2  ;;  %v3149_v12 = vadd.f32 %v10406_v30, %v13734_v63  ;;  %v3384_v22 = vand.u32 2147483647, %v3373_v53  ;;  %vm3380_vm12 = vweird.f32 %v3373_v53 }
 0x3f0   :  { %8136 = vrcp.f32 %v10440_v38  ;;  %v3305_v33 = vpop.f32.mrf.mxu3  ;;  %v3188_v39 = vadd.f32 %v10416_v10, %v3175_v32  ;;  %vm3395_vm13 = vweird.f32 %v10440_v38 }
 0x3f1   :  { %v3162_v25 = vadd.f32 %v10408_v0, %v3149_v12  ;;  %v3386_v33 = vand.u32 2147483648, %v3373_v53  ;;  %vm10466_vm15 = vcmp.eq.f32.partialorder %v3384_v22, 8.507059e+37 }
 0x3f2   :  { %v8131_v15 = vpop.eup %8130 }
 0x3f3   :  { %v8133_v28 = vpop.eup %8132  ;;  %v3411_v50 = vadd.f32 1.0, %v8131_v15 }
 0x3f4   :  { %v10445_v11 = vadd.f32 1.0, %v8133_v28 }
 0x3f5   :  { %v10443_v18 = vpop.eup %8134  ;;  %8138 = vrcp.f32 %v3411_v50  ;;  %v3424_v30 = vand.u32 2147483648, %v3411_v50  ;;  %vm3418_vm6 = vweird.f32 %v3411_v50 }
 0x3f6   :  { %v10447_v20 = vpop.eup %8136  ;;  %v3376_v36 = vmul.f32 %v10443_v18, %v3373_v53  ;;  %8140 = vrcp.f32 %v10445_v11  ;;  %v3439_v10 = vand.u32 2147483648, %v10445_v11  ;;  %vm3381_vm14 = vweird.f32 %v10443_v18 }
 0x3f7   :  { %v3391_v29 = vmul.f32 %v10447_v20, %v10440_v38  ;;  %vm3396_vm0 = vweird.f32 %v10447_v20  ;;  %vm10476_vm3 = vmor %vm3380_vm12, %vm3381_vm14  ;;  %vm3433_vm9 = vweird.f32 %v10445_v11 }
 0x3f8   :  { %v3377_v1 = vsub.f32 1.0, %v3376_v36  ;;  %v3399_v36 = vand.u32 2147483647, %v10440_v38  ;;  %vm10483_vm7 = vmor %vm3395_vm13, %vm3396_vm0  ;;  %v3440_v53 = vor.u32 1.1754944e-38, %v3439_v10 }
 0x3f9   :  { %v3392_v37 = vsub.f32 1.0, %v3391_v29  ;;  %v3401_v29 = vand.u32 2147483648, %v10440_v38 }
 0x3fa   :  { %v3378_v46 = vmul.f32 %v10443_v18, %v3377_v1  ;;  %v3422_v1 = vand.u32 2147483647, %v3411_v50  ;;  %vm3400_vm13 = vcmp.eq.f32.partialorder %v3399_v36, 8.507059e+37 }
 0x3fb   :  { %v8139_v13 = vpop.eup %8138  ;;  %v3393_v7 = vmul.f32 %v10447_v20, %v3392_v37 }
 0x3fc   :  { %v8141_v15 = vpop.eup %8140  ;;  %v3414_v28 = vmul.f32 %v8139_v13, %v3411_v50  ;;  %vm3419_vm1 = vweird.f32 %v8139_v13  ;;  %vm3423_vm11 = vcmp.eq.f32.partialorder %v3422_v1, 8.507059e+37 }
 0x3fd   :  { %v3429_v31 = vmul.f32 %v8141_v15, %v10445_v11  ;;  %v3394_v6 = vadd.f32 %v10447_v20, %v3393_v7  ;;  %vm3434_vm2 = vweird.f32 %v8141_v15  ;;  %vm3420_vm8 = vmor %vm3418_vm6, %vm3419_vm1 }
 0x3fe   :  { %v3415_v0 = vsub.f32 1.0, %v3414_v28  ;;  %v3379_v28 = vadd.f32 %v10443_v18, %v3378_v46  ;;  %v3425_v46 = vor.u32 1.1754944e-38, %v3424_v30  ;;  %vm3435_vm10 = vmor %vm3433_vm9, %vm3434_vm2 }
 0x3ff   :  { %v3430_v52 = vsub.f32 1.0, %v3429_v31 }
 0x400   :  { %v3416_v4 = vmul.f32 %v8139_v13, %v3415_v0  ;;  %v3383_v50 = vsel %vm10476_vm3, %v10443_v18, %v3379_v28 }
 0x401   :  { %v3316_v12 = vpop.f32.mrf.mxu0  ;;  %v3431_v42 = vmul.f32 %v8141_v15, %v3430_v52  ;;  %v3402_v52 = vor.u32 1.1754944e-38, %v3401_v29 }
 0x402   :  { %v3329_v37 = vpop.f32.mrf.mxu1  ;;  %v3363_v63 = vadd.f32 %v3316_v12, %v10371_v3  ;;  %v3437_v3 = vand.u32 2147483647, %v10445_v11  ;;  %v3417_v31 = vadd.f32 %v8139_v13, %v3416_v4  ;;  %v3398_v4 = vsel %vm10483_vm7, %v10447_v20, %v3394_v6 }
 0x403   :  { %v3364_v16 = vadd.f32 %v3329_v37, %v10382_v34  ;;  %v3387_v34 = vor.u32 1.1754944e-38, %v3386_v33  ;;  %v3432_v7 = vadd.f32 %v8141_v15, %v3431_v42 }
 0x404   :  { %8142 = vtanh.f32 %v3363_v63  ;;  %v3421_v63 = vsel %vm3420_vm8, %v8139_v13, %v3417_v31  ;;  %vm3438_vm12 = vcmp.eq.f32.partialorder %v3437_v3, 8.507059e+37  ;;  %v3403_v13 = vsel %vm3400_vm13, %v3402_v52, %v3398_v4 }
 0x405   :  { %8144 = vtanh.f32 %v3364_v16  ;;  %v3426_v38 = vsel %vm3423_vm11, %v3425_v46, %v3421_v63  ;;  %v3436_v16 = vsel %vm3435_vm10, %v8141_v15, %v3432_v7  ;;  %v3388_v18 = vsel %vm10466_vm15, %v3387_v34, %v3383_v50 }
 0x406   :  { %v3441_v11 = vsel %vm3438_vm12, %v3440_v53, %v3436_v16  ;;  %v3483_v6 = vmul.f32 %v3426_v38, %v10076_v14 }
 0x407   :  { %v3342_v33 = vpop.f32.mrf.mxu2  ;;  %v3484_v28 = vmul.f32 %v3441_v11, %v10078_v59 }
 0x408   :  { %v3355_v30 = vpop.f32.mrf.mxu3  ;;  %v3365_v42 = vadd.f32 %v3342_v33, %v3162_v25 }
 0x409   :  { %v3366_v10 = vadd.f32 %v3355_v30, %v3188_v39  ;;  %v3318_v12 = vpop.f32.mrf.mxu0 }
 0x40a   :  { %v3331_v37 = vpop.f32.mrf.mxu1  ;;  %v8143_v22 = vpop.eup %8142  ;;  %v7614_v29 = vmul.f32 -1.442695, %v3365_v42 }
 0x40b   :  { %v8145_v1 = vpop.eup %8144  ;;  %v3485_v20 = vmul.f32 %v8143_v22, %v3388_v18  ;;  %v7615_v15 = vmul.f32 -1.442695, %v3366_v10 }
 0x40c   :  { %v3486_v3 = vmul.f32 %v8145_v1, %v3403_v13  ;;  %8146 = vpow2.f32 %v7614_v29 }
 0x40d   :  { %v10498_v36 = vadd.f32 %v3485_v20, %v3483_v6  ;;  %8148 = vpow2.f32 %v7615_v15 }
 0x40e   :  { %v10500_v25 = vadd.f32 %v3486_v3, %v3484_v28 }
 0x40f   :  { %v3344_v39 = vpop.f32.mrf.mxu2 }
 0x410   :  { %v3357_v31 = vpop.f32.mrf.mxu3 }
 0x412   :  { %v8147_v32 = vpop.eup %8146 }
 0x413   :  { %v8149_v34 = vpop.eup %8148  ;;  %v3451_v0 = vadd.f32 1.0, %v8147_v32 }
 0x414   :  { %v3452_v46 = vadd.f32 1.0, %v8149_v34 }
 0x415   :  { %8150 = vrcp.f32 %v3451_v0  ;;  %v3464_v38 = vand.u32 2147483648, %v3451_v0  ;;  %v3462_v33 = vand.u32 2147483647, %v3451_v0  ;;  %vm3458_vm0 = vweird.f32 %v3451_v0 }
 0x416   :  { %8152 = vrcp.f32 %v3452_v46  ;;  %v3479_v30 = vand.u32 2147483648, %v3452_v46  ;;  %v3477_v42 = vand.u32 2147483647, %v3452_v46  ;;  %vm3473_vm2 = vweird.f32 %v3452_v46 }
 0x417   :  { %8154 = vtanh.f32 %v10498_v36  ;;  %v3465_v12 = vor.u32 1.1754944e-38, %v3464_v38  ;;  %vm3463_vm3 = vcmp.eq.f32.partialorder %v3462_v33, 8.507059e+37  ;;  %v13742_v38 = vld [vmem:[#allocation139_spill] sm:$0xff]  ;;  %v13744_v33 = vld [vmem:[#allocation141_spill] sm:$0xff] }
 0x418   :  { %8156 = vtanh.f32 %v10500_v25  ;;  %v3480_v13 = vor.u32 1.1754944e-38, %v3479_v30  ;;  %vm3478_vm7 = vcmp.eq.f32.partialorder %v3477_v42, 8.507059e+37  ;;  %v13747_v42 = vld [vmem:[#allocation144_spill] sm:$0xff] }
 0x41b   :  { %v8151_v14 = vpop.eup %8150 }
 0x41c   :  { %v8153_v53 = vpop.eup %8152  ;;  %v3454_v7 = vmul.f32 %v8151_v14, %v3451_v0  ;;  %vm3459_vm14 = vweird.f32 %v8151_v14 }
 0x41d   :  { %v3469_v50 = vmul.f32 %v8153_v53, %v3452_v46  ;;  %vm3474_vm15 = vweird.f32 %v8153_v53  ;;  %vm3460_vm1 = vmor %vm3458_vm0, %vm3459_vm14  ;;  %v8155_v22 = vpop.eup %8154 }
 0x41e   :  { %v3455_v4 = vsub.f32 1.0, %v3454_v7  ;;  %vm3475_vm6 = vmor %vm3473_vm2, %vm3474_vm15  ;;  %v8157_v20 = vpop.eup %8156 }
 0x41f   :  { %v3470_v52 = vsub.f32 1.0, %v3469_v50 }
 0x420   :  { %v3456_v16 = vmul.f32 %v8151_v14, %v3455_v4 }
 0x421   :  { %v10502_v59 = vpop.f32.mrf.mxu0  ;;  %v3471_v11 = vmul.f32 %v8153_v53, %v3470_v52 }
 0x422   :  { %v10504_v63 = vpop.f32.mrf.mxu1  ;;  %v3457_v10 = vadd.f32 %v8151_v14, %v3456_v16  ;;  %v3553_v50 = vadd.f32 %v10502_v59, %v13529_v8  ;;  %v13743_v16 = vld [vmem:[#allocation140_spill] sm:$0xff]  ;;  %v13746_v59 = vld [vmem:[#allocation143_spill] sm:$0xff] }
 0x423   :  { %v3472_v37 = vadd.f32 %v8153_v53, %v3471_v11  ;;  %v3554_v4 = vadd.f32 %v10504_v63, %v13532_v19  ;;  %v13745_v11 = vld [vmem:[#allocation142_spill] sm:$0xff] }
 0x424   :  { %v3461_v18 = vsel %vm3460_vm1, %v8151_v14, %v3457_v10  ;;  %v7616_v52 = vmul.f32 -1.442695, %v3553_v50  ;;  %v13748_v10 = vld [vmem:[#allocation145_spill] sm:$0xff]  ;;  %v13749_v63 = vld [vmem:[#allocation146_spill] sm:$0xff]  ;;  %v13763_v50 = vld [vmem:[#allocation203_spill] sm:$0xff] }
 0x425   :  { %v3466_v29 = vsel %vm3463_vm3, %v3465_v12, %v3461_v18  ;;  %v3476_v15 = vsel %vm3475_vm6, %v8153_v53, %v3472_v37  ;;  %v7617_v30 = vmul.f32 -1.442695, %v3554_v4  ;;  %v13750_v12 = vld [vmem:[#allocation147_spill] sm:$0xff]  ;;  %v13751_v37 = vld [vmem:[#allocation148_spill] sm:$0xff]  ;;  %v13753_v18 = vld [vmem:[#allocation150_spill] sm:$0xff] }
 0x426   :  { %v10508_v1 = vpop.f32.mrf.mxu2  ;;  %v3491_v39 = vmul.f32 %v8155_v22, %v3466_v29  ;;  %v3481_v31 = vsel %vm3478_vm7, %v3480_v13, %v3476_v15  ;;  %8158 = vpow2.f32 %v7616_v52  ;;  %v13752_v22 = vld [vmem:[#allocation149_spill] sm:$0xff]  ;;  %v13754_v13 = vld [vmem:[#allocation151_spill] sm:$0xff]  ;;  %v13755_v29 = vld [vmem:[#allocation152_spill] sm:$0xff] }
 0x427   :  { %v3492_v32 = vmul.f32 %v8157_v20, %v3481_v31  ;;  %8160 = vpow2.f32 %v7617_v30  ;;  %v13756_v15 = vld [vmem:[#allocation153_spill] sm:$0xff]  ;;  %v13764_v52 = vld [vmem:[#allocation160_spill] sm:$0xff] }
 0x428   :  { %v10510_v6 = vpop.f32.mrf.mxu3  ;;  %v10512_v34 = vpack.c.bf16 %v3491_v39, %v3491_v39  ;;  %v13765_v30 = vld [vmem:[#allocation161_spill] sm:$0xff] }
 0x429   :  { %v3512_v28 = vpop.f32.mrf.mxu0  ;;  %v3495_v0 = vrot.slane %v3492_v32, 7  ;;  %v10514_v46 = vpack.c.bf16 %v3492_v32, %v3492_v32  ;;  %v3556_v4 = vadd.f32 %v10510_v6, %v13763_v50  ;;  %v13770_v6 = vld [vmem:[#allocation166_spill] sm:$0xff]  ;;  %v13771_v50 = vld [vmem:[#allocation167_spill] sm:$0xff] }
 0x42a   :  { %v3525_v3 = vpop.f32.mrf.mxu1  ;;  %3567 = vmatmul.bf16.vlgmr.msrb.gmra.mxu0 %v10512_v34  ;;  %3593 = vmatmul.bf16.vlgmr.msrb.gmra.mxu2 %v10512_v34 }
 0x42b   :  { %v3496_v14 = vsel %vm2340_vm4, %v3491_v39, %v3495_v0  ;;  %3580 = vmatmul.bf16.vlgmr.msrb.gmra.mxu1 %v10514_v46  ;;  %3606 = vmatmul.bf16.vlgmr.msrb.gmra.mxu3 %v10514_v46  ;;  %v13757_v3 = vld [vmem:[#allocation154_spill] sm:$0xff]  ;;  %v13758_v39 = vld [vmem:[#allocation155_spill] sm:$0xff]  ;;  %v13759_v0 = vld [vmem:[#allocation156_spill] sm:$0xff] }
 0x42c   :  { %3499 = vst.msk [vmem:[#allocation2 + $0x2] ss:$8 sm:$0x3] %vm9714_vm5, %v3496_v14  ;;  %3663 = vmatpush.bf16.msrb.mxu0 %v13317_v57  ;;  %3676 = vmatpush.bf16.msrb.mxu1 %v13319_v48  ;;  %v8159_v20 = vpop.eup %8158  ;;  %v13760_v14 = vld [vmem:[#allocation157_spill] sm:$0xff] }
 0x42d   :  { %3689 = vmatpush.bf16.msrb.mxu2 %v13523_v44  ;;  %3702 = vmatpush.bf16.msrb.mxu3 %v13320_v61  ;;  %v8161_v28 = vpop.eup %8160  ;;  %v10569_v31 = vadd.f32 1.0, %v8159_v20  ;;  %v13766_v20 = vld [vmem:[#allocation162_spill] sm:$0xff] }
 0x42e   :  { %v3538_v53 = vpop.f32.mrf.mxu2  ;;  %v10573_v32 = vadd.f32 1.0, %v8161_v28  ;;  %v13767_v28 = vld [vmem:[#allocation163_spill] sm:$0xff] }
 0x42f   :  { %v13761_v53 = vld [vmem:[#allocation158_spill] sm:$0xff]  ;;  %8162 = vrcp.f32 %v10569_v31  ;;  %vm3776_vm10 = vweird.f32 %v10569_v31 }
 0x430   :  { %v3551_v7 = vpop.f32.mrf.mxu3  ;;  %3664 = vmatpush.bf16.msrb.mxu0 %v13524_v35  ;;  %3677 = vmatpush.bf16.msrb.mxu1 %v13323_v45  ;;  %8164 = vrcp.f32 %v10573_v32  ;;  %vm3795_vm11 = vweird.f32 %v10573_v32 }
 0x431   :  { %3690 = vmatpush.bf16.msrb.mxu2 %v13525_v43  ;;  %3703 = vmatpush.bf16.msrb.mxu3 %v13324_v24  ;;  %v13762_v7 = vld [vmem:[#allocation159_spill] sm:$0xff] }
 0x434   :  { %3665 = vmatpush.bf16.msrb.mxu0 %v13325_v27  ;;  %3678 = vmatpush.bf16.msrb.mxu1 %v13328_v40 }
 0x435   :  { %3691 = vmatpush.bf16.msrb.mxu2 %v13326_v5  ;;  %3704 = vmatpush.bf16.msrb.mxu3 %v13329_v21 }
 0x438   :  { %3666 = vmatpush.bf16.msrb.mxu0 %v13330_v49  ;;  %3679 = vmatpush.bf16.msrb.mxu1 %v13526_v60 }
 0x439   :  { %3692 = vmatpush.bf16.msrb.mxu2 %v13527_v17  ;;  %3705 = vmatpush.bf16.msrb.mxu3 %v13528_v41 }
 0x43a   :  { %3619 = vmatmul.bf16.vlgmr.msra.gmra.mxu0 %v10512_v34  ;;  %3645 = vmatmul.bf16.vlgmr.msra.gmra.mxu2 %v10512_v34 }
 0x43b   :  { %3632 = vmatmul.bf16.vlgmr.msra.gmra.mxu1 %v10514_v46  ;;  %3658 = vmatmul.bf16.vlgmr.msra.gmra.mxu3 %v10514_v46 }
 0x43c   :  { %3667 = vmatpush.bf16.msrb.mxu0 %v13530_v58  ;;  %3680 = vmatpush.bf16.msrb.mxu1 %v13531_v26 }
 0x43d   :  { %3693 = vmatpush.bf16.msrb.mxu2 %v13533_v56  ;;  %3706 = vmatpush.bf16.msrb.mxu3 %v13742_v38 }
 0x440   :  { %3668 = vmatpush.bf16.msrb.mxu0 %v13743_v16  ;;  %3681 = vmatpush.bf16.msrb.mxu1 %v13744_v33 }
 0x441   :  { %3694 = vmatpush.bf16.msrb.mxu2 %v13745_v11  ;;  %3707 = vmatpush.bf16.msrb.mxu3 %v13746_v59 }
 0x444   :  { %3669 = vmatpush.bf16.msrb.mxu0 %v13747_v42  ;;  %3682 = vmatpush.bf16.msrb.mxu1 %v13748_v10 }
 0x445   :  { %3695 = vmatpush.bf16.msrb.mxu2 %v13749_v63  ;;  %3708 = vmatpush.bf16.msrb.mxu3 %v13750_v12 }
 0x448   :  { %3670 = vmatpush.bf16.msrb.mxu0 %v13751_v37  ;;  %3683 = vmatpush.bf16.msrb.mxu1 %v13752_v22 }
 0x449   :  { %3696 = vmatpush.bf16.msrb.mxu2 %v13753_v18  ;;  %3709 = vmatpush.bf16.msrb.mxu3 %v13754_v13  ;;  %v13781_v13 = vld [vmem:[#allocation178_spill] sm:$0xff] }
 0x44b   :  { %3671 = vmatmul.bf16.vlgmr.msrb.gmra.mxu0 %v10512_v34  ;;  %3684 = vmatmul.bf16.vlgmr.msrb.gmra.mxu1 %v10514_v46 }
 0x44c   :  { %3715 = vmatpush.bf16.msra.mxu0 %v13755_v29  ;;  %3728 = vmatpush.bf16.msra.mxu1 %v13756_v15  ;;  %v13779_v15 = vld [vmem:[#allocation176_spill] sm:$0xff]  ;;  %v13780_v29 = vld [vmem:[#allocation177_spill] sm:$0xff] }
 0x44d   :  { %3741 = vmatpush.bf16.msra.mxu2 %v13757_v3  ;;  %3754 = vmatpush.bf16.msra.mxu3 %v13758_v39 }
 0x44e   :  { %3697 = vmatmul.bf16.vlgmr.msrb.gmra.mxu2 %v10512_v34  ;;  %3710 = vmatmul.bf16.vlgmr.msrb.gmra.mxu3 %v10514_v46 }
 0x450   :  { %3716 = vmatpush.bf16.msra.mxu0 %v13759_v0  ;;  %3729 = vmatpush.bf16.msra.mxu1 %v13760_v14  ;;  %v7618_v14 = vmul.f32 -1.442695, %v3556_v4  ;;  %v13768_v0 = vld [vmem:[#allocation164_spill] sm:$0xff] }
 0x451   :  { %3742 = vmatpush.bf16.msra.mxu2 %v13761_v53  ;;  %3755 = vmatpush.bf16.msra.mxu3 %v13762_v7  ;;  %v13769_v53 = vld [vmem:[#allocation165_spill] sm:$0xff]  ;;  %v10589_v7 = vpop.eup %8162 }
 0x452   :  { %v10593_v39 = vpop.eup %8164  ;;  %8166 = vpow2.f32 %v7618_v14  ;;  %v3772_v4 = vmul.f32 %v10589_v7, %v10569_v31  ;;  %vm3777_vm8 = vweird.f32 %v10589_v7 }
 0x453   :  { %vm3796_vm9 = vweird.f32 %v10593_v39  ;;  %vm10632_vm12 = vmor %vm3776_vm10, %vm3777_vm8 }
 0x454   :  { %3717 = vmatpush.bf16.msra.mxu0 %v13764_v52  ;;  %3730 = vmatpush.bf16.msra.mxu1 %v13765_v30  ;;  %v13772_v52 = vld [vmem:[#allocation168_spill] sm:$0xff]  ;;  %v13773_v30 = vld [vmem:[#allocation169_spill] sm:$0xff]  ;;  %v3773_v14 = vsub.f32 1.0, %v3772_v4  ;;  %vm10642_vm13 = vmor %vm3795_vm11, %vm3796_vm9 }
 0x455   :  { %3743 = vmatpush.bf16.msra.mxu2 %v13766_v20  ;;  %3756 = vmatpush.bf16.msra.mxu3 %v13767_v28  ;;  %v13775_v28 = vld [vmem:[#allocation171_spill] sm:$0xff]  ;;  %v13776_v20 = vld [vmem:[#allocation172_spill] sm:$0xff] }
 0x458   :  { %3718 = vmatpush.bf16.msra.mxu0 %v13768_v0  ;;  %3731 = vmatpush.bf16.msra.mxu1 %v13769_v53  ;;  %v3791_v0 = vmul.f32 %v10593_v39, %v10573_v32  ;;  %v13774_v53 = vld [vmem:[#allocation170_spill] sm:$0xff] }
 0x459   :  { %3744 = vmatpush.bf16.msra.mxu2 %v13770_v6  ;;  %3757 = vmatpush.bf16.msra.mxu3 %v13771_v50  ;;  %v8167_v6 = vpop.eup %8166 }
 0x45a   :  { %v3792_v50 = vsub.f32 1.0, %v3791_v0  ;;  %v10607_v3 = vadd.f32 1.0, %v8167_v6  ;;  %v13783_v0 = vld [vmem:[#allocation215_spill] sm:$0xff]  ;;  %v13784_v6 = vld [vmem:[#allocation180_spill] sm:$0xff] }
 0x45b   :  { %v3555_v4 = vadd.f32 %v10508_v1, %v13783_v0  ;;  %v3782_v1 = vand.u32 2147483648, %v10569_v31  ;;  %v13788_v0 = vld [vmem:[#allocation184_spill] sm:$0xff] }
 0x45c   :  { %3719 = vmatpush.bf16.msra.mxu0 %v13772_v52  ;;  %3732 = vmatpush.bf16.msra.mxu1 %v13773_v30  ;;  %v13777_v52 = vld [vmem:[#allocation174_spill] sm:$0xff]  ;;  %v13778_v30 = vld [vmem:[#allocation175_spill] sm:$0xff]  ;;  %8168 = vrcp.f32 %v10607_v3  ;;  %vm3815_vm1 = vweird.f32 %v10607_v3 }
 0x45d   :  { %3745 = vmatpush.bf16.msra.mxu2 %v13774_v53  ;;  %3758 = vmatpush.bf16.msra.mxu3 %v13775_v28  ;;  %v3793_v53 = vmul.f32 %v10593_v39, %v3792_v50  ;;  %v3774_v28 = vmul.f32 %v10589_v7, %v3773_v14  ;;  %8170 = vtanh.f32 %v3555_v4  ;;  %v13796_v4 = vld [vmem:[#allocation188_spill] sm:$0xff] }
 0x45f   :  { %v3775_v50 = vadd.f32 %v10589_v7, %v3774_v28  ;;  %v3794_v14 = vadd.f32 %v10593_v39, %v3793_v53  ;;  %v3780_v53 = vand.u32 2147483647, %v10569_v31  ;;  %v13798_v28 = vld [vmem:[#allocation191_spill] sm:$0xff] }
 0x460   :  { %3720 = vmatpush.bf16.msra.mxu0 %v13776_v20  ;;  %3733 = vmatpush.bf16.msra.mxu1 %v13569_v54  ;;  %v13782_v20 = vld [vmem:[#allocation179_spill] sm:$0xff] }
 0x461   :  { %3746 = vmatpush.bf16.msra.mxu2 %v13777_v52  ;;  %3759 = vmatpush.bf16.msra.mxu3 %v13778_v30  ;;  %v3779_v31 = vsel %vm10632_vm12, %v10589_v7, %v3775_v50  ;;  %vm3781_vm14 = vcmp.eq.f32.partialorder %v3780_v53, 8.507059e+37  ;;  %v13797_v30 = vld [vmem:[#allocation190_spill] sm:$0xff] }
 0x464   :  { %3721 = vmatpush.bf16.msra.mxu0 %v13779_v15  ;;  %3734 = vmatpush.bf16.msra.mxu1 %v13780_v29  ;;  %v13785_v15 = vld [vmem:[#allocation181_spill] sm:$0xff]  ;;  %v3801_v29 = vand.u32 2147483648, %v10573_v32 }
 0x465   :  { %3747 = vmatpush.bf16.msra.mxu2 %v13781_v13  ;;  %3760 = vmatpush.bf16.msra.mxu3 %v13782_v20  ;;  %v13786_v13 = vld [vmem:[#allocation182_spill] sm:$0xff]  ;;  %v13787_v20 = vld [vmem:[#allocation183_spill] sm:$0xff] }
 0x468   :  { %3722 = vmatpush.bf16.msra.mxu0 %v13784_v6  ;;  %3735 = vmatpush.bf16.msra.mxu1 %v13785_v15  ;;  %v13789_v6 = vld [vmem:[#allocation185_spill] sm:$0xff]  ;;  %v13793_v15 = vld [vmem:[#allocation187_spill] sm:$0xff] }
 0x469   :  { %3748 = vmatpush.bf16.msra.mxu2 %v13786_v13  ;;  %3761 = vmatpush.bf16.msra.mxu3 %v13787_v20  ;;  %v3799_v20 = vand.u32 2147483647, %v10573_v32  ;;  %v13792_v13 = vld [vmem:[#allocation186_spill] sm:$0xff]  ;;  %v3798_v32 = vsel %vm10642_vm13, %v10593_v39, %v3794_v14  ;;  %v13800_v14 = vld [vmem:[#allocation199_spill] sm:$0xff] }
 0x46b   :  { %3723 = vmatmul.bf16.vlgmr.msra.gmra.mxu0 %v10512_v34  ;;  %3736 = vmatmul.bf16.vlgmr.msra.gmra.mxu1 %v10514_v46  ;;  %vm3800_vm15 = vcmp.eq.f32.partialorder %v3799_v20, 8.507059e+37 }
 0x46c   :  { %3831 = vmatpush.bf16.msrb.mxu0 %v13788_v0  ;;  %3844 = vmatpush.bf16.msrb.mxu1 %v13789_v6  ;;  %v8169_v6 = vpop.eup %8168 }
 0x46d   :  { %3857 = vmatpush.bf16.msrb.mxu2 %v13792_v13  ;;  %3870 = vmatpush.bf16.msrb.mxu3 %v13793_v15  ;;  %v3802_v15 = vor.u32 1.1754944e-38, %v3801_v29  ;;  %v3783_v13 = vor.u32 1.1754944e-38, %v3782_v1  ;;  %v3811_v39 = vmul.f32 %v8169_v6, %v10607_v3  ;;  %v8171_v0 = vpop.eup %8170  ;;  %v13803_v1 = vld [vmem:[#allocation201_spill] sm:$0xff]  ;;  %vm3816_vm0 = vweird.f32 %v8169_v6 }
 0x46e   :  { %3749 = vmatmul.bf16.vlgmr.msra.gmra.mxu2 %v10512_v34  ;;  %3762 = vmatmul.bf16.vlgmr.msra.gmra.mxu3 %v10514_v46  ;;  %v13799_v34 = vld [vmem:[#allocation193_spill] sm:$0xff]  ;;  %vm3817_vm2 = vmor %vm3815_vm1, %vm3816_vm0 }
 0x46f   :  { %v3784_v7 = vsel %vm3781_vm14, %v3783_v13, %v3779_v31  ;;  %v3803_v50 = vsel %vm3800_vm15, %v3802_v15, %v3798_v32  ;;  %v3812_v20 = vsub.f32 1.0, %v3811_v39  ;;  %v13802_v15 = vld [vmem:[#allocation200_spill] sm:$0xff]  ;;  %v13804_v31 = vld [vmem:[#allocation202_spill] sm:$0xff]  ;;  %v13806_v32 = vld [vmem:[#allocation205_spill] sm:$0xff]  ;;  %v3821_v39 = vand.u32 2147483648, %v10607_v3 }
 0x470   :  { %3832 = vmatpush.bf16.msrb.mxu0 %v13796_v4  ;;  %3845 = vmatpush.bf16.msrb.mxu1 %v13590_v2  ;;  %v3825_v46 = vmul.f32 %v3803_v50, %v10246_v47  ;;  %v3826_v29 = vmul.f32 %v8171_v0, %v3784_v7  ;;  %v13805_v47 = vld [vmem:[#allocation204_spill] sm:$0xff]  ;;  %v13807_v7 = vld [vmem:[#allocation206_spill] sm:$0xff]  ;;  %v3819_v0 = vand.u32 2147483647, %v10607_v3 }
 0x471   :  { %3858 = vmatpush.bf16.msrb.mxu2 %v13797_v30  ;;  %3871 = vmatpush.bf16.msrb.mxu3 %v13798_v28  ;;  %v3813_v53 = vmul.f32 %v8169_v6, %v3812_v20  ;;  %v13810_v20 = vld [vmem:[#allocation209_spill] sm:$0xff]  ;;  %v13815_v3 = vld [vmem:[#allocation214_spill] sm:$0xff] }
 0x472   :  { %v10668_v13 = vadd.f32 %v3826_v29, %v3825_v46  ;;  %v13808_v46 = vld [vmem:[#allocation207_spill] sm:$0xff]  ;;  %v13809_v29 = vld [vmem:[#allocation208_spill] sm:$0xff]  ;;  %vm3820_vm3 = vcmp.eq.f32.partialorder %v3819_v0, 8.507059e+37  ;;  %v13821_v0 = vld [vmem:[#allocation221_spill] sm:$0xff] }
 0x473   :  { %v3814_v50 = vadd.f32 %v8169_v6, %v3813_v53  ;;  %v13812_v53 = vld [vmem:[#allocation211_spill] sm:$0xff]  ;;  %v13944_v28 = vld [vmem:[#allocation110_spill] sm:$0xff] }
 0x474   :  { %3833 = vmatpush.bf16.msrb.mxu0 %v13593_v23  ;;  %3846 = vmatpush.bf16.msrb.mxu1 %v13799_v34  ;;  %13801 = vst [vmem:[#allocation121_spill] sm:$0xff] %v10668_v13  ;;  %8172 = vtanh.f32 %v10668_v13 }
 0x475   :  { %3859 = vmatpush.bf16.msrb.mxu2 %v13596_v55  ;;  %3872 = vmatpush.bf16.msrb.mxu3 %v13597_v62  ;;  %v13903_v55 = vld [vmem:[#allocation256_spill] sm:$0xff] }
 0x478   :  { %3834 = vmatpush.bf16.msrb.mxu0 %v13598_v51  ;;  %3847 = vmatpush.bf16.msrb.mxu1 %v13800_v14  ;;  %v13814_v14 = vld [vmem:[#allocation213_spill] sm:$0xff] }
 0x479   :  { %3860 = vmatpush.bf16.msrb.mxu2 %v13802_v15  ;;  %3873 = vmatpush.bf16.msrb.mxu3 %v13803_v1  ;;  %v13813_v1 = vld [vmem:[#allocation212_spill] sm:$0xff]  ;;  %v13817_v51 = vld [vmem:[#allocation217_spill] sm:$0xff] }
 0x47c   :  { %3835 = vmatpush.bf16.msrb.mxu0 %v13804_v31  ;;  %3848 = vmatpush.bf16.msrb.mxu1 %v13805_v47  ;;  %v13811_v47 = vld [vmem:[#allocation210_spill] sm:$0xff]  ;;  %v8173_v31 = vpop.eup %8172 }
 0x47d   :  { %3861 = vmatpush.bf16.msrb.mxu2 %v13806_v32  ;;  %3874 = vmatpush.bf16.msrb.mxu3 %v13807_v7  ;;  %v3818_v32 = vsel %vm3817_vm2, %v8169_v6, %v3814_v50  ;;  %v3822_v7 = vor.u32 1.1754944e-38, %v3821_v39  ;;  %v13819_v6 = vld [vmem:[#allocation219_spill] sm:$0xff]  ;;  %v13820_v39 = vld [vmem:[#allocation220_spill] sm:$0xff] }
 0x47f   :  { %v3823_v15 = vsel %vm3820_vm3, %v3822_v7, %v3818_v32  ;;  %v13822_v32 = vld [vmem:[#allocation222_spill] sm:$0xff]  ;;  %v13823_v7 = vld [vmem:[#allocation223_spill] sm:$0xff] }
 0x480   :  { %3836 = vmatpush.bf16.msrb.mxu0 %v13808_v46  ;;  %3849 = vmatpush.bf16.msrb.mxu1 %v13809_v29  ;;  %v3829_v46 = vmul.f32 %v8173_v31, %v3823_v15  ;;  %v13816_v29 = vld [vmem:[#allocation216_spill] sm:$0xff]  ;;  %v13825_v31 = vld [vmem:[#allocation225_spill] sm:$0xff] }
 0x481   :  { %3862 = vmatpush.bf16.msrb.mxu2 %v13810_v20  ;;  %3875 = vmatpush.bf16.msrb.mxu3 %v13811_v47  ;;  %v13818_v20 = vld [vmem:[#allocation218_spill] sm:$0xff]  ;;  %v13824_v15 = vld [vmem:[#allocation224_spill] sm:$0xff] }
 0x482   :  { %v10692_v50 = vpack.c.bf16 %v3829_v46, %v3829_v46  ;;  %v13826_v46 = vld [vmem:[#allocation226_spill] sm:$0xff]  ;;  %v13874_v47 = vld [vmem:[#allocation44_spill] sm:$0xff] }
 0x484   :  { %3837 = vmatpush.bf16.msrb.mxu0 %v13812_v53  ;;  %3850 = vmatpush.bf16.msrb.mxu1 %v13813_v1  ;;  %v13865_v1 = vld [vmem:[#allocation247_spill] sm:$0xff] }
 0x485   :  { %3863 = vmatpush.bf16.msrb.mxu2 %v13814_v14  ;;  %3876 = vmatpush.bf16.msrb.mxu3 %v13815_v3  ;;  %v13863_v3 = vld [vmem:[#allocation34_spill] sm:$0xff]  ;;  %v13864_v14 = vld [vmem:[#allocation35_spill] sm:$0xff] }
 0x488   :  { %3838 = vmatpush.bf16.msrb.mxu0 %v13816_v29  ;;  %3851 = vmatpush.bf16.msrb.mxu1 %v13817_v51  ;;  %v13833_v51 = vld [vmem:[#allocation233_spill] sm:$0xff]  ;;  %v13834_v29 = vld [vmem:[#allocation234_spill] sm:$0xff] }
 0x489   :  { %3864 = vmatpush.bf16.msrb.mxu2 %v13818_v20  ;;  %3877 = vmatpush.bf16.msrb.mxu3 %v13819_v6  ;;  %v13831_v6 = vld [vmem:[#allocation231_spill] sm:$0xff]  ;;  %v13832_v20 = vld [vmem:[#allocation232_spill] sm:$0xff] }
 0x48b   :  { %3839 = vmatmul.bf16.vlgmr.msrb.gmra.mxu0 %v10692_v50  ;;  %3852 = vmatmul.bf16.vlgmr.msrb.gmra.mxu1 %v10692_v50 }
 0x48c   :  { %3883 = vmatpush.bf16.msra.mxu0 %v13820_v39  ;;  %3896 = vmatpush.bf16.msra.mxu1 %v13821_v0  ;;  %v13827_v39 = vld [vmem:[#allocation227_spill] sm:$0xff]  ;;  %v13828_v0 = vld [vmem:[#allocation228_spill] sm:$0xff] }
 0x48d   :  { %3909 = vmatpush.bf16.msra.mxu2 %v13822_v32  ;;  %3922 = vmatpush.bf16.msra.mxu3 %v13823_v7  ;;  %v13829_v32 = vld [vmem:[#allocation229_spill] sm:$0xff]  ;;  %v13830_v7 = vld [vmem:[#allocation230_spill] sm:$0xff] }
 0x48e   :  { %3865 = vmatmul.bf16.vlgmr.msrb.gmra.mxu2 %v10692_v50  ;;  %3878 = vmatmul.bf16.vlgmr.msrb.gmra.mxu3 %v10692_v50 }
 0x490   :  { %3884 = vmatpush.bf16.msra.mxu0 %v13824_v15  ;;  %3897 = vmatpush.bf16.msra.mxu1 %v13825_v31  ;;  %v13835_v15 = vld [vmem:[#allocation235_spill] sm:$0xff]  ;;  %v13836_v31 = vld [vmem:[#allocation236_spill] sm:$0xff] }
 0x491   :  { %3910 = vmatpush.bf16.msra.mxu2 %v13826_v46  ;;  %3923 = vmatpush.bf16.msra.mxu3 %v13827_v39  ;;  %v13837_v46 = vld [vmem:[#allocation237_spill] sm:$0xff]  ;;  %v13838_v39 = vld [vmem:[#allocation238_spill] sm:$0xff] }
 0x494   :  { %3885 = vmatpush.bf16.msra.mxu0 %v13828_v0  ;;  %3898 = vmatpush.bf16.msra.mxu1 %v13829_v32  ;;  %v13839_v0 = vld [vmem:[#allocation239_spill] sm:$0xff]  ;;  %v13840_v32 = vld [vmem:[#allocation240_spill] sm:$0xff] }
 0x495   :  { %3911 = vmatpush.bf16.msra.mxu2 %v13830_v7  ;;  %3924 = vmatpush.bf16.msra.mxu3 %v13831_v6  ;;  %v13841_v7 = vld [vmem:[#allocation241_spill] sm:$0xff]  ;;  %v13842_v6 = vld [vmem:[#allocation242_spill] sm:$0xff] }
 0x498   :  { %3886 = vmatpush.bf16.msra.mxu0 %v13832_v20  ;;  %3899 = vmatpush.bf16.msra.mxu1 %v13833_v51  ;;  %v13843_v20 = vld [vmem:[#allocation243_spill] sm:$0xff]  ;;  %v13844_v51 = vld [vmem:[#allocation244_spill] sm:$0xff] }
 0x499   :  { %3912 = vmatpush.bf16.msra.mxu2 %v13834_v29  ;;  %3925 = vmatpush.bf16.msra.mxu3 %v13835_v15  ;;  %v13845_v29 = vld [vmem:[#allocation245_spill] sm:$0xff]  ;;  %v13846_v15 = vld [vmem:[#allocation246_spill] sm:$0xff] }
 0x49c   :  { %3887 = vmatpush.bf16.msra.mxu0 %v13836_v31  ;;  %3900 = vmatpush.bf16.msra.mxu1 %v13837_v46  ;;  %v13847_v31 = vld [vmem:[#allocation248_spill] sm:$0xff]  ;;  %v13848_v46 = vld [vmem:[#allocation249_spill] sm:$0xff] }
 0x49d   :  { %3913 = vmatpush.bf16.msra.mxu2 %v13838_v39  ;;  %3926 = vmatpush.bf16.msra.mxu3 %v13839_v0  ;;  %v13849_v39 = vld [vmem:[#allocation250_spill] sm:$0xff]  ;;  %v13850_v0 = vld [vmem:[#allocation251_spill] sm:$0xff] }
 0x4a0   :  { %3888 = vmatpush.bf16.msra.mxu0 %v13840_v32  ;;  %3901 = vmatpush.bf16.msra.mxu1 %v13841_v7  ;;  %v13851_v32 = vld [vmem:[#allocation252_spill] sm:$0xff] }
 0x4a1   :  { %3914 = vmatpush.bf16.msra.mxu2 %v13842_v6  ;;  %3927 = vmatpush.bf16.msra.mxu3 %v13843_v20  ;;  %v13852_v7 = vld [vmem:[#allocation24_spill] sm:$0xff]  ;;  %v13853_v6 = vld [vmem:[#allocation25_spill] sm:$0xff]  ;;  %v13854_v20 = vld [vmem:[#allocation26_spill] sm:$0xff] }
 0x4a4   :  { %3889 = vmatpush.bf16.msra.mxu0 %v13844_v51  ;;  %3902 = vmatpush.bf16.msra.mxu1 %v13845_v29  ;;  %v13855_v51 = vld [vmem:[#allocation27_spill] sm:$0xff]  ;;  %v13862_v29 = vld [vmem:[#allocation33_spill] sm:$0xff] }
 0x4a5   :  { %3915 = vmatpush.bf16.msra.mxu2 %v13846_v15  ;;  %3928 = vmatpush.bf16.msra.mxu3 %v13847_v31  ;;  %v13859_v31 = vld [vmem:[#allocation30_spill] sm:$0xff]  ;;  %v13861_v15 = vld [vmem:[#allocation32_spill] sm:$0xff] }
 0x4a8   :  { %3890 = vmatpush.bf16.msra.mxu0 %v13848_v46  ;;  %3903 = vmatpush.bf16.msra.mxu1 %v13849_v39  ;;  %v3568_v39 = vpop.f32.mrf.mxu0 }
 0x4a9   :  { %3916 = vmatpush.bf16.msra.mxu2 %v13850_v0  ;;  %3929 = vmatpush.bf16.msra.mxu3 %v13851_v32  ;;  %v13856_v0 = vld [vmem:[#allocation28_spill] sm:$0xff]  ;;  %v13857_v32 = vld [vmem:[#allocation29_spill] sm:$0xff] }
 0x4ab   :  { %3891 = vmatmul.bf16.vlgmr.msra.gmra.mxu0 %v10692_v50  ;;  %3904 = vmatmul.bf16.vlgmr.msra.gmra.mxu1 %v10692_v50 }
 0x4ac   :  { %4077 = vmatpush.bf16.msrb.mxu0 %v13852_v7  ;;  %4090 = vmatpush.bf16.msrb.mxu1 %v13853_v6  ;;  %v13858_v7 = vld [vmem:[#allocation253_spill] sm:$0xff]  ;;  %v3581_v6 = vpop.f32.mrf.mxu1 }
 0x4ad   :  { %4103 = vmatpush.bf16.msrb.mxu2 %v13854_v20  ;;  %4116 = vmatpush.bf16.msrb.mxu3 %v13855_v51  ;;  %v3569_v46 = vadd.f32 %v3568_v39, %v13858_v7  ;;  %v13860_v20 = vld [vmem:[#allocation31_spill] sm:$0xff]  ;;  %v13866_v7 = vld [vmem:[#allocation36_spill] sm:$0xff] }
 0x4ae   :  { %3917 = vmatmul.bf16.vlgmr.msra.gmra.mxu2 %v10692_v50  ;;  %3930 = vmatmul.bf16.vlgmr.msra.gmra.mxu3 %v10692_v50  ;;  %v3607_v53 = vpop.f32.mrf.mxu3 }
 0x4af   :  { %v10743_v51 = vadd.f32 %v3581_v6, %v3569_v46  ;;  %v13868_v46 = vld [vmem:[#allocation38_spill] sm:$0xff] }
 0x4b0   :  { %4078 = vmatpush.bf16.msrb.mxu0 %v13856_v0  ;;  %4091 = vmatpush.bf16.msrb.mxu1 %v13857_v32  ;;  %v3594_v0 = vpop.f32.mrf.mxu2  ;;  %v3570_v39 = vpop.f32.mrf.mxu0 }
 0x4b1   :  { %4104 = vmatpush.bf16.msrb.mxu2 %v13859_v31  ;;  %4117 = vmatpush.bf16.msrb.mxu3 %v13860_v20  ;;  %v3595_v32 = vadd.f32 %v3594_v0, %v13865_v1  ;;  %v13867_v31 = vld [vmem:[#allocation37_spill] sm:$0xff]  ;;  %v13873_v0 = vld [vmem:[#allocation43_spill] sm:$0xff] }
 0x4b3   :  { %v10752_v20 = vadd.f32 %v3607_v53, %v3595_v32  ;;  %v13875_v53 = vld [vmem:[#allocation45_spill] sm:$0xff]  ;;  %v13876_v32 = vld [vmem:[#allocation255_spill] sm:$0xff] }
 0x4b4   :  { %4079 = vmatpush.bf16.msrb.mxu0 %v13861_v15  ;;  %4092 = vmatpush.bf16.msrb.mxu1 %v13862_v29  ;;  %v3583_v6 = vpop.f32.mrf.mxu1  ;;  %v13869_v15 = vld [vmem:[#allocation39_spill] sm:$0xff]  ;;  %v13870_v29 = vld [vmem:[#allocation40_spill] sm:$0xff] }
 0x4b5   :  { %4105 = vmatpush.bf16.msrb.mxu2 %v13863_v3  ;;  %4118 = vmatpush.bf16.msrb.mxu3 %v13864_v14  ;;  %v13871_v3 = vld [vmem:[#allocation41_spill] sm:$0xff]  ;;  %v13872_v14 = vld [vmem:[#allocation42_spill] sm:$0xff] }
 0x4b6   :  { %v3609_v1 = vpop.f32.mrf.mxu3 }
 0x4b7   :  { %v13882_v1 = vld [vmem:[#allocation51_spill] sm:$0xff] }
 0x4b8   :  { %4080 = vmatpush.bf16.msrb.mxu0 %v13866_v7  ;;  %4093 = vmatpush.bf16.msrb.mxu1 %v13867_v31  ;;  %v3596_v39 = vpop.f32.mrf.mxu2  ;;  %v3620_v7 = vpop.f32.mrf.mxu0  ;;  %v13877_v31 = vld [vmem:[#allocation46_spill] sm:$0xff] }
 0x4b9   :  { %4106 = vmatpush.bf16.msrb.mxu2 %v13868_v46  ;;  %4119 = vmatpush.bf16.msrb.mxu3 %v13869_v15  ;;  %v3621_v6 = vadd.f32 %v3620_v7, %v13876_v32  ;;  %v13878_v15 = vld [vmem:[#allocation47_spill] sm:$0xff]  ;;  %v13881_v39 = vld [vmem:[#allocation50_spill] sm:$0xff]  ;;  %v13884_v32 = vld [vmem:[#allocation52_spill] sm:$0xff] }
 0x4bc   :  { %4081 = vmatpush.bf16.msrb.mxu0 %v13870_v29  ;;  %4094 = vmatpush.bf16.msrb.mxu1 %v13871_v3  ;;  %v3633_v46 = vpop.f32.mrf.mxu1  ;;  %v13879_v3 = vld [vmem:[#allocation48_spill] sm:$0xff] }
 0x4bd   :  { %4107 = vmatpush.bf16.msrb.mxu2 %v13872_v14  ;;  %4120 = vmatpush.bf16.msrb.mxu3 %v13873_v0  ;;  %v10765_v29 = vadd.f32 %v3633_v46, %v3621_v6  ;;  %v13880_v14 = vld [vmem:[#allocation49_spill] sm:$0xff]  ;;  %v13883_v0 = vld [vmem:[#allocation254_spill] sm:$0xff] }
 0x4be   :  { %v3659_v62 = vpop.f32.mrf.mxu3  ;;  %v13886_v6 = vld [vmem:[#allocation54_spill] sm:$0xff] }
 0x4c0   :  { %4082 = vmatpush.bf16.msrb.mxu0 %v13874_v47  ;;  %4095 = vmatpush.bf16.msrb.mxu1 %v13875_v53  ;;  %v3646_v47 = vpop.f32.mrf.mxu2  ;;  %v3622_v7 = vpop.f32.mrf.mxu0 }
 0x4c1   :  { %4108 = vmatpush.bf16.msrb.mxu2 %v13877_v31  ;;  %4121 = vmatpush.bf16.msrb.mxu3 %v13878_v15  ;;  %v3647_v53 = vadd.f32 %v3646_v47, %v13883_v0  ;;  %v13885_v31 = vld [vmem:[#allocation53_spill] sm:$0xff] }
 0x4c3   :  { %v10774_v15 = vadd.f32 %v3659_v62, %v3647_v53  ;;  %v13890_v62 = vld [vmem:[#allocation58_spill] sm:$0xff]  ;;  %v13891_v53 = vld [vmem:[#allocation59_spill] sm:$0xff] }
 0x4c4   :  { %4083 = vmatpush.bf16.msrb.mxu0 %v13879_v3  ;;  %4096 = vmatpush.bf16.msrb.mxu1 %v13880_v14  ;;  %v3635_v46 = vpop.f32.mrf.mxu1  ;;  %v13887_v3 = vld [vmem:[#allocation55_spill] sm:$0xff]  ;;  %v13888_v14 = vld [vmem:[#allocation56_spill] sm:$0xff] }
 0x4c5   :  { %4109 = vmatpush.bf16.msrb.mxu2 %v13881_v39  ;;  %4122 = vmatpush.bf16.msrb.mxu3 %v13882_v1  ;;  %v13889_v39 = vld [vmem:[#allocation57_spill] sm:$0xff]  ;;  %v13892_v46 = vld [vmem:[#allocation60_spill] sm:$0xff] }
 0x4c6   :  { %v3661_v7 = vpop.f32.mrf.mxu3  ;;  %v13897_v1 = vld [vmem:[#allocation64_spill] sm:$0xff] }
 0x4c7   :  { %v13900_v7 = vld [vmem:[#allocation67_spill] sm:$0xff] }
 0x4c8   :  { %4084 = vmatpush.bf16.msrb.mxu0 %v13884_v32  ;;  %4097 = vmatpush.bf16.msrb.mxu1 %v13885_v31  ;;  %v3648_v47 = vpop.f32.mrf.mxu2  ;;  %v13895_v31 = vld [vmem:[#allocation63_spill] sm:$0xff]  ;;  %v13896_v32 = vld [vmem:[#allocation257_spill] sm:$0xff] }
 0x4c9   :  { %4110 = vmatpush.bf16.msrb.mxu2 %v13886_v6  ;;  %4123 = vmatpush.bf16.msrb.mxu3 %v13887_v3  ;;  %v13893_v3 = vld [vmem:[#allocation61_spill] sm:$0xff]  ;;  %v13894_v6 = vld [vmem:[#allocation62_spill] sm:$0xff] }
 0x4cb   :  { %4085 = vmatmul.bf16.vlgmr.msrb.gmra.mxu0 %v10692_v50  ;;  %4098 = vmatmul.bf16.vlgmr.msrb.gmra.mxu1 %v10692_v50 }
 0x4cc   :  { %4135 = vmatpush.bf16.msra.mxu0 %v13888_v14  ;;  %4148 = vmatpush.bf16.msra.mxu1 %v13889_v39  ;;  %v3672_v14 = vpop.f32.mrf.mxu0  ;;  %v3685_v39 = vpop.f32.mrf.mxu1 }
 0x4cd   :  { %4111 = vmatmul.bf16.vlgmr.msrb.gmra.mxu2 %v10692_v50  ;;  %4124 = vmatmul.bf16.vlgmr.msrb.gmra.mxu3 %v10692_v50  ;;  %v3673_v0 = vadd.f32 %v3672_v14, %v13896_v32  ;;  %v13898_v50 = vld [vmem:[#allocation65_spill] sm:$0xff]  ;;  %v13904_v32 = vld [vmem:[#allocation70_spill] sm:$0xff] }
 0x4ce   :  { %4161 = vmatpush.bf16.msra.mxu2 %v13890_v62  ;;  %4174 = vmatpush.bf16.msra.mxu3 %v13891_v53  ;;  %v13899_v53 = vld [vmem:[#allocation66_spill] sm:$0xff] }
 0x4cf   :  { %v10793_v47 = vadd.f32 %v3685_v39, %v3673_v0  ;;  %v13906_v0 = vld [vmem:[#allocation72_spill] sm:$0xff]  ;;  %v13907_v39 = vld [vmem:[#allocation73_spill] sm:$0xff] }
 0x4d0   :  { %4136 = vmatpush.bf16.msra.mxu0 %v13892_v46  ;;  %4149 = vmatpush.bf16.msra.mxu1 %v13893_v3  ;;  %v13901_v46 = vld [vmem:[#allocation68_spill] sm:$0xff]  ;;  %v13902_v3 = vld [vmem:[#allocation69_spill] sm:$0xff] }
 0x4d1   :  { %v3698_v62 = vpop.f32.mrf.mxu2 }
 0x4d2   :  { %4162 = vmatpush.bf16.msra.mxu2 %v13894_v6  ;;  %4175 = vmatpush.bf16.msra.mxu3 %v13895_v31  ;;  %v3711_v6 = vpop.f32.mrf.mxu3  ;;  %v3699_v31 = vadd.f32 %v3698_v62, %v13903_v55 }
 0x4d4   :  { %4137 = vmatpush.bf16.msra.mxu0 %v13897_v1  ;;  %4150 = vmatpush.bf16.msra.mxu1 %v13898_v50  ;;  %v3674_v13 = vpop.f32.mrf.mxu0  ;;  %v3687_v14 = vpop.f32.mrf.mxu1  ;;  %v13905_v1 = vld [vmem:[#allocation71_spill] sm:$0xff]  ;;  %v13911_v50 = vld [vmem:[#allocation77_spill] sm:$0xff] }
 0x4d5   :  { %v13912_v14 = vld [vmem:[#allocation78_spill] sm:$0xff] }
 0x4d6   :  { %4163 = vmatpush.bf16.msra.mxu2 %v13899_v53  ;;  %4176 = vmatpush.bf16.msra.mxu3 %v13900_v7  ;;  %v10804_v53 = vadd.f32 %v3711_v6, %v3699_v31  ;;  %v13908_v7 = vld [vmem:[#allocation74_spill] sm:$0xff]  ;;  %v13917_v6 = vld [vmem:[#allocation83_spill] sm:$0xff] }
 0x4d7   :  { %v13916_v31 = vld [vmem:[#allocation82_spill] sm:$0xff] }
 0x4d8   :  { %4138 = vmatpush.bf16.msra.mxu0 %v13901_v46  ;;  %4151 = vmatpush.bf16.msra.mxu1 %v13902_v3  ;;  %v13909_v46 = vld [vmem:[#allocation75_spill] sm:$0xff]  ;;  %v13910_v3 = vld [vmem:[#allocation76_spill] sm:$0xff] }
 0x4d9   :  { %v3700_v13 = vpop.f32.mrf.mxu2 }
 0x4da   :  { %4164 = vmatpush.bf16.msra.mxu2 %v13904_v32  ;;  %4177 = vmatpush.bf16.msra.mxu3 %v13905_v1  ;;  %v3713_v62 = vpop.f32.mrf.mxu3  ;;  %v13913_v32 = vld [vmem:[#allocation79_spill] sm:$0xff]  ;;  %v13914_v1 = vld [vmem:[#allocation80_spill] sm:$0xff]  ;;  %v13921_v13 = vld [vmem:[#allocation89_spill] sm:$0xff] }
 0x4db   :  { %v13922_v62 = vld [vmem:[#allocation86_spill] sm:$0xff] }
 0x4dc   :  { %4139 = vmatpush.bf16.msra.mxu0 %v13906_v0  ;;  %4152 = vmatpush.bf16.msra.mxu1 %v13907_v39  ;;  %v13915_v0 = vld [vmem:[#allocation81_spill] sm:$0xff] }
 0x4de   :  { %4165 = vmatpush.bf16.msra.mxu2 %v13908_v7  ;;  %4178 = vmatpush.bf16.msra.mxu3 %v13909_v46  ;;  %v13918_v7 = vld [vmem:[#allocation84_spill] sm:$0xff]  ;;  %v13919_v46 = vld [vmem:[#allocation85_spill] sm:$0xff] }
 0x4e0   :  { %4140 = vmatpush.bf16.msra.mxu0 %v13910_v3  ;;  %4153 = vmatpush.bf16.msra.mxu1 %v13911_v50  ;;  %v13920_v3 = vld [vmem:[#allocation88_spill] sm:$0xff]  ;;  %v13937_v50 = vld [vmem:[#allocation103_spill] sm:$0xff] }
 0x4e2   :  { %4166 = vmatpush.bf16.msra.mxu2 %v13912_v14  ;;  %4179 = vmatpush.bf16.msra.mxu3 %v13913_v32  ;;  %v13923_v14 = vld [vmem:[#allocation87_spill] sm:$0xff]  ;;  %v13924_v32 = vld [vmem:[#allocation90_spill] sm:$0xff] }
 0x4e4   :  { %4141 = vmatpush.bf16.msra.mxu0 %v13914_v1  ;;  %4154 = vmatpush.bf16.msra.mxu1 %v13915_v0  ;;  %v13925_v1 = vld [vmem:[#allocation91_spill] sm:$0xff]  ;;  %v13926_v0 = vld [vmem:[#allocation92_spill] sm:$0xff] }
 0x4e6   :  { %4167 = vmatpush.bf16.msra.mxu2 %v13916_v31  ;;  %4180 = vmatpush.bf16.msra.mxu3 %v13917_v6  ;;  %v13927_v31 = vld [vmem:[#allocation93_spill] sm:$0xff]  ;;  %v13928_v6 = vld [vmem:[#allocation94_spill] sm:$0xff] }
 0x4e8   :  { %4142 = vmatpush.bf16.msra.mxu0 %v13918_v7  ;;  %4155 = vmatpush.bf16.msra.mxu1 %v13919_v46  ;;  %v13929_v7 = vld [vmem:[#allocation95_spill] sm:$0xff]  ;;  %v10828_v46 = vpop.f32.mrf.mxu0 }
 0x4ea   :  { %4168 = vmatpush.bf16.msra.mxu2 %v13922_v62  ;;  %4181 = vmatpush.bf16.msra.mxu3 %v13923_v14  ;;  %v13931_v62 = vld [vmem:[#allocation97_spill] sm:$0xff]  ;;  %v13932_v14 = vld [vmem:[#allocation98_spill] sm:$0xff] }
 0x4ec   :  { %4187 = vmatpush.bf16.msrb.mxu0 %v13920_v3  ;;  %4200 = vmatpush.bf16.msrb.mxu1 %v13921_v13  ;;  %v10830_v3 = vpop.f32.mrf.mxu1  ;;  %v13930_v13 = vld [vmem:[#allocation96_spill] sm:$0xff] }
 0x4ee   :  { %4213 = vmatpush.bf16.msrb.mxu2 %v13924_v32  ;;  %4226 = vmatpush.bf16.msrb.mxu3 %v13925_v1  ;;  %v13933_v32 = vld [vmem:[#allocation99_spill] sm:$0xff]  ;;  %v13934_v1 = vld [vmem:[#allocation100_spill] sm:$0xff] }
 0x4f0   :  { %4188 = vmatpush.bf16.msrb.mxu0 %v13926_v0  ;;  %4201 = vmatpush.bf16.msrb.mxu1 %v13927_v31  ;;  %v13935_v0 = vld [vmem:[#allocation101_spill] sm:$0xff]  ;;  %v3726_v39 = vpop.f32.mrf.mxu0 }
 0x4f1   :  { %v3750_v31 = vpop.f32.mrf.mxu2  ;;  %v13946_v39 = vld [vmem:[#allocation112_spill] sm:$0xff] }
 0x4f2   :  { %4214 = vmatpush.bf16.msrb.mxu2 %v13928_v6  ;;  %4227 = vmatpush.bf16.msrb.mxu3 %v13929_v7  ;;  %v10838_v6 = vpop.f32.mrf.mxu3  ;;  %v13936_v7 = vld [vmem:[#allocation102_spill] sm:$0xff] }
 0x4f4   :  { %4189 = vmatpush.bf16.msrb.mxu0 %v13930_v13  ;;  %4202 = vmatpush.bf16.msrb.mxu1 %v13931_v62  ;;  %v3739_v55 = vpop.f32.mrf.mxu1  ;;  %v13938_v13 = vld [vmem:[#allocation104_spill] sm:$0xff]  ;;  %v13939_v62 = vld [vmem:[#allocation105_spill] sm:$0xff] }
 0x4f5   :  { %v13947_v55 = vld [vmem:[#allocation113_spill] sm:$0xff] }
 0x4f6   :  { %4215 = vmatpush.bf16.msrb.mxu2 %v13932_v14  ;;  %4228 = vmatpush.bf16.msrb.mxu3 %v13933_v32  ;;  %v13940_v14 = vld [vmem:[#allocation106_spill] sm:$0xff]  ;;  %v13941_v32 = vld [vmem:[#allocation107_spill] sm:$0xff] }
 0x4f8   :  { %4190 = vmatpush.bf16.msrb.mxu0 %v13934_v1  ;;  %4203 = vmatpush.bf16.msrb.mxu1 %v13935_v0  ;;  %v13942_v1 = vld [vmem:[#allocation108_spill] sm:$0xff]  ;;  %v13943_v0 = vld [vmem:[#allocation109_spill] sm:$0xff] }
 0x4f9   :  { %v3752_v34 = vpop.f32.mrf.mxu2 }
 0x4fa   :  { %4216 = vmatpush.bf16.msrb.mxu2 %v13936_v7  ;;  %4229 = vmatpush.bf16.msrb.mxu3 %v13937_v50  ;;  %v3765_v23 = vpop.f32.mrf.mxu3  ;;  %v13945_v7 = vld [vmem:[#allocation111_spill] sm:$0xff] }
 0x4fb   :  { %v13953_v34 = vld [vmem:[#allocation119_spill] sm:$0xff] }
 0x4fc   :  { %4191 = vmatpush.bf16.msrb.mxu0 %v13938_v13  ;;  %4204 = vmatpush.bf16.msrb.mxu1 %v13939_v62  ;;  %v13948_v13 = vld [vmem:[#allocation114_spill] sm:$0xff]  ;;  %v13949_v62 = vld [vmem:[#allocation115_spill] sm:$0xff] }
 0x4fe   :  { %4217 = vmatpush.bf16.msrb.mxu2 %v13940_v14  ;;  %4230 = vmatpush.bf16.msrb.mxu3 %v13941_v32  ;;  %v13950_v14 = vld [vmem:[#allocation116_spill] sm:$0xff]  ;;  %v13951_v32 = vld [vmem:[#allocation117_spill] sm:$0xff] }
 0x500   :  { %4192 = vmatpush.bf16.msrb.mxu0 %v13942_v1  ;;  %4205 = vmatpush.bf16.msrb.mxu1 %v13943_v0  ;;  %v13952_v1 = vld [vmem:[#allocation118_spill] sm:$0xff] }
 0x502   :  { %4218 = vmatpush.bf16.msrb.mxu2 %v13944_v28  ;;  %4231 = vmatpush.bf16.msrb.mxu3 %v13945_v7 }
 0x504   :  { %4193 = vmatpush.bf16.msrb.mxu0 %v13946_v39  ;;  %4206 = vmatpush.bf16.msrb.mxu1 %v13947_v55 }
 0x506   :  { %4219 = vmatpush.bf16.msrb.mxu2 %v13948_v13  ;;  %4232 = vmatpush.bf16.msrb.mxu3 %v13949_v62 }
 0x508   :  { %4194 = vmatpush.bf16.msrb.mxu0 %v13950_v14  ;;  %4207 = vmatpush.bf16.msrb.mxu1 %v13951_v32  ;;  %v3840_v23 = vpop.f32.mrf.mxu0  ;;  %v3853_v28 = vpop.f32.mrf.mxu1 }
 0x509   :  { %v3935_v7 = vadd.f32 %v3840_v23, %v10743_v51  ;;  %v3936_v39 = vadd.f32 %v3853_v28, %v10752_v20 }
 0x50a   :  { %4220 = vmatpush.bf16.msrb.mxu2 %v13952_v1  ;;  %4233 = vmatpush.bf16.msrb.mxu3 %v13953_v34 }
 0x50b   :  { %v7619_v0 = vmul.f32 -1.442695, %v3935_v7  ;;  %v7620_v55 = vmul.f32 -1.442695, %v3936_v39 }
 0x50d   :  { %8174 = vpow2.f32 %v7619_v0 }
 0x50e   :  { %8176 = vpow2.f32 %v7620_v55 }
 0x510   :  { %v3842_v50 = vpop.f32.mrf.mxu0  ;;  %v3855_v1 = vpop.f32.mrf.mxu1 }
 0x511   :  { %v3866_v13 = vpop.f32.mrf.mxu2  ;;  %v3879_v62 = vpop.f32.mrf.mxu3 }
 0x512   :  { %v3937_v14 = vadd.f32 %v3866_v13, %v10765_v29  ;;  %v3938_v32 = vadd.f32 %v3879_v62, %v10774_v15 }
 0x513   :  { %v8175_v2 = vpop.eup %8174 }
 0x514   :  { %v7621_v30 = vmul.f32 -1.442695, %v3937_v14  ;;  %v7622_v34 = vmul.f32 -1.442695, %v3938_v32  ;;  %v8177_v4 = vpop.eup %8176  ;;  %v3949_v52 = vadd.f32 1.0, %v8175_v2  ;;  %v13955_v14 = vld [vmem:[#allocation259_spill] sm:$0xff] }
 0x515   :  { %v10862_v51 = vadd.f32 1.0, %v8177_v4  ;;  %v13954_v4 = vld [vmem:[#allocation258_spill] sm:$0xff]  ;;  %v3751_v13 = vadd.f32 %v3750_v31, %v13955_v14 }
 0x516   :  { %8178 = vpow2.f32 %v7621_v30  ;;  %v3725_v50 = vadd.f32 %v10828_v46, %v13954_v4  ;;  %v3960_v55 = vand.u32 2147483647, %v3949_v52  ;;  %vm3956_vm6 = vweird.f32 %v3949_v52 }
 0x517   :  { %8180 = vpow2.f32 %v7622_v34  ;;  %vm3971_vm7 = vweird.f32 %v10862_v51 }
 0x518   :  { %8182 = vrcp.f32 %v3949_v52  ;;  %v3738_v23 = vadd.f32 %v10830_v3, %v3725_v50  ;;  %vm10888_vm9 = vcmp.eq.f32.partialorder %v3960_v55, 8.507059e+37 }
 0x519   :  { %8184 = vrcp.f32 %v10862_v51  ;;  %v3868_v28 = vpop.f32.mrf.mxu2  ;;  %v3881_v20 = vpop.f32.mrf.mxu3 }
 0x51a   :  { %v3764_v28 = vadd.f32 %v10838_v6, %v3751_v13  ;;  %v3962_v20 = vand.u32 2147483648, %v3949_v52 }
 0x51c   :  { %v8179_v7 = vpop.eup %8178 }
 0x51d   :  { %v8181_v29 = vpop.eup %8180  ;;  %v3987_v0 = vadd.f32 1.0, %v8179_v7 }
 0x51e   :  { %v10865_v15 = vpop.eup %8182  ;;  %v10867_v1 = vadd.f32 1.0, %v8181_v29 }
 0x51f   :  { %v10869_v32 = vpop.eup %8184  ;;  %v3952_v2 = vmul.f32 %v10865_v15, %v3949_v52  ;;  %8186 = vrcp.f32 %v3987_v0  ;;  %v4000_v46 = vand.u32 2147483648, %v3987_v0  ;;  %vm3957_vm8 = vweird.f32 %v10865_v15 }
 0x520   :  { %v3967_v30 = vmul.f32 %v10869_v32, %v10862_v51  ;;  %8188 = vrcp.f32 %v10867_v1  ;;  %v4015_v6 = vand.u32 2147483648, %v10867_v1  ;;  %vm3972_vm10 = vweird.f32 %v10869_v32  ;;  %vm10898_vm13 = vmor %vm3956_vm6, %vm3957_vm8 }
 0x521   :  { %v3953_v62 = vsub.f32 1.0, %v3952_v2  ;;  %v3975_v2 = vand.u32 2147483647, %v10862_v51  ;;  %vm3994_vm14 = vweird.f32 %v3987_v0  ;;  %vm10905_vm15 = vmor %vm3971_vm7, %vm3972_vm10  ;;  %vm4009_vm1 = vweird.f32 %v10867_v1 }
 0x522   :  { %v3968_v39 = vsub.f32 1.0, %v3967_v30  ;;  %v3977_v30 = vand.u32 2147483648, %v10862_v51 }
 0x523   :  { %v3954_v54 = vmul.f32 %v10865_v15, %v3953_v62  ;;  %v3998_v62 = vand.u32 2147483647, %v3987_v0  ;;  %vm3976_vm7 = vcmp.eq.f32.partialorder %v3975_v2, 8.507059e+37 }
 0x524   :  { %v3969_v18 = vmul.f32 %v10869_v32, %v3968_v39 }
 0x525   :  { %v8187_v34 = vpop.eup %8186  ;;  %vm3999_vm3 = vcmp.eq.f32.partialorder %v3998_v62, 8.507059e+37 }
 0x526   :  { %v8189_v7 = vpop.eup %8188  ;;  %v3990_v29 = vmul.f32 %v8187_v34, %v3987_v0  ;;  %vm3995_vm11 = vweird.f32 %v8187_v34  ;;  %v3970_v12 = vadd.f32 %v10869_v32, %v3969_v18  ;;  %v4016_v18 = vor.u32 1.1754944e-38, %v4015_v6 }
 0x527   :  { %v4005_v31 = vmul.f32 %v8189_v7, %v10867_v1  ;;  %vm4010_vm12 = vweird.f32 %v8189_v7  ;;  %vm3996_vm0 = vmor %vm3994_vm14, %vm3995_vm11 }
 0x528   :  { %v3991_v3 = vsub.f32 1.0, %v3990_v29  ;;  %v3892_v50 = vpop.f32.mrf.mxu0  ;;  %v3905_v39 = vpop.f32.mrf.mxu1  ;;  %v3955_v29 = vadd.f32 %v10865_v15, %v3954_v54  ;;  %v4001_v54 = vor.u32 1.1754944e-38, %v4000_v46  ;;  %vm4011_vm2 = vmor %vm4009_vm1, %vm4010_vm12 }
 0x529   :  { %v4006_v14 = vsub.f32 1.0, %v4005_v31  ;;  %v3939_v4 = vadd.f32 %v3892_v50, %v10793_v47  ;;  %v3940_v22 = vadd.f32 %v3905_v39, %v10804_v53  ;;  %v4013_v47 = vand.u32 2147483647, %v10867_v1 }
 0x52a   :  { %v3992_v37 = vmul.f32 %v8187_v34, %v3991_v3  ;;  %v3963_v53 = vor.u32 1.1754944e-38, %v3962_v20  ;;  %v3959_v0 = vsel %vm10898_vm13, %v10865_v15, %v3955_v29 }
 0x52b   :  { %v4007_v63 = vmul.f32 %v8189_v7, %v4006_v14  ;;  %8190 = vtanh.f32 %v3939_v4  ;;  %v3978_v14 = vor.u32 1.1754944e-38, %v3977_v30  ;;  %vm4014_vm6 = vcmp.eq.f32.partialorder %v4013_v47, 8.507059e+37 }
 0x52c   :  { %v3993_v31 = vadd.f32 %v8187_v34, %v3992_v37  ;;  %8192 = vtanh.f32 %v3940_v22  ;;  %v3974_v37 = vsel %vm10905_vm15, %v10869_v32, %v3970_v12  ;;  %v3964_v15 = vsel %vm10888_vm9, %v3963_v53, %v3959_v0 }
 0x52d   :  { %v4008_v52 = vadd.f32 %v8189_v7, %v4007_v63 }
 0x52e   :  { %v3997_v4 = vsel %vm3996_vm0, %v8187_v34, %v3993_v31  ;;  %v3979_v34 = vsel %vm3976_vm7, %v3978_v14, %v3974_v37 }
 0x52f   :  { %v4002_v51 = vsel %vm3999_vm3, %v4001_v54, %v3997_v4  ;;  %v4012_v22 = vsel %vm4011_vm2, %v8189_v7, %v4008_v52 }
 0x530   :  { %v4017_v1 = vsel %vm4014_vm6, %v4016_v18, %v4012_v22  ;;  %v3894_v50 = vpop.f32.mrf.mxu0  ;;  %v3907_v39 = vpop.f32.mrf.mxu1  ;;  %v4059_v12 = vmul.f32 %v4002_v51, %v10498_v36 }
 0x531   :  { %v3918_v20 = vpop.f32.mrf.mxu2  ;;  %v3931_v46 = vpop.f32.mrf.mxu3  ;;  %v4060_v29 = vmul.f32 %v4017_v1, %v10500_v25 }
 0x532   :  { %v3941_v63 = vadd.f32 %v3918_v20, %v3738_v23  ;;  %v3942_v6 = vadd.f32 %v3931_v46, %v3764_v28  ;;  %v8191_v55 = vpop.eup %8190 }
 0x533   :  { %v8193_v62 = vpop.eup %8192  ;;  %v4061_v32 = vmul.f32 %v8191_v55, %v3964_v15 }
 0x534   :  { %v7623_v30 = vmul.f32 -1.442695, %v3941_v63  ;;  %v7624_v7 = vmul.f32 -1.442695, %v3942_v6  ;;  %v4062_v47 = vmul.f32 %v8193_v62, %v3979_v34 }
 0x535   :  { %v10920_v2 = vadd.f32 %v4061_v32, %v4059_v12 }
 0x536   :  { %8194 = vpow2.f32 %v7623_v30  ;;  %v10922_v23 = vadd.f32 %v4062_v47, %v4060_v29 }
 0x537   :  { %8196 = vpow2.f32 %v7624_v7 }
 0x539   :  { %v3920_v28 = vpop.f32.mrf.mxu2  ;;  %v3933_v31 = vpop.f32.mrf.mxu3 }
 0x53c   :  { %v8195_v13 = vpop.eup %8194 }
 0x53d   :  { %v8197_v53 = vpop.eup %8196  ;;  %v4027_v3 = vadd.f32 1.0, %v8195_v13 }
 0x53e   :  { %v4028_v54 = vadd.f32 1.0, %v8197_v53 }
 0x53f   :  { %8198 = vrcp.f32 %v4027_v3  ;;  %v4040_v51 = vand.u32 2147483648, %v4027_v3  ;;  %v4038_v20 = vand.u32 2147483647, %v4027_v3  ;;  %vm4034_vm10 = vweird.f32 %v4027_v3 }
 0x540   :  { %8200 = vrcp.f32 %v4028_v54  ;;  %v4055_v46 = vand.u32 2147483648, %v4028_v54  ;;  %v4053_v63 = vand.u32 2147483647, %v4028_v54  ;;  %vm4049_vm12 = vweird.f32 %v4028_v54 }
 0x541   :  { %8202 = vtanh.f32 %v10920_v2  ;;  %v4041_v50 = vor.u32 1.1754944e-38, %v4040_v51  ;;  %vm4039_vm13 = vcmp.eq.f32.partialorder %v4038_v20, 8.507059e+37  ;;  %v13965_v20 = vld [vmem:[#allocation149_spill] sm:$0xff] }
 0x542   :  { %8204 = vtanh.f32 %v10922_v23  ;;  %v4056_v34 = vor.u32 1.1754944e-38, %v4055_v46  ;;  %vm4054_vm15 = vcmp.eq.f32.partialorder %v4053_v63, 8.507059e+37  ;;  %v13966_v46 = vld [vmem:[#allocation150_spill] sm:$0xff] }
 0x545   :  { %v8199_v36 = vpop.eup %8198 }
 0x546   :  { %v8201_v18 = vpop.eup %8200  ;;  %v4030_v52 = vmul.f32 %v8199_v36, %v4027_v3  ;;  %vm4035_vm8 = vweird.f32 %v8199_v36 }
 0x547   :  { %v4045_v0 = vmul.f32 %v8201_v18, %v4028_v54  ;;  %vm4050_vm9 = vweird.f32 %v8201_v18  ;;  %vm4036_vm11 = vmor %vm4034_vm10, %vm4035_vm8  ;;  %v8203_v55 = vpop.eup %8202 }
 0x548   :  { %v10924_v25 = vpop.f32.mrf.mxu0  ;;  %v10926_v4 = vpop.f32.mrf.mxu1  ;;  %v4031_v37 = vsub.f32 1.0, %v4030_v52  ;;  %vm4051_vm14 = vmor %vm4049_vm12, %vm4050_vm9 }
 0x549   :  { %v4046_v14 = vsub.f32 1.0, %v4045_v0  ;;  %v8205_v32 = vpop.eup %8204  ;;  %v4129_v0 = vadd.f32 %v10924_v25, %v13529_v8  ;;  %v13962_v25 = vld [vmem:[#allocation146_spill] sm:$0xff] }
 0x54a   :  { %v4032_v22 = vmul.f32 %v8199_v36, %v4031_v37  ;;  %v4130_v37 = vadd.f32 %v10926_v4, %v13532_v19  ;;  %v13963_v4 = vld [vmem:[#allocation147_spill] sm:$0xff] }
 0x54b   :  { %v4047_v1 = vmul.f32 %v8201_v18, %v4046_v14  ;;  %v7625_v51 = vmul.f32 -1.442695, %v4129_v0  ;;  %v13981_v0 = vld [vmem:[#allocation164_spill] sm:$0xff] }
 0x54c   :  { %v4033_v6 = vadd.f32 %v8199_v36, %v4032_v22  ;;  %v7626_v14 = vmul.f32 -1.442695, %v4130_v37  ;;  %v13964_v22 = vld [vmem:[#allocation148_spill] sm:$0xff]  ;;  %v13982_v37 = vld [vmem:[#allocation165_spill] sm:$0xff] }
 0x54d   :  { %v4048_v39 = vadd.f32 %v8201_v18, %v4047_v1  ;;  %8206 = vpow2.f32 %v7625_v51  ;;  %v13967_v1 = vld [vmem:[#allocation151_spill] sm:$0xff] }
 0x54e   :  { %v4037_v15 = vsel %vm4036_vm11, %v8199_v36, %v4033_v6  ;;  %8208 = vpow2.f32 %v7626_v14  ;;  %v13968_v6 = vld [vmem:[#allocation152_spill] sm:$0xff]  ;;  %v13984_v14 = vld [vmem:[#allocation167_spill] sm:$0xff] }
 0x54f   :  { %v4042_v30 = vsel %vm4039_vm13, %v4041_v50, %v4037_v15  ;;  %v4052_v7 = vsel %vm4051_vm14, %v8201_v18, %v4048_v39  ;;  %v13969_v50 = vld [vmem:[#allocation153_spill] sm:$0xff]  ;;  %v13971_v15 = vld [vmem:[#allocation155_spill] sm:$0xff] }
 0x550   :  { %v10930_v62 = vpop.f32.mrf.mxu2  ;;  %v10932_v12 = vpop.f32.mrf.mxu3  ;;  %v4067_v28 = vmul.f32 %v8203_v55, %v4042_v30  ;;  %v4057_v31 = vsel %vm4054_vm15, %v4056_v34, %v4052_v7  ;;  %v13970_v55 = vld [vmem:[#allocation154_spill] sm:$0xff]  ;;  %v13972_v30 = vld [vmem:[#allocation156_spill] sm:$0xff]  ;;  %v13973_v7 = vld [vmem:[#allocation157_spill] sm:$0xff] }
 0x551   :  { %v4088_v29 = vpop.f32.mrf.mxu0  ;;  %v4101_v47 = vpop.f32.mrf.mxu1  ;;  %v4068_v13 = vmul.f32 %v8205_v32, %v4057_v31 }
 0x552   :  { %v10934_v53 = vpack.c.bf16 %v4067_v28, %v4067_v28  ;;  %v13974_v29 = vld [vmem:[#allocation158_spill] sm:$0xff]  ;;  %v13975_v47 = vld [vmem:[#allocation159_spill] sm:$0xff] }
 0x553   :  { %v4071_v3 = vrot.slane %v4068_v13, 7  ;;  %v10936_v54 = vpack.c.bf16 %v4068_v13, %v4068_v13  ;;  %v8207_v63 = vpop.eup %8206  ;;  %v13977_v13 = vld [vmem:[#allocation160_spill] sm:$0xff] }
 0x554   :  { %4143 = vmatmul.bf16.vlgmr.msra.gmra.mxu0 %v10934_v53  ;;  %4169 = vmatmul.bf16.vlgmr.msra.gmra.mxu2 %v10934_v53  ;;  %v8209_v39 = vpop.eup %8208  ;;  %v10991_v34 = vadd.f32 1.0, %v8207_v63 }
 0x555   :  { %v4072_v36 = vsel %vm2340_vm4, %v4067_v28, %v4071_v3  ;;  %4156 = vmatmul.bf16.vlgmr.msra.gmra.mxu1 %v10936_v54  ;;  %4182 = vmatmul.bf16.vlgmr.msra.gmra.mxu3 %v10936_v54  ;;  %v10995_v32 = vadd.f32 1.0, %v8209_v39  ;;  %v13976_v28 = vld [vmem:[#allocation203_spill] sm:$0xff]  ;;  %v13978_v3 = vld [vmem:[#allocation161_spill] sm:$0xff]  ;;  %v13985_v39 = vld [vmem:[#allocation168_spill] sm:$0xff] }
 0x556   :  { %4075 = vst.msk [vmem:[#allocation2 + $0x3] ss:$8 sm:$0x3] %vm9714_vm5, %v4072_v36  ;;  %4239 = vmatpush.bf16.msra.mxu0 %v13317_v57  ;;  %4252 = vmatpush.bf16.msra.mxu1 %v13319_v48  ;;  %v4132_v31 = vadd.f32 %v10932_v12, %v13976_v28  ;;  %8210 = vrcp.f32 %v10991_v34  ;;  %v13979_v36 = vld [vmem:[#allocation162_spill] sm:$0xff]  ;;  %vm4352_vm2 = vweird.f32 %v10991_v34 }
 0x557   :  { %4265 = vmatpush.bf16.msra.mxu2 %v13523_v44  ;;  %4278 = vmatpush.bf16.msra.mxu3 %v13320_v61  ;;  %8212 = vrcp.f32 %v10995_v32  ;;  %v13983_v12 = vld [vmem:[#allocation166_spill] sm:$0xff]  ;;  %vm4371_vm3 = vweird.f32 %v10995_v32 }
 0x558   :  { %v4114_v18 = vpop.f32.mrf.mxu2  ;;  %v4127_v52 = vpop.f32.mrf.mxu3 }
 0x559   :  { %v13980_v18 = vld [vmem:[#allocation163_spill] sm:$0xff]  ;;  %v7627_v52 = vmul.f32 -1.442695, %v4132_v31 }
 0x55a   :  { %4240 = vmatpush.bf16.msra.mxu0 %v13524_v35  ;;  %4253 = vmatpush.bf16.msra.mxu1 %v13323_v45 }
 0x55b   :  { %4266 = vmatpush.bf16.msra.mxu2 %v13525_v43  ;;  %4279 = vmatpush.bf16.msra.mxu3 %v13324_v24  ;;  %8214 = vpow2.f32 %v7627_v52 }
 0x55c   :  { %v11011_v51 = vpop.eup %8210 }
 0x55d   :  { %v11015_v63 = vpop.eup %8212  ;;  %v4348_v31 = vmul.f32 %v11011_v51, %v10991_v34  ;;  %vm4353_vm0 = vweird.f32 %v11011_v51 }
 0x55e   :  { %4241 = vmatpush.bf16.msra.mxu0 %v13325_v27  ;;  %4254 = vmatpush.bf16.msra.mxu1 %v13328_v40  ;;  %vm4372_vm1 = vweird.f32 %v11015_v63  ;;  %vm11054_vm6 = vmor %vm4352_vm2, %vm4353_vm0 }
 0x55f   :  { %4267 = vmatpush.bf16.msra.mxu2 %v13326_v5  ;;  %4280 = vmatpush.bf16.msra.mxu3 %v13329_v21  ;;  %v4349_v52 = vsub.f32 1.0, %v4348_v31  ;;  %vm11064_vm7 = vmor %vm4371_vm3, %vm4372_vm1 }
 0x562   :  { %4242 = vmatpush.bf16.msra.mxu0 %v13330_v49  ;;  %4255 = vmatpush.bf16.msra.mxu1 %v13526_v60 }
 0x563   :  { %4268 = vmatpush.bf16.msra.mxu2 %v13527_v17  ;;  %4281 = vmatpush.bf16.msra.mxu3 %v13528_v41 }
 0x564   :  { %4195 = vmatmul.bf16.vlgmr.msrb.gmra.mxu0 %v10934_v53  ;;  %4221 = vmatmul.bf16.vlgmr.msrb.gmra.mxu2 %v10934_v53 }
 0x565   :  { %4208 = vmatmul.bf16.vlgmr.msrb.gmra.mxu1 %v10936_v54  ;;  %4234 = vmatmul.bf16.vlgmr.msrb.gmra.mxu3 %v10936_v54 }
 0x566   :  { %4243 = vmatpush.bf16.msra.mxu0 %v13530_v58  ;;  %4256 = vmatpush.bf16.msra.mxu1 %v13531_v26 }
 0x567   :  { %4269 = vmatpush.bf16.msra.mxu2 %v13533_v56  ;;  %4282 = vmatpush.bf16.msra.mxu3 %v13742_v38 }
 0x56a   :  { %4244 = vmatpush.bf16.msra.mxu0 %v13743_v16  ;;  %4257 = vmatpush.bf16.msra.mxu1 %v13744_v33 }
 0x56b   :  { %4270 = vmatpush.bf16.msra.mxu2 %v13745_v11  ;;  %4283 = vmatpush.bf16.msra.mxu3 %v13746_v59 }
 0x56e   :  { %4245 = vmatpush.bf16.msra.mxu0 %v13747_v42  ;;  %4258 = vmatpush.bf16.msra.mxu1 %v13748_v10 }
 0x56f   :  { %4271 = vmatpush.bf16.msra.mxu2 %v13962_v25  ;;  %4284 = vmatpush.bf16.msra.mxu3 %v13963_v4 }
 0x572   :  { %4246 = vmatpush.bf16.msra.mxu0 %v13964_v22  ;;  %4259 = vmatpush.bf16.msra.mxu1 %v13965_v20 }
 0x573   :  { %4272 = vmatpush.bf16.msra.mxu2 %v13966_v46  ;;  %4285 = vmatpush.bf16.msra.mxu3 %v13967_v1 }
 0x575   :  { %4247 = vmatmul.bf16.vlgmr.msra.gmra.mxu0 %v10934_v53  ;;  %4260 = vmatmul.bf16.vlgmr.msra.gmra.mxu1 %v10936_v54 }
 0x576   :  { %4291 = vmatpush.bf16.msrb.mxu0 %v13968_v6  ;;  %4304 = vmatpush.bf16.msrb.mxu1 %v13969_v50 }
 0x577   :  { %4317 = vmatpush.bf16.msrb.mxu2 %v13970_v55  ;;  %4330 = vmatpush.bf16.msrb.mxu3 %v13971_v15 }
 0x578   :  { %4273 = vmatmul.bf16.vlgmr.msra.gmra.mxu2 %v10934_v53  ;;  %4286 = vmatmul.bf16.vlgmr.msra.gmra.mxu3 %v10936_v54 }
 0x57a   :  { %4292 = vmatpush.bf16.msrb.mxu0 %v13972_v30  ;;  %4305 = vmatpush.bf16.msrb.mxu1 %v13973_v7  ;;  %v13995_v7 = vld [vmem:[#allocation178_spill] sm:$0xff] }
 0x57b   :  { %4318 = vmatpush.bf16.msrb.mxu2 %v13974_v29  ;;  %4331 = vmatpush.bf16.msrb.mxu3 %v13975_v47  ;;  %v13993_v47 = vld [vmem:[#allocation176_spill] sm:$0xff]  ;;  %v13994_v29 = vld [vmem:[#allocation177_spill] sm:$0xff]  ;;  %v14164_v30 = vld [vmem:[#allocation110_spill] sm:$0xff] }
 0x57e   :  { %4293 = vmatpush.bf16.msrb.mxu0 %v13977_v13  ;;  %4306 = vmatpush.bf16.msrb.mxu1 %v13978_v3  ;;  %v13986_v3 = vld [vmem:[#allocation169_spill] sm:$0xff] }
 0x57f   :  { %4319 = vmatpush.bf16.msrb.mxu2 %v13979_v36  ;;  %4332 = vmatpush.bf16.msrb.mxu3 %v13980_v18  ;;  %v13988_v18 = vld [vmem:[#allocation171_spill] sm:$0xff]  ;;  %v13989_v36 = vld [vmem:[#allocation172_spill] sm:$0xff] }
 0x582   :  { %4294 = vmatpush.bf16.msrb.mxu0 %v13981_v0  ;;  %4307 = vmatpush.bf16.msrb.mxu1 %v13982_v37  ;;  %v4367_v0 = vmul.f32 %v11015_v63, %v10995_v32  ;;  %v13987_v37 = vld [vmem:[#allocation170_spill] sm:$0xff] }
 0x583   :  { %4320 = vmatpush.bf16.msrb.mxu2 %v13983_v12  ;;  %4333 = vmatpush.bf16.msrb.mxu3 %v13984_v14  ;;  %v8215_v12 = vpop.eup %8214  ;;  %v13990_v14 = vld [vmem:[#allocation173_spill] sm:$0xff] }
 0x584   :  { %v4368_v13 = vsub.f32 1.0, %v4367_v0  ;;  %v11029_v28 = vadd.f32 1.0, %v8215_v12  ;;  %v13997_v0 = vld [vmem:[#allocation215_spill] sm:$0xff]  ;;  %v13998_v12 = vld [vmem:[#allocation180_spill] sm:$0xff] }
 0x585   :  { %v4131_v31 = vadd.f32 %v10930_v62, %v13997_v0  ;;  %v4358_v62 = vand.u32 2147483648, %v10991_v34  ;;  %v14002_v0 = vld [vmem:[#allocation184_spill] sm:$0xff] }
 0x586   :  { %4295 = vmatpush.bf16.msrb.mxu0 %v13985_v39  ;;  %4308 = vmatpush.bf16.msrb.mxu1 %v13986_v3  ;;  %v13991_v39 = vld [vmem:[#allocation174_spill] sm:$0xff]  ;;  %v13992_v3 = vld [vmem:[#allocation175_spill] sm:$0xff]  ;;  %8216 = vrcp.f32 %v11029_v28  ;;  %vm4391_vm11 = vweird.f32 %v11029_v28 }
 0x587   :  { %4321 = vmatpush.bf16.msrb.mxu2 %v13987_v37  ;;  %4334 = vmatpush.bf16.msrb.mxu3 %v13988_v18  ;;  %v4369_v37 = vmul.f32 %v11015_v63, %v4368_v13  ;;  %v4350_v18 = vmul.f32 %v11011_v51, %v4349_v52  ;;  %8218 = vtanh.f32 %v4131_v31  ;;  %v14010_v31 = vld [vmem:[#allocation188_spill] sm:$0xff] }
 0x589   :  { %v4351_v13 = vadd.f32 %v11011_v51, %v4350_v18  ;;  %v4370_v52 = vadd.f32 %v11015_v63, %v4369_v37  ;;  %v4356_v37 = vand.u32 2147483647, %v10991_v34  ;;  %v14013_v18 = vld [vmem:[#allocation191_spill] sm:$0xff] }
 0x58a   :  { %4296 = vmatpush.bf16.msrb.mxu0 %v13989_v36  ;;  %4309 = vmatpush.bf16.msrb.mxu1 %v13990_v14  ;;  %v13996_v36 = vld [vmem:[#allocation179_spill] sm:$0xff] }
 0x58b   :  { %4322 = vmatpush.bf16.msrb.mxu2 %v13991_v39  ;;  %4335 = vmatpush.bf16.msrb.mxu3 %v13992_v3  ;;  %v4355_v34 = vsel %vm11054_vm6, %v11011_v51, %v4351_v13  ;;  %v14011_v3 = vld [vmem:[#allocation189_spill] sm:$0xff]  ;;  %vm4357_vm8 = vcmp.eq.f32.partialorder %v4356_v37, 8.507059e+37  ;;  %v14012_v39 = vld [vmem:[#allocation190_spill] sm:$0xff]  ;;  %v14018_v37 = vld [vmem:[#allocation196_spill] sm:$0xff] }
 0x58e   :  { %4297 = vmatpush.bf16.msrb.mxu0 %v13993_v47  ;;  %4310 = vmatpush.bf16.msrb.mxu1 %v13994_v29  ;;  %v13999_v47 = vld [vmem:[#allocation181_spill] sm:$0xff]  ;;  %v4377_v29 = vand.u32 2147483648, %v10995_v32 }
 0x58f   :  { %4323 = vmatpush.bf16.msrb.mxu2 %v13995_v7  ;;  %4336 = vmatpush.bf16.msrb.mxu3 %v13996_v36  ;;  %v14000_v7 = vld [vmem:[#allocation182_spill] sm:$0xff]  ;;  %v14001_v36 = vld [vmem:[#allocation183_spill] sm:$0xff] }
 0x592   :  { %4298 = vmatpush.bf16.msrb.mxu0 %v13998_v12  ;;  %4311 = vmatpush.bf16.msrb.mxu1 %v13999_v47  ;;  %v14003_v12 = vld [vmem:[#allocation185_spill] sm:$0xff]  ;;  %v14007_v47 = vld [vmem:[#allocation187_spill] sm:$0xff] }
 0x593   :  { %4324 = vmatpush.bf16.msrb.mxu2 %v14000_v7  ;;  %4337 = vmatpush.bf16.msrb.mxu3 %v14001_v36  ;;  %v4375_v36 = vand.u32 2147483647, %v10995_v32  ;;  %v14006_v7 = vld [vmem:[#allocation186_spill] sm:$0xff]  ;;  %v4374_v32 = vsel %vm11064_vm7, %v11015_v63, %v4370_v52 }
 0x595   :  { %4299 = vmatmul.bf16.vlgmr.msrb.gmra.mxu0 %v10934_v53  ;;  %4312 = vmatmul.bf16.vlgmr.msrb.gmra.mxu1 %v10936_v54  ;;  %vm4376_vm9 = vcmp.eq.f32.partialorder %v4375_v36, 8.507059e+37 }
 0x596   :  { %4407 = vmatpush.bf16.msra.mxu0 %v14002_v0  ;;  %4420 = vmatpush.bf16.msra.mxu1 %v14003_v12  ;;  %v8217_v12 = vpop.eup %8216 }
 0x597   :  { %4433 = vmatpush.bf16.msra.mxu2 %v14006_v7  ;;  %4446 = vmatpush.bf16.msra.mxu3 %v14007_v47  ;;  %v4378_v47 = vor.u32 1.1754944e-38, %v4377_v29  ;;  %v4359_v7 = vor.u32 1.1754944e-38, %v4358_v62  ;;  %v4387_v63 = vmul.f32 %v8217_v12, %v11029_v28  ;;  %v8219_v0 = vpop.eup %8218  ;;  %v14016_v29 = vld [vmem:[#allocation121_spill] sm:$0xff]  ;;  %vm4392_vm10 = vweird.f32 %v8217_v12 }
 0x598   :  { %4325 = vmatmul.bf16.vlgmr.msrb.gmra.mxu2 %v10934_v53  ;;  %4338 = vmatmul.bf16.vlgmr.msrb.gmra.mxu3 %v10936_v54  ;;  %v14014_v53 = vld [vmem:[#allocation192_spill] sm:$0xff]  ;;  %v14015_v54 = vld [vmem:[#allocation193_spill] sm:$0xff]  ;;  %vm4393_vm12 = vmor %vm4391_vm11, %vm4392_vm10 }
 0x599   :  { %v4360_v51 = vsel %vm4357_vm8, %v4359_v7, %v4355_v34  ;;  %v4379_v13 = vsel %vm4376_vm9, %v4378_v47, %v4374_v32  ;;  %v4388_v36 = vsub.f32 1.0, %v4387_v63  ;;  %v14022_v47 = vld [vmem:[#allocation200_spill] sm:$0xff]  ;;  %v14023_v34 = vld [vmem:[#allocation201_spill] sm:$0xff]  ;;  %v14027_v63 = vld [vmem:[#allocation206_spill] sm:$0xff] }
 0x59a   :  { %4408 = vmatpush.bf16.msra.mxu0 %v14010_v31  ;;  %4421 = vmatpush.bf16.msra.mxu1 %v14011_v3  ;;  %v4401_v52 = vmul.f32 %v4379_v13, %v14016_v29  ;;  %v4402_v62 = vmul.f32 %v8219_v0, %v4360_v51  ;;  %v14017_v31 = vld [vmem:[#allocation194_spill] sm:$0xff]  ;;  %v14025_v13 = vld [vmem:[#allocation204_spill] sm:$0xff]  ;;  %v14026_v51 = vld [vmem:[#allocation205_spill] sm:$0xff]  ;;  %v4397_v29 = vand.u32 2147483648, %v11029_v28 }
 0x59b   :  { %4434 = vmatpush.bf16.msra.mxu2 %v14012_v39  ;;  %4447 = vmatpush.bf16.msra.mxu3 %v14013_v18  ;;  %v14019_v39 = vld [vmem:[#allocation198_spill] sm:$0xff]  ;;  %v14020_v18 = vld [vmem:[#allocation199_spill] sm:$0xff]  ;;  %v4389_v32 = vmul.f32 %v8217_v12, %v4388_v36  ;;  %v14029_v36 = vld [vmem:[#allocation208_spill] sm:$0xff] }
 0x59c   :  { %v11090_v7 = vadd.f32 %v4402_v62, %v4401_v52  ;;  %v4395_v52 = vand.u32 2147483647, %v11029_v28  ;;  %v14028_v62 = vld [vmem:[#allocation207_spill] sm:$0xff]  ;;  %v14035_v28 = vld [vmem:[#allocation214_spill] sm:$0xff] }
 0x59d   :  { %v4390_v0 = vadd.f32 %v8217_v12, %v4389_v32  ;;  %v14032_v32 = vld [vmem:[#allocation211_spill] sm:$0xff] }
 0x59e   :  { %4409 = vmatpush.bf16.msra.mxu0 %v14014_v53  ;;  %4422 = vmatpush.bf16.msra.mxu1 %v14015_v54  ;;  %14021 = vst [vmem:[#allocation123_spill] sm:$0xff] %v11090_v7  ;;  %v14024_v54 = vld [vmem:[#allocation202_spill] sm:$0xff]  ;;  %8220 = vtanh.f32 %v11090_v7  ;;  %vm4396_vm13 = vcmp.eq.f32.partialorder %v4395_v52, 8.507059e+37  ;;  %v14041_v52 = vld [vmem:[#allocation221_spill] sm:$0xff]  ;;  %v14123_v7 = vld [vmem:[#allocation256_spill] sm:$0xff] }
 0x59f   :  { %4435 = vmatpush.bf16.msra.mxu2 %v14017_v31  ;;  %4448 = vmatpush.bf16.msra.mxu3 %v14018_v37  ;;  %v14037_v37 = vld [vmem:[#allocation217_spill] sm:$0xff] }
 0x5a2   :  { %4410 = vmatpush.bf16.msra.mxu0 %v14019_v39  ;;  %4423 = vmatpush.bf16.msra.mxu1 %v14020_v18  ;;  %v14034_v39 = vld [vmem:[#allocation213_spill] sm:$0xff] }
 0x5a3   :  { %4436 = vmatpush.bf16.msra.mxu2 %v14022_v47  ;;  %4449 = vmatpush.bf16.msra.mxu3 %v14023_v34  ;;  %v14033_v47 = vld [vmem:[#allocation212_spill] sm:$0xff] }
 0x5a4   :  { %v8221_v34 = vpop.eup %8220 }
 0x5a6   :  { %4411 = vmatpush.bf16.msra.mxu0 %v14024_v54  ;;  %4424 = vmatpush.bf16.msra.mxu1 %v14025_v13  ;;  %v14030_v13 = vld [vmem:[#allocation209_spill] sm:$0xff]  ;;  %v14031_v54 = vld [vmem:[#allocation210_spill] sm:$0xff] }
 0x5a7   :  { %4437 = vmatpush.bf16.msra.mxu2 %v14026_v51  ;;  %4450 = vmatpush.bf16.msra.mxu3 %v14027_v63  ;;  %v4394_v51 = vsel %vm4393_vm12, %v8217_v12, %v4390_v0  ;;  %v4398_v63 = vor.u32 1.1754944e-38, %v4397_v29  ;;  %v14039_v12 = vld [vmem:[#allocation219_spill] sm:$0xff]  ;;  %v14040_v29 = vld [vmem:[#allocation220_spill] sm:$0xff] }
 0x5a9   :  { %v4399_v18 = vsel %vm4396_vm13, %v4398_v63, %v4394_v51  ;;  %v14042_v51 = vld [vmem:[#allocation222_spill] sm:$0xff]  ;;  %v14043_v63 = vld [vmem:[#allocation223_spill] sm:$0xff] }
 0x5aa   :  { %4412 = vmatpush.bf16.msra.mxu0 %v14028_v62  ;;  %4425 = vmatpush.bf16.msra.mxu1 %v14029_v36  ;;  %v4405_v62 = vmul.f32 %v8221_v34, %v4399_v18  ;;  %v14036_v36 = vld [vmem:[#allocation216_spill] sm:$0xff]  ;;  %v14045_v34 = vld [vmem:[#allocation225_spill] sm:$0xff] }
 0x5ab   :  { %4438 = vmatpush.bf16.msra.mxu2 %v14030_v13  ;;  %4451 = vmatpush.bf16.msra.mxu3 %v14031_v54  ;;  %v14038_v13 = vld [vmem:[#allocation218_spill] sm:$0xff]  ;;  %v14044_v18 = vld [vmem:[#allocation224_spill] sm:$0xff] }
 0x5ac   :  { %v11114_v0 = vpack.c.bf16 %v4405_v62, %v4405_v62  ;;  %v14046_v62 = vld [vmem:[#allocation226_spill] sm:$0xff]  ;;  %v14094_v54 = vld [vmem:[#allocation44_spill] sm:$0xff] }
 0x5ae   :  { %4413 = vmatpush.bf16.msra.mxu0 %v14032_v32  ;;  %4426 = vmatpush.bf16.msra.mxu1 %v14033_v47  ;;  %v14085_v47 = vld [vmem:[#allocation247_spill] sm:$0xff] }
 0x5af   :  { %4439 = vmatpush.bf16.msra.mxu2 %v14034_v39  ;;  %4452 = vmatpush.bf16.msra.mxu3 %v14035_v28  ;;  %v14083_v28 = vld [vmem:[#allocation34_spill] sm:$0xff]  ;;  %v14084_v39 = vld [vmem:[#allocation35_spill] sm:$0xff] }
 0x5b2   :  { %4414 = vmatpush.bf16.msra.mxu0 %v14036_v36  ;;  %4427 = vmatpush.bf16.msra.mxu1 %v14037_v37  ;;  %v14053_v37 = vld [vmem:[#allocation233_spill] sm:$0xff]  ;;  %v14054_v36 = vld [vmem:[#allocation234_spill] sm:$0xff] }
 0x5b3   :  { %4440 = vmatpush.bf16.msra.mxu2 %v14038_v13  ;;  %4453 = vmatpush.bf16.msra.mxu3 %v14039_v12  ;;  %v14051_v12 = vld [vmem:[#allocation231_spill] sm:$0xff]  ;;  %v14052_v13 = vld [vmem:[#allocation232_spill] sm:$0xff] }
 0x5b5   :  { %4415 = vmatmul.bf16.vlgmr.msra.gmra.mxu0 %v11114_v0  ;;  %4428 = vmatmul.bf16.vlgmr.msra.gmra.mxu1 %v11114_v0 }
 0x5b6   :  { %4459 = vmatpush.bf16.msrb.mxu0 %v14040_v29  ;;  %4472 = vmatpush.bf16.msrb.mxu1 %v14041_v52  ;;  %v14047_v29 = vld [vmem:[#allocation227_spill] sm:$0xff]  ;;  %v14048_v52 = vld [vmem:[#allocation228_spill] sm:$0xff] }
 0x5b7   :  { %4485 = vmatpush.bf16.msrb.mxu2 %v14042_v51  ;;  %4498 = vmatpush.bf16.msrb.mxu3 %v14043_v63  ;;  %v14049_v51 = vld [vmem:[#allocation229_spill] sm:$0xff]  ;;  %v14050_v63 = vld [vmem:[#allocation230_spill] sm:$0xff] }
 0x5b8   :  { %4441 = vmatmul.bf16.vlgmr.msra.gmra.mxu2 %v11114_v0  ;;  %4454 = vmatmul.bf16.vlgmr.msra.gmra.mxu3 %v11114_v0 }
 0x5ba   :  { %4460 = vmatpush.bf16.msrb.mxu0 %v14044_v18  ;;  %4473 = vmatpush.bf16.msrb.mxu1 %v14045_v34  ;;  %v14055_v18 = vld [vmem:[#allocation235_spill] sm:$0xff]  ;;  %v14056_v34 = vld [vmem:[#allocation236_spill] sm:$0xff] }
 0x5bb   :  { %4486 = vmatpush.bf16.msrb.mxu2 %v14046_v62  ;;  %4499 = vmatpush.bf16.msrb.mxu3 %v14047_v29  ;;  %v14057_v62 = vld [vmem:[#allocation237_spill] sm:$0xff]  ;;  %v14058_v29 = vld [vmem:[#allocation238_spill] sm:$0xff] }
 0x5be   :  { %4461 = vmatpush.bf16.msrb.mxu0 %v14048_v52  ;;  %4474 = vmatpush.bf16.msrb.mxu1 %v14049_v51  ;;  %v14059_v52 = vld [vmem:[#allocation239_spill] sm:$0xff]  ;;  %v14060_v51 = vld [vmem:[#allocation240_spill] sm:$0xff] }
 0x5bf   :  { %4487 = vmatpush.bf16.msrb.mxu2 %v14050_v63  ;;  %4500 = vmatpush.bf16.msrb.mxu3 %v14051_v12  ;;  %v14061_v63 = vld [vmem:[#allocation241_spill] sm:$0xff]  ;;  %v14062_v12 = vld [vmem:[#allocation242_spill] sm:$0xff] }
 0x5c2   :  { %4462 = vmatpush.bf16.msrb.mxu0 %v14052_v13  ;;  %4475 = vmatpush.bf16.msrb.mxu1 %v14053_v37  ;;  %v14063_v13 = vld [vmem:[#allocation243_spill] sm:$0xff]  ;;  %v14064_v37 = vld [vmem:[#allocation244_spill] sm:$0xff] }
 0x5c3   :  { %4488 = vmatpush.bf16.msrb.mxu2 %v14054_v36  ;;  %4501 = vmatpush.bf16.msrb.mxu3 %v14055_v18  ;;  %v14065_v36 = vld [vmem:[#allocation245_spill] sm:$0xff]  ;;  %v14066_v18 = vld [vmem:[#allocation246_spill] sm:$0xff] }
 0x5c6   :  { %4463 = vmatpush.bf16.msrb.mxu0 %v14056_v34  ;;  %4476 = vmatpush.bf16.msrb.mxu1 %v14057_v62  ;;  %v14067_v34 = vld [vmem:[#allocation248_spill] sm:$0xff]  ;;  %v14068_v62 = vld [vmem:[#allocation249_spill] sm:$0xff] }
 0x5c7   :  { %4489 = vmatpush.bf16.msrb.mxu2 %v14058_v29  ;;  %4502 = vmatpush.bf16.msrb.mxu3 %v14059_v52  ;;  %v14069_v29 = vld [vmem:[#allocation250_spill] sm:$0xff]  ;;  %v14070_v52 = vld [vmem:[#allocation251_spill] sm:$0xff] }
 0x5ca   :  { %4464 = vmatpush.bf16.msrb.mxu0 %v14060_v51  ;;  %4477 = vmatpush.bf16.msrb.mxu1 %v14061_v63  ;;  %v14071_v51 = vld [vmem:[#allocation252_spill] sm:$0xff] }
 0x5cb   :  { %4490 = vmatpush.bf16.msrb.mxu2 %v14062_v12  ;;  %4503 = vmatpush.bf16.msrb.mxu3 %v14063_v13  ;;  %v14072_v63 = vld [vmem:[#allocation24_spill] sm:$0xff]  ;;  %v14073_v12 = vld [vmem:[#allocation25_spill] sm:$0xff]  ;;  %v14074_v13 = vld [vmem:[#allocation26_spill] sm:$0xff] }
 0x5ce   :  { %4465 = vmatpush.bf16.msrb.mxu0 %v14064_v37  ;;  %4478 = vmatpush.bf16.msrb.mxu1 %v14065_v36  ;;  %v14075_v37 = vld [vmem:[#allocation27_spill] sm:$0xff]  ;;  %v14082_v36 = vld [vmem:[#allocation33_spill] sm:$0xff] }
 0x5cf   :  { %4491 = vmatpush.bf16.msrb.mxu2 %v14066_v18  ;;  %4504 = vmatpush.bf16.msrb.mxu3 %v14067_v34  ;;  %v14079_v34 = vld [vmem:[#allocation30_spill] sm:$0xff]  ;;  %v14081_v18 = vld [vmem:[#allocation32_spill] sm:$0xff] }
 0x5d2   :  { %4466 = vmatpush.bf16.msrb.mxu0 %v14068_v62  ;;  %4479 = vmatpush.bf16.msrb.mxu1 %v14069_v29  ;;  %v4144_v29 = vpop.f32.mrf.mxu0 }
 0x5d3   :  { %4492 = vmatpush.bf16.msrb.mxu2 %v14070_v52  ;;  %4505 = vmatpush.bf16.msrb.mxu3 %v14071_v51  ;;  %v14076_v52 = vld [vmem:[#allocation28_spill] sm:$0xff]  ;;  %v14077_v51 = vld [vmem:[#allocation29_spill] sm:$0xff] }
 0x5d5   :  { %4467 = vmatmul.bf16.vlgmr.msrb.gmra.mxu0 %v11114_v0  ;;  %4480 = vmatmul.bf16.vlgmr.msrb.gmra.mxu1 %v11114_v0 }
 0x5d6   :  { %4653 = vmatpush.bf16.msra.mxu0 %v14072_v63  ;;  %4666 = vmatpush.bf16.msra.mxu1 %v14073_v12  ;;  %v14078_v63 = vld [vmem:[#allocation253_spill] sm:$0xff]  ;;  %v4157_v12 = vpop.f32.mrf.mxu1 }
 0x5d7   :  { %4679 = vmatpush.bf16.msra.mxu2 %v14074_v13  ;;  %4692 = vmatpush.bf16.msra.mxu3 %v14075_v37  ;;  %v4145_v62 = vadd.f32 %v4144_v29, %v14078_v63  ;;  %v14080_v13 = vld [vmem:[#allocation31_spill] sm:$0xff]  ;;  %v14086_v63 = vld [vmem:[#allocation36_spill] sm:$0xff] }
 0x5d8   :  { %4493 = vmatmul.bf16.vlgmr.msrb.gmra.mxu2 %v11114_v0  ;;  %4506 = vmatmul.bf16.vlgmr.msrb.gmra.mxu3 %v11114_v0  ;;  %v4183_v32 = vpop.f32.mrf.mxu3 }
 0x5d9   :  { %v11165_v37 = vadd.f32 %v4157_v12, %v4145_v62  ;;  %v14088_v62 = vld [vmem:[#allocation38_spill] sm:$0xff] }
 0x5da   :  { %4654 = vmatpush.bf16.msra.mxu0 %v14076_v52  ;;  %4667 = vmatpush.bf16.msra.mxu1 %v14077_v51  ;;  %v4170_v52 = vpop.f32.mrf.mxu2  ;;  %v4146_v29 = vpop.f32.mrf.mxu0 }
 0x5db   :  { %4680 = vmatpush.bf16.msra.mxu2 %v14079_v34  ;;  %4693 = vmatpush.bf16.msra.mxu3 %v14080_v13  ;;  %v4171_v51 = vadd.f32 %v4170_v52, %v14085_v47  ;;  %v14087_v34 = vld [vmem:[#allocation37_spill] sm:$0xff]  ;;  %v14093_v52 = vld [vmem:[#allocation43_spill] sm:$0xff] }
 0x5dd   :  { %v11174_v13 = vadd.f32 %v4183_v32, %v4171_v51  ;;  %v14095_v32 = vld [vmem:[#allocation45_spill] sm:$0xff]  ;;  %v14096_v51 = vld [vmem:[#allocation255_spill] sm:$0xff] }
 0x5de   :  { %4655 = vmatpush.bf16.msra.mxu0 %v14081_v18  ;;  %4668 = vmatpush.bf16.msra.mxu1 %v14082_v36  ;;  %v4159_v12 = vpop.f32.mrf.mxu1  ;;  %v14089_v18 = vld [vmem:[#allocation39_spill] sm:$0xff]  ;;  %v14090_v36 = vld [vmem:[#allocation40_spill] sm:$0xff] }
 0x5df   :  { %4681 = vmatpush.bf16.msra.mxu2 %v14083_v28  ;;  %4694 = vmatpush.bf16.msra.mxu3 %v14084_v39  ;;  %v14091_v28 = vld [vmem:[#allocation41_spill] sm:$0xff]  ;;  %v14092_v39 = vld [vmem:[#allocation42_spill] sm:$0xff] }
 0x5e0   :  { %v4185_v47 = vpop.f32.mrf.mxu3 }
 0x5e1   :  { %v14102_v47 = vld [vmem:[#allocation51_spill] sm:$0xff] }
 0x5e2   :  { %4656 = vmatpush.bf16.msra.mxu0 %v14086_v63  ;;  %4669 = vmatpush.bf16.msra.mxu1 %v14087_v34  ;;  %v4172_v29 = vpop.f32.mrf.mxu2  ;;  %v4196_v63 = vpop.f32.mrf.mxu0  ;;  %v14097_v34 = vld [vmem:[#allocation46_spill] sm:$0xff] }
 0x5e3   :  { %4682 = vmatpush.bf16.msra.mxu2 %v14088_v62  ;;  %4695 = vmatpush.bf16.msra.mxu3 %v14089_v18  ;;  %v4197_v12 = vadd.f32 %v4196_v63, %v14096_v51  ;;  %v14098_v18 = vld [vmem:[#allocation47_spill] sm:$0xff]  ;;  %v14101_v29 = vld [vmem:[#allocation50_spill] sm:$0xff]  ;;  %v14104_v51 = vld [vmem:[#allocation52_spill] sm:$0xff] }
 0x5e6   :  { %4657 = vmatpush.bf16.msra.mxu0 %v14090_v36  ;;  %4670 = vmatpush.bf16.msra.mxu1 %v14091_v28  ;;  %v4209_v62 = vpop.f32.mrf.mxu1  ;;  %v14099_v28 = vld [vmem:[#allocation48_spill] sm:$0xff] }
 0x5e7   :  { %4683 = vmatpush.bf16.msra.mxu2 %v14092_v39  ;;  %4696 = vmatpush.bf16.msra.mxu3 %v14093_v52  ;;  %v11187_v36 = vadd.f32 %v4209_v62, %v4197_v12  ;;  %v14100_v39 = vld [vmem:[#allocation49_spill] sm:$0xff]  ;;  %v14103_v52 = vld [vmem:[#allocation254_spill] sm:$0xff] }
 0x5e8   :  { %v4235_v31 = vpop.f32.mrf.mxu3  ;;  %v14106_v12 = vld [vmem:[#allocation54_spill] sm:$0xff] }
 0x5ea   :  { %4658 = vmatpush.bf16.msra.mxu0 %v14094_v54  ;;  %4671 = vmatpush.bf16.msra.mxu1 %v14095_v32  ;;  %v4222_v54 = vpop.f32.mrf.mxu2  ;;  %v4198_v63 = vpop.f32.mrf.mxu0 }
 0x5eb   :  { %4684 = vmatpush.bf16.msra.mxu2 %v14097_v34  ;;  %4697 = vmatpush.bf16.msra.mxu3 %v14098_v18  ;;  %v4223_v32 = vadd.f32 %v4222_v54, %v14103_v52  ;;  %v14105_v34 = vld [vmem:[#allocation53_spill] sm:$0xff] }
 0x5ed   :  { %v11196_v18 = vadd.f32 %v4235_v31, %v4223_v32  ;;  %v14110_v31 = vld [vmem:[#allocation58_spill] sm:$0xff]  ;;  %v14111_v32 = vld [vmem:[#allocation59_spill] sm:$0xff] }
 0x5ee   :  { %4659 = vmatpush.bf16.msra.mxu0 %v14099_v28  ;;  %4672 = vmatpush.bf16.msra.mxu1 %v14100_v39  ;;  %v4211_v62 = vpop.f32.mrf.mxu1  ;;  %v14107_v28 = vld [vmem:[#allocation55_spill] sm:$0xff]  ;;  %v14108_v39 = vld [vmem:[#allocation56_spill] sm:$0xff] }
 0x5ef   :  { %4685 = vmatpush.bf16.msra.mxu2 %v14101_v29  ;;  %4698 = vmatpush.bf16.msra.mxu3 %v14102_v47  ;;  %v14109_v29 = vld [vmem:[#allocation57_spill] sm:$0xff]  ;;  %v14112_v62 = vld [vmem:[#allocation60_spill] sm:$0xff] }
 0x5f0   :  { %v4237_v63 = vpop.f32.mrf.mxu3  ;;  %v14117_v47 = vld [vmem:[#allocation64_spill] sm:$0xff] }
 0x5f1   :  { %v14120_v63 = vld [vmem:[#allocation67_spill] sm:$0xff] }
 0x5f2   :  { %4660 = vmatpush.bf16.msra.mxu0 %v14104_v51  ;;  %4673 = vmatpush.bf16.msra.mxu1 %v14105_v34  ;;  %v4224_v54 = vpop.f32.mrf.mxu2  ;;  %v14115_v34 = vld [vmem:[#allocation63_spill] sm:$0xff]  ;;  %v14116_v51 = vld [vmem:[#allocation257_spill] sm:$0xff] }
 0x5f3   :  { %4686 = vmatpush.bf16.msra.mxu2 %v14106_v12  ;;  %4699 = vmatpush.bf16.msra.mxu3 %v14107_v28  ;;  %v14113_v28 = vld [vmem:[#allocation61_spill] sm:$0xff]  ;;  %v14114_v12 = vld [vmem:[#allocation62_spill] sm:$0xff] }
 0x5f5   :  { %4661 = vmatmul.bf16.vlgmr.msra.gmra.mxu0 %v11114_v0  ;;  %4674 = vmatmul.bf16.vlgmr.msra.gmra.mxu1 %v11114_v0 }
 0x5f6   :  { %4711 = vmatpush.bf16.msrb.mxu0 %v14108_v39  ;;  %4724 = vmatpush.bf16.msrb.mxu1 %v14109_v29  ;;  %v4248_v39 = vpop.f32.mrf.mxu0  ;;  %v4261_v29 = vpop.f32.mrf.mxu1 }
 0x5f7   :  { %4687 = vmatmul.bf16.vlgmr.msra.gmra.mxu2 %v11114_v0  ;;  %4700 = vmatmul.bf16.vlgmr.msra.gmra.mxu3 %v11114_v0  ;;  %v4249_v52 = vadd.f32 %v4248_v39, %v14116_v51  ;;  %v14118_v0 = vld [vmem:[#allocation65_spill] sm:$0xff]  ;;  %v14124_v51 = vld [vmem:[#allocation70_spill] sm:$0xff] }
 0x5f8   :  { %4737 = vmatpush.bf16.msrb.mxu2 %v14110_v31  ;;  %4750 = vmatpush.bf16.msrb.mxu3 %v14111_v32  ;;  %v14119_v32 = vld [vmem:[#allocation66_spill] sm:$0xff] }
 0x5f9   :  { %v11215_v54 = vadd.f32 %v4261_v29, %v4249_v52  ;;  %v14126_v52 = vld [vmem:[#allocation72_spill] sm:$0xff]  ;;  %v14127_v29 = vld [vmem:[#allocation73_spill] sm:$0xff] }
 0x5fa   :  { %4712 = vmatpush.bf16.msrb.mxu0 %v14112_v62  ;;  %4725 = vmatpush.bf16.msrb.mxu1 %v14113_v28  ;;  %v14121_v62 = vld [vmem:[#allocation68_spill] sm:$0xff]  ;;  %v14122_v28 = vld [vmem:[#allocation69_spill] sm:$0xff] }
 0x5fb   :  { %v4274_v31 = vpop.f32.mrf.mxu2 }
 0x5fc   :  { %4738 = vmatpush.bf16.msrb.mxu2 %v14114_v12  ;;  %4751 = vmatpush.bf16.msrb.mxu3 %v14115_v34  ;;  %v4287_v12 = vpop.f32.mrf.mxu3  ;;  %v4275_v34 = vadd.f32 %v4274_v31, %v14123_v7 }
 0x5fe   :  { %4713 = vmatpush.bf16.msrb.mxu0 %v14117_v47  ;;  %4726 = vmatpush.bf16.msrb.mxu1 %v14118_v0  ;;  %v4250_v53 = vpop.f32.mrf.mxu0  ;;  %v4263_v39 = vpop.f32.mrf.mxu1  ;;  %v14125_v47 = vld [vmem:[#allocation71_spill] sm:$0xff]  ;;  %v14131_v0 = vld [vmem:[#allocation77_spill] sm:$0xff] }
 0x5ff   :  { %v14132_v39 = vld [vmem:[#allocation78_spill] sm:$0xff] }
 0x600   :  { %4739 = vmatpush.bf16.msrb.mxu2 %v14119_v32  ;;  %4752 = vmatpush.bf16.msrb.mxu3 %v14120_v63  ;;  %v11226_v32 = vadd.f32 %v4287_v12, %v4275_v34  ;;  %v14128_v63 = vld [vmem:[#allocation74_spill] sm:$0xff]  ;;  %v14137_v12 = vld [vmem:[#allocation83_spill] sm:$0xff] }
 0x601   :  { %v14136_v34 = vld [vmem:[#allocation82_spill] sm:$0xff] }
 0x602   :  { %4714 = vmatpush.bf16.msrb.mxu0 %v14121_v62  ;;  %4727 = vmatpush.bf16.msrb.mxu1 %v14122_v28  ;;  %v14129_v62 = vld [vmem:[#allocation75_spill] sm:$0xff]  ;;  %v14130_v28 = vld [vmem:[#allocation76_spill] sm:$0xff] }
 0x603   :  { %v4276_v53 = vpop.f32.mrf.mxu2 }
 0x604   :  { %4740 = vmatpush.bf16.msrb.mxu2 %v14124_v51  ;;  %4753 = vmatpush.bf16.msrb.mxu3 %v14125_v47  ;;  %v4289_v31 = vpop.f32.mrf.mxu3  ;;  %v14133_v51 = vld [vmem:[#allocation79_spill] sm:$0xff]  ;;  %v14134_v47 = vld [vmem:[#allocation80_spill] sm:$0xff]  ;;  %v14141_v53 = vld [vmem:[#allocation89_spill] sm:$0xff] }
 0x605   :  { %v14142_v31 = vld [vmem:[#allocation86_spill] sm:$0xff] }
 0x606   :  { %4715 = vmatpush.bf16.msrb.mxu0 %v14126_v52  ;;  %4728 = vmatpush.bf16.msrb.mxu1 %v14127_v29  ;;  %v14135_v52 = vld [vmem:[#allocation81_spill] sm:$0xff] }
 0x608   :  { %4741 = vmatpush.bf16.msrb.mxu2 %v14128_v63  ;;  %4754 = vmatpush.bf16.msrb.mxu3 %v14129_v62  ;;  %v14138_v63 = vld [vmem:[#allocation84_spill] sm:$0xff]  ;;  %v14139_v62 = vld [vmem:[#allocation85_spill] sm:$0xff] }
 0x60a   :  { %4716 = vmatpush.bf16.msrb.mxu0 %v14130_v28  ;;  %4729 = vmatpush.bf16.msrb.mxu1 %v14131_v0  ;;  %v14140_v28 = vld [vmem:[#allocation88_spill] sm:$0xff]  ;;  %v14157_v0 = vld [vmem:[#allocation103_spill] sm:$0xff] }
 0x60c   :  { %4742 = vmatpush.bf16.msrb.mxu2 %v14132_v39  ;;  %4755 = vmatpush.bf16.msrb.mxu3 %v14133_v51  ;;  %v14143_v39 = vld [vmem:[#allocation87_spill] sm:$0xff]  ;;  %v14144_v51 = vld [vmem:[#allocation90_spill] sm:$0xff] }
 0x60e   :  { %4717 = vmatpush.bf16.msrb.mxu0 %v14134_v47  ;;  %4730 = vmatpush.bf16.msrb.mxu1 %v14135_v52  ;;  %v14145_v47 = vld [vmem:[#allocation91_spill] sm:$0xff]  ;;  %v14146_v52 = vld [vmem:[#allocation92_spill] sm:$0xff] }
 0x610   :  { %4743 = vmatpush.bf16.msrb.mxu2 %v14136_v34  ;;  %4756 = vmatpush.bf16.msrb.mxu3 %v14137_v12  ;;  %v14147_v34 = vld [vmem:[#allocation93_spill] sm:$0xff]  ;;  %v14148_v12 = vld [vmem:[#allocation94_spill] sm:$0xff] }
 0x612   :  { %4718 = vmatpush.bf16.msrb.mxu0 %v14138_v63  ;;  %4731 = vmatpush.bf16.msrb.mxu1 %v14139_v62  ;;  %v14149_v63 = vld [vmem:[#allocation95_spill] sm:$0xff]  ;;  %v11250_v62 = vpop.f32.mrf.mxu0 }
 0x614   :  { %4744 = vmatpush.bf16.msrb.mxu2 %v14142_v31  ;;  %4757 = vmatpush.bf16.msrb.mxu3 %v14143_v39  ;;  %v14151_v31 = vld [vmem:[#allocation97_spill] sm:$0xff]  ;;  %v14152_v39 = vld [vmem:[#allocation98_spill] sm:$0xff] }
 0x616   :  { %4763 = vmatpush.bf16.msra.mxu0 %v14140_v28  ;;  %4776 = vmatpush.bf16.msra.mxu1 %v14141_v53  ;;  %v11252_v28 = vpop.f32.mrf.mxu1  ;;  %v14150_v53 = vld [vmem:[#allocation96_spill] sm:$0xff] }
 0x618   :  { %4789 = vmatpush.bf16.msra.mxu2 %v14144_v51  ;;  %4802 = vmatpush.bf16.msra.mxu3 %v14145_v47  ;;  %v14153_v51 = vld [vmem:[#allocation99_spill] sm:$0xff]  ;;  %v14154_v47 = vld [vmem:[#allocation100_spill] sm:$0xff] }
 0x61a   :  { %4764 = vmatpush.bf16.msra.mxu0 %v14146_v52  ;;  %4777 = vmatpush.bf16.msra.mxu1 %v14147_v34  ;;  %v14155_v52 = vld [vmem:[#allocation101_spill] sm:$0xff]  ;;  %v4302_v29 = vpop.f32.mrf.mxu0 }
 0x61b   :  { %v4326_v34 = vpop.f32.mrf.mxu2  ;;  %v14166_v29 = vld [vmem:[#allocation112_spill] sm:$0xff] }
 0x61c   :  { %4790 = vmatpush.bf16.msra.mxu2 %v14148_v12  ;;  %4803 = vmatpush.bf16.msra.mxu3 %v14149_v63  ;;  %v11260_v12 = vpop.f32.mrf.mxu3  ;;  %v14156_v63 = vld [vmem:[#allocation102_spill] sm:$0xff] }
 0x61e   :  { %4765 = vmatpush.bf16.msra.mxu0 %v14150_v53  ;;  %4778 = vmatpush.bf16.msra.mxu1 %v14151_v31  ;;  %v4315_v7 = vpop.f32.mrf.mxu1  ;;  %v14158_v53 = vld [vmem:[#allocation104_spill] sm:$0xff]  ;;  %v14159_v31 = vld [vmem:[#allocation105_spill] sm:$0xff] }
 0x61f   :  { %v14167_v7 = vld [vmem:[#allocation113_spill] sm:$0xff] }
 0x620   :  { %4791 = vmatpush.bf16.msra.mxu2 %v14152_v39  ;;  %4804 = vmatpush.bf16.msra.mxu3 %v14153_v51  ;;  %v14160_v39 = vld [vmem:[#allocation106_spill] sm:$0xff]  ;;  %v14161_v51 = vld [vmem:[#allocation107_spill] sm:$0xff] }
 0x622   :  { %4766 = vmatpush.bf16.msra.mxu0 %v14154_v47  ;;  %4779 = vmatpush.bf16.msra.mxu1 %v14155_v52  ;;  %v14162_v47 = vld [vmem:[#allocation108_spill] sm:$0xff]  ;;  %v14163_v52 = vld [vmem:[#allocation109_spill] sm:$0xff] }
 0x623   :  { %v4328_v3 = vpop.f32.mrf.mxu2 }
 0x624   :  { %4792 = vmatpush.bf16.msra.mxu2 %v14156_v63  ;;  %4805 = vmatpush.bf16.msra.mxu3 %v14157_v0  ;;  %v4341_v14 = vpop.f32.mrf.mxu3  ;;  %v14165_v63 = vld [vmem:[#allocation111_spill] sm:$0xff] }
 0x625   :  { %v14173_v3 = vld [vmem:[#allocation119_spill] sm:$0xff] }
 0x626   :  { %4767 = vmatpush.bf16.msra.mxu0 %v14158_v53  ;;  %4780 = vmatpush.bf16.msra.mxu1 %v14159_v31  ;;  %v14168_v53 = vld [vmem:[#allocation114_spill] sm:$0xff]  ;;  %v14169_v31 = vld [vmem:[#allocation115_spill] sm:$0xff] }
 0x628   :  { %4793 = vmatpush.bf16.msra.mxu2 %v14160_v39  ;;  %4806 = vmatpush.bf16.msra.mxu3 %v14161_v51  ;;  %v14170_v39 = vld [vmem:[#allocation116_spill] sm:$0xff]  ;;  %v14171_v51 = vld [vmem:[#allocation117_spill] sm:$0xff] }
 0x62a   :  { %4768 = vmatpush.bf16.msra.mxu0 %v14162_v47  ;;  %4781 = vmatpush.bf16.msra.mxu1 %v14163_v52  ;;  %v14172_v47 = vld [vmem:[#allocation118_spill] sm:$0xff] }
 0x62c   :  { %4794 = vmatpush.bf16.msra.mxu2 %v14164_v30  ;;  %4807 = vmatpush.bf16.msra.mxu3 %v14165_v63 }
 0x62e   :  { %4769 = vmatpush.bf16.msra.mxu0 %v14166_v29  ;;  %4782 = vmatpush.bf16.msra.mxu1 %v14167_v7 }
 0x630   :  { %4795 = vmatpush.bf16.msra.mxu2 %v14168_v53  ;;  %4808 = vmatpush.bf16.msra.mxu3 %v14169_v31 }
 0x632   :  { %4770 = vmatpush.bf16.msra.mxu0 %v14170_v39  ;;  %4783 = vmatpush.bf16.msra.mxu1 %v14171_v51  ;;  %v4416_v14 = vpop.f32.mrf.mxu0  ;;  %v4429_v30 = vpop.f32.mrf.mxu1 }
 0x633   :  { %v4511_v63 = vadd.f32 %v4416_v14, %v11165_v37  ;;  %v4512_v29 = vadd.f32 %v4429_v30, %v11174_v13 }
 0x634   :  { %4796 = vmatpush.bf16.msra.mxu2 %v14172_v47  ;;  %4809 = vmatpush.bf16.msra.mxu3 %v14173_v3 }
 0x635   :  { %v7628_v52 = vmul.f32 -1.442695, %v4511_v63  ;;  %v7629_v7 = vmul.f32 -1.442695, %v4512_v29 }
 0x637   :  { %8222 = vpow2.f32 %v7628_v52 }
 0x638   :  { %8224 = vpow2.f32 %v7629_v7 }
 0x63a   :  { %v4418_v0 = vpop.f32.mrf.mxu0  ;;  %v4431_v47 = vpop.f32.mrf.mxu1 }
 0x63b   :  { %v4442_v53 = vpop.f32.mrf.mxu2  ;;  %v4455_v31 = vpop.f32.mrf.mxu3 }
 0x63c   :  { %v4513_v39 = vadd.f32 %v4442_v53, %v11187_v36  ;;  %v4514_v51 = vadd.f32 %v4455_v31, %v11196_v18 }
 0x63d   :  { %v8223_v55 = vpop.eup %8222 }
 0x63e   :  { %v7630_v15 = vmul.f32 -1.442695, %v4513_v39  ;;  %v7631_v3 = vmul.f32 -1.442695, %v4514_v51  ;;  %v8225_v50 = vpop.eup %8224  ;;  %v4525_v6 = vadd.f32 1.0, %v8223_v55  ;;  %v14175_v39 = vld [vmem:[#allocation259_spill] sm:$0xff] }
 0x63f   :  { %v11284_v37 = vadd.f32 1.0, %v8225_v50  ;;  %v4327_v53 = vadd.f32 %v4326_v34, %v14175_v39 }
 0x640   :  { %8226 = vpow2.f32 %v7630_v15  ;;  %v14174_v15 = vld [vmem:[#allocation258_spill] sm:$0xff]  ;;  %v4536_v7 = vand.u32 2147483647, %v4525_v6  ;;  %vm4532_vm14 = vweird.f32 %v4525_v6 }
 0x641   :  { %8228 = vpow2.f32 %v7631_v3  ;;  %v4301_v0 = vadd.f32 %v11250_v62, %v14174_v15  ;;  %vm4547_vm15 = vweird.f32 %v11284_v37 }
 0x642   :  { %8230 = vrcp.f32 %v4525_v6  ;;  %vm11310_vm1 = vcmp.eq.f32.partialorder %v4536_v7, 8.507059e+37 }
 0x643   :  { %8232 = vrcp.f32 %v11284_v37  ;;  %v4444_v30 = vpop.f32.mrf.mxu2  ;;  %v4457_v13 = vpop.f32.mrf.mxu3  ;;  %v4314_v14 = vadd.f32 %v11252_v28, %v4301_v0 }
 0x644   :  { %v4340_v30 = vadd.f32 %v11260_v12, %v4327_v53  ;;  %v4538_v13 = vand.u32 2147483648, %v4525_v6 }
 0x646   :  { %v8227_v63 = vpop.eup %8226 }
 0x647   :  { %v8229_v36 = vpop.eup %8228  ;;  %v4563_v52 = vadd.f32 1.0, %v8227_v63 }
 0x648   :  { %v11287_v18 = vpop.eup %8230  ;;  %v11289_v47 = vadd.f32 1.0, %v8229_v36 }
 0x649   :  { %v11291_v51 = vpop.eup %8232  ;;  %v4528_v55 = vmul.f32 %v11287_v18, %v4525_v6  ;;  %8234 = vrcp.f32 %v4563_v52  ;;  %v4576_v62 = vand.u32 2147483648, %v4563_v52  ;;  %vm4533_vm0 = vweird.f32 %v11287_v18 }
 0x64a   :  { %v4543_v50 = vmul.f32 %v11291_v51, %v11284_v37  ;;  %8236 = vrcp.f32 %v11289_v47  ;;  %v4591_v12 = vand.u32 2147483648, %v11289_v47  ;;  %vm4548_vm2 = vweird.f32 %v11291_v51  ;;  %vm11320_vm7 = vmor %vm4532_vm14, %vm4533_vm0 }
 0x64b   :  { %v4529_v31 = vsub.f32 1.0, %v4528_v55  ;;  %v4551_v55 = vand.u32 2147483647, %v11284_v37  ;;  %vm4570_vm8 = vweird.f32 %v4563_v52  ;;  %vm11327_vm9 = vmor %vm4547_vm15, %vm4548_vm2  ;;  %vm4585_vm11 = vweird.f32 %v11289_v47 }
 0x64c   :  { %v4544_v29 = vsub.f32 1.0, %v4543_v50  ;;  %v4553_v50 = vand.u32 2147483648, %v11284_v37 }
 0x64d   :  { %v4530_v1 = vmul.f32 %v11287_v18, %v4529_v31  ;;  %v4574_v31 = vand.u32 2147483647, %v4563_v52  ;;  %vm4552_vm15 = vcmp.eq.f32.partialorder %v4551_v55, 8.507059e+37 }
 0x64e   :  { %v4545_v46 = vmul.f32 %v11291_v51, %v4544_v29 }
 0x64f   :  { %v8235_v3 = vpop.eup %8234  ;;  %vm4575_vm13 = vcmp.eq.f32.partialorder %v4574_v31, 8.507059e+37 }
 0x650   :  { %v8237_v63 = vpop.eup %8236  ;;  %v4566_v36 = vmul.f32 %v8235_v3, %v4563_v52  ;;  %vm4571_vm3 = vweird.f32 %v8235_v3  ;;  %v4546_v4 = vadd.f32 %v11291_v51, %v4545_v46  ;;  %v4577_v46 = vor.u32 1.1754944e-38, %v4576_v62 }
 0x651   :  { %v4581_v34 = vmul.f32 %v8237_v63, %v11289_v47  ;;  %vm4586_vm6 = vweird.f32 %v8237_v63  ;;  %vm4572_vm10 = vmor %vm4570_vm8, %vm4571_vm3 }
 0x652   :  { %v4567_v28 = vsub.f32 1.0, %v4566_v36  ;;  %v4468_v0 = vpop.f32.mrf.mxu0  ;;  %v4481_v29 = vpop.f32.mrf.mxu1  ;;  %v4531_v36 = vadd.f32 %v11287_v18, %v4530_v1  ;;  %v4592_v1 = vor.u32 1.1754944e-38, %v4591_v12  ;;  %vm4587_vm12 = vmor %vm4585_vm11, %vm4586_vm6 }
 0x653   :  { %v4582_v39 = vsub.f32 1.0, %v4581_v34  ;;  %v4515_v15 = vadd.f32 %v4468_v0, %v11215_v54  ;;  %v4516_v20 = vadd.f32 %v4481_v29, %v11226_v32  ;;  %v4589_v54 = vand.u32 2147483647, %v11289_v47 }
 0x654   :  { %v4568_v22 = vmul.f32 %v8235_v3, %v4567_v28  ;;  %v4539_v32 = vor.u32 1.1754944e-38, %v4538_v13  ;;  %v4535_v52 = vsel %vm11320_vm7, %v11287_v18, %v4531_v36 }
 0x655   :  { %v4583_v25 = vmul.f32 %v8237_v63, %v4582_v39  ;;  %8238 = vtanh.f32 %v4515_v15  ;;  %v4554_v39 = vor.u32 1.1754944e-38, %v4553_v50  ;;  %vm4590_vm14 = vcmp.eq.f32.partialorder %v4589_v54, 8.507059e+37 }
 0x656   :  { %v4569_v34 = vadd.f32 %v8235_v3, %v4568_v22  ;;  %8240 = vtanh.f32 %v4516_v20  ;;  %v4550_v22 = vsel %vm11327_vm9, %v11291_v51, %v4546_v4  ;;  %v4540_v18 = vsel %vm11310_vm1, %v4539_v32, %v4535_v52 }
 0x657   :  { %v4584_v6 = vadd.f32 %v8237_v63, %v4583_v25 }
 0x658   :  { %v4573_v15 = vsel %vm4572_vm10, %v8235_v3, %v4569_v34  ;;  %v4555_v3 = vsel %vm4552_vm15, %v4554_v39, %v4550_v22 }
 0x659   :  { %v4578_v37 = vsel %vm4575_vm13, %v4577_v46, %v4573_v15  ;;  %v4588_v20 = vsel %vm4587_vm12, %v8237_v63, %v4584_v6 }
 0x65a   :  { %v4593_v47 = vsel %vm4590_vm14, %v4592_v1, %v4588_v20  ;;  %v4470_v0 = vpop.f32.mrf.mxu0  ;;  %v4483_v29 = vpop.f32.mrf.mxu1  ;;  %v4635_v4 = vmul.f32 %v4578_v37, %v10920_v2 }
 0x65b   :  { %v4494_v13 = vpop.f32.mrf.mxu2  ;;  %v4507_v62 = vpop.f32.mrf.mxu3  ;;  %v4636_v36 = vmul.f32 %v4593_v47, %v10922_v23 }
 0x65c   :  { %v4517_v25 = vadd.f32 %v4494_v13, %v4314_v14  ;;  %v4518_v12 = vadd.f32 %v4507_v62, %v4340_v30  ;;  %v8239_v7 = vpop.eup %8238 }
 0x65d   :  { %v8241_v31 = vpop.eup %8240  ;;  %v4637_v51 = vmul.f32 %v8239_v7, %v4540_v18 }
 0x65e   :  { %v7632_v50 = vmul.f32 -1.442695, %v4517_v25  ;;  %v7633_v63 = vmul.f32 -1.442695, %v4518_v12  ;;  %v4638_v54 = vmul.f32 %v8241_v31, %v4555_v3 }
 0x65f   :  { %v11342_v55 = vadd.f32 %v4637_v51, %v4635_v4 }
 0x660   :  { %8242 = vpow2.f32 %v7632_v50  ;;  %v11344_v14 = vadd.f32 %v4638_v54, %v4636_v36 }
 0x661   :  { %8244 = vpow2.f32 %v7633_v63 }
 0x663   :  { %v4496_v30 = vpop.f32.mrf.mxu2  ;;  %v4509_v34 = vpop.f32.mrf.mxu3 }
 0x666   :  { %v8243_v53 = vpop.eup %8242 }
 0x667   :  { %v8245_v32 = vpop.eup %8244  ;;  %v4603_v28 = vadd.f32 1.0, %v8243_v53 }
 0x668   :  { %v4604_v46 = vadd.f32 1.0, %v8245_v32 }
 0x669   :  { %8246 = vrcp.f32 %v4603_v28  ;;  %v4616_v37 = vand.u32 2147483648, %v4603_v28  ;;  %v4614_v13 = vand.u32 2147483647, %v4603_v28  ;;  %vm4610_vm2 = vweird.f32 %v4603_v28 }
 0x66a   :  { %8248 = vrcp.f32 %v4604_v46  ;;  %v4631_v62 = vand.u32 2147483648, %v4604_v46  ;;  %v4629_v25 = vand.u32 2147483647, %v4604_v46  ;;  %vm4625_vm6 = vweird.f32 %v4604_v46 }
 0x66b   :  { %8250 = vtanh.f32 %v11342_v55  ;;  %v4617_v0 = vor.u32 1.1754944e-38, %v4616_v37  ;;  %vm4615_vm7 = vcmp.eq.f32.partialorder %v4614_v13, 8.507059e+37  ;;  %v14185_v13 = vld [vmem:[#allocation149_spill] sm:$0xff] }
 0x66c   :  { %8252 = vtanh.f32 %v11344_v14  ;;  %v4632_v3 = vor.u32 1.1754944e-38, %v4631_v62  ;;  %vm4630_vm9 = vcmp.eq.f32.partialorder %v4629_v25, 8.507059e+37  ;;  %v14186_v62 = vld [vmem:[#allocation150_spill] sm:$0xff] }
 0x66f   :  { %v8247_v2 = vpop.eup %8246 }
 0x670   :  { %v8249_v1 = vpop.eup %8248  ;;  %v4606_v6 = vmul.f32 %v8247_v2, %v4603_v28  ;;  %vm4611_vm0 = vweird.f32 %v8247_v2 }
 0x671   :  { %v4621_v52 = vmul.f32 %v8249_v1, %v4604_v46  ;;  %vm4626_vm1 = vweird.f32 %v8249_v1  ;;  %vm4612_vm3 = vmor %vm4610_vm2, %vm4611_vm0  ;;  %v8251_v7 = vpop.eup %8250 }
 0x672   :  { %v11346_v23 = vpop.f32.mrf.mxu0  ;;  %v11348_v15 = vpop.f32.mrf.mxu1  ;;  %v4607_v22 = vsub.f32 1.0, %v4606_v6  ;;  %vm4627_vm8 = vmor %vm4625_vm6, %vm4626_vm1 }
 0x673   :  { %v4622_v39 = vsub.f32 1.0, %v4621_v52  ;;  %v8253_v51 = vpop.eup %8252  ;;  %v4705_v52 = vadd.f32 %v11346_v23, %v13529_v8  ;;  %v14182_v23 = vld [vmem:[#allocation146_spill] sm:$0xff] }
 0x674   :  { %v4608_v20 = vmul.f32 %v8247_v2, %v4607_v22  ;;  %v4706_v22 = vadd.f32 %v11348_v15, %v13532_v19  ;;  %v14183_v15 = vld [vmem:[#allocation147_spill] sm:$0xff] }
 0x675   :  { %v4623_v47 = vmul.f32 %v8249_v1, %v4622_v39  ;;  %v7634_v37 = vmul.f32 -1.442695, %v4705_v52  ;;  %v14201_v52 = vld [vmem:[#allocation164_spill] sm:$0xff] }
 0x676   :  { %v4609_v12 = vadd.f32 %v8247_v2, %v4608_v20  ;;  %v7635_v39 = vmul.f32 -1.442695, %v4706_v22  ;;  %v14184_v20 = vld [vmem:[#allocation148_spill] sm:$0xff]  ;;  %v14202_v22 = vld [vmem:[#allocation165_spill] sm:$0xff] }
 0x677   :  { %v4624_v29 = vadd.f32 %v8249_v1, %v4623_v47  ;;  %8254 = vpow2.f32 %v7634_v37  ;;  %v14187_v47 = vld [vmem:[#allocation151_spill] sm:$0xff] }
 0x678   :  { %v4613_v18 = vsel %vm4612_vm3, %v8247_v2, %v4609_v12  ;;  %8256 = vpow2.f32 %v7635_v39  ;;  %v14188_v12 = vld [vmem:[#allocation152_spill] sm:$0xff]  ;;  %v14204_v39 = vld [vmem:[#allocation167_spill] sm:$0xff] }
 0x679   :  { %v4618_v50 = vsel %vm4615_vm7, %v4617_v0, %v4613_v18  ;;  %v4628_v63 = vsel %vm4627_vm8, %v8249_v1, %v4624_v29  ;;  %v14189_v0 = vld [vmem:[#allocation153_spill] sm:$0xff]  ;;  %v14191_v18 = vld [vmem:[#allocation155_spill] sm:$0xff] }
 0x67a   :  { %v11352_v31 = vpop.f32.mrf.mxu2  ;;  %v11354_v4 = vpop.f32.mrf.mxu3  ;;  %v4643_v30 = vmul.f32 %v8251_v7, %v4618_v50  ;;  %v4633_v34 = vsel %vm4630_vm9, %v4632_v3, %v4628_v63  ;;  %v14190_v7 = vld [vmem:[#allocation154_spill] sm:$0xff]  ;;  %v14192_v50 = vld [vmem:[#allocation156_spill] sm:$0xff]  ;;  %v14193_v63 = vld [vmem:[#allocation157_spill] sm:$0xff] }
 0x67b   :  { %v4664_v36 = vpop.f32.mrf.mxu0  ;;  %v4677_v54 = vpop.f32.mrf.mxu1  ;;  %v4644_v53 = vmul.f32 %v8253_v51, %v4633_v34 }
 0x67c   :  { %v11356_v32 = vpack.c.bf16 %v4643_v30, %v4643_v30  ;;  %v14194_v36 = vld [vmem:[#allocation158_spill] sm:$0xff]  ;;  %v14195_v54 = vld [vmem:[#allocation159_spill] sm:$0xff] }
 0x67d   :  { %v4647_v28 = vrot.slane %v4644_v53, 7  ;;  %v11358_v46 = vpack.c.bf16 %v4644_v53, %v4644_v53  ;;  %v8255_v25 = vpop.eup %8254  ;;  %v14197_v53 = vld [vmem:[#allocation160_spill] sm:$0xff] }
 0x67e   :  { %4719 = vmatmul.bf16.vlgmr.msrb.gmra.mxu0 %v11356_v32  ;;  %4745 = vmatmul.bf16.vlgmr.msrb.gmra.mxu2 %v11356_v32  ;;  %v8257_v29 = vpop.eup %8256  ;;  %v11413_v3 = vadd.f32 1.0, %v8255_v25 }
 0x67f   :  { %v4648_v2 = vsel %vm2340_vm4, %v4643_v30, %v4647_v28  ;;  %4732 = vmatmul.bf16.vlgmr.msrb.gmra.mxu1 %v11358_v46  ;;  %4758 = vmatmul.bf16.vlgmr.msrb.gmra.mxu3 %v11358_v46  ;;  %v11417_v51 = vadd.f32 1.0, %v8257_v29  ;;  %v14196_v30 = vld [vmem:[#allocation203_spill] sm:$0xff]  ;;  %v14198_v28 = vld [vmem:[#allocation161_spill] sm:$0xff]  ;;  %v14205_v29 = vld [vmem:[#allocation168_spill] sm:$0xff] }
 0x680   :  { %4651 = vst.msk [vmem:[#allocation2 + $0x4] ss:$8 sm:$0x3] %vm9714_vm5, %v4648_v2  ;;  %4815 = vmatpush.bf16.msrb.mxu0 %v13317_v57  ;;  %4828 = vmatpush.bf16.msrb.mxu1 %v13319_v48  ;;  %v4708_v34 = vadd.f32 %v11354_v4, %v14196_v30  ;;  %8258 = vrcp.f32 %v11413_v3  ;;  %v14199_v2 = vld [vmem:[#allocation162_spill] sm:$0xff]  ;;  %vm4928_vm12 = vweird.f32 %v11413_v3 }
 0x681   :  { %4841 = vmatpush.bf16.msrb.mxu2 %v13523_v44  ;;  %4854 = vmatpush.bf16.msrb.mxu3 %v13320_v61  ;;  %8260 = vrcp.f32 %v11417_v51  ;;  %v14203_v4 = vld [vmem:[#allocation166_spill] sm:$0xff]  ;;  %vm4947_vm13 = vweird.f32 %v11417_v51 }
 0x682   :  { %v4690_v1 = vpop.f32.mrf.mxu2  ;;  %v4703_v6 = vpop.f32.mrf.mxu3 }
 0x683   :  { %v14200_v1 = vld [vmem:[#allocation163_spill] sm:$0xff]  ;;  %v7636_v6 = vmul.f32 -1.442695, %v4708_v34 }
 0x684   :  { %4816 = vmatpush.bf16.msrb.mxu0 %v13524_v35  ;;  %4829 = vmatpush.bf16.msrb.mxu1 %v13323_v45 }
 0x685   :  { %4842 = vmatpush.bf16.msrb.mxu2 %v13525_v43  ;;  %4855 = vmatpush.bf16.msrb.mxu3 %v13324_v24  ;;  %8262 = vpow2.f32 %v7636_v6 }
 0x686   :  { %v11433_v37 = vpop.eup %8258 }
 0x687   :  { %v11437_v25 = vpop.eup %8260  ;;  %v4924_v34 = vmul.f32 %v11433_v37, %v11413_v3  ;;  %vm4929_vm10 = vweird.f32 %v11433_v37 }
 0x688   :  { %4817 = vmatpush.bf16.msrb.mxu0 %v13325_v27  ;;  %4830 = vmatpush.bf16.msrb.mxu1 %v13328_v40  ;;  %vm4948_vm11 = vweird.f32 %v11437_v25  ;;  %vm11476_vm14 = vmor %vm4928_vm12, %vm4929_vm10 }
 0x689   :  { %4843 = vmatpush.bf16.msrb.mxu2 %v13326_v5  ;;  %4856 = vmatpush.bf16.msrb.mxu3 %v13329_v21  ;;  %v4925_v6 = vsub.f32 1.0, %v4924_v34  ;;  %vm11486_vm15 = vmor %vm4947_vm13, %vm4948_vm11 }
 0x68c   :  { %4818 = vmatpush.bf16.msrb.mxu0 %v13330_v49  ;;  %4831 = vmatpush.bf16.msrb.mxu1 %v13526_v60 }
 0x68d   :  { %4844 = vmatpush.bf16.msrb.mxu2 %v13527_v17  ;;  %4857 = vmatpush.bf16.msrb.mxu3 %v13528_v41 }
 0x68e   :  { %4771 = vmatmul.bf16.vlgmr.msra.gmra.mxu0 %v11356_v32  ;;  %4797 = vmatmul.bf16.vlgmr.msra.gmra.mxu2 %v11356_v32 }
 0x68f   :  { %4784 = vmatmul.bf16.vlgmr.msra.gmra.mxu1 %v11358_v46  ;;  %4810 = vmatmul.bf16.vlgmr.msra.gmra.mxu3 %v11358_v46 }
 0x690   :  { %4819 = vmatpush.bf16.msrb.mxu0 %v13530_v58  ;;  %4832 = vmatpush.bf16.msrb.mxu1 %v13531_v26 }
 0x691   :  { %4845 = vmatpush.bf16.msrb.mxu2 %v13533_v56  ;;  %4858 = vmatpush.bf16.msrb.mxu3 %v13742_v38 }
 0x694   :  { %4820 = vmatpush.bf16.msrb.mxu0 %v13743_v16  ;;  %4833 = vmatpush.bf16.msrb.mxu1 %v13744_v33 }
 0x695   :  { %4846 = vmatpush.bf16.msrb.mxu2 %v13745_v11  ;;  %4859 = vmatpush.bf16.msrb.mxu3 %v13746_v59 }
 0x698   :  { %4821 = vmatpush.bf16.msrb.mxu0 %v13747_v42  ;;  %4834 = vmatpush.bf16.msrb.mxu1 %v13748_v10 }
 0x699   :  { %4847 = vmatpush.bf16.msrb.mxu2 %v14182_v23  ;;  %4860 = vmatpush.bf16.msrb.mxu3 %v14183_v15 }
 0x69c   :  { %4822 = vmatpush.bf16.msrb.mxu0 %v14184_v20  ;;  %4835 = vmatpush.bf16.msrb.mxu1 %v14185_v13 }
 0x69d   :  { %4848 = vmatpush.bf16.msrb.mxu2 %v14186_v62  ;;  %4861 = vmatpush.bf16.msrb.mxu3 %v14187_v47 }
 0x69f   :  { %4823 = vmatmul.bf16.vlgmr.msrb.gmra.mxu0 %v11356_v32  ;;  %4836 = vmatmul.bf16.vlgmr.msrb.gmra.mxu1 %v11358_v46 }
 0x6a0   :  { %4867 = vmatpush.bf16.msra.mxu0 %v14188_v12  ;;  %4880 = vmatpush.bf16.msra.mxu1 %v14189_v0 }
 0x6a1   :  { %4893 = vmatpush.bf16.msra.mxu2 %v14190_v7  ;;  %4906 = vmatpush.bf16.msra.mxu3 %v14191_v18 }
 0x6a2   :  { %4849 = vmatmul.bf16.vlgmr.msrb.gmra.mxu2 %v11356_v32  ;;  %4862 = vmatmul.bf16.vlgmr.msrb.gmra.mxu3 %v11358_v46 }
 0x6a4   :  { %4868 = vmatpush.bf16.msra.mxu0 %v14192_v50  ;;  %4881 = vmatpush.bf16.msra.mxu1 %v14193_v63  ;;  %v14215_v63 = vld [vmem:[#allocation178_spill] sm:$0xff] }
 0x6a5   :  { %4894 = vmatpush.bf16.msra.mxu2 %v14194_v36  ;;  %4907 = vmatpush.bf16.msra.mxu3 %v14195_v54  ;;  %v14213_v54 = vld [vmem:[#allocation176_spill] sm:$0xff]  ;;  %v14214_v36 = vld [vmem:[#allocation177_spill] sm:$0xff]  ;;  %v14384_v50 = vld [vmem:[#allocation110_spill] sm:$0xff] }
 0x6a8   :  { %4869 = vmatpush.bf16.msra.mxu0 %v14197_v53  ;;  %4882 = vmatpush.bf16.msra.mxu1 %v14198_v28  ;;  %v14206_v28 = vld [vmem:[#allocation169_spill] sm:$0xff] }
 0x6a9   :  { %4895 = vmatpush.bf16.msra.mxu2 %v14199_v2  ;;  %4908 = vmatpush.bf16.msra.mxu3 %v14200_v1  ;;  %v14208_v1 = vld [vmem:[#allocation171_spill] sm:$0xff]  ;;  %v14209_v2 = vld [vmem:[#allocation172_spill] sm:$0xff] }
 0x6ac   :  { %4870 = vmatpush.bf16.msra.mxu0 %v14201_v52  ;;  %4883 = vmatpush.bf16.msra.mxu1 %v14202_v22  ;;  %v4943_v52 = vmul.f32 %v11437_v25, %v11417_v51  ;;  %v14207_v22 = vld [vmem:[#allocation170_spill] sm:$0xff] }
 0x6ad   :  { %4896 = vmatpush.bf16.msra.mxu2 %v14203_v4  ;;  %4909 = vmatpush.bf16.msra.mxu3 %v14204_v39  ;;  %v8263_v4 = vpop.eup %8262  ;;  %v14210_v39 = vld [vmem:[#allocation173_spill] sm:$0xff] }
 0x6ae   :  { %v4944_v53 = vsub.f32 1.0, %v4943_v52  ;;  %v11451_v30 = vadd.f32 1.0, %v8263_v4  ;;  %v14217_v52 = vld [vmem:[#allocation215_spill] sm:$0xff]  ;;  %v14218_v4 = vld [vmem:[#allocation180_spill] sm:$0xff] }
 0x6af   :  { %v4707_v34 = vadd.f32 %v11352_v31, %v14217_v52  ;;  %v4934_v31 = vand.u32 2147483648, %v11413_v3  ;;  %v14222_v52 = vld [vmem:[#allocation184_spill] sm:$0xff] }
 0x6b0   :  { %4871 = vmatpush.bf16.msra.mxu0 %v14205_v29  ;;  %4884 = vmatpush.bf16.msra.mxu1 %v14206_v28  ;;  %v14211_v29 = vld [vmem:[#allocation174_spill] sm:$0xff]  ;;  %v14212_v28 = vld [vmem:[#allocation175_spill] sm:$0xff]  ;;  %8264 = vrcp.f32 %v11451_v30  ;;  %vm4967_vm3 = vweird.f32 %v11451_v30 }
 0x6b1   :  { %4897 = vmatpush.bf16.msra.mxu2 %v14207_v22  ;;  %4910 = vmatpush.bf16.msra.mxu3 %v14208_v1  ;;  %v4945_v22 = vmul.f32 %v11437_v25, %v4944_v53  ;;  %v4926_v1 = vmul.f32 %v11433_v37, %v4925_v6  ;;  %8266 = vtanh.f32 %v4707_v34  ;;  %v14230_v34 = vld [vmem:[#allocation188_spill] sm:$0xff] }
 0x6b3   :  { %v4927_v53 = vadd.f32 %v11433_v37, %v4926_v1  ;;  %v4946_v6 = vadd.f32 %v11437_v25, %v4945_v22  ;;  %v4932_v22 = vand.u32 2147483647, %v11413_v3  ;;  %v14233_v1 = vld [vmem:[#allocation191_spill] sm:$0xff] }
 0x6b4   :  { %4872 = vmatpush.bf16.msra.mxu0 %v14209_v2  ;;  %4885 = vmatpush.bf16.msra.mxu1 %v14210_v39  ;;  %v14216_v2 = vld [vmem:[#allocation179_spill] sm:$0xff] }
 0x6b5   :  { %4898 = vmatpush.bf16.msra.mxu2 %v14211_v29  ;;  %4911 = vmatpush.bf16.msra.mxu3 %v14212_v28  ;;  %v4931_v3 = vsel %vm11476_vm14, %v11433_v37, %v4927_v53  ;;  %v14231_v28 = vld [vmem:[#allocation189_spill] sm:$0xff]  ;;  %vm4933_vm0 = vcmp.eq.f32.partialorder %v4932_v22, 8.507059e+37  ;;  %v14232_v29 = vld [vmem:[#allocation190_spill] sm:$0xff]  ;;  %v14238_v22 = vld [vmem:[#allocation196_spill] sm:$0xff] }
 0x6b8   :  { %4873 = vmatpush.bf16.msra.mxu0 %v14213_v54  ;;  %4886 = vmatpush.bf16.msra.mxu1 %v14214_v36  ;;  %v14219_v54 = vld [vmem:[#allocation181_spill] sm:$0xff]  ;;  %v4953_v36 = vand.u32 2147483648, %v11417_v51 }
 0x6b9   :  { %4899 = vmatpush.bf16.msra.mxu2 %v14215_v63  ;;  %4912 = vmatpush.bf16.msra.mxu3 %v14216_v2  ;;  %v14220_v63 = vld [vmem:[#allocation182_spill] sm:$0xff]  ;;  %v14221_v2 = vld [vmem:[#allocation183_spill] sm:$0xff] }
 0x6bc   :  { %4874 = vmatpush.bf16.msra.mxu0 %v14218_v4  ;;  %4887 = vmatpush.bf16.msra.mxu1 %v14219_v54  ;;  %v14223_v4 = vld [vmem:[#allocation185_spill] sm:$0xff]  ;;  %v14227_v54 = vld [vmem:[#allocation187_spill] sm:$0xff] }
 0x6bd   :  { %4900 = vmatpush.bf16.msra.mxu2 %v14220_v63  ;;  %4913 = vmatpush.bf16.msra.mxu3 %v14221_v2  ;;  %v4951_v2 = vand.u32 2147483647, %v11417_v51  ;;  %v14226_v63 = vld [vmem:[#allocation186_spill] sm:$0xff]  ;;  %v4950_v51 = vsel %vm11486_vm15, %v11437_v25, %v4946_v6 }
 0x6bf   :  { %4875 = vmatmul.bf16.vlgmr.msra.gmra.mxu0 %v11356_v32  ;;  %4888 = vmatmul.bf16.vlgmr.msra.gmra.mxu1 %v11358_v46  ;;  %vm4952_vm1 = vcmp.eq.f32.partialorder %v4951_v2, 8.507059e+37 }
 0x6c0   :  { %4983 = vmatpush.bf16.msrb.mxu0 %v14222_v52  ;;  %4996 = vmatpush.bf16.msrb.mxu1 %v14223_v4  ;;  %v8265_v4 = vpop.eup %8264 }
 0x6c1   :  { %5009 = vmatpush.bf16.msrb.mxu2 %v14226_v63  ;;  %5022 = vmatpush.bf16.msrb.mxu3 %v14227_v54  ;;  %v4954_v54 = vor.u32 1.1754944e-38, %v4953_v36  ;;  %v4935_v63 = vor.u32 1.1754944e-38, %v4934_v31  ;;  %v4963_v25 = vmul.f32 %v8265_v4, %v11451_v30  ;;  %v8267_v52 = vpop.eup %8266  ;;  %v14236_v36 = vld [vmem:[#allocation123_spill] sm:$0xff]  ;;  %vm4968_vm2 = vweird.f32 %v8265_v4 }
 0x6c2   :  { %4901 = vmatmul.bf16.vlgmr.msra.gmra.mxu2 %v11356_v32  ;;  %4914 = vmatmul.bf16.vlgmr.msra.gmra.mxu3 %v11358_v46  ;;  %v14234_v32 = vld [vmem:[#allocation192_spill] sm:$0xff]  ;;  %v14235_v46 = vld [vmem:[#allocation193_spill] sm:$0xff]  ;;  %vm4969_vm6 = vmor %vm4967_vm3, %vm4968_vm2 }
 0x6c3   :  { %v4936_v37 = vsel %vm4933_vm0, %v4935_v63, %v4931_v3  ;;  %v4955_v53 = vsel %vm4952_vm1, %v4954_v54, %v4950_v51  ;;  %v4964_v2 = vsub.f32 1.0, %v4963_v25  ;;  %v14242_v54 = vld [vmem:[#allocation200_spill] sm:$0xff]  ;;  %v14243_v3 = vld [vmem:[#allocation201_spill] sm:$0xff]  ;;  %v14247_v25 = vld [vmem:[#allocation206_spill] sm:$0xff] }
 0x6c4   :  { %4984 = vmatpush.bf16.msrb.mxu0 %v14230_v34  ;;  %4997 = vmatpush.bf16.msrb.mxu1 %v14231_v28  ;;  %v4977_v6 = vmul.f32 %v4955_v53, %v14236_v36  ;;  %v4978_v31 = vmul.f32 %v8267_v52, %v4936_v37  ;;  %v14237_v34 = vld [vmem:[#allocation194_spill] sm:$0xff]  ;;  %v14245_v53 = vld [vmem:[#allocation204_spill] sm:$0xff]  ;;  %v14246_v37 = vld [vmem:[#allocation205_spill] sm:$0xff]  ;;  %v4973_v36 = vand.u32 2147483648, %v11451_v30 }
 0x6c5   :  { %5010 = vmatpush.bf16.msrb.mxu2 %v14232_v29  ;;  %5023 = vmatpush.bf16.msrb.mxu3 %v14233_v1  ;;  %v14239_v29 = vld [vmem:[#allocation198_spill] sm:$0xff]  ;;  %v14240_v1 = vld [vmem:[#allocation199_spill] sm:$0xff]  ;;  %v4965_v51 = vmul.f32 %v8265_v4, %v4964_v2  ;;  %v14249_v2 = vld [vmem:[#allocation208_spill] sm:$0xff] }
 0x6c6   :  { %v11512_v63 = vadd.f32 %v4978_v31, %v4977_v6  ;;  %v4971_v6 = vand.u32 2147483647, %v11451_v30  ;;  %v14248_v31 = vld [vmem:[#allocation207_spill] sm:$0xff]  ;;  %v14255_v30 = vld [vmem:[#allocation214_spill] sm:$0xff] }
 0x6c7   :  { %v4966_v52 = vadd.f32 %v8265_v4, %v4965_v51  ;;  %v14252_v51 = vld [vmem:[#allocation211_spill] sm:$0xff] }
 0x6c8   :  { %4985 = vmatpush.bf16.msrb.mxu0 %v14234_v32  ;;  %4998 = vmatpush.bf16.msrb.mxu1 %v14235_v46  ;;  %14241 = vst [vmem:[#allocation125_spill] sm:$0xff] %v11512_v63  ;;  %v14244_v46 = vld [vmem:[#allocation202_spill] sm:$0xff]  ;;  %8268 = vtanh.f32 %v11512_v63  ;;  %vm4972_vm7 = vcmp.eq.f32.partialorder %v4971_v6, 8.507059e+37  ;;  %v14261_v6 = vld [vmem:[#allocation221_spill] sm:$0xff]  ;;  %v14343_v63 = vld [vmem:[#allocation256_spill] sm:$0xff] }
 0x6c9   :  { %5011 = vmatpush.bf16.msrb.mxu2 %v14237_v34  ;;  %5024 = vmatpush.bf16.msrb.mxu3 %v14238_v22  ;;  %v14257_v22 = vld [vmem:[#allocation217_spill] sm:$0xff] }
 0x6cc   :  { %4986 = vmatpush.bf16.msrb.mxu0 %v14239_v29  ;;  %4999 = vmatpush.bf16.msrb.mxu1 %v14240_v1  ;;  %v14254_v29 = vld [vmem:[#allocation213_spill] sm:$0xff] }
 0x6cd   :  { %5012 = vmatpush.bf16.msrb.mxu2 %v14242_v54  ;;  %5025 = vmatpush.bf16.msrb.mxu3 %v14243_v3  ;;  %v14253_v54 = vld [vmem:[#allocation212_spill] sm:$0xff] }
 0x6ce   :  { %v8269_v3 = vpop.eup %8268 }
 0x6d0   :  { %4987 = vmatpush.bf16.msrb.mxu0 %v14244_v46  ;;  %5000 = vmatpush.bf16.msrb.mxu1 %v14245_v53  ;;  %v14250_v53 = vld [vmem:[#allocation209_spill] sm:$0xff]  ;;  %v14251_v46 = vld [vmem:[#allocation210_spill] sm:$0xff] }
 0x6d1   :  { %5013 = vmatpush.bf16.msrb.mxu2 %v14246_v37  ;;  %5026 = vmatpush.bf16.msrb.mxu3 %v14247_v25  ;;  %v4970_v37 = vsel %vm4969_vm6, %v8265_v4, %v4966_v52  ;;  %v4974_v25 = vor.u32 1.1754944e-38, %v4973_v36  ;;  %v14259_v4 = vld [vmem:[#allocation219_spill] sm:$0xff]  ;;  %v14260_v36 = vld [vmem:[#allocation220_spill] sm:$0xff] }
 0x6d3   :  { %v4975_v1 = vsel %vm4972_vm7, %v4974_v25, %v4970_v37  ;;  %v14262_v37 = vld [vmem:[#allocation222_spill] sm:$0xff]  ;;  %v14263_v25 = vld [vmem:[#allocation223_spill] sm:$0xff] }
 0x6d4   :  { %4988 = vmatpush.bf16.msrb.mxu0 %v14248_v31  ;;  %5001 = vmatpush.bf16.msrb.mxu1 %v14249_v2  ;;  %v4981_v31 = vmul.f32 %v8269_v3, %v4975_v1  ;;  %v14256_v2 = vld [vmem:[#allocation216_spill] sm:$0xff]  ;;  %v14265_v3 = vld [vmem:[#allocation225_spill] sm:$0xff] }
 0x6d5   :  { %5014 = vmatpush.bf16.msrb.mxu2 %v14250_v53  ;;  %5027 = vmatpush.bf16.msrb.mxu3 %v14251_v46  ;;  %v14258_v53 = vld [vmem:[#allocation218_spill] sm:$0xff]  ;;  %v14264_v1 = vld [vmem:[#allocation224_spill] sm:$0xff] }
 0x6d6   :  { %v11536_v52 = vpack.c.bf16 %v4981_v31, %v4981_v31  ;;  %v14266_v31 = vld [vmem:[#allocation226_spill] sm:$0xff]  ;;  %v14314_v46 = vld [vmem:[#allocation44_spill] sm:$0xff] }
 0x6d8   :  { %4989 = vmatpush.bf16.msrb.mxu0 %v14252_v51  ;;  %5002 = vmatpush.bf16.msrb.mxu1 %v14253_v54  ;;  %v14305_v54 = vld [vmem:[#allocation247_spill] sm:$0xff] }
 0x6d9   :  { %5015 = vmatpush.bf16.msrb.mxu2 %v14254_v29  ;;  %5028 = vmatpush.bf16.msrb.mxu3 %v14255_v30  ;;  %v14303_v30 = vld [vmem:[#allocation34_spill] sm:$0xff]  ;;  %v14304_v29 = vld [vmem:[#allocation35_spill] sm:$0xff] }
 0x6dc   :  { %4990 = vmatpush.bf16.msrb.mxu0 %v14256_v2  ;;  %5003 = vmatpush.bf16.msrb.mxu1 %v14257_v22  ;;  %v14273_v22 = vld [vmem:[#allocation233_spill] sm:$0xff]  ;;  %v14274_v2 = vld [vmem:[#allocation234_spill] sm:$0xff] }
 0x6dd   :  { %5016 = vmatpush.bf16.msrb.mxu2 %v14258_v53  ;;  %5029 = vmatpush.bf16.msrb.mxu3 %v14259_v4  ;;  %v14271_v4 = vld [vmem:[#allocation231_spill] sm:$0xff]  ;;  %v14272_v53 = vld [vmem:[#allocation232_spill] sm:$0xff] }
 0x6df   :  { %4991 = vmatmul.bf16.vlgmr.msrb.gmra.mxu0 %v11536_v52  ;;  %5004 = vmatmul.bf16.vlgmr.msrb.gmra.mxu1 %v11536_v52 }
 0x6e0   :  { %5035 = vmatpush.bf16.msra.mxu0 %v14260_v36  ;;  %5048 = vmatpush.bf16.msra.mxu1 %v14261_v6  ;;  %v14267_v36 = vld [vmem:[#allocation227_spill] sm:$0xff]  ;;  %v14268_v6 = vld [vmem:[#allocation228_spill] sm:$0xff] }
 0x6e1   :  { %5061 = vmatpush.bf16.msra.mxu2 %v14262_v37  ;;  %5074 = vmatpush.bf16.msra.mxu3 %v14263_v25  ;;  %v14269_v37 = vld [vmem:[#allocation229_spill] sm:$0xff]  ;;  %v14270_v25 = vld [vmem:[#allocation230_spill] sm:$0xff] }
 0x6e2   :  { %5017 = vmatmul.bf16.vlgmr.msrb.gmra.mxu2 %v11536_v52  ;;  %5030 = vmatmul.bf16.vlgmr.msrb.gmra.mxu3 %v11536_v52 }
 0x6e4   :  { %5036 = vmatpush.bf16.msra.mxu0 %v14264_v1  ;;  %5049 = vmatpush.bf16.msra.mxu1 %v14265_v3  ;;  %v14275_v1 = vld [vmem:[#allocation235_spill] sm:$0xff]  ;;  %v14276_v3 = vld [vmem:[#allocation236_spill] sm:$0xff] }
 0x6e5   :  { %5062 = vmatpush.bf16.msra.mxu2 %v14266_v31  ;;  %5075 = vmatpush.bf16.msra.mxu3 %v14267_v36  ;;  %v14277_v31 = vld [vmem:[#allocation237_spill] sm:$0xff]  ;;  %v14278_v36 = vld [vmem:[#allocation238_spill] sm:$0xff] }
 0x6e8   :  { %5037 = vmatpush.bf16.msra.mxu0 %v14268_v6  ;;  %5050 = vmatpush.bf16.msra.mxu1 %v14269_v37  ;;  %v14279_v6 = vld [vmem:[#allocation239_spill] sm:$0xff]  ;;  %v14280_v37 = vld [vmem:[#allocation240_spill] sm:$0xff] }
 0x6e9   :  { %5063 = vmatpush.bf16.msra.mxu2 %v14270_v25  ;;  %5076 = vmatpush.bf16.msra.mxu3 %v14271_v4  ;;  %v14281_v25 = vld [vmem:[#allocation241_spill] sm:$0xff]  ;;  %v14282_v4 = vld [vmem:[#allocation242_spill] sm:$0xff] }
 0x6ec   :  { %5038 = vmatpush.bf16.msra.mxu0 %v14272_v53  ;;  %5051 = vmatpush.bf16.msra.mxu1 %v14273_v22  ;;  %v14283_v53 = vld [vmem:[#allocation243_spill] sm:$0xff]  ;;  %v14284_v22 = vld [vmem:[#allocation244_spill] sm:$0xff] }
 0x6ed   :  { %5064 = vmatpush.bf16.msra.mxu2 %v14274_v2  ;;  %5077 = vmatpush.bf16.msra.mxu3 %v14275_v1  ;;  %v14285_v2 = vld [vmem:[#allocation245_spill] sm:$0xff]  ;;  %v14286_v1 = vld [vmem:[#allocation246_spill] sm:$0xff] }
 0x6f0   :  { %5039 = vmatpush.bf16.msra.mxu0 %v14276_v3  ;;  %5052 = vmatpush.bf16.msra.mxu1 %v14277_v31  ;;  %v14287_v3 = vld [vmem:[#allocation248_spill] sm:$0xff]  ;;  %v14288_v31 = vld [vmem:[#allocation249_spill] sm:$0xff] }
 0x6f1   :  { %5065 = vmatpush.bf16.msra.mxu2 %v14278_v36  ;;  %5078 = vmatpush.bf16.msra.mxu3 %v14279_v6  ;;  %v14289_v36 = vld [vmem:[#allocation250_spill] sm:$0xff]  ;;  %v14290_v6 = vld [vmem:[#allocation251_spill] sm:$0xff] }
 0x6f4   :  { %5040 = vmatpush.bf16.msra.mxu0 %v14280_v37  ;;  %5053 = vmatpush.bf16.msra.mxu1 %v14281_v25  ;;  %v14291_v37 = vld [vmem:[#allocation252_spill] sm:$0xff] }
 0x6f5   :  { %5066 = vmatpush.bf16.msra.mxu2 %v14282_v4  ;;  %5079 = vmatpush.bf16.msra.mxu3 %v14283_v53  ;;  %v14292_v25 = vld [vmem:[#allocation24_spill] sm:$0xff]  ;;  %v14293_v4 = vld [vmem:[#allocation25_spill] sm:$0xff]  ;;  %v14294_v53 = vld [vmem:[#allocation26_spill] sm:$0xff] }
 0x6f8   :  { %5041 = vmatpush.bf16.msra.mxu0 %v14284_v22  ;;  %5054 = vmatpush.bf16.msra.mxu1 %v14285_v2  ;;  %v14295_v22 = vld [vmem:[#allocation27_spill] sm:$0xff]  ;;  %v14302_v2 = vld [vmem:[#allocation33_spill] sm:$0xff] }
 0x6f9   :  { %5067 = vmatpush.bf16.msra.mxu2 %v14286_v1  ;;  %5080 = vmatpush.bf16.msra.mxu3 %v14287_v3  ;;  %v14299_v3 = vld [vmem:[#allocation30_spill] sm:$0xff]  ;;  %v14301_v1 = vld [vmem:[#allocation32_spill] sm:$0xff] }
 0x6fc   :  { %5042 = vmatpush.bf16.msra.mxu0 %v14288_v31  ;;  %5055 = vmatpush.bf16.msra.mxu1 %v14289_v36  ;;  %v4720_v36 = vpop.f32.mrf.mxu0 }
 0x6fd   :  { %5068 = vmatpush.bf16.msra.mxu2 %v14290_v6  ;;  %5081 = vmatpush.bf16.msra.mxu3 %v14291_v37  ;;  %v14296_v6 = vld [vmem:[#allocation28_spill] sm:$0xff]  ;;  %v14297_v37 = vld [vmem:[#allocation29_spill] sm:$0xff] }
 0x6ff   :  { %5043 = vmatmul.bf16.vlgmr.msra.gmra.mxu0 %v11536_v52  ;;  %5056 = vmatmul.bf16.vlgmr.msra.gmra.mxu1 %v11536_v52 }
 0x700   :  { %5229 = vmatpush.bf16.msrb.mxu0 %v14292_v25  ;;  %5242 = vmatpush.bf16.msrb.mxu1 %v14293_v4  ;;  %v14298_v25 = vld [vmem:[#allocation253_spill] sm:$0xff]  ;;  %v4733_v4 = vpop.f32.mrf.mxu1 }
 0x701   :  { %5255 = vmatpush.bf16.msrb.mxu2 %v14294_v53  ;;  %5268 = vmatpush.bf16.msrb.mxu3 %v14295_v22  ;;  %v4721_v31 = vadd.f32 %v4720_v36, %v14298_v25  ;;  %v14300_v53 = vld [vmem:[#allocation31_spill] sm:$0xff]  ;;  %v14306_v25 = vld [vmem:[#allocation36_spill] sm:$0xff] }
 0x702   :  { %5069 = vmatmul.bf16.vlgmr.msra.gmra.mxu2 %v11536_v52  ;;  %5082 = vmatmul.bf16.vlgmr.msra.gmra.mxu3 %v11536_v52  ;;  %v4759_v51 = vpop.f32.mrf.mxu3 }
 0x703   :  { %v11587_v22 = vadd.f32 %v4733_v4, %v4721_v31  ;;  %v14308_v31 = vld [vmem:[#allocation38_spill] sm:$0xff] }
 0x704   :  { %5230 = vmatpush.bf16.msrb.mxu0 %v14296_v6  ;;  %5243 = vmatpush.bf16.msrb.mxu1 %v14297_v37  ;;  %v4746_v6 = vpop.f32.mrf.mxu2  ;;  %v4722_v36 = vpop.f32.mrf.mxu0 }
 0x705   :  { %5256 = vmatpush.bf16.msrb.mxu2 %v14299_v3  ;;  %5269 = vmatpush.bf16.msrb.mxu3 %v14300_v53  ;;  %v4747_v37 = vadd.f32 %v4746_v6, %v14305_v54  ;;  %v14307_v3 = vld [vmem:[#allocation37_spill] sm:$0xff]  ;;  %v14313_v6 = vld [vmem:[#allocation43_spill] sm:$0xff] }
 0x707   :  { %v11596_v53 = vadd.f32 %v4759_v51, %v4747_v37  ;;  %v14315_v51 = vld [vmem:[#allocation45_spill] sm:$0xff]  ;;  %v14316_v37 = vld [vmem:[#allocation255_spill] sm:$0xff] }
 0x708   :  { %5231 = vmatpush.bf16.msrb.mxu0 %v14301_v1  ;;  %5244 = vmatpush.bf16.msrb.mxu1 %v14302_v2  ;;  %v4735_v4 = vpop.f32.mrf.mxu1  ;;  %v14309_v1 = vld [vmem:[#allocation39_spill] sm:$0xff]  ;;  %v14310_v2 = vld [vmem:[#allocation40_spill] sm:$0xff] }
 0x709   :  { %5257 = vmatpush.bf16.msrb.mxu2 %v14303_v30  ;;  %5270 = vmatpush.bf16.msrb.mxu3 %v14304_v29  ;;  %v14311_v30 = vld [vmem:[#allocation41_spill] sm:$0xff]  ;;  %v14312_v29 = vld [vmem:[#allocation42_spill] sm:$0xff] }
 0x70a   :  { %v4761_v54 = vpop.f32.mrf.mxu3 }
 0x70b   :  { %v14322_v54 = vld [vmem:[#allocation51_spill] sm:$0xff] }
 0x70c   :  { %5232 = vmatpush.bf16.msrb.mxu0 %v14306_v25  ;;  %5245 = vmatpush.bf16.msrb.mxu1 %v14307_v3  ;;  %v4748_v36 = vpop.f32.mrf.mxu2  ;;  %v4772_v25 = vpop.f32.mrf.mxu0  ;;  %v14317_v3 = vld [vmem:[#allocation46_spill] sm:$0xff] }
 0x70d   :  { %5258 = vmatpush.bf16.msrb.mxu2 %v14308_v31  ;;  %5271 = vmatpush.bf16.msrb.mxu3 %v14309_v1  ;;  %v4773_v4 = vadd.f32 %v4772_v25, %v14316_v37  ;;  %v14318_v1 = vld [vmem:[#allocation47_spill] sm:$0xff]  ;;  %v14321_v36 = vld [vmem:[#allocation50_spill] sm:$0xff]  ;;  %v14324_v37 = vld [vmem:[#allocation52_spill] sm:$0xff] }
 0x710   :  { %5233 = vmatpush.bf16.msrb.mxu0 %v14310_v2  ;;  %5246 = vmatpush.bf16.msrb.mxu1 %v14311_v30  ;;  %v4785_v31 = vpop.f32.mrf.mxu1  ;;  %v14319_v30 = vld [vmem:[#allocation48_spill] sm:$0xff] }
 0x711   :  { %5259 = vmatpush.bf16.msrb.mxu2 %v14312_v29  ;;  %5272 = vmatpush.bf16.msrb.mxu3 %v14313_v6  ;;  %v11609_v2 = vadd.f32 %v4785_v31, %v4773_v4  ;;  %v14320_v29 = vld [vmem:[#allocation49_spill] sm:$0xff]  ;;  %v14323_v6 = vld [vmem:[#allocation254_spill] sm:$0xff] }
 0x712   :  { %v4811_v34 = vpop.f32.mrf.mxu3  ;;  %v14326_v4 = vld [vmem:[#allocation54_spill] sm:$0xff] }
 0x714   :  { %5234 = vmatpush.bf16.msrb.mxu0 %v14314_v46  ;;  %5247 = vmatpush.bf16.msrb.mxu1 %v14315_v51  ;;  %v4798_v46 = vpop.f32.mrf.mxu2  ;;  %v4774_v25 = vpop.f32.mrf.mxu0 }
 0x715   :  { %5260 = vmatpush.bf16.msrb.mxu2 %v14317_v3  ;;  %5273 = vmatpush.bf16.msrb.mxu3 %v14318_v1  ;;  %v4799_v51 = vadd.f32 %v4798_v46, %v14323_v6  ;;  %v14325_v3 = vld [vmem:[#allocation53_spill] sm:$0xff] }
 0x717   :  { %v11618_v1 = vadd.f32 %v4811_v34, %v4799_v51  ;;  %v14330_v34 = vld [vmem:[#allocation58_spill] sm:$0xff]  ;;  %v14331_v51 = vld [vmem:[#allocation59_spill] sm:$0xff] }
 0x718   :  { %5235 = vmatpush.bf16.msrb.mxu0 %v14319_v30  ;;  %5248 = vmatpush.bf16.msrb.mxu1 %v14320_v29  ;;  %v4787_v31 = vpop.f32.mrf.mxu1  ;;  %v14327_v30 = vld [vmem:[#allocation55_spill] sm:$0xff]  ;;  %v14328_v29 = vld [vmem:[#allocation56_spill] sm:$0xff] }
 0x719   :  { %5261 = vmatpush.bf16.msrb.mxu2 %v14321_v36  ;;  %5274 = vmatpush.bf16.msrb.mxu3 %v14322_v54  ;;  %v14329_v36 = vld [vmem:[#allocation57_spill] sm:$0xff]  ;;  %v14332_v31 = vld [vmem:[#allocation60_spill] sm:$0xff] }
 0x71a   :  { %v4813_v25 = vpop.f32.mrf.mxu3  ;;  %v14337_v54 = vld [vmem:[#allocation64_spill] sm:$0xff] }
 0x71b   :  { %v14340_v25 = vld [vmem:[#allocation67_spill] sm:$0xff] }
 0x71c   :  { %5236 = vmatpush.bf16.msrb.mxu0 %v14324_v37  ;;  %5249 = vmatpush.bf16.msrb.mxu1 %v14325_v3  ;;  %v4800_v46 = vpop.f32.mrf.mxu2  ;;  %v14335_v3 = vld [vmem:[#allocation63_spill] sm:$0xff]  ;;  %v14336_v37 = vld [vmem:[#allocation257_spill] sm:$0xff] }
 0x71d   :  { %5262 = vmatpush.bf16.msrb.mxu2 %v14326_v4  ;;  %5275 = vmatpush.bf16.msrb.mxu3 %v14327_v30  ;;  %v14333_v30 = vld [vmem:[#allocation61_spill] sm:$0xff]  ;;  %v14334_v4 = vld [vmem:[#allocation62_spill] sm:$0xff] }
 0x71f   :  { %5237 = vmatmul.bf16.vlgmr.msrb.gmra.mxu0 %v11536_v52  ;;  %5250 = vmatmul.bf16.vlgmr.msrb.gmra.mxu1 %v11536_v52 }
 0x720   :  { %5287 = vmatpush.bf16.msra.mxu0 %v14328_v29  ;;  %5300 = vmatpush.bf16.msra.mxu1 %v14329_v36  ;;  %v4824_v29 = vpop.f32.mrf.mxu0  ;;  %v4837_v36 = vpop.f32.mrf.mxu1 }
 0x721   :  { %5263 = vmatmul.bf16.vlgmr.msrb.gmra.mxu2 %v11536_v52  ;;  %5276 = vmatmul.bf16.vlgmr.msrb.gmra.mxu3 %v11536_v52  ;;  %v4825_v6 = vadd.f32 %v4824_v29, %v14336_v37  ;;  %v14338_v52 = vld [vmem:[#allocation65_spill] sm:$0xff]  ;;  %v14344_v37 = vld [vmem:[#allocation70_spill] sm:$0xff] }
 0x722   :  { %5313 = vmatpush.bf16.msra.mxu2 %v14330_v34  ;;  %5326 = vmatpush.bf16.msra.mxu3 %v14331_v51  ;;  %v14339_v51 = vld [vmem:[#allocation66_spill] sm:$0xff] }
 0x723   :  { %v11637_v46 = vadd.f32 %v4837_v36, %v4825_v6  ;;  %v14346_v6 = vld [vmem:[#allocation72_spill] sm:$0xff]  ;;  %v14347_v36 = vld [vmem:[#allocation73_spill] sm:$0xff] }
 0x724   :  { %5288 = vmatpush.bf16.msra.mxu0 %v14332_v31  ;;  %5301 = vmatpush.bf16.msra.mxu1 %v14333_v30  ;;  %v14341_v31 = vld [vmem:[#allocation68_spill] sm:$0xff]  ;;  %v14342_v30 = vld [vmem:[#allocation69_spill] sm:$0xff] }
 0x725   :  { %v4850_v34 = vpop.f32.mrf.mxu2 }
 0x726   :  { %5314 = vmatpush.bf16.msra.mxu2 %v14334_v4  ;;  %5327 = vmatpush.bf16.msra.mxu3 %v14335_v3  ;;  %v4863_v4 = vpop.f32.mrf.mxu3  ;;  %v4851_v3 = vadd.f32 %v4850_v34, %v14343_v63 }
 0x728   :  { %5289 = vmatpush.bf16.msra.mxu0 %v14337_v54  ;;  %5302 = vmatpush.bf16.msra.mxu1 %v14338_v52  ;;  %v4826_v32 = vpop.f32.mrf.mxu0  ;;  %v4839_v29 = vpop.f32.mrf.mxu1  ;;  %v14345_v54 = vld [vmem:[#allocation71_spill] sm:$0xff]  ;;  %v14351_v52 = vld [vmem:[#allocation77_spill] sm:$0xff] }
 0x729   :  { %v14352_v29 = vld [vmem:[#allocation78_spill] sm:$0xff] }
 0x72a   :  { %5315 = vmatpush.bf16.msra.mxu2 %v14339_v51  ;;  %5328 = vmatpush.bf16.msra.mxu3 %v14340_v25  ;;  %v11648_v51 = vadd.f32 %v4863_v4, %v4851_v3  ;;  %v14348_v25 = vld [vmem:[#allocation74_spill] sm:$0xff]  ;;  %v14357_v4 = vld [vmem:[#allocation83_spill] sm:$0xff] }
 0x72b   :  { %v14356_v3 = vld [vmem:[#allocation82_spill] sm:$0xff] }
 0x72c   :  { %5290 = vmatpush.bf16.msra.mxu0 %v14341_v31  ;;  %5303 = vmatpush.bf16.msra.mxu1 %v14342_v30  ;;  %v14349_v31 = vld [vmem:[#allocation75_spill] sm:$0xff]  ;;  %v14350_v30 = vld [vmem:[#allocation76_spill] sm:$0xff] }
 0x72d   :  { %v4852_v32 = vpop.f32.mrf.mxu2 }
 0x72e   :  { %5316 = vmatpush.bf16.msra.mxu2 %v14344_v37  ;;  %5329 = vmatpush.bf16.msra.mxu3 %v14345_v54  ;;  %v4865_v34 = vpop.f32.mrf.mxu3  ;;  %v14353_v37 = vld [vmem:[#allocation79_spill] sm:$0xff]  ;;  %v14354_v54 = vld [vmem:[#allocation80_spill] sm:$0xff]  ;;  %v14361_v32 = vld [vmem:[#allocation89_spill] sm:$0xff] }
 0x72f   :  { %v14362_v34 = vld [vmem:[#allocation86_spill] sm:$0xff] }
 0x730   :  { %5291 = vmatpush.bf16.msra.mxu0 %v14346_v6  ;;  %5304 = vmatpush.bf16.msra.mxu1 %v14347_v36  ;;  %v14355_v6 = vld [vmem:[#allocation81_spill] sm:$0xff] }
 0x732   :  { %5317 = vmatpush.bf16.msra.mxu2 %v14348_v25  ;;  %5330 = vmatpush.bf16.msra.mxu3 %v14349_v31  ;;  %v14358_v25 = vld [vmem:[#allocation84_spill] sm:$0xff]  ;;  %v14359_v31 = vld [vmem:[#allocation85_spill] sm:$0xff] }
 0x734   :  { %5292 = vmatpush.bf16.msra.mxu0 %v14350_v30  ;;  %5305 = vmatpush.bf16.msra.mxu1 %v14351_v52  ;;  %v14360_v30 = vld [vmem:[#allocation88_spill] sm:$0xff]  ;;  %v14377_v52 = vld [vmem:[#allocation103_spill] sm:$0xff] }
 0x736   :  { %5318 = vmatpush.bf16.msra.mxu2 %v14352_v29  ;;  %5331 = vmatpush.bf16.msra.mxu3 %v14353_v37  ;;  %v14363_v29 = vld [vmem:[#allocation87_spill] sm:$0xff]  ;;  %v14364_v37 = vld [vmem:[#allocation90_spill] sm:$0xff] }
 0x738   :  { %5293 = vmatpush.bf16.msra.mxu0 %v14354_v54  ;;  %5306 = vmatpush.bf16.msra.mxu1 %v14355_v6  ;;  %v14365_v54 = vld [vmem:[#allocation91_spill] sm:$0xff]  ;;  %v14366_v6 = vld [vmem:[#allocation92_spill] sm:$0xff] }
 0x73a   :  { %5319 = vmatpush.bf16.msra.mxu2 %v14356_v3  ;;  %5332 = vmatpush.bf16.msra.mxu3 %v14357_v4  ;;  %v14367_v3 = vld [vmem:[#allocation93_spill] sm:$0xff]  ;;  %v14368_v4 = vld [vmem:[#allocation94_spill] sm:$0xff] }
 0x73c   :  { %5294 = vmatpush.bf16.msra.mxu0 %v14358_v25  ;;  %5307 = vmatpush.bf16.msra.mxu1 %v14359_v31  ;;  %v14369_v25 = vld [vmem:[#allocation95_spill] sm:$0xff]  ;;  %v11672_v31 = vpop.f32.mrf.mxu0 }
 0x73e   :  { %5320 = vmatpush.bf16.msra.mxu2 %v14362_v34  ;;  %5333 = vmatpush.bf16.msra.mxu3 %v14363_v29  ;;  %v14371_v34 = vld [vmem:[#allocation97_spill] sm:$0xff]  ;;  %v14372_v29 = vld [vmem:[#allocation98_spill] sm:$0xff] }
 0x740   :  { %5339 = vmatpush.bf16.msrb.mxu0 %v14360_v30  ;;  %5352 = vmatpush.bf16.msrb.mxu1 %v14361_v32  ;;  %v11674_v30 = vpop.f32.mrf.mxu1  ;;  %v14370_v32 = vld [vmem:[#allocation96_spill] sm:$0xff] }
 0x742   :  { %5365 = vmatpush.bf16.msrb.mxu2 %v14364_v37  ;;  %5378 = vmatpush.bf16.msrb.mxu3 %v14365_v54  ;;  %v14373_v37 = vld [vmem:[#allocation99_spill] sm:$0xff]  ;;  %v14374_v54 = vld [vmem:[#allocation100_spill] sm:$0xff] }
 0x744   :  { %5340 = vmatpush.bf16.msrb.mxu0 %v14366_v6  ;;  %5353 = vmatpush.bf16.msrb.mxu1 %v14367_v3  ;;  %v14375_v6 = vld [vmem:[#allocation101_spill] sm:$0xff]  ;;  %v4878_v36 = vpop.f32.mrf.mxu0 }
 0x745   :  { %v4902_v3 = vpop.f32.mrf.mxu2  ;;  %v14386_v36 = vld [vmem:[#allocation112_spill] sm:$0xff] }
 0x746   :  { %5366 = vmatpush.bf16.msrb.mxu2 %v14368_v4  ;;  %5379 = vmatpush.bf16.msrb.mxu3 %v14369_v25  ;;  %v11682_v4 = vpop.f32.mrf.mxu3  ;;  %v14376_v25 = vld [vmem:[#allocation102_spill] sm:$0xff] }
 0x748   :  { %5341 = vmatpush.bf16.msrb.mxu0 %v14370_v32  ;;  %5354 = vmatpush.bf16.msrb.mxu1 %v14371_v34  ;;  %v4891_v63 = vpop.f32.mrf.mxu1  ;;  %v14378_v32 = vld [vmem:[#allocation104_spill] sm:$0xff]  ;;  %v14379_v34 = vld [vmem:[#allocation105_spill] sm:$0xff] }
 0x749   :  { %v14387_v63 = vld [vmem:[#allocation113_spill] sm:$0xff] }
 0x74a   :  { %5367 = vmatpush.bf16.msrb.mxu2 %v14372_v29  ;;  %5380 = vmatpush.bf16.msrb.mxu3 %v14373_v37  ;;  %v14380_v29 = vld [vmem:[#allocation106_spill] sm:$0xff]  ;;  %v14381_v37 = vld [vmem:[#allocation107_spill] sm:$0xff] }
 0x74c   :  { %5342 = vmatpush.bf16.msrb.mxu0 %v14374_v54  ;;  %5355 = vmatpush.bf16.msrb.mxu1 %v14375_v6  ;;  %v14382_v54 = vld [vmem:[#allocation108_spill] sm:$0xff]  ;;  %v14383_v6 = vld [vmem:[#allocation109_spill] sm:$0xff] }
 0x74d   :  { %v4904_v28 = vpop.f32.mrf.mxu2 }
 0x74e   :  { %5368 = vmatpush.bf16.msrb.mxu2 %v14376_v25  ;;  %5381 = vmatpush.bf16.msrb.mxu3 %v14377_v52  ;;  %v4917_v39 = vpop.f32.mrf.mxu3  ;;  %v14385_v25 = vld [vmem:[#allocation111_spill] sm:$0xff] }
 0x74f   :  { %v14393_v28 = vld [vmem:[#allocation119_spill] sm:$0xff] }
 0x750   :  { %5343 = vmatpush.bf16.msrb.mxu0 %v14378_v32  ;;  %5356 = vmatpush.bf16.msrb.mxu1 %v14379_v34  ;;  %v14388_v32 = vld [vmem:[#allocation114_spill] sm:$0xff]  ;;  %v14389_v34 = vld [vmem:[#allocation115_spill] sm:$0xff] }
 0x752   :  { %5369 = vmatpush.bf16.msrb.mxu2 %v14380_v29  ;;  %5382 = vmatpush.bf16.msrb.mxu3 %v14381_v37  ;;  %v14390_v29 = vld [vmem:[#allocation116_spill] sm:$0xff]  ;;  %v14391_v37 = vld [vmem:[#allocation117_spill] sm:$0xff] }
 0x754   :  { %5344 = vmatpush.bf16.msrb.mxu0 %v14382_v54  ;;  %5357 = vmatpush.bf16.msrb.mxu1 %v14383_v6  ;;  %v14392_v54 = vld [vmem:[#allocation118_spill] sm:$0xff] }
 0x756   :  { %5370 = vmatpush.bf16.msrb.mxu2 %v14384_v50  ;;  %5383 = vmatpush.bf16.msrb.mxu3 %v14385_v25 }
 0x758   :  { %5345 = vmatpush.bf16.msrb.mxu0 %v14386_v36  ;;  %5358 = vmatpush.bf16.msrb.mxu1 %v14387_v63 }
 0x75a   :  { %5371 = vmatpush.bf16.msrb.mxu2 %v14388_v32  ;;  %5384 = vmatpush.bf16.msrb.mxu3 %v14389_v34 }
 0x75c   :  { %5346 = vmatpush.bf16.msrb.mxu0 %v14390_v29  ;;  %5359 = vmatpush.bf16.msrb.mxu1 %v14391_v37  ;;  %v4992_v39 = vpop.f32.mrf.mxu0  ;;  %v5005_v50 = vpop.f32.mrf.mxu1 }
 0x75d   :  { %v5087_v25 = vadd.f32 %v4992_v39, %v11587_v22  ;;  %v5088_v36 = vadd.f32 %v5005_v50, %v11596_v53 }
 0x75e   :  { %5372 = vmatpush.bf16.msrb.mxu2 %v14392_v54  ;;  %5385 = vmatpush.bf16.msrb.mxu3 %v14393_v28 }
 0x75f   :  { %v7637_v6 = vmul.f32 -1.442695, %v5087_v25  ;;  %v7638_v63 = vmul.f32 -1.442695, %v5088_v36 }
 0x761   :  { %8270 = vpow2.f32 %v7637_v6 }
 0x762   :  { %8272 = vpow2.f32 %v7638_v63 }
 0x764   :  { %v4994_v52 = vpop.f32.mrf.mxu0  ;;  %v5007_v54 = vpop.f32.mrf.mxu1 }
 0x765   :  { %v5018_v32 = vpop.f32.mrf.mxu2  ;;  %v5031_v34 = vpop.f32.mrf.mxu3 }
 0x766   :  { %v5089_v29 = vadd.f32 %v5018_v32, %v11609_v2  ;;  %v5090_v37 = vadd.f32 %v5031_v34, %v11618_v1 }
 0x767   :  { %v8271_v7 = vpop.eup %8270 }
 0x768   :  { %v7639_v18 = vmul.f32 -1.442695, %v5089_v29  ;;  %v7640_v28 = vmul.f32 -1.442695, %v5090_v37  ;;  %v8273_v0 = vpop.eup %8272  ;;  %v5101_v12 = vadd.f32 1.0, %v8271_v7  ;;  %v14395_v29 = vld [vmem:[#allocation259_spill] sm:$0xff] }
 0x769   :  { %v11706_v22 = vadd.f32 1.0, %v8273_v0  ;;  %v4903_v32 = vadd.f32 %v4902_v3, %v14395_v29 }
 0x76a   :  { %8274 = vpow2.f32 %v7639_v18  ;;  %v14394_v18 = vld [vmem:[#allocation258_spill] sm:$0xff]  ;;  %v5112_v63 = vand.u32 2147483647, %v5101_v12  ;;  %vm5108_vm8 = vweird.f32 %v5101_v12 }
 0x76b   :  { %8276 = vpow2.f32 %v7640_v28  ;;  %v4877_v52 = vadd.f32 %v11672_v31, %v14394_v18  ;;  %vm5123_vm9 = vweird.f32 %v11706_v22 }
 0x76c   :  { %8278 = vrcp.f32 %v5101_v12  ;;  %vm11732_vm11 = vcmp.eq.f32.partialorder %v5112_v63, 8.507059e+37 }
 0x76d   :  { %8280 = vrcp.f32 %v11706_v22  ;;  %v5020_v50 = vpop.f32.mrf.mxu2  ;;  %v5033_v53 = vpop.f32.mrf.mxu3  ;;  %v4890_v39 = vadd.f32 %v11674_v30, %v4877_v52 }
 0x76e   :  { %v4916_v50 = vadd.f32 %v11682_v4, %v4903_v32  ;;  %v5114_v53 = vand.u32 2147483648, %v5101_v12 }
 0x770   :  { %v8275_v25 = vpop.eup %8274 }
 0x771   :  { %v8277_v2 = vpop.eup %8276  ;;  %v5139_v6 = vadd.f32 1.0, %v8275_v25 }
 0x772   :  { %v11709_v1 = vpop.eup %8278  ;;  %v11711_v54 = vadd.f32 1.0, %v8277_v2 }
 0x773   :  { %v11713_v37 = vpop.eup %8280  ;;  %v5104_v7 = vmul.f32 %v11709_v1, %v5101_v12  ;;  %8282 = vrcp.f32 %v5139_v6  ;;  %v5152_v31 = vand.u32 2147483648, %v5139_v6  ;;  %vm5109_vm10 = vweird.f32 %v11709_v1 }
 0x774   :  { %v5119_v0 = vmul.f32 %v11713_v37, %v11706_v22  ;;  %8284 = vrcp.f32 %v11711_v54  ;;  %v5167_v4 = vand.u32 2147483648, %v11711_v54  ;;  %vm5124_vm12 = vweird.f32 %v11713_v37  ;;  %vm11742_vm15 = vmor %vm5108_vm8, %vm5109_vm10 }
 0x775   :  { %v5105_v34 = vsub.f32 1.0, %v5104_v7  ;;  %v5127_v7 = vand.u32 2147483647, %v11706_v22  ;;  %vm5146_vm0 = vweird.f32 %v5139_v6  ;;  %vm11749_vm1 = vmor %vm5123_vm9, %vm5124_vm12  ;;  %vm5161_vm3 = vweird.f32 %v11711_v54 }
 0x776   :  { %v5120_v36 = vsub.f32 1.0, %v5119_v0  ;;  %v5129_v0 = vand.u32 2147483648, %v11706_v22 }
 0x777   :  { %v5106_v47 = vmul.f32 %v11709_v1, %v5105_v34  ;;  %v5150_v34 = vand.u32 2147483647, %v5139_v6  ;;  %vm5128_vm9 = vcmp.eq.f32.partialorder %v5127_v7, 8.507059e+37 }
 0x778   :  { %v5121_v62 = vmul.f32 %v11713_v37, %v5120_v36 }
 0x779   :  { %v8283_v28 = vpop.eup %8282  ;;  %vm5151_vm7 = vcmp.eq.f32.partialorder %v5150_v34, 8.507059e+37 }
 0x77a   :  { %v8285_v25 = vpop.eup %8284  ;;  %v5142_v2 = vmul.f32 %v8283_v28, %v5139_v6  ;;  %vm5147_vm13 = vweird.f32 %v8283_v28  ;;  %v5122_v15 = vadd.f32 %v11713_v37, %v5121_v62  ;;  %v5153_v62 = vor.u32 1.1754944e-38, %v5152_v31 }
 0x77b   :  { %v5157_v3 = vmul.f32 %v8285_v25, %v11711_v54  ;;  %vm5162_vm14 = vweird.f32 %v8285_v25  ;;  %vm5148_vm2 = vmor %vm5146_vm0, %vm5147_vm13 }
 0x77c   :  { %v5143_v30 = vsub.f32 1.0, %v5142_v2  ;;  %v5044_v52 = vpop.f32.mrf.mxu0  ;;  %v5057_v36 = vpop.f32.mrf.mxu1  ;;  %v5107_v2 = vadd.f32 %v11709_v1, %v5106_v47  ;;  %v5168_v47 = vor.u32 1.1754944e-38, %v5167_v4  ;;  %vm5163_vm6 = vmor %vm5161_vm3, %vm5162_vm14 }
 0x77d   :  { %v5158_v29 = vsub.f32 1.0, %v5157_v3  ;;  %v5091_v18 = vadd.f32 %v5044_v52, %v11637_v46  ;;  %v5092_v13 = vadd.f32 %v5057_v36, %v11648_v51  ;;  %v5165_v46 = vand.u32 2147483647, %v11711_v54 }
 0x77e   :  { %v5144_v20 = vmul.f32 %v8283_v28, %v5143_v30  ;;  %v5115_v51 = vor.u32 1.1754944e-38, %v5114_v53  ;;  %v5111_v6 = vsel %vm11742_vm15, %v11709_v1, %v5107_v2 }
 0x77f   :  { %v5159_v23 = vmul.f32 %v8285_v25, %v5158_v29  ;;  %8286 = vtanh.f32 %v5091_v18  ;;  %v5130_v29 = vor.u32 1.1754944e-38, %v5129_v0  ;;  %vm5166_vm8 = vcmp.eq.f32.partialorder %v5165_v46, 8.507059e+37 }
 0x780   :  { %v5145_v3 = vadd.f32 %v8283_v28, %v5144_v20  ;;  %8288 = vtanh.f32 %v5092_v13  ;;  %v5126_v20 = vsel %vm11749_vm1, %v11713_v37, %v5122_v15  ;;  %v5116_v1 = vsel %vm11732_vm11, %v5115_v51, %v5111_v6 }
 0x781   :  { %v5160_v12 = vadd.f32 %v8285_v25, %v5159_v23 }
 0x782   :  { %v5149_v18 = vsel %vm5148_vm2, %v8283_v28, %v5145_v3  ;;  %v5131_v28 = vsel %vm5128_vm9, %v5130_v29, %v5126_v20 }
 0x783   :  { %v5154_v22 = vsel %vm5151_vm7, %v5153_v62, %v5149_v18  ;;  %v5164_v13 = vsel %vm5163_vm6, %v8285_v25, %v5160_v12 }
 0x784   :  { %v5169_v54 = vsel %vm5166_vm8, %v5168_v47, %v5164_v13  ;;  %v5046_v52 = vpop.f32.mrf.mxu0  ;;  %v5059_v36 = vpop.f32.mrf.mxu1  ;;  %v5211_v15 = vmul.f32 %v5154_v22, %v11342_v55 }
 0x785   :  { %v5070_v53 = vpop.f32.mrf.mxu2  ;;  %v5083_v31 = vpop.f32.mrf.mxu3  ;;  %v5212_v2 = vmul.f32 %v5169_v54, %v11344_v14 }
 0x786   :  { %v5093_v23 = vadd.f32 %v5070_v53, %v4890_v39  ;;  %v5094_v4 = vadd.f32 %v5083_v31, %v4916_v50  ;;  %v8287_v63 = vpop.eup %8286 }
 0x787   :  { %v8289_v34 = vpop.eup %8288  ;;  %v5213_v37 = vmul.f32 %v8287_v63, %v5116_v1 }
 0x788   :  { %v7641_v0 = vmul.f32 -1.442695, %v5093_v23  ;;  %v7642_v25 = vmul.f32 -1.442695, %v5094_v4  ;;  %v5214_v46 = vmul.f32 %v8289_v34, %v5131_v28 }
 0x789   :  { %v11764_v7 = vadd.f32 %v5213_v37, %v5211_v15 }
 0x78a   :  { %8290 = vpow2.f32 %v7641_v0  ;;  %v11766_v39 = vadd.f32 %v5214_v46, %v5212_v2 }
 0x78b   :  { %8292 = vpow2.f32 %v7642_v25 }
 0x78d   :  { %v5072_v50 = vpop.f32.mrf.mxu2  ;;  %v5085_v3 = vpop.f32.mrf.mxu3 }
 0x790   :  { %v8291_v32 = vpop.eup %8290 }
 0x791   :  { %v8293_v51 = vpop.eup %8292  ;;  %v5179_v30 = vadd.f32 1.0, %v8291_v32 }
 0x792   :  { %v5180_v62 = vadd.f32 1.0, %v8293_v51 }
 0x793   :  { %8294 = vrcp.f32 %v5179_v30  ;;  %v5192_v22 = vand.u32 2147483648, %v5179_v30  ;;  %v5190_v53 = vand.u32 2147483647, %v5179_v30  ;;  %vm5186_vm12 = vweird.f32 %v5179_v30 }
 0x794   :  { %8296 = vrcp.f32 %v5180_v62  ;;  %v5207_v31 = vand.u32 2147483648, %v5180_v62  ;;  %v5205_v23 = vand.u32 2147483647, %v5180_v62  ;;  %vm5201_vm14 = vweird.f32 %v5180_v62 }
 0x795   :  { %8298 = vtanh.f32 %v11764_v7  ;;  %v5193_v52 = vor.u32 1.1754944e-38, %v5192_v22  ;;  %vm5191_vm15 = vcmp.eq.f32.partialorder %v5190_v53, 8.507059e+37  ;;  %v14405_v53 = vld [vmem:[#allocation149_spill] sm:$0xff] }
 0x796   :  { %8300 = vtanh.f32 %v11766_v39  ;;  %v5208_v28 = vor.u32 1.1754944e-38, %v5207_v31  ;;  %vm5206_vm1 = vcmp.eq.f32.partialorder %v5205_v23, 8.507059e+37  ;;  %v14406_v31 = vld [vmem:[#allocation150_spill] sm:$0xff] }
 0x799   :  { %v8295_v55 = vpop.eup %8294 }
 0x79a   :  { %v8297_v47 = vpop.eup %8296  ;;  %v5182_v12 = vmul.f32 %v8295_v55, %v5179_v30  ;;  %vm5187_vm10 = vweird.f32 %v8295_v55 }
 0x79b   :  { %v5197_v6 = vmul.f32 %v8297_v47, %v5180_v62  ;;  %vm5202_vm11 = vweird.f32 %v8297_v47  ;;  %vm5188_vm13 = vmor %vm5186_vm12, %vm5187_vm10  ;;  %v8299_v63 = vpop.eup %8298 }
 0x79c   :  { %v11768_v14 = vpop.f32.mrf.mxu0  ;;  %v11770_v18 = vpop.f32.mrf.mxu1  ;;  %v5183_v20 = vsub.f32 1.0, %v5182_v12  ;;  %vm5203_vm0 = vmor %vm5201_vm14, %vm5202_vm11 }
 0x79d   :  { %v5198_v29 = vsub.f32 1.0, %v5197_v6  ;;  %v8301_v37 = vpop.eup %8300  ;;  %v5281_v6 = vadd.f32 %v11768_v14, %v13529_v8  ;;  %v14402_v14 = vld [vmem:[#allocation146_spill] sm:$0xff] }
 0x79e   :  { %v5184_v13 = vmul.f32 %v8295_v55, %v5183_v20  ;;  %v5282_v20 = vadd.f32 %v11770_v18, %v13532_v19  ;;  %v14403_v18 = vld [vmem:[#allocation147_spill] sm:$0xff] }
 0x79f   :  { %v5199_v54 = vmul.f32 %v8297_v47, %v5198_v29  ;;  %v7643_v22 = vmul.f32 -1.442695, %v5281_v6  ;;  %v14421_v6 = vld [vmem:[#allocation164_spill] sm:$0xff] }
 0x7a0   :  { %v5185_v4 = vadd.f32 %v8295_v55, %v5184_v13  ;;  %v7644_v29 = vmul.f32 -1.442695, %v5282_v20  ;;  %v14404_v13 = vld [vmem:[#allocation148_spill] sm:$0xff]  ;;  %v14422_v20 = vld [vmem:[#allocation165_spill] sm:$0xff] }
 0x7a1   :  { %v5200_v36 = vadd.f32 %v8297_v47, %v5199_v54  ;;  %8302 = vpow2.f32 %v7643_v22  ;;  %v14407_v54 = vld [vmem:[#allocation151_spill] sm:$0xff] }
 0x7a2   :  { %v5189_v1 = vsel %vm5188_vm13, %v8295_v55, %v5185_v4  ;;  %8304 = vpow2.f32 %v7644_v29  ;;  %v14408_v4 = vld [vmem:[#allocation152_spill] sm:$0xff]  ;;  %v14424_v29 = vld [vmem:[#allocation167_spill] sm:$0xff] }
 0x7a3   :  { %v5194_v0 = vsel %vm5191_vm15, %v5193_v52, %v5189_v1  ;;  %v5204_v25 = vsel %vm5203_vm0, %v8297_v47, %v5200_v36  ;;  %v14409_v52 = vld [vmem:[#allocation153_spill] sm:$0xff]  ;;  %v14411_v1 = vld [vmem:[#allocation155_spill] sm:$0xff] }
 0x7a4   :  { %v11774_v34 = vpop.f32.mrf.mxu2  ;;  %v11776_v15 = vpop.f32.mrf.mxu3  ;;  %v5219_v50 = vmul.f32 %v8299_v63, %v5194_v0  ;;  %v5209_v3 = vsel %vm5206_vm1, %v5208_v28, %v5204_v25  ;;  %v14410_v63 = vld [vmem:[#allocation154_spill] sm:$0xff]  ;;  %v14412_v0 = vld [vmem:[#allocation156_spill] sm:$0xff]  ;;  %v14413_v25 = vld [vmem:[#allocation157_spill] sm:$0xff] }
 0x7a5   :  { %v5240_v2 = vpop.f32.mrf.mxu0  ;;  %v5253_v46 = vpop.f32.mrf.mxu1  ;;  %v5220_v32 = vmul.f32 %v8301_v37, %v5209_v3 }
 0x7a6   :  { %v11778_v51 = vpack.c.bf16 %v5219_v50, %v5219_v50  ;;  %v14414_v2 = vld [vmem:[#allocation158_spill] sm:$0xff]  ;;  %v14415_v46 = vld [vmem:[#allocation159_spill] sm:$0xff] }
 0x7a7   :  { %v5223_v30 = vrot.slane %v5220_v32, 7  ;;  %v11780_v62 = vpack.c.bf16 %v5220_v32, %v5220_v32  ;;  %v8303_v23 = vpop.eup %8302  ;;  %v14417_v32 = vld [vmem:[#allocation160_spill] sm:$0xff] }
 0x7a8   :  { %5295 = vmatmul.bf16.vlgmr.msra.gmra.mxu0 %v11778_v51  ;;  %5321 = vmatmul.bf16.vlgmr.msra.gmra.mxu2 %v11778_v51  ;;  %v8305_v36 = vpop.eup %8304  ;;  %v11835_v28 = vadd.f32 1.0, %v8303_v23 }
 0x7a9   :  { %v5224_v55 = vsel %vm2340_vm4, %v5219_v50, %v5223_v30  ;;  %5308 = vmatmul.bf16.vlgmr.msra.gmra.mxu1 %v11780_v62  ;;  %5334 = vmatmul.bf16.vlgmr.msra.gmra.mxu3 %v11780_v62  ;;  %v11839_v37 = vadd.f32 1.0, %v8305_v36  ;;  %v14416_v50 = vld [vmem:[#allocation203_spill] sm:$0xff]  ;;  %v14418_v30 = vld [vmem:[#allocation161_spill] sm:$0xff]  ;;  %v14425_v36 = vld [vmem:[#allocation168_spill] sm:$0xff] }
 0x7aa   :  { %5227 = vst.msk [vmem:[#allocation2 + $0x5] ss:$8 sm:$0x3] %vm9714_vm5, %v5224_v55  ;;  %5391 = vmatpush.bf16.msra.mxu0 %v13317_v57  ;;  %5404 = vmatpush.bf16.msra.mxu1 %v13319_v48  ;;  %v5284_v3 = vadd.f32 %v11776_v15, %v14416_v50  ;;  %8306 = vrcp.f32 %v11835_v28  ;;  %v14419_v55 = vld [vmem:[#allocation162_spill] sm:$0xff]  ;;  %vm5504_vm6 = vweird.f32 %v11835_v28 }
 0x7ab   :  { %5417 = vmatpush.bf16.msra.mxu2 %v13523_v44  ;;  %5430 = vmatpush.bf16.msra.mxu3 %v13320_v61  ;;  %8308 = vrcp.f32 %v11839_v37  ;;  %v14423_v15 = vld [vmem:[#allocation166_spill] sm:$0xff]  ;;  %vm5523_vm7 = vweird.f32 %v11839_v37 }
 0x7ac   :  { %v5266_v47 = vpop.f32.mrf.mxu2  ;;  %v5279_v12 = vpop.f32.mrf.mxu3 }
 0x7ad   :  { %v14420_v47 = vld [vmem:[#allocation163_spill] sm:$0xff]  ;;  %v7645_v12 = vmul.f32 -1.442695, %v5284_v3 }
 0x7ae   :  { %5392 = vmatpush.bf16.msra.mxu0 %v13524_v35  ;;  %5405 = vmatpush.bf16.msra.mxu1 %v13323_v45 }
 0x7af   :  { %5418 = vmatpush.bf16.msra.mxu2 %v13525_v43  ;;  %5431 = vmatpush.bf16.msra.mxu3 %v13324_v24  ;;  %8310 = vpow2.f32 %v7645_v12 }
 0x7b0   :  { %v11855_v22 = vpop.eup %8306 }
 0x7b1   :  { %v11859_v23 = vpop.eup %8308  ;;  %v5500_v3 = vmul.f32 %v11855_v22, %v11835_v28  ;;  %vm5505_vm2 = vweird.f32 %v11855_v22 }
 0x7b2   :  { %5393 = vmatpush.bf16.msra.mxu0 %v13325_v27  ;;  %5406 = vmatpush.bf16.msra.mxu1 %v13328_v40  ;;  %vm5524_vm3 = vweird.f32 %v11859_v23  ;;  %vm11898_vm8 = vmor %vm5504_vm6, %vm5505_vm2 }
 0x7b3   :  { %5419 = vmatpush.bf16.msra.mxu2 %v13326_v5  ;;  %5432 = vmatpush.bf16.msra.mxu3 %v13329_v21  ;;  %v5501_v12 = vsub.f32 1.0, %v5500_v3  ;;  %vm11908_vm9 = vmor %vm5523_vm7, %vm5524_vm3 }
 0x7b6   :  { %5394 = vmatpush.bf16.msra.mxu0 %v13330_v49  ;;  %5407 = vmatpush.bf16.msra.mxu1 %v13526_v60 }
 0x7b7   :  { %5420 = vmatpush.bf16.msra.mxu2 %v13527_v17  ;;  %5433 = vmatpush.bf16.msra.mxu3 %v13528_v41 }
 0x7b8   :  { %5347 = vmatmul.bf16.vlgmr.msrb.gmra.mxu0 %v11778_v51  ;;  %5373 = vmatmul.bf16.vlgmr.msrb.gmra.mxu2 %v11778_v51 }
 0x7b9   :  { %5360 = vmatmul.bf16.vlgmr.msrb.gmra.mxu1 %v11780_v62  ;;  %5386 = vmatmul.bf16.vlgmr.msrb.gmra.mxu3 %v11780_v62 }
 0x7ba   :  { %5395 = vmatpush.bf16.msra.mxu0 %v13530_v58  ;;  %5408 = vmatpush.bf16.msra.mxu1 %v13531_v26 }
 0x7bb   :  { %5421 = vmatpush.bf16.msra.mxu2 %v13533_v56  ;;  %5434 = vmatpush.bf16.msra.mxu3 %v13742_v38 }
 0x7be   :  { %5396 = vmatpush.bf16.msra.mxu0 %v13743_v16  ;;  %5409 = vmatpush.bf16.msra.mxu1 %v13744_v33 }
 0x7bf   :  { %5422 = vmatpush.bf16.msra.mxu2 %v13745_v11  ;;  %5435 = vmatpush.bf16.msra.mxu3 %v13746_v59 }
 0x7c2   :  { %5397 = vmatpush.bf16.msra.mxu0 %v13747_v42  ;;  %5410 = vmatpush.bf16.msra.mxu1 %v13748_v10 }
 0x7c3   :  { %5423 = vmatpush.bf16.msra.mxu2 %v14402_v14  ;;  %5436 = vmatpush.bf16.msra.mxu3 %v14403_v18 }
 0x7c6   :  { %5398 = vmatpush.bf16.msra.mxu0 %v14404_v13  ;;  %5411 = vmatpush.bf16.msra.mxu1 %v14405_v53 }
 0x7c7   :  { %5424 = vmatpush.bf16.msra.mxu2 %v14406_v31  ;;  %5437 = vmatpush.bf16.msra.mxu3 %v14407_v54 }
 0x7c9   :  { %5399 = vmatmul.bf16.vlgmr.msra.gmra.mxu0 %v11778_v51  ;;  %5412 = vmatmul.bf16.vlgmr.msra.gmra.mxu1 %v11780_v62 }
 0x7ca   :  { %5443 = vmatpush.bf16.msrb.mxu0 %v14408_v4  ;;  %5456 = vmatpush.bf16.msrb.mxu1 %v14409_v52  ;;  %v14603_v52 = vld [vmem:[#allocation110_spill] sm:$0xff] }
 0x7cb   :  { %5469 = vmatpush.bf16.msrb.mxu2 %v14410_v63  ;;  %5482 = vmatpush.bf16.msrb.mxu3 %v14411_v1 }
 0x7cc   :  { %5425 = vmatmul.bf16.vlgmr.msra.gmra.mxu2 %v11778_v51  ;;  %5438 = vmatmul.bf16.vlgmr.msra.gmra.mxu3 %v11780_v62 }
 0x7ce   :  { %5444 = vmatpush.bf16.msrb.mxu0 %v14412_v0  ;;  %5457 = vmatpush.bf16.msrb.mxu1 %v14413_v25  ;;  %v14434_v25 = vld [vmem:[#allocation177_spill] sm:$0xff]  ;;  %v14435_v0 = vld [vmem:[#allocation178_spill] sm:$0xff] }
 0x7cf   :  { %5470 = vmatpush.bf16.msrb.mxu2 %v14414_v2  ;;  %5483 = vmatpush.bf16.msrb.mxu3 %v14415_v46  ;;  %v14433_v2 = vld [vmem:[#allocation176_spill] sm:$0xff] }
 0x7d2   :  { %5445 = vmatpush.bf16.msrb.mxu0 %v14417_v32  ;;  %5458 = vmatpush.bf16.msrb.mxu1 %v14418_v30  ;;  %v14426_v30 = vld [vmem:[#allocation169_spill] sm:$0xff] }
 0x7d3   :  { %5471 = vmatpush.bf16.msrb.mxu2 %v14419_v55  ;;  %5484 = vmatpush.bf16.msrb.mxu3 %v14420_v47  ;;  %v14428_v47 = vld [vmem:[#allocation171_spill] sm:$0xff]  ;;  %v14429_v55 = vld [vmem:[#allocation172_spill] sm:$0xff] }
 0x7d6   :  { %5446 = vmatpush.bf16.msrb.mxu0 %v14421_v6  ;;  %5459 = vmatpush.bf16.msrb.mxu1 %v14422_v20  ;;  %v5519_v6 = vmul.f32 %v11859_v23, %v11839_v37  ;;  %v14427_v20 = vld [vmem:[#allocation170_spill] sm:$0xff] }
 0x7d7   :  { %5472 = vmatpush.bf16.msrb.mxu2 %v14423_v15  ;;  %5485 = vmatpush.bf16.msrb.mxu3 %v14424_v29  ;;  %v8311_v15 = vpop.eup %8310  ;;  %v14430_v29 = vld [vmem:[#allocation173_spill] sm:$0xff] }
 0x7d8   :  { %v5520_v32 = vsub.f32 1.0, %v5519_v6  ;;  %v11873_v46 = vadd.f32 1.0, %v8311_v15  ;;  %v14437_v6 = vld [vmem:[#allocation215_spill] sm:$0xff]  ;;  %v14438_v15 = vld [vmem:[#allocation180_spill] sm:$0xff] }
 0x7d9   :  { %v5283_v3 = vadd.f32 %v11774_v34, %v14437_v6  ;;  %v5510_v34 = vand.u32 2147483648, %v11835_v28 }
 0x7da   :  { %5447 = vmatpush.bf16.msrb.mxu0 %v14425_v36  ;;  %5460 = vmatpush.bf16.msrb.mxu1 %v14426_v30  ;;  %v14431_v36 = vld [vmem:[#allocation174_spill] sm:$0xff]  ;;  %v14432_v30 = vld [vmem:[#allocation175_spill] sm:$0xff]  ;;  %8312 = vrcp.f32 %v11873_v46  ;;  %vm5543_vm13 = vweird.f32 %v11873_v46 }
 0x7db   :  { %5473 = vmatpush.bf16.msrb.mxu2 %v14427_v20  ;;  %5486 = vmatpush.bf16.msrb.mxu3 %v14428_v47  ;;  %v5521_v20 = vmul.f32 %v11859_v23, %v5520_v32  ;;  %v5502_v47 = vmul.f32 %v11855_v22, %v5501_v12  ;;  %8314 = vtanh.f32 %v5283_v3  ;;  %v14450_v3 = vld [vmem:[#allocation188_spill] sm:$0xff] }
 0x7dd   :  { %v5503_v32 = vadd.f32 %v11855_v22, %v5502_v47  ;;  %v5522_v12 = vadd.f32 %v11859_v23, %v5521_v20  ;;  %v5508_v20 = vand.u32 2147483647, %v11835_v28  ;;  %v14453_v47 = vld [vmem:[#allocation191_spill] sm:$0xff] }
 0x7de   :  { %5448 = vmatpush.bf16.msrb.mxu0 %v14429_v55  ;;  %5461 = vmatpush.bf16.msrb.mxu1 %v14430_v29  ;;  %v14436_v55 = vld [vmem:[#allocation179_spill] sm:$0xff]  ;;  %v14452_v29 = vld [vmem:[#allocation190_spill] sm:$0xff] }
 0x7df   :  { %5474 = vmatpush.bf16.msrb.mxu2 %v14431_v36  ;;  %5487 = vmatpush.bf16.msrb.mxu3 %v14432_v30  ;;  %v14442_v30 = vld [vmem:[#allocation184_spill] sm:$0xff]  ;;  %v5507_v28 = vsel %vm11898_vm8, %v11855_v22, %v5503_v32  ;;  %v14451_v36 = vld [vmem:[#allocation189_spill] sm:$0xff]  ;;  %vm5509_vm10 = vcmp.eq.f32.partialorder %v5508_v20, 8.507059e+37 }
 0x7e0   :  { %v14458_v20 = vld [vmem:[#allocation196_spill] sm:$0xff] }
 0x7e2   :  { %5449 = vmatpush.bf16.msrb.mxu0 %v14433_v2  ;;  %5462 = vmatpush.bf16.msrb.mxu1 %v14434_v25  ;;  %v14439_v2 = vld [vmem:[#allocation181_spill] sm:$0xff]  ;;  %v5529_v25 = vand.u32 2147483648, %v11839_v37 }
 0x7e3   :  { %5475 = vmatpush.bf16.msrb.mxu2 %v14435_v0  ;;  %5488 = vmatpush.bf16.msrb.mxu3 %v14436_v55  ;;  %v14440_v0 = vld [vmem:[#allocation182_spill] sm:$0xff]  ;;  %v14441_v55 = vld [vmem:[#allocation183_spill] sm:$0xff] }
 0x7e6   :  { %5450 = vmatpush.bf16.msrb.mxu0 %v14438_v15  ;;  %5463 = vmatpush.bf16.msrb.mxu1 %v14439_v2  ;;  %v14443_v15 = vld [vmem:[#allocation185_spill] sm:$0xff]  ;;  %v14447_v2 = vld [vmem:[#allocation187_spill] sm:$0xff] }
 0x7e7   :  { %5476 = vmatpush.bf16.msrb.mxu2 %v14440_v0  ;;  %5489 = vmatpush.bf16.msrb.mxu3 %v14441_v55  ;;  %v5527_v55 = vand.u32 2147483647, %v11839_v37  ;;  %v14446_v0 = vld [vmem:[#allocation186_spill] sm:$0xff]  ;;  %v5526_v37 = vsel %vm11908_vm9, %v11859_v23, %v5522_v12 }
 0x7e9   :  { %5451 = vmatmul.bf16.vlgmr.msrb.gmra.mxu0 %v11778_v51  ;;  %5464 = vmatmul.bf16.vlgmr.msrb.gmra.mxu1 %v11780_v62  ;;  %vm5528_vm11 = vcmp.eq.f32.partialorder %v5527_v55, 8.507059e+37 }
 0x7ea   :  { %5559 = vmatpush.bf16.msra.mxu0 %v14442_v30  ;;  %5572 = vmatpush.bf16.msra.mxu1 %v14443_v15  ;;  %v8313_v15 = vpop.eup %8312 }
 0x7eb   :  { %5585 = vmatpush.bf16.msra.mxu2 %v14446_v0  ;;  %5598 = vmatpush.bf16.msra.mxu3 %v14447_v2  ;;  %v5530_v2 = vor.u32 1.1754944e-38, %v5529_v25  ;;  %v5511_v0 = vor.u32 1.1754944e-38, %v5510_v34  ;;  %v5539_v30 = vmul.f32 %v8313_v15, %v11873_v46  ;;  %v8315_v23 = vpop.eup %8314  ;;  %v14456_v25 = vld [vmem:[#allocation125_spill] sm:$0xff]  ;;  %vm5544_vm12 = vweird.f32 %v8313_v15 }
 0x7ec   :  { %5477 = vmatmul.bf16.vlgmr.msrb.gmra.mxu2 %v11778_v51  ;;  %5490 = vmatmul.bf16.vlgmr.msrb.gmra.mxu3 %v11780_v62  ;;  %v14454_v51 = vld [vmem:[#allocation192_spill] sm:$0xff]  ;;  %v14455_v62 = vld [vmem:[#allocation193_spill] sm:$0xff]  ;;  %vm5545_vm14 = vmor %vm5543_vm13, %vm5544_vm12 }
 0x7ed   :  { %v5512_v22 = vsel %vm5509_vm10, %v5511_v0, %v5507_v28  ;;  %v5531_v32 = vsel %vm5528_vm11, %v5530_v2, %v5526_v37  ;;  %v5540_v55 = vsub.f32 1.0, %v5539_v30  ;;  %v14461_v2 = vld [vmem:[#allocation200_spill] sm:$0xff]  ;;  %v14462_v28 = vld [vmem:[#allocation201_spill] sm:$0xff]  ;;  %v14466_v30 = vld [vmem:[#allocation206_spill] sm:$0xff] }
 0x7ee   :  { %5560 = vmatpush.bf16.msra.mxu0 %v14450_v3  ;;  %5573 = vmatpush.bf16.msra.mxu1 %v14451_v36  ;;  %v5553_v12 = vmul.f32 %v5531_v32, %v14456_v25  ;;  %v5554_v34 = vmul.f32 %v8315_v23, %v5512_v22  ;;  %v14457_v3 = vld [vmem:[#allocation194_spill] sm:$0xff]  ;;  %v14464_v32 = vld [vmem:[#allocation204_spill] sm:$0xff]  ;;  %v14465_v22 = vld [vmem:[#allocation205_spill] sm:$0xff]  ;;  %v5549_v25 = vand.u32 2147483648, %v11873_v46 }
 0x7ef   :  { %5586 = vmatpush.bf16.msra.mxu2 %v14452_v29  ;;  %5599 = vmatpush.bf16.msra.mxu3 %v14453_v47  ;;  %v14459_v29 = vld [vmem:[#allocation198_spill] sm:$0xff]  ;;  %v14460_v47 = vld [vmem:[#allocation199_spill] sm:$0xff]  ;;  %v5541_v37 = vmul.f32 %v8313_v15, %v5540_v55  ;;  %v14468_v55 = vld [vmem:[#allocation208_spill] sm:$0xff] }
 0x7f0   :  { %v11934_v0 = vadd.f32 %v5554_v34, %v5553_v12  ;;  %v5547_v12 = vand.u32 2147483647, %v11873_v46  ;;  %v14467_v34 = vld [vmem:[#allocation207_spill] sm:$0xff]  ;;  %v14474_v46 = vld [vmem:[#allocation214_spill] sm:$0xff] }
 0x7f1   :  { %v5542_v23 = vadd.f32 %v8313_v15, %v5541_v37  ;;  %v14471_v37 = vld [vmem:[#allocation211_spill] sm:$0xff] }
 0x7f2   :  { %5561 = vmatpush.bf16.msra.mxu0 %v14454_v51  ;;  %5574 = vmatpush.bf16.msra.mxu1 %v14455_v62  ;;  %v14463_v62 = vld [vmem:[#allocation202_spill] sm:$0xff]  ;;  %8316 = vtanh.f32 %v11934_v0  ;;  %vm5548_vm15 = vcmp.eq.f32.partialorder %v5547_v12, 8.507059e+37  ;;  %v14480_v12 = vld [vmem:[#allocation221_spill] sm:$0xff]  ;;  %v14562_v51 = vld [vmem:[#allocation256_spill] sm:$0xff] }
 0x7f3   :  { %5587 = vmatpush.bf16.msra.mxu2 %v14457_v3  ;;  %5600 = vmatpush.bf16.msra.mxu3 %v14458_v20  ;;  %v14476_v20 = vld [vmem:[#allocation217_spill] sm:$0xff] }
 0x7f6   :  { %5562 = vmatpush.bf16.msra.mxu0 %v14459_v29  ;;  %5575 = vmatpush.bf16.msra.mxu1 %v14460_v47  ;;  %v14473_v29 = vld [vmem:[#allocation213_spill] sm:$0xff] }
 0x7f7   :  { %5588 = vmatpush.bf16.msra.mxu2 %v14461_v2  ;;  %5601 = vmatpush.bf16.msra.mxu3 %v14462_v28  ;;  %v14472_v2 = vld [vmem:[#allocation212_spill] sm:$0xff] }
 0x7f8   :  { %v8317_v28 = vpop.eup %8316 }
 0x7fa   :  { %5563 = vmatpush.bf16.msra.mxu0 %v14463_v62  ;;  %5576 = vmatpush.bf16.msra.mxu1 %v14464_v32  ;;  %v14469_v32 = vld [vmem:[#allocation209_spill] sm:$0xff]  ;;  %v14470_v62 = vld [vmem:[#allocation210_spill] sm:$0xff] }
 0x7fb   :  { %5589 = vmatpush.bf16.msra.mxu2 %v14465_v22  ;;  %5602 = vmatpush.bf16.msra.mxu3 %v14466_v30  ;;  %v5546_v22 = vsel %vm5545_vm14, %v8313_v15, %v5542_v23  ;;  %v5550_v30 = vor.u32 1.1754944e-38, %v5549_v25  ;;  %v14478_v15 = vld [vmem:[#allocation219_spill] sm:$0xff]  ;;  %v14479_v25 = vld [vmem:[#allocation220_spill] sm:$0xff] }
 0x7fd   :  { %v5551_v47 = vsel %vm5548_vm15, %v5550_v30, %v5546_v22  ;;  %v14481_v22 = vld [vmem:[#allocation222_spill] sm:$0xff]  ;;  %v14482_v30 = vld [vmem:[#allocation223_spill] sm:$0xff] }
 0x7fe   :  { %5564 = vmatpush.bf16.msra.mxu0 %v14467_v34  ;;  %5577 = vmatpush.bf16.msra.mxu1 %v14468_v55  ;;  %v5557_v34 = vmul.f32 %v8317_v28, %v5551_v47  ;;  %v14475_v55 = vld [vmem:[#allocation216_spill] sm:$0xff]  ;;  %v14484_v28 = vld [vmem:[#allocation225_spill] sm:$0xff] }
 0x7ff   :  { %5590 = vmatpush.bf16.msra.mxu2 %v14469_v32  ;;  %5603 = vmatpush.bf16.msra.mxu3 %v14470_v62  ;;  %v14477_v32 = vld [vmem:[#allocation218_spill] sm:$0xff]  ;;  %v14483_v47 = vld [vmem:[#allocation224_spill] sm:$0xff] }
 0x800   :  { %v11958_v23 = vpack.c.bf16 %v5557_v34, %v5557_v34  ;;  %v14485_v34 = vld [vmem:[#allocation226_spill] sm:$0xff]  ;;  %v14533_v62 = vld [vmem:[#allocation44_spill] sm:$0xff] }
 0x802   :  { %5565 = vmatpush.bf16.msra.mxu0 %v14471_v37  ;;  %5578 = vmatpush.bf16.msra.mxu1 %v14472_v2  ;;  %v14524_v2 = vld [vmem:[#allocation247_spill] sm:$0xff] }
 0x803   :  { %5591 = vmatpush.bf16.msra.mxu2 %v14473_v29  ;;  %5604 = vmatpush.bf16.msra.mxu3 %v14474_v46  ;;  %v14522_v46 = vld [vmem:[#allocation34_spill] sm:$0xff]  ;;  %v14523_v29 = vld [vmem:[#allocation35_spill] sm:$0xff] }
 0x806   :  { %5566 = vmatpush.bf16.msra.mxu0 %v14475_v55  ;;  %5579 = vmatpush.bf16.msra.mxu1 %v14476_v20  ;;  %v14492_v20 = vld [vmem:[#allocation233_spill] sm:$0xff]  ;;  %v14493_v55 = vld [vmem:[#allocation234_spill] sm:$0xff] }
 0x807   :  { %5592 = vmatpush.bf16.msra.mxu2 %v14477_v32  ;;  %5605 = vmatpush.bf16.msra.mxu3 %v14478_v15  ;;  %v14490_v15 = vld [vmem:[#allocation231_spill] sm:$0xff]  ;;  %v14491_v32 = vld [vmem:[#allocation232_spill] sm:$0xff] }
 0x809   :  { %5567 = vmatmul.bf16.vlgmr.msra.gmra.mxu0 %v11958_v23  ;;  %5580 = vmatmul.bf16.vlgmr.msra.gmra.mxu1 %v11958_v23 }
 0x80a   :  { %5611 = vmatpush.bf16.msrb.mxu0 %v14479_v25  ;;  %5624 = vmatpush.bf16.msrb.mxu1 %v14480_v12  ;;  %v14486_v25 = vld [vmem:[#allocation227_spill] sm:$0xff]  ;;  %v14487_v12 = vld [vmem:[#allocation228_spill] sm:$0xff] }
 0x80b   :  { %5637 = vmatpush.bf16.msrb.mxu2 %v14481_v22  ;;  %5650 = vmatpush.bf16.msrb.mxu3 %v14482_v30  ;;  %v14488_v22 = vld [vmem:[#allocation229_spill] sm:$0xff]  ;;  %v14489_v30 = vld [vmem:[#allocation230_spill] sm:$0xff] }
 0x80c   :  { %5593 = vmatmul.bf16.vlgmr.msra.gmra.mxu2 %v11958_v23  ;;  %5606 = vmatmul.bf16.vlgmr.msra.gmra.mxu3 %v11958_v23 }
 0x80e   :  { %5612 = vmatpush.bf16.msrb.mxu0 %v14483_v47  ;;  %5625 = vmatpush.bf16.msrb.mxu1 %v14484_v28  ;;  %v14494_v47 = vld [vmem:[#allocation235_spill] sm:$0xff]  ;;  %v14495_v28 = vld [vmem:[#allocation236_spill] sm:$0xff] }
 0x80f   :  { %5638 = vmatpush.bf16.msrb.mxu2 %v14485_v34  ;;  %5651 = vmatpush.bf16.msrb.mxu3 %v14486_v25  ;;  %v14496_v34 = vld [vmem:[#allocation237_spill] sm:$0xff]  ;;  %v14497_v25 = vld [vmem:[#allocation238_spill] sm:$0xff] }
 0x812   :  { %5613 = vmatpush.bf16.msrb.mxu0 %v14487_v12  ;;  %5626 = vmatpush.bf16.msrb.mxu1 %v14488_v22  ;;  %v14498_v12 = vld [vmem:[#allocation239_spill] sm:$0xff]  ;;  %v14499_v22 = vld [vmem:[#allocation240_spill] sm:$0xff] }
 0x813   :  { %5639 = vmatpush.bf16.msrb.mxu2 %v14489_v30  ;;  %5652 = vmatpush.bf16.msrb.mxu3 %v14490_v15  ;;  %v14500_v30 = vld [vmem:[#allocation241_spill] sm:$0xff]  ;;  %v14501_v15 = vld [vmem:[#allocation242_spill] sm:$0xff] }
 0x816   :  { %5614 = vmatpush.bf16.msrb.mxu0 %v14491_v32  ;;  %5627 = vmatpush.bf16.msrb.mxu1 %v14492_v20  ;;  %v14502_v32 = vld [vmem:[#allocation243_spill] sm:$0xff]  ;;  %v14503_v20 = vld [vmem:[#allocation244_spill] sm:$0xff] }
 0x817   :  { %5640 = vmatpush.bf16.msrb.mxu2 %v14493_v55  ;;  %5653 = vmatpush.bf16.msrb.mxu3 %v14494_v47  ;;  %v14504_v55 = vld [vmem:[#allocation245_spill] sm:$0xff]  ;;  %v14505_v47 = vld [vmem:[#allocation246_spill] sm:$0xff] }
 0x81a   :  { %5615 = vmatpush.bf16.msrb.mxu0 %v14495_v28  ;;  %5628 = vmatpush.bf16.msrb.mxu1 %v14496_v34  ;;  %v14506_v28 = vld [vmem:[#allocation248_spill] sm:$0xff]  ;;  %v14507_v34 = vld [vmem:[#allocation249_spill] sm:$0xff] }
 0x81b   :  { %5641 = vmatpush.bf16.msrb.mxu2 %v14497_v25  ;;  %5654 = vmatpush.bf16.msrb.mxu3 %v14498_v12  ;;  %v14508_v25 = vld [vmem:[#allocation250_spill] sm:$0xff]  ;;  %v14509_v12 = vld [vmem:[#allocation251_spill] sm:$0xff] }
 0x81e   :  { %5616 = vmatpush.bf16.msrb.mxu0 %v14499_v22  ;;  %5629 = vmatpush.bf16.msrb.mxu1 %v14500_v30  ;;  %v14510_v22 = vld [vmem:[#allocation252_spill] sm:$0xff] }
 0x81f   :  { %5642 = vmatpush.bf16.msrb.mxu2 %v14501_v15  ;;  %5655 = vmatpush.bf16.msrb.mxu3 %v14502_v32  ;;  %v14511_v30 = vld [vmem:[#allocation24_spill] sm:$0xff]  ;;  %v14512_v15 = vld [vmem:[#allocation25_spill] sm:$0xff]  ;;  %v14513_v32 = vld [vmem:[#allocation26_spill] sm:$0xff] }
 0x822   :  { %5617 = vmatpush.bf16.msrb.mxu0 %v14503_v20  ;;  %5630 = vmatpush.bf16.msrb.mxu1 %v14504_v55  ;;  %v14514_v20 = vld [vmem:[#allocation27_spill] sm:$0xff]  ;;  %v14521_v55 = vld [vmem:[#allocation33_spill] sm:$0xff] }
 0x823   :  { %5643 = vmatpush.bf16.msrb.mxu2 %v14505_v47  ;;  %5656 = vmatpush.bf16.msrb.mxu3 %v14506_v28  ;;  %v14518_v28 = vld [vmem:[#allocation30_spill] sm:$0xff]  ;;  %v14520_v47 = vld [vmem:[#allocation32_spill] sm:$0xff] }
 0x826   :  { %5618 = vmatpush.bf16.msrb.mxu0 %v14507_v34  ;;  %5631 = vmatpush.bf16.msrb.mxu1 %v14508_v25  ;;  %v5296_v25 = vpop.f32.mrf.mxu0 }
 0x827   :  { %5644 = vmatpush.bf16.msrb.mxu2 %v14509_v12  ;;  %5657 = vmatpush.bf16.msrb.mxu3 %v14510_v22  ;;  %v14515_v12 = vld [vmem:[#allocation28_spill] sm:$0xff]  ;;  %v14516_v22 = vld [vmem:[#allocation29_spill] sm:$0xff] }
 0x829   :  { %5619 = vmatmul.bf16.vlgmr.msrb.gmra.mxu0 %v11958_v23  ;;  %5632 = vmatmul.bf16.vlgmr.msrb.gmra.mxu1 %v11958_v23 }
 0x82a   :  { %5805 = vmatpush.bf16.msra.mxu0 %v14511_v30  ;;  %5818 = vmatpush.bf16.msra.mxu1 %v14512_v15  ;;  %v14517_v30 = vld [vmem:[#allocation253_spill] sm:$0xff]  ;;  %v5309_v15 = vpop.f32.mrf.mxu1 }
 0x82b   :  { %5831 = vmatpush.bf16.msra.mxu2 %v14513_v32  ;;  %5844 = vmatpush.bf16.msra.mxu3 %v14514_v20  ;;  %v5297_v34 = vadd.f32 %v5296_v25, %v14517_v30  ;;  %v14519_v32 = vld [vmem:[#allocation31_spill] sm:$0xff]  ;;  %v14525_v30 = vld [vmem:[#allocation36_spill] sm:$0xff] }
 0x82c   :  { %5645 = vmatmul.bf16.vlgmr.msrb.gmra.mxu2 %v11958_v23  ;;  %5658 = vmatmul.bf16.vlgmr.msrb.gmra.mxu3 %v11958_v23  ;;  %v5335_v37 = vpop.f32.mrf.mxu3 }
 0x82d   :  { %v12009_v20 = vadd.f32 %v5309_v15, %v5297_v34  ;;  %v14527_v15 = vld [vmem:[#allocation38_spill] sm:$0xff] }
 0x82e   :  { %5806 = vmatpush.bf16.msra.mxu0 %v14515_v12  ;;  %5819 = vmatpush.bf16.msra.mxu1 %v14516_v22  ;;  %v5322_v12 = vpop.f32.mrf.mxu2  ;;  %v5298_v25 = vpop.f32.mrf.mxu0 }
 0x82f   :  { %5832 = vmatpush.bf16.msra.mxu2 %v14518_v28  ;;  %5845 = vmatpush.bf16.msra.mxu3 %v14519_v32  ;;  %v5323_v22 = vadd.f32 %v5322_v12, %v14524_v2  ;;  %v14526_v28 = vld [vmem:[#allocation37_spill] sm:$0xff]  ;;  %v14532_v12 = vld [vmem:[#allocation43_spill] sm:$0xff] }
 0x831   :  { %v12018_v32 = vadd.f32 %v5335_v37, %v5323_v22  ;;  %v14534_v37 = vld [vmem:[#allocation45_spill] sm:$0xff]  ;;  %v14535_v22 = vld [vmem:[#allocation255_spill] sm:$0xff] }
 0x832   :  { %5807 = vmatpush.bf16.msra.mxu0 %v14520_v47  ;;  %5820 = vmatpush.bf16.msra.mxu1 %v14521_v55  ;;  %v5311_v34 = vpop.f32.mrf.mxu1  ;;  %v14528_v47 = vld [vmem:[#allocation39_spill] sm:$0xff]  ;;  %v14529_v55 = vld [vmem:[#allocation40_spill] sm:$0xff] }
 0x833   :  { %5833 = vmatpush.bf16.msra.mxu2 %v14522_v46  ;;  %5846 = vmatpush.bf16.msra.mxu3 %v14523_v29  ;;  %v14530_v46 = vld [vmem:[#allocation41_spill] sm:$0xff]  ;;  %v14531_v29 = vld [vmem:[#allocation42_spill] sm:$0xff] }
 0x834   :  { %v5337_v2 = vpop.f32.mrf.mxu3 }
 0x835   :  { %v14541_v2 = vld [vmem:[#allocation51_spill] sm:$0xff] }
 0x836   :  { %5808 = vmatpush.bf16.msra.mxu0 %v14525_v30  ;;  %5821 = vmatpush.bf16.msra.mxu1 %v14526_v28  ;;  %v5324_v25 = vpop.f32.mrf.mxu2  ;;  %v5348_v30 = vpop.f32.mrf.mxu0 }
 0x837   :  { %5834 = vmatpush.bf16.msra.mxu2 %v14527_v15  ;;  %5847 = vmatpush.bf16.msra.mxu3 %v14528_v47  ;;  %v5349_v28 = vadd.f32 %v5348_v30, %v14535_v22  ;;  %v14536_v15 = vld [vmem:[#allocation46_spill] sm:$0xff]  ;;  %v14537_v47 = vld [vmem:[#allocation47_spill] sm:$0xff]  ;;  %v14543_v22 = vld [vmem:[#allocation52_spill] sm:$0xff] }
 0x838   :  { %v14542_v25 = vld [vmem:[#allocation254_spill] sm:$0xff] }
 0x83a   :  { %5809 = vmatpush.bf16.msra.mxu0 %v14529_v55  ;;  %5822 = vmatpush.bf16.msra.mxu1 %v14530_v46  ;;  %v5361_v34 = vpop.f32.mrf.mxu1  ;;  %v14538_v46 = vld [vmem:[#allocation48_spill] sm:$0xff] }
 0x83b   :  { %5835 = vmatpush.bf16.msra.mxu2 %v14531_v29  ;;  %5848 = vmatpush.bf16.msra.mxu3 %v14532_v12  ;;  %v12031_v55 = vadd.f32 %v5361_v34, %v5349_v28  ;;  %v14539_v29 = vld [vmem:[#allocation49_spill] sm:$0xff]  ;;  %v14540_v12 = vld [vmem:[#allocation50_spill] sm:$0xff] }
 0x83c   :  { %v5387_v3 = vpop.f32.mrf.mxu3  ;;  %v14545_v34 = vld [vmem:[#allocation54_spill] sm:$0xff] }
 0x83e   :  { %5810 = vmatpush.bf16.msra.mxu0 %v14533_v62  ;;  %5823 = vmatpush.bf16.msra.mxu1 %v14534_v37  ;;  %v5374_v62 = vpop.f32.mrf.mxu2  ;;  %v5350_v30 = vpop.f32.mrf.mxu0 }
 0x83f   :  { %5836 = vmatpush.bf16.msra.mxu2 %v14536_v15  ;;  %5849 = vmatpush.bf16.msra.mxu3 %v14537_v47  ;;  %v5375_v37 = vadd.f32 %v5374_v62, %v14542_v25  ;;  %v14544_v15 = vld [vmem:[#allocation53_spill] sm:$0xff]  ;;  %v14556_v25 = vld [vmem:[#allocation64_spill] sm:$0xff] }
 0x840   :  { %v14552_v30 = vld [vmem:[#allocation61_spill] sm:$0xff] }
 0x841   :  { %v12040_v47 = vadd.f32 %v5387_v3, %v5375_v37  ;;  %v14549_v3 = vld [vmem:[#allocation58_spill] sm:$0xff]  ;;  %v14551_v37 = vld [vmem:[#allocation60_spill] sm:$0xff] }
 0x842   :  { %5811 = vmatpush.bf16.msra.mxu0 %v14538_v46  ;;  %5824 = vmatpush.bf16.msra.mxu1 %v14539_v29  ;;  %v5363_v28 = vpop.f32.mrf.mxu1  ;;  %v14546_v46 = vld [vmem:[#allocation55_spill] sm:$0xff]  ;;  %v14547_v29 = vld [vmem:[#allocation56_spill] sm:$0xff] }
 0x843   :  { %5837 = vmatpush.bf16.msra.mxu2 %v14540_v12  ;;  %5850 = vmatpush.bf16.msra.mxu3 %v14541_v2  ;;  %v14548_v12 = vld [vmem:[#allocation57_spill] sm:$0xff]  ;;  %v14550_v2 = vld [vmem:[#allocation59_spill] sm:$0xff] }
 0x844   :  { %v5389_v62 = vpop.f32.mrf.mxu3 }
 0x845   :  { %v14560_v62 = vld [vmem:[#allocation68_spill] sm:$0xff] }
 0x846   :  { %5812 = vmatpush.bf16.msra.mxu0 %v14543_v22  ;;  %5825 = vmatpush.bf16.msra.mxu1 %v14544_v15  ;;  %v5376_v22 = vpop.f32.mrf.mxu2  ;;  %v5400_v15 = vpop.f32.mrf.mxu0 }
 0x847   :  { %5838 = vmatpush.bf16.msra.mxu2 %v14545_v34  ;;  %5851 = vmatpush.bf16.msra.mxu3 %v14546_v46  ;;  %v14553_v34 = vld [vmem:[#allocation62_spill] sm:$0xff]  ;;  %v14554_v46 = vld [vmem:[#allocation63_spill] sm:$0xff] }
 0x849   :  { %5813 = vmatmul.bf16.vlgmr.msra.gmra.mxu0 %v11958_v23  ;;  %5826 = vmatmul.bf16.vlgmr.msra.gmra.mxu1 %v11958_v23 }
 0x84a   :  { %5863 = vmatpush.bf16.msrb.mxu0 %v14547_v29  ;;  %5876 = vmatpush.bf16.msrb.mxu1 %v14548_v12  ;;  %v5413_v28 = vpop.f32.mrf.mxu1  ;;  %v14555_v29 = vld [vmem:[#allocation257_spill] sm:$0xff] }
 0x84b   :  { %5839 = vmatmul.bf16.vlgmr.msra.gmra.mxu2 %v11958_v23  ;;  %5852 = vmatmul.bf16.vlgmr.msra.gmra.mxu3 %v11958_v23  ;;  %v5401_v12 = vadd.f32 %v5400_v15, %v14555_v29  ;;  %v14557_v23 = vld [vmem:[#allocation65_spill] sm:$0xff]  ;;  %v14563_v29 = vld [vmem:[#allocation70_spill] sm:$0xff] }
 0x84c   :  { %5889 = vmatpush.bf16.msrb.mxu2 %v14549_v3  ;;  %5902 = vmatpush.bf16.msrb.mxu3 %v14550_v2  ;;  %v14558_v3 = vld [vmem:[#allocation66_spill] sm:$0xff]  ;;  %v14559_v2 = vld [vmem:[#allocation67_spill] sm:$0xff] }
 0x84d   :  { %v12059_v22 = vadd.f32 %v5413_v28, %v5401_v12  ;;  %v14565_v28 = vld [vmem:[#allocation72_spill] sm:$0xff]  ;;  %v14566_v12 = vld [vmem:[#allocation73_spill] sm:$0xff] }
 0x84e   :  { %5864 = vmatpush.bf16.msrb.mxu0 %v14551_v37  ;;  %5877 = vmatpush.bf16.msrb.mxu1 %v14552_v30  ;;  %v14561_v37 = vld [vmem:[#allocation69_spill] sm:$0xff]  ;;  %v5402_v36 = vpop.f32.mrf.mxu0 }
 0x84f   :  { %v5426_v30 = vpop.f32.mrf.mxu2 }
 0x850   :  { %5890 = vmatpush.bf16.msrb.mxu2 %v14553_v34  ;;  %5903 = vmatpush.bf16.msrb.mxu3 %v14554_v46  ;;  %v5439_v34 = vpop.f32.mrf.mxu3  ;;  %v5427_v46 = vadd.f32 %v5426_v30, %v14562_v51 }
 0x852   :  { %5865 = vmatpush.bf16.msrb.mxu0 %v14556_v25  ;;  %5878 = vmatpush.bf16.msrb.mxu1 %v14557_v23  ;;  %v5415_v15 = vpop.f32.mrf.mxu1  ;;  %v14564_v25 = vld [vmem:[#allocation71_spill] sm:$0xff]  ;;  %v12070_v23 = vadd.f32 %v5439_v34, %v5427_v46  ;;  %v14575_v34 = vld [vmem:[#allocation82_spill] sm:$0xff] }
 0x853   :  { %v14571_v15 = vld [vmem:[#allocation78_spill] sm:$0xff]  ;;  %v14576_v46 = vld [vmem:[#allocation83_spill] sm:$0xff] }
 0x854   :  { %5891 = vmatpush.bf16.msrb.mxu2 %v14558_v3  ;;  %5904 = vmatpush.bf16.msrb.mxu3 %v14559_v2  ;;  %v14567_v3 = vld [vmem:[#allocation74_spill] sm:$0xff]  ;;  %v14568_v2 = vld [vmem:[#allocation75_spill] sm:$0xff] }
 0x856   :  { %5866 = vmatpush.bf16.msrb.mxu0 %v14560_v62  ;;  %5879 = vmatpush.bf16.msrb.mxu1 %v14561_v37  ;;  %v14569_v62 = vld [vmem:[#allocation76_spill] sm:$0xff]  ;;  %v14570_v37 = vld [vmem:[#allocation77_spill] sm:$0xff] }
 0x857   :  { %v5428_v36 = vpop.f32.mrf.mxu2 }
 0x858   :  { %5892 = vmatpush.bf16.msrb.mxu2 %v14563_v29  ;;  %5905 = vmatpush.bf16.msrb.mxu3 %v14564_v25  ;;  %v5441_v30 = vpop.f32.mrf.mxu3  ;;  %v14572_v29 = vld [vmem:[#allocation79_spill] sm:$0xff]  ;;  %v14573_v25 = vld [vmem:[#allocation80_spill] sm:$0xff] }
 0x859   :  { %v14582_v36 = vld [vmem:[#allocation87_spill] sm:$0xff]  ;;  %v14583_v30 = vld [vmem:[#allocation90_spill] sm:$0xff] }
 0x85a   :  { %5867 = vmatpush.bf16.msrb.mxu0 %v14565_v28  ;;  %5880 = vmatpush.bf16.msrb.mxu1 %v14566_v12  ;;  %v14574_v28 = vld [vmem:[#allocation81_spill] sm:$0xff]  ;;  %v14577_v12 = vld [vmem:[#allocation84_spill] sm:$0xff] }
 0x85c   :  { %5893 = vmatpush.bf16.msrb.mxu2 %v14567_v3  ;;  %5906 = vmatpush.bf16.msrb.mxu3 %v14568_v2  ;;  %v14578_v3 = vld [vmem:[#allocation85_spill] sm:$0xff]  ;;  %v14579_v2 = vld [vmem:[#allocation88_spill] sm:$0xff] }
 0x85e   :  { %5868 = vmatpush.bf16.msrb.mxu0 %v14569_v62  ;;  %5881 = vmatpush.bf16.msrb.mxu1 %v14570_v37  ;;  %v14580_v62 = vld [vmem:[#allocation89_spill] sm:$0xff]  ;;  %v14581_v37 = vld [vmem:[#allocation86_spill] sm:$0xff] }
 0x860   :  { %5894 = vmatpush.bf16.msrb.mxu2 %v14571_v15  ;;  %5907 = vmatpush.bf16.msrb.mxu3 %v14572_v29  ;;  %v14584_v15 = vld [vmem:[#allocation91_spill] sm:$0xff]  ;;  %v14585_v29 = vld [vmem:[#allocation92_spill] sm:$0xff] }
 0x862   :  { %5869 = vmatpush.bf16.msrb.mxu0 %v14573_v25  ;;  %5882 = vmatpush.bf16.msrb.mxu1 %v14574_v28  ;;  %v14586_v25 = vld [vmem:[#allocation93_spill] sm:$0xff]  ;;  %v14587_v28 = vld [vmem:[#allocation94_spill] sm:$0xff] }
 0x864   :  { %5895 = vmatpush.bf16.msrb.mxu2 %v14575_v34  ;;  %5908 = vmatpush.bf16.msrb.mxu3 %v14576_v46  ;;  %v14588_v34 = vld [vmem:[#allocation95_spill] sm:$0xff] }
 0x866   :  { %5870 = vmatpush.bf16.msrb.mxu0 %v14577_v12  ;;  %5883 = vmatpush.bf16.msrb.mxu1 %v14578_v3  ;;  %v12094_v46 = vpop.f32.mrf.mxu0  ;;  %v12096_v12 = vpop.f32.mrf.mxu1  ;;  %v14589_v3 = vld [vmem:[#allocation96_spill] sm:$0xff] }
 0x868   :  { %5896 = vmatpush.bf16.msrb.mxu2 %v14581_v37  ;;  %5909 = vmatpush.bf16.msrb.mxu3 %v14582_v36  ;;  %v14592_v37 = vld [vmem:[#allocation99_spill] sm:$0xff]  ;;  %v14593_v36 = vld [vmem:[#allocation100_spill] sm:$0xff] }
 0x86a   :  { %5915 = vmatpush.bf16.msra.mxu0 %v14579_v2  ;;  %5928 = vmatpush.bf16.msra.mxu1 %v14580_v62  ;;  %v14590_v2 = vld [vmem:[#allocation97_spill] sm:$0xff]  ;;  %v14591_v62 = vld [vmem:[#allocation98_spill] sm:$0xff] }
 0x86c   :  { %5941 = vmatpush.bf16.msra.mxu2 %v14583_v30  ;;  %5954 = vmatpush.bf16.msra.mxu3 %v14584_v15  ;;  %v14594_v30 = vld [vmem:[#allocation101_spill] sm:$0xff] }
 0x86e   :  { %5916 = vmatpush.bf16.msra.mxu0 %v14585_v29  ;;  %5929 = vmatpush.bf16.msra.mxu1 %v14586_v25  ;;  %v14595_v25 = vld [vmem:[#allocation102_spill] sm:$0xff]  ;;  %v5467_v51 = vpop.f32.mrf.mxu1 }
 0x86f   :  { %v5478_v15 = vpop.f32.mrf.mxu2  ;;  %v12104_v29 = vpop.f32.mrf.mxu3  ;;  %v14606_v51 = vld [vmem:[#allocation113_spill] sm:$0xff] }
 0x870   :  { %5942 = vmatpush.bf16.msra.mxu2 %v14587_v28  ;;  %5955 = vmatpush.bf16.msra.mxu3 %v14588_v34  ;;  %v14596_v28 = vld [vmem:[#allocation103_spill] sm:$0xff]  ;;  %v5454_v34 = vpop.f32.mrf.mxu0 }
 0x871   :  { %v14607_v34 = vld [vmem:[#allocation114_spill] sm:$0xff] }
 0x872   :  { %5917 = vmatpush.bf16.msra.mxu0 %v14589_v3  ;;  %5930 = vmatpush.bf16.msra.mxu1 %v14590_v2  ;;  %v14597_v3 = vld [vmem:[#allocation104_spill] sm:$0xff]  ;;  %v14598_v2 = vld [vmem:[#allocation105_spill] sm:$0xff] }
 0x874   :  { %5943 = vmatpush.bf16.msra.mxu2 %v14591_v62  ;;  %5956 = vmatpush.bf16.msra.mxu3 %v14592_v37  ;;  %v14599_v62 = vld [vmem:[#allocation106_spill] sm:$0xff]  ;;  %v14600_v37 = vld [vmem:[#allocation107_spill] sm:$0xff] }
 0x876   :  { %5918 = vmatpush.bf16.msra.mxu0 %v14593_v36  ;;  %5931 = vmatpush.bf16.msra.mxu1 %v14594_v30  ;;  %v14601_v36 = vld [vmem:[#allocation108_spill] sm:$0xff]  ;;  %v14602_v30 = vld [vmem:[#allocation109_spill] sm:$0xff] }
 0x877   :  { %v5480_v1 = vpop.f32.mrf.mxu2  ;;  %v5493_v63 = vpop.f32.mrf.mxu3 }
 0x878   :  { %5944 = vmatpush.bf16.msra.mxu2 %v14595_v25  ;;  %5957 = vmatpush.bf16.msra.mxu3 %v14596_v28  ;;  %v14604_v25 = vld [vmem:[#allocation111_spill] sm:$0xff]  ;;  %v14605_v28 = vld [vmem:[#allocation112_spill] sm:$0xff] }
 0x879   :  { %v14612_v1 = vld [vmem:[#allocation119_spill] sm:$0xff] }
 0x87a   :  { %5919 = vmatpush.bf16.msra.mxu0 %v14597_v3  ;;  %5932 = vmatpush.bf16.msra.mxu1 %v14598_v2  ;;  %v14608_v3 = vld [vmem:[#allocation115_spill] sm:$0xff]  ;;  %v14609_v2 = vld [vmem:[#allocation116_spill] sm:$0xff] }
 0x87c   :  { %5945 = vmatpush.bf16.msra.mxu2 %v14599_v62  ;;  %5958 = vmatpush.bf16.msra.mxu3 %v14600_v37  ;;  %v14610_v62 = vld [vmem:[#allocation117_spill] sm:$0xff]  ;;  %v14611_v37 = vld [vmem:[#allocation118_spill] sm:$0xff] }
 0x87e   :  { %5920 = vmatpush.bf16.msra.mxu0 %v14601_v36  ;;  %5933 = vmatpush.bf16.msra.mxu1 %v14602_v30 }
 0x880   :  { %5946 = vmatpush.bf16.msra.mxu2 %v14603_v52  ;;  %5959 = vmatpush.bf16.msra.mxu3 %v14604_v25 }
 0x882   :  { %5921 = vmatpush.bf16.msra.mxu0 %v14605_v28  ;;  %5934 = vmatpush.bf16.msra.mxu1 %v14606_v51 }
 0x884   :  { %5947 = vmatpush.bf16.msra.mxu2 %v14607_v34  ;;  %5960 = vmatpush.bf16.msra.mxu3 %v14608_v3 }
 0x886   :  { %5922 = vmatpush.bf16.msra.mxu0 %v14609_v2  ;;  %5935 = vmatpush.bf16.msra.mxu1 %v14610_v62  ;;  %v5568_v63 = vpop.f32.mrf.mxu0  ;;  %v5581_v52 = vpop.f32.mrf.mxu1 }
 0x887   :  { %v5663_v36 = vadd.f32 %v5568_v63, %v12009_v20  ;;  %v5664_v30 = vadd.f32 %v5581_v52, %v12018_v32 }
 0x888   :  { %5948 = vmatpush.bf16.msra.mxu2 %v14611_v37  ;;  %5961 = vmatpush.bf16.msra.mxu3 %v14612_v1 }
 0x889   :  { %v7646_v25 = vmul.f32 -1.442695, %v5663_v36  ;;  %v7647_v28 = vmul.f32 -1.442695, %v5664_v30 }
 0x88b   :  { %8318 = vpow2.f32 %v7646_v25 }
 0x88c   :  { %8320 = vpow2.f32 %v7647_v28 }
 0x88e   :  { %v5570_v62 = vpop.f32.mrf.mxu0  ;;  %v5583_v37 = vpop.f32.mrf.mxu1 }
 0x88f   :  { %v5594_v51 = vpop.f32.mrf.mxu2  ;;  %v5607_v34 = vpop.f32.mrf.mxu3 }
 0x890   :  { %v5665_v3 = vadd.f32 %v5594_v51, %v12031_v55  ;;  %v5666_v2 = vadd.f32 %v5607_v34, %v12040_v47  ;;  %v14614_v51 = vld [vmem:[#allocation259_spill] sm:$0xff] }
 0x891   :  { %v8319_v54 = vpop.eup %8318  ;;  %v5479_v34 = vadd.f32 %v5478_v15, %v14614_v51 }
 0x892   :  { %v7648_v4 = vmul.f32 -1.442695, %v5665_v3  ;;  %v7649_v1 = vmul.f32 -1.442695, %v5666_v2  ;;  %v8321_v31 = vpop.eup %8320  ;;  %v5677_v53 = vadd.f32 1.0, %v8319_v54 }
 0x893   :  { %v12128_v20 = vadd.f32 1.0, %v8321_v31 }
 0x894   :  { %8322 = vpow2.f32 %v7648_v4  ;;  %v14613_v4 = vld [vmem:[#allocation258_spill] sm:$0xff]  ;;  %v5688_v62 = vand.u32 2147483647, %v5677_v53  ;;  %vm5684_vm0 = vweird.f32 %v5677_v53 }
 0x895   :  { %8324 = vpow2.f32 %v7649_v1  ;;  %v5453_v28 = vadd.f32 %v12094_v46, %v14613_v4  ;;  %vm5699_vm1 = vweird.f32 %v12128_v20 }
 0x896   :  { %8326 = vrcp.f32 %v5677_v53  ;;  %vm12154_vm3 = vcmp.eq.f32.partialorder %v5688_v62, 8.507059e+37 }
 0x897   :  { %8328 = vrcp.f32 %v12128_v20  ;;  %v5596_v32 = vpop.f32.mrf.mxu2  ;;  %v5609_v63 = vpop.f32.mrf.mxu3  ;;  %v5466_v1 = vadd.f32 %v12096_v12, %v5453_v28 }
 0x898   :  { %v5492_v32 = vadd.f32 %v12104_v29, %v5479_v34  ;;  %v5690_v63 = vand.u32 2147483648, %v5677_v53 }
 0x89a   :  { %v8323_v52 = vpop.eup %8322 }
 0x89b   :  { %v8325_v55 = vpop.eup %8324  ;;  %v5715_v36 = vadd.f32 1.0, %v8323_v52 }
 0x89c   :  { %v12131_v47 = vpop.eup %8326  ;;  %v12133_v30 = vadd.f32 1.0, %v8325_v55 }
 0x89d   :  { %v12135_v25 = vpop.eup %8328  ;;  %v5680_v54 = vmul.f32 %v12131_v47, %v5677_v53  ;;  %8330 = vrcp.f32 %v5715_v36  ;;  %v5728_v46 = vand.u32 2147483648, %v5715_v36  ;;  %vm5685_vm2 = vweird.f32 %v12131_v47 }
 0x89e   :  { %v5695_v31 = vmul.f32 %v12135_v25, %v12128_v20  ;;  %8332 = vrcp.f32 %v12133_v30  ;;  %v5743_v29 = vand.u32 2147483648, %v12133_v30  ;;  %vm5700_vm6 = vweird.f32 %v12135_v25  ;;  %vm12164_vm9 = vmor %vm5684_vm0, %vm5685_vm2 }
 0x89f   :  { %v5681_v3 = vsub.f32 1.0, %v5680_v54  ;;  %v5703_v54 = vand.u32 2147483647, %v12128_v20  ;;  %vm5722_vm10 = vweird.f32 %v5715_v36  ;;  %vm12171_vm11 = vmor %vm5699_vm1, %vm5700_vm6  ;;  %vm5737_vm13 = vweird.f32 %v12133_v30 }
 0x8a0   :  { %v5696_v2 = vsub.f32 1.0, %v5695_v31  ;;  %v5705_v31 = vand.u32 2147483648, %v12128_v20 }
 0x8a1   :  { %v5682_v13 = vmul.f32 %v12131_v47, %v5681_v3  ;;  %v5726_v3 = vand.u32 2147483647, %v5715_v36  ;;  %vm5704_vm1 = vcmp.eq.f32.partialorder %v5703_v54, 8.507059e+37 }
 0x8a2   :  { %v5697_v18 = vmul.f32 %v12135_v25, %v5696_v2 }
 0x8a3   :  { %v8331_v37 = vpop.eup %8330  ;;  %vm5727_vm15 = vcmp.eq.f32.partialorder %v5726_v3, 8.507059e+37 }
 0x8a4   :  { %v8333_v52 = vpop.eup %8332  ;;  %v5718_v55 = vmul.f32 %v8331_v37, %v5715_v36  ;;  %vm5723_vm7 = vweird.f32 %v8331_v37  ;;  %v5698_v42 = vadd.f32 %v12135_v25, %v5697_v18  ;;  %v5729_v18 = vor.u32 1.1754944e-38, %v5728_v46 }
 0x8a5   :  { %v5733_v15 = vmul.f32 %v8333_v52, %v12133_v30  ;;  %vm5738_vm8 = vweird.f32 %v8333_v52  ;;  %vm5724_vm12 = vmor %vm5722_vm10, %vm5723_vm7 }
 0x8a6   :  { %v5719_v12 = vsub.f32 1.0, %v5718_v55  ;;  %v5620_v28 = vpop.f32.mrf.mxu0  ;;  %v5633_v2 = vpop.f32.mrf.mxu1  ;;  %v5683_v55 = vadd.f32 %v12131_v47, %v5682_v13  ;;  %v5744_v13 = vor.u32 1.1754944e-38, %v5743_v29  ;;  %vm5739_vm14 = vmor %vm5737_vm13, %vm5738_vm8 }
 0x8a7   :  { %v5734_v51 = vsub.f32 1.0, %v5733_v15  ;;  %v5667_v4 = vadd.f32 %v5620_v28, %v12059_v22  ;;  %v5668_v14 = vadd.f32 %v5633_v2, %v12070_v23  ;;  %v5741_v22 = vand.u32 2147483647, %v12133_v30 }
 0x8a8   :  { %v5720_v10 = vmul.f32 %v8331_v37, %v5719_v12  ;;  %v5691_v23 = vor.u32 1.1754944e-38, %v5690_v63  ;;  %v5687_v36 = vsel %vm12164_vm9, %v12131_v47, %v5683_v55 }
 0x8a9   :  { %v5735_v59 = vmul.f32 %v8333_v52, %v5734_v51  ;;  %8334 = vtanh.f32 %v5667_v4  ;;  %v5706_v51 = vor.u32 1.1754944e-38, %v5705_v31  ;;  %vm5742_vm0 = vcmp.eq.f32.partialorder %v5741_v22, 8.507059e+37 }
 0x8aa   :  { %v5721_v15 = vadd.f32 %v8331_v37, %v5720_v10  ;;  %8336 = vtanh.f32 %v5668_v14  ;;  %v5702_v10 = vsel %vm12171_vm11, %v12135_v25, %v5698_v42  ;;  %v5692_v47 = vsel %vm12154_vm3, %v5691_v23, %v5687_v36 }
 0x8ab   :  { %v5736_v53 = vadd.f32 %v8333_v52, %v5735_v59 }
 0x8ac   :  { %v5725_v4 = vsel %vm5724_vm12, %v8331_v37, %v5721_v15  ;;  %v5707_v37 = vsel %vm5704_vm1, %v5706_v51, %v5702_v10 }
 0x8ad   :  { %v5730_v20 = vsel %vm5727_vm15, %v5729_v18, %v5725_v4  ;;  %v5740_v14 = vsel %vm5739_vm14, %v8333_v52, %v5736_v53 }
 0x8ae   :  { %v5745_v30 = vsel %vm5742_vm0, %v5744_v13, %v5740_v14  ;;  %v5622_v28 = vpop.f32.mrf.mxu0  ;;  %v5635_v2 = vpop.f32.mrf.mxu1  ;;  %v5787_v42 = vmul.f32 %v5730_v20, %v11764_v7 }
 0x8af   :  { %v5646_v63 = vpop.f32.mrf.mxu2  ;;  %v5659_v46 = vpop.f32.mrf.mxu3  ;;  %v5788_v55 = vmul.f32 %v5745_v30, %v11766_v39 }
 0x8b0   :  { %v5669_v59 = vadd.f32 %v5646_v63, %v5466_v1  ;;  %v5670_v29 = vadd.f32 %v5659_v46, %v5492_v32  ;;  %v8335_v62 = vpop.eup %8334 }
 0x8b1   :  { %v8337_v3 = vpop.eup %8336  ;;  %v5789_v25 = vmul.f32 %v8335_v62, %v5692_v47 }
 0x8b2   :  { %v7650_v31 = vmul.f32 -1.442695, %v5669_v59  ;;  %v7651_v52 = vmul.f32 -1.442695, %v5670_v29  ;;  %v5790_v22 = vmul.f32 %v8337_v3, %v5707_v37 }
 0x8b3   :  { %v12186_v54 = vadd.f32 %v5789_v25, %v5787_v42 }
 0x8b4   :  { %8338 = vpow2.f32 %v7650_v31  ;;  %v12188_v1 = vadd.f32 %v5790_v22, %v5788_v55 }
 0x8b5   :  { %8340 = vpow2.f32 %v7651_v52 }
 0x8b7   :  { %v5648_v32 = vpop.f32.mrf.mxu2  ;;  %v5661_v15 = vpop.f32.mrf.mxu3 }
 0x8ba   :  { %v8339_v34 = vpop.eup %8338 }
 0x8bb   :  { %v8341_v23 = vpop.eup %8340  ;;  %v5755_v12 = vadd.f32 1.0, %v8339_v34 }
 0x8bc   :  { %v5756_v18 = vadd.f32 1.0, %v8341_v23 }
 0x8bd   :  { %8342 = vrcp.f32 %v5755_v12  ;;  %v5766_v14 = vand.u32 2147483647, %v5755_v12  ;;  %v5768_v63 = vand.u32 2147483648, %v5755_v12  ;;  %vm5762_vm6 = vweird.f32 %v5755_v12 }
 0x8be   :  { %8344 = vrcp.f32 %v5756_v18  ;;  %v5783_v30 = vand.u32 2147483648, %v5756_v18  ;;  %v5781_v62 = vand.u32 2147483647, %v5756_v18  ;;  %vm5777_vm8 = vweird.f32 %v5756_v18 }
 0x8bf   :  { %8346 = vtanh.f32 %v12186_v54  ;;  %v5769_v3 = vor.u32 1.1754944e-38, %v5768_v63  ;;  %vm5767_vm9 = vcmp.eq.f32.partialorder %v5766_v14, 8.507059e+37 }
 0x8c0   :  { %8348 = vtanh.f32 %v12188_v1  ;;  %v5784_v25 = vor.u32 1.1754944e-38, %v5783_v30  ;;  %vm5782_vm11 = vcmp.eq.f32.partialorder %v5781_v62, 8.507059e+37 }
 0x8c3   :  { %v8343_v7 = vpop.eup %8342 }
 0x8c4   :  { %v8345_v13 = vpop.eup %8344  ;;  %v5758_v53 = vmul.f32 %v8343_v7, %v5755_v12  ;;  %vm5763_vm2 = vweird.f32 %v8343_v7 }
 0x8c5   :  { %v5773_v39 = vmul.f32 %v8345_v13, %v5756_v18  ;;  %vm5778_vm3 = vweird.f32 %v8345_v13  ;;  %v8347_v37 = vpop.eup %8346  ;;  %vm5764_vm7 = vmor %vm5762_vm6, %vm5763_vm2 }
 0x8c6   :  { %v5814_v36 = vpop.f32.mrf.mxu0  ;;  %v5827_v4 = vpop.f32.mrf.mxu1  ;;  %v5759_v10 = vsub.f32 1.0, %v5758_v53  ;;  %vm5779_vm10 = vmor %vm5777_vm8, %vm5778_vm3 }
 0x8c7   :  { %v5857_v20 = vadd.f32 %v5814_v36, %v13529_v8  ;;  %v5858_v51 = vadd.f32 %v5827_v4, %v13532_v19  ;;  %v5774_v46 = vsub.f32 1.0, %v5773_v39  ;;  %v8349_v19 = vpop.eup %8348 }
 0x8c8   :  { %v5760_v59 = vmul.f32 %v8343_v7, %v5759_v10 }
 0x8c9   :  { %v7652_v29 = vmul.f32 -1.442695, %v5857_v20  ;;  %v7653_v28 = vmul.f32 -1.442695, %v5858_v51  ;;  %v5775_v2 = vmul.f32 %v8345_v13, %v5774_v46 }
 0x8ca   :  { %v5761_v47 = vadd.f32 %v8343_v7, %v5760_v59 }
 0x8cb   :  { %8350 = vpow2.f32 %v7652_v29  ;;  %v5776_v8 = vadd.f32 %v8345_v13, %v5775_v2 }
 0x8cc   :  { %8352 = vpow2.f32 %v7653_v28  ;;  %v5765_v42 = vsel %vm5764_vm7, %v8343_v7, %v5761_v47 }
 0x8cd   :  { %v5770_v55 = vsel %vm5767_vm9, %v5769_v3, %v5765_v42  ;;  %v5780_v22 = vsel %vm5779_vm10, %v8345_v13, %v5776_v8 }
 0x8ce   :  { %v5840_v31 = vpop.f32.mrf.mxu2  ;;  %v5853_v52 = vpop.f32.mrf.mxu3  ;;  %v5795_v23 = vmul.f32 %v8347_v37, %v5770_v55  ;;  %v5785_v12 = vsel %vm5782_vm11, %v5784_v25, %v5780_v22 }
 0x8cf   :  { %v5860_v32 = vadd.f32 %v5853_v52, %v14416_v50  ;;  %v5816_v15 = vpop.f32.mrf.mxu0  ;;  %v5829_v34 = vpop.f32.mrf.mxu1  ;;  %v5796_v53 = vmul.f32 %v8349_v19, %v5785_v12  ;;  %v5859_v59 = vadd.f32 %v5840_v31, %v14437_v6  ;;  %v14624_v52 = vld [vmem:[#allocation146_spill] sm:$0xff]  ;;  %v14630_v12 = vld [vmem:[#allocation152_spill] sm:$0xff] }
 0x8d0   :  { %v12195_v36 = vpack.c.bf16 %v5795_v23, %v5795_v23  ;;  %v14627_v15 = vld [vmem:[#allocation149_spill] sm:$0xff]  ;;  %v14628_v34 = vld [vmem:[#allocation150_spill] sm:$0xff] }
 0x8d1   :  { %v7654_v39 = vmul.f32 -1.442695, %v5860_v32  ;;  %v8351_v18 = vpop.eup %8350  ;;  %v5799_v4 = vrot.slane %v5796_v53, 7  ;;  %v12197_v10 = vpack.c.bf16 %v5796_v53, %v5796_v53  ;;  %v14626_v32 = vld [vmem:[#allocation148_spill] sm:$0xff]  ;;  %v14631_v53 = vld [vmem:[#allocation153_spill] sm:$0xff] }
 0x8d2   :  { %v8353_v7 = vpop.eup %8352  ;;  %v6074_v20 = vadd.f32 1.0, %v8351_v18  ;;  %5871 = vmatmul.bf16.vlgmr.msrb.gmra.mxu0 %v12195_v36  ;;  %5897 = vmatmul.bf16.vlgmr.msrb.gmra.mxu2 %v12195_v36  ;;  %v14633_v18 = vld [vmem:[#allocation155_spill] sm:$0xff] }
 0x8d3   :  { %8354 = vpow2.f32 %v7654_v39  ;;  %v12199_v51 = vadd.f32 1.0, %v8353_v7  ;;  %v5800_v50 = vsel %vm2340_vm4, %v5795_v23, %v5799_v4  ;;  %5884 = vmatmul.bf16.vlgmr.msrb.gmra.mxu1 %v12197_v10  ;;  %5910 = vmatmul.bf16.vlgmr.msrb.gmra.mxu3 %v12197_v10  ;;  %v14629_v23 = vld [vmem:[#allocation151_spill] sm:$0xff]  ;;  %v14632_v39 = vld [vmem:[#allocation154_spill] sm:$0xff]  ;;  %v14634_v7 = vld [vmem:[#allocation156_spill] sm:$0xff] }
 0x8d4   :  { %8356 = vrcp.f32 %v6074_v20  ;;  %5803 = vst.msk [vmem:[#allocation2 + $0x6] ss:$8 sm:$0x3] %vm9714_vm5, %v5800_v50  ;;  %5967 = vmatpush.bf16.msrb.mxu0 %v13317_v57  ;;  %5980 = vmatpush.bf16.msrb.mxu1 %v13319_v48  ;;  %v6084_v6 = vand.u32 2147483647, %v6074_v20  ;;  %vm6080_vm14 = vweird.f32 %v6074_v20  ;;  %v14635_v4 = vld [vmem:[#allocation157_spill] sm:$0xff] }
 0x8d5   :  { %8358 = vrcp.f32 %v12199_v51  ;;  %5993 = vmatpush.bf16.msrb.mxu2 %v13523_v44  ;;  %6006 = vmatpush.bf16.msrb.mxu3 %v13320_v61  ;;  %v6103_v28 = vand.u32 2147483647, %v12199_v51  ;;  %vm6099_vm15 = vweird.f32 %v12199_v51  ;;  %v14638_v50 = vld [vmem:[#allocation160_spill] sm:$0xff] }
 0x8d6   :  { %v5842_v13 = vpop.f32.mrf.mxu2  ;;  %v5855_v14 = vpop.f32.mrf.mxu3  ;;  %vm6085_vm2 = vcmp.eq.f32.partialorder %v6084_v6, 8.507059e+37  ;;  %v14653_v6 = vld [vmem:[#allocation175_spill] sm:$0xff] }
 0x8d7   :  { %vm6104_vm3 = vcmp.eq.f32.partialorder %v6103_v28, 8.507059e+37  ;;  %v14639_v13 = vld [vmem:[#allocation161_spill] sm:$0xff]  ;;  %v14640_v14 = vld [vmem:[#allocation162_spill] sm:$0xff] }
 0x8d8   :  { %5968 = vmatpush.bf16.msrb.mxu0 %v13524_v35  ;;  %5981 = vmatpush.bf16.msrb.mxu1 %v13323_v45  ;;  %v6086_v45 = vand.u32 2147483648, %v6074_v20  ;;  %v14655_v28 = vld [vmem:[#allocation177_spill] sm:$0xff] }
 0x8d9   :  { %v8355_v63 = vpop.eup %8354  ;;  %5994 = vmatpush.bf16.msrb.mxu2 %v13525_v43  ;;  %6007 = vmatpush.bf16.msrb.mxu3 %v13324_v24  ;;  %v6105_v24 = vand.u32 2147483648, %v12199_v51 }
 0x8da   :  { %v12213_v46 = vadd.f32 1.0, %v8355_v63  ;;  %v8357_v30 = vpop.eup %8356  ;;  %v14641_v63 = vld [vmem:[#allocation163_spill] sm:$0xff] }
 0x8db   :  { %v8359_v57 = vpop.eup %8358  ;;  %v6076_v48 = vmul.f32 %v8357_v30, %v6074_v20  ;;  %vm6081_vm12 = vweird.f32 %v8357_v30  ;;  %v6106_v62 = vor.u32 1.1754944e-38, %v6105_v24  ;;  %v14636_v20 = vld [vmem:[#allocation158_spill] sm:$0xff]  ;;  %v14651_v24 = vld [vmem:[#allocation173_spill] sm:$0xff] }
 0x8dc   :  { %8360 = vrcp.f32 %v12213_v46  ;;  %v6095_v61 = vmul.f32 %v8359_v57, %v12199_v51  ;;  %5969 = vmatpush.bf16.msrb.mxu0 %v13325_v27  ;;  %5982 = vmatpush.bf16.msrb.mxu1 %v13328_v40  ;;  %vm6100_vm13 = vweird.f32 %v8359_v57  ;;  %vm6082_vm0 = vmor %vm6080_vm14, %vm6081_vm12  ;;  %v6125_v31 = vand.u32 2147483648, %v12213_v46  ;;  %v14637_v51 = vld [vmem:[#allocation159_spill] sm:$0xff] }
 0x8dd   :  { %v6077_v44 = vsub.f32 1.0, %v6076_v48  ;;  %8362 = vtanh.f32 %v5859_v59  ;;  %5995 = vmatpush.bf16.msrb.mxu2 %v13326_v5  ;;  %6008 = vmatpush.bf16.msrb.mxu3 %v13329_v21  ;;  %v6087_v5 = vor.u32 1.1754944e-38, %v6086_v45  ;;  %vm6101_vm1 = vmor %vm6099_vm15, %vm6100_vm13  ;;  %vm6119_vm7 = vweird.f32 %v12213_v46  ;;  %v14644_v59 = vld [vmem:[#allocation166_spill] sm:$0xff]  ;;  %v14646_v48 = vld [vmem:[#allocation168_spill] sm:$0xff] }
 0x8de   :  { %v6096_v35 = vsub.f32 1.0, %v6095_v61  ;;  %v14647_v61 = vld [vmem:[#allocation169_spill] sm:$0xff]  ;;  %v14650_v45 = vld [vmem:[#allocation172_spill] sm:$0xff] }
 0x8df   :  { %v6078_v43 = vmul.f32 %v8357_v30, %v6077_v44  ;;  %v14648_v44 = vld [vmem:[#allocation170_spill] sm:$0xff] }
 0x8e0   :  { %v6097_v29 = vmul.f32 %v8359_v57, %v6096_v35  ;;  %5970 = vmatpush.bf16.msrb.mxu0 %v13330_v49  ;;  %5983 = vmatpush.bf16.msrb.mxu1 %v13526_v60  ;;  %v14649_v35 = vld [vmem:[#allocation171_spill] sm:$0xff] }
 0x8e1   :  { %v6079_v27 = vadd.f32 %v8357_v30, %v6078_v43  ;;  %5996 = vmatpush.bf16.msrb.mxu2 %v13527_v17  ;;  %6009 = vmatpush.bf16.msrb.mxu3 %v13528_v41  ;;  %v14652_v43 = vld [vmem:[#allocation174_spill] sm:$0xff] }
 0x8e2   :  { %v8361_v2 = vpop.eup %8360  ;;  %v6098_v40 = vadd.f32 %v8359_v57, %v6097_v29  ;;  %5923 = vmatmul.bf16.vlgmr.msra.gmra.mxu0 %v12195_v36  ;;  %5949 = vmatmul.bf16.vlgmr.msra.gmra.mxu2 %v12195_v36  ;;  %v14654_v29 = vld [vmem:[#allocation176_spill] sm:$0xff] }
 0x8e3   :  { %v6115_v21 = vmul.f32 %v8361_v2, %v12213_v46  ;;  %v6083_v47 = vsel %vm6082_vm0, %v8357_v30, %v6079_v27  ;;  %v8363_v49 = vpop.eup %8362  ;;  %5936 = vmatmul.bf16.vlgmr.msra.gmra.mxu1 %v12197_v10  ;;  %5962 = vmatmul.bf16.vlgmr.msra.gmra.mxu3 %v12197_v10  ;;  %vm6120_vm6 = vweird.f32 %v8361_v2  ;;  %v14643_v30 = vld [vmem:[#allocation165_spill] sm:$0xff]  ;;  %v14657_v27 = vld [vmem:[#allocation179_spill] sm:$0xff] }
 0x8e4   :  { %v6088_v60 = vsel %vm6085_vm2, %v6087_v5, %v6083_v47  ;;  %v6102_v37 = vsel %vm6101_vm1, %v8359_v57, %v6098_v40  ;;  %5971 = vmatpush.bf16.msrb.mxu0 %v13530_v58  ;;  %5984 = vmatpush.bf16.msrb.mxu1 %v13531_v26  ;;  %v14621_v58 = vld [vmem:[#allocation143_spill] sm:$0xff]  ;;  %v6123_v26 = vand.u32 2147483647, %v12213_v46  ;;  %vm6121_vm8 = vmor %vm6119_vm7, %vm6120_vm6  ;;  %v14642_v46 = vld [vmem:[#allocation164_spill] sm:$0xff] }
 0x8e5   :  { %v6116_v3 = vsub.f32 1.0, %v6115_v21  ;;  %v6107_v17 = vsel %vm6104_vm3, %v6106_v62, %v6102_v37  ;;  %v6130_v8 = vmul.f32 %v8363_v49, %v6088_v60  ;;  %5997 = vmatpush.bf16.msrb.mxu2 %v13533_v56  ;;  %6010 = vmatpush.bf16.msrb.mxu3 %v13742_v38  ;;  %v14622_v38 = vld [vmem:[#allocation144_spill] sm:$0xff]  ;;  %v14645_v57 = vld [vmem:[#allocation167_spill] sm:$0xff]  ;;  %v14659_v40 = vld [vmem:[#allocation181_spill] sm:$0xff] }
 0x8e6   :  { %v6129_v41 = vmul.f32 %v6107_v17, %v11934_v0  ;;  %v14623_v0 = vld [vmem:[#allocation145_spill] sm:$0xff]  ;;  %vm6124_vm9 = vcmp.eq.f32.partialorder %v6123_v26, 8.507059e+37  ;;  %v14658_v5 = vld [vmem:[#allocation180_spill] sm:$0xff]  ;;  %v14660_v21 = vld [vmem:[#allocation182_spill] sm:$0xff] }
 0x8e7   :  { %v6117_v19 = vmul.f32 %v8361_v2, %v6116_v3  ;;  %v14661_v62 = vld [vmem:[#allocation183_spill] sm:$0xff]  ;;  %v14662_v47 = vld [vmem:[#allocation184_spill] sm:$0xff]  ;;  %v14663_v49 = vld [vmem:[#allocation185_spill] sm:$0xff] }
 0x8e8   :  { %v6131_v42 = vadd.f32 %v6130_v8, %v6129_v41  ;;  %5972 = vmatpush.bf16.msrb.mxu0 %v13743_v16  ;;  %5985 = vmatpush.bf16.msrb.mxu1 %v13744_v33  ;;  %v6126_v16 = vor.u32 1.1754944e-38, %v6125_v31  ;;  %v14625_v33 = vld [vmem:[#allocation147_spill] sm:$0xff]  ;;  %v14664_v60 = vld [vmem:[#allocation186_spill] sm:$0xff]  ;;  %v14666_v3 = vld [vmem:[#allocation188_spill] sm:$0xff] }
 0x8e9   :  { %v6118_v25 = vadd.f32 %v8361_v2, %v6117_v19  ;;  %5998 = vmatpush.bf16.msrb.mxu2 %v13745_v11  ;;  %6011 = vmatpush.bf16.msrb.mxu3 %v14621_v58  ;;  %v14665_v37 = vld [vmem:[#allocation187_spill] sm:$0xff]  ;;  %v14667_v17 = vld [vmem:[#allocation189_spill] sm:$0xff]  ;;  %v14668_v8 = vld [vmem:[#allocation190_spill] sm:$0xff] }
 0x8ea   :  { %8364 = vtanh.f32 %v6131_v42  ;;  %v14669_v41 = vld [vmem:[#allocation191_spill] sm:$0xff]  ;;  %v14670_v19 = vld [vmem:[#allocation192_spill] sm:$0xff]  ;;  %v14671_v42 = vld [vmem:[#allocation193_spill] sm:$0xff] }
 0x8eb   :  { %v6122_v56 = vsel %vm6121_vm8, %v8361_v2, %v6118_v25  ;;  %v14656_v2 = vld [vmem:[#allocation178_spill] sm:$0xff]  ;;  %v14673_v31 = vld [vmem:[#allocation196_spill] sm:$0xff]  ;;  %v14677_v26 = vld [vmem:[#allocation201_spill] sm:$0xff] }
 0x8ec   :  { %5973 = vmatpush.bf16.msrb.mxu0 %v14622_v38  ;;  %5986 = vmatpush.bf16.msrb.mxu1 %v14623_v0  ;;  %v6127_v11 = vsel %vm6124_vm9, %v6126_v16, %v6122_v56  ;;  %v14672_v25 = vld [vmem:[#allocation194_spill] sm:$0xff]  ;;  %v14679_v38 = vld [vmem:[#allocation204_spill] sm:$0xff]  ;;  %v14680_v0 = vld [vmem:[#allocation205_spill] sm:$0xff] }
 0x8ed   :  { %5999 = vmatpush.bf16.msrb.mxu2 %v14624_v52  ;;  %6012 = vmatpush.bf16.msrb.mxu3 %v14625_v33  ;;  %v14674_v58 = vld [vmem:[#allocation198_spill] sm:$0xff]  ;;  %v14682_v52 = vld [vmem:[#allocation207_spill] sm:$0xff]  ;;  %v14683_v33 = vld [vmem:[#allocation208_spill] sm:$0xff] }
 0x8ee   :  { %v14678_v56 = vld [vmem:[#allocation202_spill] sm:$0xff] }
 0x8ef   :  { %v14681_v16 = vld [vmem:[#allocation206_spill] sm:$0xff] }
 0x8f0   :  { %v8365_v55 = vpop.eup %8364  ;;  %5974 = vmatpush.bf16.msrb.mxu0 %v14626_v32  ;;  %5987 = vmatpush.bf16.msrb.mxu1 %v14627_v15  ;;  %v14686_v32 = vld [vmem:[#allocation211_spill] sm:$0xff]  ;;  %v14687_v15 = vld [vmem:[#allocation212_spill] sm:$0xff] }
 0x8f1   :  { %v12254_v22 = vmul.f32 %v8365_v55, %v6127_v11  ;;  %6000 = vmatpush.bf16.msrb.mxu2 %v14628_v34  ;;  %6013 = vmatpush.bf16.msrb.mxu3 %v14629_v23  ;;  %v14684_v55 = vld [vmem:[#allocation209_spill] sm:$0xff]  ;;  %v14685_v11 = vld [vmem:[#allocation210_spill] sm:$0xff] }
 0x8f2   :  { %v14688_v34 = vld [vmem:[#allocation213_spill] sm:$0xff]  ;;  %v14689_v23 = vld [vmem:[#allocation214_spill] sm:$0xff] }
 0x8f3   :  { %5975 = vmatmul.bf16.vlgmr.msrb.gmra.mxu0 %v12195_v36  ;;  %5988 = vmatmul.bf16.vlgmr.msrb.gmra.mxu1 %v12197_v10 }
 0x8f4   :  { %6019 = vmatpush.bf16.msra.mxu0 %v14630_v12  ;;  %6032 = vmatpush.bf16.msra.mxu1 %v14631_v53  ;;  %v14690_v12 = vld [vmem:[#allocation216_spill] sm:$0xff]  ;;  %v14691_v53 = vld [vmem:[#allocation217_spill] sm:$0xff] }
 0x8f5   :  { %6045 = vmatpush.bf16.msra.mxu2 %v14632_v39  ;;  %6058 = vmatpush.bf16.msra.mxu3 %v14633_v18  ;;  %v14692_v39 = vld [vmem:[#allocation218_spill] sm:$0xff]  ;;  %v14693_v18 = vld [vmem:[#allocation219_spill] sm:$0xff] }
 0x8f6   :  { %6001 = vmatmul.bf16.vlgmr.msrb.gmra.mxu2 %v12195_v36  ;;  %6014 = vmatmul.bf16.vlgmr.msrb.gmra.mxu3 %v12197_v10 }
 0x8f8   :  { %6020 = vmatpush.bf16.msra.mxu0 %v14634_v7  ;;  %6033 = vmatpush.bf16.msra.mxu1 %v14635_v4  ;;  %v6134_v7 = vpack.c.bf16 %v12254_v22, %v12254_v22  ;;  %v14694_v4 = vld [vmem:[#allocation220_spill] sm:$0xff] }
 0x8f9   :  { %6046 = vmatpush.bf16.msra.mxu2 %v14636_v20  ;;  %6059 = vmatpush.bf16.msra.mxu3 %v14637_v51  ;;  %v14695_v20 = vld [vmem:[#allocation221_spill] sm:$0xff]  ;;  %v14696_v51 = vld [vmem:[#allocation222_spill] sm:$0xff]  ;;  %v14702_v22 = vld [vmem:[#allocation228_spill] sm:$0xff] }
 0x8fc   :  { %6021 = vmatpush.bf16.msra.mxu0 %v14638_v50  ;;  %6034 = vmatpush.bf16.msra.mxu1 %v14639_v13  ;;  %v14697_v50 = vld [vmem:[#allocation223_spill] sm:$0xff]  ;;  %v14698_v13 = vld [vmem:[#allocation224_spill] sm:$0xff] }
 0x8fd   :  { %6047 = vmatpush.bf16.msra.mxu2 %v14640_v14  ;;  %6060 = vmatpush.bf16.msra.mxu3 %v14641_v63  ;;  %v14699_v14 = vld [vmem:[#allocation225_spill] sm:$0xff]  ;;  %v14700_v63 = vld [vmem:[#allocation226_spill] sm:$0xff] }
 0x900   :  { %6022 = vmatpush.bf16.msra.mxu0 %v14642_v46  ;;  %6035 = vmatpush.bf16.msra.mxu1 %v14643_v30  ;;  %v14701_v46 = vld [vmem:[#allocation227_spill] sm:$0xff]  ;;  %v14703_v30 = vld [vmem:[#allocation229_spill] sm:$0xff] }
 0x901   :  { %6048 = vmatpush.bf16.msra.mxu2 %v14644_v59  ;;  %6061 = vmatpush.bf16.msra.mxu3 %v14645_v57  ;;  %v14704_v59 = vld [vmem:[#allocation230_spill] sm:$0xff]  ;;  %v14705_v57 = vld [vmem:[#allocation231_spill] sm:$0xff] }
 0x904   :  { %6023 = vmatpush.bf16.msra.mxu0 %v14646_v48  ;;  %6036 = vmatpush.bf16.msra.mxu1 %v14647_v61  ;;  %v14706_v48 = vld [vmem:[#allocation232_spill] sm:$0xff]  ;;  %v14707_v61 = vld [vmem:[#allocation233_spill] sm:$0xff] }
 0x905   :  { %6049 = vmatpush.bf16.msra.mxu2 %v14648_v44  ;;  %6062 = vmatpush.bf16.msra.mxu3 %v14649_v35  ;;  %v14708_v44 = vld [vmem:[#allocation234_spill] sm:$0xff]  ;;  %v14709_v35 = vld [vmem:[#allocation235_spill] sm:$0xff] }
 0x908   :  { %6024 = vmatpush.bf16.msra.mxu0 %v14650_v45  ;;  %6037 = vmatpush.bf16.msra.mxu1 %v14651_v24  ;;  %v14710_v45 = vld [vmem:[#allocation236_spill] sm:$0xff]  ;;  %v14711_v24 = vld [vmem:[#allocation237_spill] sm:$0xff] }
 0x909   :  { %6050 = vmatpush.bf16.msra.mxu2 %v14652_v43  ;;  %6063 = vmatpush.bf16.msra.mxu3 %v14653_v6  ;;  %v14712_v43 = vld [vmem:[#allocation238_spill] sm:$0xff]  ;;  %v14713_v6 = vld [vmem:[#allocation239_spill] sm:$0xff] }
 0x90c   :  { %6025 = vmatpush.bf16.msra.mxu0 %v14654_v29  ;;  %6038 = vmatpush.bf16.msra.mxu1 %v14655_v28  ;;  %v14714_v29 = vld [vmem:[#allocation240_spill] sm:$0xff]  ;;  %v14715_v28 = vld [vmem:[#allocation241_spill] sm:$0xff] }
 0x90d   :  { %6051 = vmatpush.bf16.msra.mxu2 %v14656_v2  ;;  %6064 = vmatpush.bf16.msra.mxu3 %v14657_v27  ;;  %v14716_v2 = vld [vmem:[#allocation242_spill] sm:$0xff]  ;;  %v14717_v27 = vld [vmem:[#allocation243_spill] sm:$0xff] }
 0x910   :  { %6026 = vmatpush.bf16.msra.mxu0 %v14658_v5  ;;  %6039 = vmatpush.bf16.msra.mxu1 %v14659_v40  ;;  %v14718_v5 = vld [vmem:[#allocation244_spill] sm:$0xff]  ;;  %v14719_v40 = vld [vmem:[#allocation245_spill] sm:$0xff] }
 0x911   :  { %6052 = vmatpush.bf16.msra.mxu2 %v14660_v21  ;;  %6065 = vmatpush.bf16.msra.mxu3 %v14661_v62  ;;  %v14720_v21 = vld [vmem:[#allocation246_spill] sm:$0xff]  ;;  %v14721_v62 = vld [vmem:[#allocation248_spill] sm:$0xff] }
 0x913   :  { %6027 = vmatmul.bf16.vlgmr.msra.gmra.mxu0 %v12195_v36  ;;  %6040 = vmatmul.bf16.vlgmr.msra.gmra.mxu1 %v12197_v10 }
 0x914   :  { %6135 = vmatpush.bf16.msrb.mxu0 %v14662_v47  ;;  %6148 = vmatpush.bf16.msrb.mxu1 %v14663_v49  ;;  %v14722_v47 = vld [vmem:[#allocation249_spill] sm:$0xff]  ;;  %v14723_v49 = vld [vmem:[#allocation250_spill] sm:$0xff] }
 0x915   :  { %6161 = vmatpush.bf16.msrb.mxu2 %v14664_v60  ;;  %6174 = vmatpush.bf16.msrb.mxu3 %v14665_v37  ;;  %v14724_v60 = vld [vmem:[#allocation251_spill] sm:$0xff]  ;;  %v14725_v37 = vld [vmem:[#allocation252_spill] sm:$0xff] }
 0x916   :  { %6053 = vmatmul.bf16.vlgmr.msra.gmra.mxu2 %v12195_v36  ;;  %6066 = vmatmul.bf16.vlgmr.msra.gmra.mxu3 %v12197_v10  ;;  %v14675_v36 = vld [vmem:[#allocation199_spill] sm:$0xff]  ;;  %v14676_v10 = vld [vmem:[#allocation200_spill] sm:$0xff] }
 0x918   :  { %6136 = vmatpush.bf16.msrb.mxu0 %v14666_v3  ;;  %6149 = vmatpush.bf16.msrb.mxu1 %v14667_v17  ;;  %v14726_v17 = vld [vmem:[#allocation253_spill] sm:$0xff] }
 0x919   :  { %6162 = vmatpush.bf16.msrb.mxu2 %v14668_v8  ;;  %6175 = vmatpush.bf16.msrb.mxu3 %v14669_v41 }
 0x91c   :  { %6137 = vmatpush.bf16.msrb.mxu0 %v14670_v19  ;;  %6150 = vmatpush.bf16.msrb.mxu1 %v14671_v42 }
 0x91d   :  { %6163 = vmatpush.bf16.msrb.mxu2 %v14672_v25  ;;  %6176 = vmatpush.bf16.msrb.mxu3 %v14673_v31  ;;  %v14727_v25 = vld [vmem:[#allocation247_spill] sm:$0xff] }
 0x920   :  { %6138 = vmatpush.bf16.msrb.mxu0 %v14674_v58  ;;  %6151 = vmatpush.bf16.msrb.mxu1 %v14675_v36 }
 0x921   :  { %6164 = vmatpush.bf16.msrb.mxu2 %v14676_v10  ;;  %6177 = vmatpush.bf16.msrb.mxu3 %v14677_v26 }
 0x924   :  { %6139 = vmatpush.bf16.msrb.mxu0 %v14678_v56  ;;  %6152 = vmatpush.bf16.msrb.mxu1 %v14679_v38 }
 0x925   :  { %6165 = vmatpush.bf16.msrb.mxu2 %v14680_v0  ;;  %6178 = vmatpush.bf16.msrb.mxu3 %v14681_v16  ;;  %v14728_v16 = vld [vmem:[#allocation255_spill] sm:$0xff] }
 0x928   :  { %6140 = vmatpush.bf16.msrb.mxu0 %v14682_v52  ;;  %6153 = vmatpush.bf16.msrb.mxu1 %v14683_v33 }
 0x929   :  { %6166 = vmatpush.bf16.msrb.mxu2 %v14684_v55  ;;  %6179 = vmatpush.bf16.msrb.mxu3 %v14685_v11 }
 0x92c   :  { %6141 = vmatpush.bf16.msrb.mxu0 %v14686_v32  ;;  %6154 = vmatpush.bf16.msrb.mxu1 %v14687_v15  ;;  %v14729_v32 = vld [vmem:[#allocation254_spill] sm:$0xff] }
 0x92d   :  { %6167 = vmatpush.bf16.msrb.mxu2 %v14688_v34  ;;  %6180 = vmatpush.bf16.msrb.mxu3 %v14689_v23 }
 0x930   :  { %6142 = vmatpush.bf16.msrb.mxu0 %v14690_v12  ;;  %6155 = vmatpush.bf16.msrb.mxu1 %v14691_v53 }
 0x931   :  { %6168 = vmatpush.bf16.msrb.mxu2 %v14692_v39  ;;  %6181 = vmatpush.bf16.msrb.mxu3 %v14693_v18 }
 0x933   :  { %6143 = vmatmul.bf16.vlgmr.msrb.gmra.mxu0 %v6134_v7  ;;  %6156 = vmatmul.bf16.vlgmr.msrb.gmra.mxu1 %v6134_v7 }
 0x934   :  { %6187 = vmatpush.bf16.msra.mxu0 %v14694_v4  ;;  %6200 = vmatpush.bf16.msra.mxu1 %v14695_v20  ;;  %v14730_v20 = vld [vmem:[#allocation257_spill] sm:$0xff] }
 0x935   :  { %6213 = vmatpush.bf16.msra.mxu2 %v14696_v51  ;;  %6226 = vmatpush.bf16.msra.mxu3 %v14697_v50 }
 0x936   :  { %6169 = vmatmul.bf16.vlgmr.msrb.gmra.mxu2 %v6134_v7  ;;  %6182 = vmatmul.bf16.vlgmr.msrb.gmra.mxu3 %v6134_v7 }
 0x938   :  { %6188 = vmatpush.bf16.msra.mxu0 %v14698_v13  ;;  %6201 = vmatpush.bf16.msra.mxu1 %v14699_v14 }
 0x939   :  { %6214 = vmatpush.bf16.msra.mxu2 %v14700_v63  ;;  %6227 = vmatpush.bf16.msra.mxu3 %v14701_v46  ;;  %v14731_v63 = vld [vmem:[#allocation256_spill] sm:$0xff] }
 0x93c   :  { %6189 = vmatpush.bf16.msra.mxu0 %v14702_v22  ;;  %6202 = vmatpush.bf16.msra.mxu1 %v14703_v30 }
 0x93d   :  { %6215 = vmatpush.bf16.msra.mxu2 %v14704_v59  ;;  %6228 = vmatpush.bf16.msra.mxu3 %v14705_v57 }
 0x940   :  { %6190 = vmatpush.bf16.msra.mxu0 %v14706_v48  ;;  %6203 = vmatpush.bf16.msra.mxu1 %v14707_v61 }
 0x941   :  { %6216 = vmatpush.bf16.msra.mxu2 %v14708_v44  ;;  %6229 = vmatpush.bf16.msra.mxu3 %v14709_v35  ;;  %v14732_v35 = vld [vmem:[#allocation258_spill] sm:$0xff] }
 0x944   :  { %6191 = vmatpush.bf16.msra.mxu0 %v14710_v45  ;;  %6204 = vmatpush.bf16.msra.mxu1 %v14711_v24 }
 0x945   :  { %6217 = vmatpush.bf16.msra.mxu2 %v14712_v43  ;;  %6230 = vmatpush.bf16.msra.mxu3 %v14713_v6 }
 0x948   :  { %6192 = vmatpush.bf16.msra.mxu0 %v14714_v29  ;;  %6205 = vmatpush.bf16.msra.mxu1 %v14715_v28 }
 0x949   :  { %6218 = vmatpush.bf16.msra.mxu2 %v14716_v2  ;;  %6231 = vmatpush.bf16.msra.mxu3 %v14717_v27 }
 0x94c   :  { %6193 = vmatpush.bf16.msra.mxu0 %v14718_v5  ;;  %6206 = vmatpush.bf16.msra.mxu1 %v14719_v40 }
 0x94d   :  { %6219 = vmatpush.bf16.msra.mxu2 %v14720_v21  ;;  %6232 = vmatpush.bf16.msra.mxu3 %v14721_v62 }
 0x94f   :  { %v5872_v3 = vpop.f32.mrf.mxu0 }
 0x950   :  { %6194 = vmatpush.bf16.msra.mxu0 %v14722_v47  ;;  %6207 = vmatpush.bf16.msra.mxu1 %v14723_v49  ;;  %v5873_v8 = vadd.f32 %v5872_v3, %v14726_v17  ;;  %v5885_v41 = vpop.f32.mrf.mxu1 }
 0x951   :  { %6220 = vmatpush.bf16.msra.mxu2 %v14724_v60  ;;  %6233 = vmatpush.bf16.msra.mxu3 %v14725_v37 }
 0x952   :  { %v5886_v19 = vadd.f32 %v5885_v41, %v5873_v8 }
 0x953   :  { %6195 = vmatmul.bf16.vlgmr.msra.gmra.mxu0 %v6134_v7  ;;  %6208 = vmatmul.bf16.vlgmr.msra.gmra.mxu1 %v6134_v7 }
 0x954   :  { %6221 = vmatmul.bf16.vlgmr.msra.gmra.mxu2 %v6134_v7  ;;  %6234 = vmatmul.bf16.vlgmr.msra.gmra.mxu3 %v6134_v7 }
 0x955   :  { %v5898_v42 = vpop.f32.mrf.mxu2 }
 0x956   :  { %v5899_v31 = vadd.f32 %v5898_v42, %v14727_v25  ;;  %v5911_v58 = vpop.f32.mrf.mxu3 }
 0x957   :  { %v5874_v36 = vpop.f32.mrf.mxu0 }
 0x958   :  { %v5912_v10 = vadd.f32 %v5911_v58, %v5899_v31  ;;  %v5887_v26 = vpop.f32.mrf.mxu1 }
 0x95d   :  { %v5900_v56 = vpop.f32.mrf.mxu2 }
 0x95e   :  { %v5913_v38 = vpop.f32.mrf.mxu3 }
 0x95f   :  { %v5924_v0 = vpop.f32.mrf.mxu0 }
 0x960   :  { %v5925_v52 = vadd.f32 %v5924_v0, %v14728_v16  ;;  %v5937_v33 = vpop.f32.mrf.mxu1 }
 0x962   :  { %v5938_v55 = vadd.f32 %v5937_v33, %v5925_v52  ;;  %v7988_v33 = vld [vmem:[#allocation15 + $0x38] sm:$0xff] }
 0x963   :  { %6517 = vmatpush.bf16.msrb.mxu0 %v7988_v33 }
 0x965   :  { %v5950_v11 = vpop.f32.mrf.mxu2 }
 0x966   :  { %v5951_v15 = vadd.f32 %v5950_v11, %v14729_v32  ;;  %v5963_v34 = vpop.f32.mrf.mxu3 }
 0x967   :  { %v5926_v23 = vpop.f32.mrf.mxu0 }
 0x968   :  { %v5964_v12 = vadd.f32 %v5963_v34, %v5951_v15  ;;  %v5939_v53 = vpop.f32.mrf.mxu1  ;;  %v14733_v15 = vld [vmem:[#allocation259_spill] sm:$0xff] }
 0x96d   :  { %v5952_v39 = vpop.f32.mrf.mxu2 }
 0x96e   :  { %v5965_v18 = vpop.f32.mrf.mxu3 }
 0x96f   :  { %v7987_v18 = vld [vmem:[#allocation15 + $0x30] sm:$0xff] }
 0x970   :  { %v5976_v7 = vpop.f32.mrf.mxu0  ;;  %v5989_v4 = vpop.f32.mrf.mxu1  ;;  %6518 = vmatpush.bf16.msrb.mxu0 %v7987_v18 }
 0x971   :  { %v5977_v51 = vadd.f32 %v5976_v7, %v14730_v20  ;;  %v7995_v7 = vld [vmem:[#allocation15 + $0x70] sm:$0xff] }
 0x973   :  { %v12371_v50 = vadd.f32 %v5989_v4, %v5977_v51 }
 0x978   :  { %v5978_v22 = vpop.f32.mrf.mxu0  ;;  %v5991_v30 = vpop.f32.mrf.mxu1 }
 0x979   :  { %v6002_v13 = vpop.f32.mrf.mxu2  ;;  %v6015_v14 = vpop.f32.mrf.mxu3 }
 0x97a   :  { %v6003_v46 = vadd.f32 %v6002_v13, %v14731_v63 }
 0x97c   :  { %v12374_v59 = vadd.f32 %v6015_v14, %v6003_v46 }
 0x981   :  { %v6004_v57 = vpop.f32.mrf.mxu2  ;;  %v6017_v48 = vpop.f32.mrf.mxu3 }
 0x982   :  { %v7986_v48 = vld [vmem:[#allocation15 + $0x28] sm:$0xff] }
 0x983   :  { %6519 = vmatpush.bf16.msrb.mxu0 %v7986_v48  ;;  %v7989_v48 = vld [vmem:[#allocation15 + $0x40] sm:$0xff] }
 0x990   :  { %v6028_v61 = vpop.f32.mrf.mxu0  ;;  %v6041_v44 = vpop.f32.mrf.mxu1 }
 0x991   :  { %v6029_v45 = vadd.f32 %v6028_v61, %v14732_v35  ;;  %v7994_v61 = vld [vmem:[#allocation15 + $0x68] sm:$0xff] }
 0x993   :  { %v12377_v24 = vadd.f32 %v6041_v44, %v6029_v45 }
 0x998   :  { %v6030_v29 = vpop.f32.mrf.mxu0  ;;  %v6043_v28 = vpop.f32.mrf.mxu1 }
 0x999   :  { %v6054_v43 = vpop.f32.mrf.mxu2  ;;  %v6067_v6 = vpop.f32.mrf.mxu3 }
 0x99a   :  { %v6055_v34 = vadd.f32 %v6054_v43, %v14733_v15 }
 0x99c   :  { %v12402_v20 = vadd.f32 %v6067_v6, %v6055_v34 }
 0x9a1   :  { %v6056_v2 = vpop.f32.mrf.mxu2  ;;  %v6069_v27 = vpop.f32.mrf.mxu3 }
 0x9b0   :  { %v6144_v5 = vpop.f32.mrf.mxu0  ;;  %v6157_v40 = vpop.f32.mrf.mxu1 }
 0x9b1   :  { %v6239_v21 = vadd.f32 %v6144_v5, %v5886_v19  ;;  %v6240_v62 = vadd.f32 %v6157_v40, %v5912_v10 }
 0x9b3   :  { %v7655_v47 = vmul.f32 -1.442695, %v6239_v21  ;;  %v7656_v49 = vmul.f32 -1.442695, %v6240_v62 }
 0x9b5   :  { %8366 = vpow2.f32 %v7655_v47 }
 0x9b6   :  { %8368 = vpow2.f32 %v7656_v49  ;;  %v7985_v49 = vld [vmem:[#allocation15 + $0x20] sm:$0xff] }
 0x9b7   :  { %6520 = vmatpush.bf16.msrb.mxu0 %v7985_v49 }
 0x9b8   :  { %v6146_v8 = vpop.f32.mrf.mxu0  ;;  %v6159_v41 = vpop.f32.mrf.mxu1 }
 0x9b9   :  { %v6170_v60 = vpop.f32.mrf.mxu2  ;;  %v6183_v37 = vpop.f32.mrf.mxu3 }
 0x9ba   :  { %v6241_v3 = vadd.f32 %v6170_v60, %v5938_v55  ;;  %v6242_v17 = vadd.f32 %v6183_v37, %v5964_v12  ;;  %v7996_v55 = vld [vmem:[#allocation15 + $0x78] sm:$0xff]  ;;  %v7993_v60 = vld [vmem:[#allocation15 + $0x60] sm:$0xff] }
 0x9bb   :  { %v8367_v31 = vpop.eup %8366  ;;  %6530 = vmatpush.bf16.msrb.mxu1 %v7996_v55 }
 0x9bc   :  { %v7657_v42 = vmul.f32 -1.442695, %v6241_v3  ;;  %v7658_v25 = vmul.f32 -1.442695, %v6242_v17  ;;  %v8369_v58 = vpop.eup %8368  ;;  %v12379_v36 = vadd.f32 1.0, %v8367_v31 }
 0x9bd   :  { %v12381_v26 = vadd.f32 1.0, %v8369_v58 }
 0x9be   :  { %8370 = vpow2.f32 %v7657_v42  ;;  %v6266_v39 = vand.u32 2147483648, %v12379_v36  ;;  %v6264_v4 = vand.u32 2147483647, %v12379_v36  ;;  %vm6260_vm10 = vweird.f32 %v12379_v36 }
 0x9bf   :  { %8372 = vpow2.f32 %v7658_v25  ;;  %6531 = vmatpush.bf16.msrb.mxu1 %v7995_v7  ;;  %vm6275_vm11 = vweird.f32 %v12381_v26  ;;  %v6279_v30 = vand.u32 2147483647, %v12381_v26  ;;  %v6281_v57 = vand.u32 2147483648, %v12381_v26 }
 0x9c0   :  { %8374 = vrcp.f32 %v12379_v36  ;;  %v6267_v22 = vor.u32 1.1754944e-38, %v6266_v39  ;;  %vm12421_vm13 = vcmp.eq.f32.partialorder %v6264_v4, 8.507059e+37 }
 0x9c1   :  { %8376 = vrcp.f32 %v12381_v26  ;;  %v6172_v19 = vpop.f32.mrf.mxu2  ;;  %v6185_v10 = vpop.f32.mrf.mxu3  ;;  %vm12444_vm2 = vcmp.eq.f32.partialorder %v6279_v30, 8.507059e+37  ;;  %v6282_v41 = vor.u32 1.1754944e-38, %v6281_v57 }
 0x9c3   :  { %6532 = vmatpush.bf16.msrb.mxu1 %v7994_v61 }
 0x9c4   :  { %v8371_v56 = vpop.eup %8370 }
 0x9c5   :  { %v8373_v38 = vpop.eup %8372  ;;  %v12385_v0 = vadd.f32 1.0, %v8371_v56 }
 0x9c6   :  { %v12387_v16 = vpop.eup %8374  ;;  %v12389_v52 = vadd.f32 1.0, %v8373_v38  ;;  %v7984_v38 = vld [vmem:[#allocation15 + $0x18] sm:$0xff] }
 0x9c7   :  { %v12391_v11 = vpop.eup %8376  ;;  %v6256_v32 = vmul.f32 %v12387_v16, %v12379_v36  ;;  %8378 = vrcp.f32 %v12385_v0  ;;  %v6304_v44 = vand.u32 2147483648, %v12385_v0  ;;  %vm6261_vm12 = vweird.f32 %v12387_v16  ;;  %6533 = vmatpush.bf16.msrb.mxu1 %v7993_v60  ;;  %6521 = vmatpush.bf16.msrb.mxu0 %v7984_v38  ;;  %v8013_v38 = vld [vmem:[%s12503_s8] ss:$0 sm:$0xff] }
 0x9c8   :  { %v6271_v23 = vmul.f32 %v12391_v11, %v12381_v26  ;;  %8380 = vrcp.f32 %v12389_v52  ;;  %v6319_v45 = vand.u32 2147483648, %v12389_v52  ;;  %v6302_v27 = vand.u32 2147483647, %v12385_v0  ;;  %vm12440_vm1 = vmor %vm6260_vm10, %vm6261_vm12 }
 0x9c9   :  { %v6257_v12 = vsub.f32 1.0, %v6256_v32  ;;  %vm6276_vm14 = vweird.f32 %v12391_v11  ;;  %vm6298_vm3 = vweird.f32 %v12385_v0  ;;  %vm6313_vm6 = vweird.f32 %v12389_v52 }
 0x9ca   :  { %v6272_v53 = vsub.f32 1.0, %v6271_v23  ;;  %vm12455_vm7 = vmor %vm6275_vm11, %vm6276_vm14  ;;  %v6305_v42 = vor.u32 1.1754944e-38, %v6304_v44  ;;  %v6320_v26 = vor.u32 1.1754944e-38, %v6319_v45  ;;  %vm6303_vm10 = vcmp.eq.f32.partialorder %v6302_v27, 8.507059e+37 }
 0x9cb   :  { %v6258_v13 = vmul.f32 %v12387_v16, %v6257_v12 }
 0x9cc   :  { %v6273_v14 = vmul.f32 %v12391_v11, %v6272_v53 }
 0x9cd   :  { %v12404_v51 = vpop.eup %8378  ;;  %v6259_v21 = vadd.f32 %v12387_v16, %v6258_v13  ;;  %v7991_v13 = vld [vmem:[#allocation15 + $0x50] sm:$0xff] }
 0x9ce   :  { %v12410_v63 = vpop.eup %8380  ;;  %v6294_v46 = vmul.f32 %v12404_v51, %v12385_v0  ;;  %v6274_v62 = vadd.f32 %v12391_v11, %v6273_v14  ;;  %vm6299_vm15 = vweird.f32 %v12404_v51  ;;  %v7992_v0 = vld [vmem:[#allocation15 + $0x58] sm:$0xff] }
 0x9cf   :  { %v6309_v35 = vmul.f32 %v12410_v63, %v12389_v52  ;;  %vm6314_vm0 = vweird.f32 %v12410_v63  ;;  %vm6300_vm8 = vmor %vm6298_vm3, %vm6299_vm15  ;;  %v6263_v25 = vsel %vm12440_vm1, %v12387_v16, %v6259_v21  ;;  %6534 = vmatpush.bf16.msrb.mxu1 %v7992_v0 }
 0x9d0   :  { %v6196_v43 = vpop.f32.mrf.mxu0  ;;  %v6209_v29 = vpop.f32.mrf.mxu1  ;;  %v6295_v28 = vsub.f32 1.0, %v6294_v46  ;;  %v6278_v31 = vsel %vm12455_vm7, %v12391_v11, %v6274_v62  ;;  %vm12470_vm9 = vmor %vm6313_vm6, %vm6314_vm0  ;;  %v6268_v34 = vsel %vm12421_vm13, %v6267_v22, %v6263_v25  ;;  %v7982_v46 = vld [vmem:[#allocation15 + $0x8] sm:$0xff] }
 0x9d1   :  { %v6243_v2 = vadd.f32 %v6196_v43, %v12371_v50  ;;  %v6244_v5 = vadd.f32 %v6209_v29, %v12374_v59  ;;  %v6310_v40 = vsub.f32 1.0, %v6309_v35  ;;  %v6317_v50 = vand.u32 2147483647, %v12389_v52  ;;  %v7990_v22 = vld [vmem:[#allocation15 + $0x48] sm:$0xff] }
 0x9d2   :  { %v6296_v47 = vmul.f32 %v12404_v51, %v6295_v28  ;;  %v6283_v23 = vsel %vm12444_vm2, %v6282_v41, %v6278_v31 }
 0x9d3   :  { %8382 = vtanh.f32 %v6243_v2  ;;  %v6311_v59 = vmul.f32 %v12410_v63, %v6310_v40  ;;  %vm6318_vm11 = vcmp.eq.f32.partialorder %v6317_v50, 8.507059e+37  ;;  %6535 = vmatpush.bf16.msrb.mxu1 %v7991_v13 }
 0x9d4   :  { %8384 = vtanh.f32 %v6244_v5  ;;  %v6297_v17 = vadd.f32 %v12404_v51, %v6296_v47 }
 0x9d5   :  { %v6312_v58 = vadd.f32 %v12410_v63, %v6311_v59 }
 0x9d6   :  { %v6301_v19 = vsel %vm6300_vm8, %v12404_v51, %v6297_v17  ;;  %v7983_v51 = vld [vmem:[#allocation15 + $0x10] sm:$0xff] }
 0x9d7   :  { %v6222_v10 = vpop.f32.mrf.mxu2  ;;  %v6235_v56 = vpop.f32.mrf.mxu3  ;;  %v6306_v16 = vsel %vm6303_vm10, %v6305_v42, %v6301_v19  ;;  %v6316_v52 = vsel %vm12470_vm9, %v12410_v63, %v6312_v58  ;;  %6522 = vmatpush.bf16.msrb.mxu0 %v7983_v51  ;;  %6536 = vmatpush.bf16.msrb.mxu1 %v7990_v22 }
 0x9d8   :  { %v6245_v33 = vadd.f32 %v6222_v10, %v12377_v24  ;;  %v6246_v55 = vadd.f32 %v6235_v56, %v12402_v20  ;;  %v6198_v11 = vpop.f32.mrf.mxu0  ;;  %v6211_v32 = vpop.f32.mrf.mxu1  ;;  %v6321_v12 = vsel %vm6318_vm11, %v6320_v26, %v6316_v52  ;;  %v6363_v39 = vmul.f32 %v6306_v16, %v12186_v54  ;;  %v7981_v54 = vld [vmem:[#allocation15] sm:$0xff] }
 0x9d9   :  { %v8383_v15 = vpop.eup %8382  ;;  %v6364_v4 = vmul.f32 %v6321_v12, %v12188_v1 }
 0x9da   :  { %v8385_v53 = vpop.eup %8384  ;;  %v6365_v18 = vmul.f32 %v8383_v15, %v6268_v34  ;;  %v7659_v7 = vmul.f32 -1.442695, %v6245_v33  ;;  %v7660_v24 = vmul.f32 -1.442695, %v6246_v55 }
 0x9db   :  { %v6366_v20 = vmul.f32 %v8385_v53, %v6283_v23  ;;  %6523 = vmatpush.bf16.msrb.mxu0 %v7982_v46  ;;  %6537 = vmatpush.bf16.msrb.mxu1 %v7989_v48 }
 0x9dc   :  { %v6367_v14 = vadd.f32 %v6365_v18, %v6363_v39  ;;  %8386 = vpow2.f32 %v7659_v7 }
 0x9dd   :  { %v6368_v63 = vadd.f32 %v6366_v20, %v6364_v4  ;;  %8388 = vpow2.f32 %v7660_v24 }
 0x9df   :  { %v6224_v30 = vpop.f32.mrf.mxu2  ;;  %v6237_v57 = vpop.f32.mrf.mxu3  ;;  %6524 = vmatpush.bf16.msrb.mxu0 %v7981_v54 }
 0x9e2   :  { %v8387_v61 = vpop.eup %8386 }
 0x9e3   :  { %v8389_v44 = vpop.eup %8388  ;;  %v6331_v1 = vadd.f32 1.0, %v8387_v61 }
 0x9e4   :  { %v6332_v35 = vadd.f32 1.0, %v8389_v44 }
 0x9e5   :  { %8390 = vrcp.f32 %v6331_v1  ;;  %v6344_v2 = vand.u32 2147483648, %v6331_v1  ;;  %v6342_v40 = vand.u32 2147483647, %v6331_v1  ;;  %vm6338_vm14 = vweird.f32 %v6331_v1 }
 0x9e6   :  { %8392 = vrcp.f32 %v6332_v35  ;;  %v6359_v21 = vand.u32 2147483648, %v6332_v35  ;;  %v6357_v47 = vand.u32 2147483647, %v6332_v35  ;;  %vm6353_vm0 = vweird.f32 %v6332_v35 }
 0x9e7   :  { %8394 = vtanh.f32 %v6367_v14  ;;  %v6345_v49 = vor.u32 1.1754944e-38, %v6344_v2  ;;  %vm6343_vm1 = vcmp.eq.f32.partialorder %v6342_v40, 8.507059e+37 }
 0x9e8   :  { %8396 = vtanh.f32 %v6368_v63  ;;  %v6360_v3 = vor.u32 1.1754944e-38, %v6359_v21  ;;  %vm6358_vm3 = vcmp.eq.f32.partialorder %v6357_v47, 8.507059e+37 }
 0x9eb   :  { %v8391_v45 = vpop.eup %8390 }
 0x9ec   :  { %v8393_v43 = vpop.eup %8392  ;;  %v6334_v6 = vmul.f32 %v8391_v45, %v6331_v1  ;;  %vm6339_vm12 = vweird.f32 %v8391_v45 }
 0x9ed   :  { %v6349_v29 = vmul.f32 %v8393_v43, %v6332_v35  ;;  %vm6354_vm13 = vweird.f32 %v8393_v43  ;;  %vm6340_vm15 = vmor %vm6338_vm14, %vm6339_vm12  ;;  %v8395_v59 = vpop.eup %8394 }
 0x9ee   :  { %v6335_v28 = vsub.f32 1.0, %v6334_v6  ;;  %vm6355_vm2 = vmor %vm6353_vm0, %vm6354_vm13  ;;  %v8397_v17 = vpop.eup %8396 }
 0x9ef   :  { %v6350_v27 = vsub.f32 1.0, %v6349_v29 }
 0x9f0   :  { %v6336_v5 = vmul.f32 %v8391_v45, %v6335_v28 }
 0x9f1   :  { %v6351_v62 = vmul.f32 %v8393_v43, %v6350_v27 }
 0x9f2   :  { %v6337_v50 = vadd.f32 %v8391_v45, %v6336_v5 }
 0x9f3   :  { %v6352_v60 = vadd.f32 %v8393_v43, %v6351_v62 }
 0x9f4   :  { %v6341_v37 = vsel %vm6340_vm15, %v8391_v45, %v6337_v50 }
 0x9f5   :  { %v6346_v8 = vsel %vm6343_vm1, %v6345_v49, %v6341_v37  ;;  %v6356_v41 = vsel %vm6355_vm2, %v8393_v43, %v6352_v60 }
 0x9f6   :  { %v6371_v42 = vmul.f32 %v8395_v59, %v6346_v8  ;;  %v6361_v25 = vsel %vm6358_vm3, %v6360_v3, %v6356_v41 }
 0x9f7   :  { %v6372_v31 = vmul.f32 %v8397_v17, %v6361_v25 }
 0x9f9   :  { %v6375_v58 = vrot.slane %v6372_v31, 7 }
 0x9fb   :  { %v6376_v36 = vsel %vm2340_vm4, %v6371_v42, %v6375_v58 }
 0x9fc   :  { %6379 = vst.msk [vmem:[#allocation2 + $0x7] ss:$8 sm:$0x3] %vm9714_vm5, %v6376_v36 }
 0xa03   :  { %v6381_v26 = vld [vmem:[#allocation2] sm:$0xff]  ;;  %v6382_v19 = vld [vmem:[#allocation2 + $0x8] sm:$0xff] }
 0xa04   :  { %v6383_v10 = vpack.c.bf16 %v6381_v26, %v6381_v26  ;;  %v6384_v56 = vpack.c.bf16 %v6382_v19, %v6382_v19 }
 0xa06   :  { %6525 = vmatmul.bf16.vlgmr.msrb.gmra.mxu0 %v6383_v10  ;;  %6538 = vmatmul.bf16.vlgmr.msrb.gmra.mxu1 %v6384_v56 }
 0xa83   :  { %v6526_v0 = vpop.f32.mrf.mxu0  ;;  %v6539_v16 = vpop.f32.mrf.mxu1 }
 0xa84   :  { %v6527_v9 = vadd.f32 %v8013_v38, %v6526_v0 }
 0xa86   :  { %v6540_v52 = vadd.f32 %v6539_v16, %v6527_v9 }
 0xa88   :  { %6543 = vst [vmem:[#allocation17] sm:$0xff] %v6540_v52 }
 0xa89   :  { %6554 = dma.vmem_to_hbm [thread:$0]  %s6550_s27, 128, %s6552_s30, [#allocation5]  }
 0xa8b   :  { %v6528_v33 = vpop.f32.mrf.mxu0  ;;  %v6541_v55 = vpop.f32.mrf.mxu1 }
 0xa8c   :  { %8624 = dma.done.wait [#allocation5], 128  }
 0xa8d   :  { %8625 = vsyncadd [#allocation5], 4294967168 }
 0xa8e   :  { %6559 = vsyncpa [#allocation4], 1 }
 0xa8f   :  { %6560 = vsyncpa [#allocation7], 1 }
 0xa90   :  { %6561 = vsyncpa [#allocation10], 1 }
 0xa91   :  { %6562 = vsyncpa [#allocation13], 1 }
 0xa92   :  { %6563 = vsyncpa [#allocation16], 1 }
 0xa93   :  { %6564 = vsyncpa [#allocation5], 1 }

</bundles_post_ra>
